<compile_context>
chip_gen: v7x
topology: tpu7x:2x2x1
jax: 0.10.0
libtpu: 0.0.40
codegen_flags: <defaults>
</compile_context>

<pallas_src>
import math

import jax
import jax.numpy as jnp
from jax import lax
from jax.experimental import pallas as pl
from jax.experimental.pallas import tpu as pltpu

EPS = 1e-5
LANE = 128


def _pad128(c):
    return -(-c // LANE) * LANE


def _vmem_limit_bytes():
    """Generation-aware VMEM budget (v7x: 64 MiB/TC, v5e/v6e: 128 MiB)."""
    try:
        cap = int(pltpu.get_tpu_info().vmem_capacity_bytes)
    except Exception:
        cap = 64 * 1024 * 1024
    return max(32 * 1024 * 1024, min(cap - 12 * 1024 * 1024, 112 * 1024 * 1024))


def _compiler_params(vmem_limit):
    return pltpu.CompilerParams(
        dimension_semantics=("parallel", "parallel"),
        vmem_limit_bytes=int(vmem_limit),
    )


def _largest_divisor(n, cap, even=False, fits=None):
    """Largest divisor of n that is <= cap, (optionally even) and fits VMEM."""
    best = 2 if even else 1
    for d in range(1, min(n, cap) + 1):
        if n % d:
            continue
        if even and d % 2:
            continue
        if fits is not None and not fits(d):
            continue
        best = d
    return best


# ----------------------------- Pallas kernels ------------------------------

def _convt_kernel(x_ref, w_ref, b_ref, o_ref):
    """ConvTranspose2d(k=2, s=2) for TH input rows, interleaved output layout.

    x: (1, TH, w, Cin_p) bf16
    w: (2, Cin_p, 2*Co_p) bf16     per-di weight, cols ordered (dj, co)
    b: (2, 1, 2*Co_p) f32          bias tiled across (dj, co)
    o: (1, TH, 2, w, 2*Co_p) bf16  -> reshape in wrapper to (N, 2h, 2w, Co_p), free
    """
    th, w_, cin = x_ref.shape[1], x_ref.shape[2], x_ref.shape[3]
    x = x_ref[0].reshape(th * w_, cin)                       # M = TH*w
    for di in range(2):
        y = jnp.dot(x, w_ref[di], preferred_element_type=jnp.float32) + b_ref[di]
        o_ref[0, :, di] = y.reshape(th, w_, -1).astype(o_ref.dtype)


def _make_conv3x3_kernel(n_streams, th, W, fuse_bn_relu):
    """3x3 conv (pad=1) over TH output rows; multi-stream = fused channel concat.

    refs (per stream s): main_s (1, TH, W+2, Cs), halo_s (1, 2, W+2, Cs)   bf16
         if fuse_bn_relu, per stream: scale_s (1, Cs), shift_s (1, Cs)     f32
         per stream: w_s (3, 3, Cs, Cout_p)                                bf16
         y  (1, TH, W, Cout_p)         conv output (pre-BN, bf16)
         st (1, 1, 2, Cout_p) f32      per-tile [sum, sum_sq] for BN
    """
    def kernel(*refs):
        k = 0
        views = refs[k:k + 2 * n_streams]; k += 2 * n_streams
        if fuse_bn_relu:
            bns = refs[k:k + 2 * n_streams]; k += 2 * n_streams
        ws = refs[k:k + n_streams]; k += n_streams
        y_ref, st_ref = refs[k], refs[k + 1]
        cout_p = y_ref.shape[-1]
        i = pl.program_id(1)
        last = pl.num_programs(1) - 1

        acc = jnp.zeros((th * W, cout_p), jnp.float32)
        for s in range(n_streams):
            main = views[2 * s][0]                            # (TH,  W+2, Cs)
            halo = views[2 * s + 1][0]                        # (2,   W+2, Cs)
            win = jnp.concatenate([main, halo], axis=0)       # (TH+2, W+2, Cs)
            if fuse_bn_relu:
                # BN-apply + ReLU of the previous stage, fused on the input;
                # halo / padding positions are forced back to zero.
                sc = bns[2 * s][...]                          # (1, Cs)
                sh = bns[2 * s + 1][...]
                act = jnp.maximum(win.astype(jnp.float32) * sc + sh, 0.0)
                row = lax.broadcasted_iota(jnp.int32, (th + 2, W + 2, 1), 0)
                col = lax.broadcasted_iota(jnp.int32, (th + 2, W + 2, 1), 1)
                valid = (col >= 1) & (col <= W)
                valid &= jnp.logical_or(row != 0, i != 0)
                valid &= jnp.logical_or(row != th + 1, i != last)
                win = jnp.where(valid, act, 0.0).astype(jnp.bfloat16)
            w_ref = ws[s]
            for dy in range(3):
                rows = win[dy:dy + th]                        # (TH, W+2, Cs)
                for dx in range(3):
                    lhs = rows[:, dx:dx + W, :].reshape(th * W, -1)
                    acc += jnp.dot(lhs, w_ref[dy, dx],
                                   preferred_element_type=jnp.float32)

        y_ref[0] = acc.reshape(th, W, cout_p).astype(y_ref.dtype)
        st_ref[0, 0, 0:1, :] = jnp.sum(acc, axis=0, keepdims=True)
        st_ref[0, 0, 1:2, :] = jnp.sum(acc * acc, axis=0, keepdims=True)
    return kernel


def _bn_relu_kernel(y_ref, sc_ref, sh_ref, o_ref):
    """Per-tile BN apply (folded to scale/shift) + ReLU."""
    z = y_ref[0].astype(jnp.float32) * sc_ref[...] + sh_ref[...]
    o_ref[0] = jnp.maximum(z, 0.0).astype(o_ref.dtype)


# ------------------------------ kernel wrappers -----------------------------

def _conv_transpose_2x2(x, w_t, b_t, vmem_limit):
    N, h, w, cin_p = x.shape
    co2 = w_t.shape[-1]                                       # 2 * Co_p

    def fits(th):
        b = 2 * th * w * cin_p * 2 + 2 * 2 * cin_p * co2 * 2
        b += 2 * th * 2 * w * co2 * 2 + th * w * co2 * 4 + 2 * 2 * co2 * 4
        return b <= 0.6 * vmem_limit

    th = _largest_divisor(h, cap=64, even=False, fits=fits)
    out = pl.pallas_call(
        _convt_kernel,
        out_shape=jax.ShapeDtypeStruct((N, h, 2, w, co2), jnp.bfloat16),
        grid=(N, h // th),
        in_specs=[
            pl.BlockSpec((1, th, w, cin_p), lambda n, i: (n, i, 0, 0)),
            pl.BlockSpec((2, cin_p, co2), lambda n, i: (0, 0, 0)),    # resident
            pl.BlockSpec((2, 1, co2), lambda n, i: (0, 0, 0)),        # resident
        ],
        out_specs=pl.BlockSpec((1, th, 2, w, co2), lambda n, i: (n, i, 0, 0, 0)),
        compiler_params=_compiler_params(vmem_limit),
    )(x, w_t, b_t)
    # (N, h, 2, w, 2*Co_p) is bitwise the (N, 2h, 2w, Co_p) layout -> free reshape.
    return out.reshape(N, 2 * h, 2 * w, co2 // 2)


def _conv3x3_pass(streams, weights, cout_p, y_dtype, vmem_limit, bn=None):
    """Pass 1: TH-row-tiled 3x3 conv (fused multi-stream) + per-tile BN stats.

    streams: halo-padded (N, H+2, W+2, Cp_s) bf16; weights: (3, 3, Cp_s, cout_p) bf16.
    bn: optional per-stream (scale, shift) pairs, each (1, Cp_s) f32 -> fused
        BN-apply + ReLU on that input stream (used to consume conv1's raw output).
    """
    N, Hp2, Wp2, _ = streams[0].shape
    H, W = Hp2 - 2, Wp2 - 2
    cs_list = [int(x.shape[-1]) for x in streams]
    y_bytes = jnp.dtype(y_dtype).itemsize

    def fits(th):
        b = 0
        for cs in cs_list:
            b += 2 * (th + 2) * Wp2 * cs * 2          # main + halo blocks (dbl-buf)
            b += 2 * 9 * cs * cout_p * 2              # resident weights (dbl-buf)
            b += (th + 2) * Wp2 * cs * 4              # in-kernel window / act value
            b += th * W * cs * 2                      # per-tap LHS slice copy
        b += 2 * th * W * cout_p * y_bytes            # y tile (dbl-buf)
        b += th * W * cout_p * 4                      # f32 accumulator
        return b <= 0.7 * vmem_limit

    th = _largest_divisor(H, cap=64, even=True, fits=fits)
    n_tiles = H // th
    half = th // 2                                    # halo block index step

    in_specs, operands = [], []
    for x in streams:
        cp = int(x.shape[-1])
        # Main TH-row block + 2-row halo block: overlapping (TH+2)-row window with
        # only (TH+2)/TH read amplification, fully auto-pipelined.
        in_specs.append(pl.BlockSpec((1, th, Wp2, cp), lambda n, i: (n, i, 0, 0)))
        operands.append(x)
        in_specs.append(pl.BlockSpec(
            (1, 2, Wp2, cp), lambda n, i, half=half: (n, (i + 1) * half, 0, 0)))
        operands.append(x)
    if bn is not None:
        for sc, sh in bn:
            in_specs.append(pl.BlockSpec(sc.shape, lambda n, i: (0, 0)))
            operands.append(sc)
            in_specs.append(pl.BlockSpec(sh.shape, lambda n, i: (0, 0)))
            operands.append(sh)
    for wgt in weights:
        in_specs.append(pl.BlockSpec(wgt.shape, lambda n, i: (0, 0, 0, 0)))
        operands.append(wgt)

    flops = 2 * N * H * W * 9 * cout_p * sum(cs_list)
    bytes_accessed = int(
        sum(N * Hp2 * Wp2 * cs * 2 * (th + 2) / th for cs in cs_list)
        + sum(math.prod(w.shape) * 2 for w in weights)
        + N * H * W * cout_p * y_bytes + N * n_tiles * 2 * cout_p * 4)

    y, stats = pl.pallas_call(
        _make_conv3x3_kernel(len(streams), th, W, bn is not None),
        out_shape=(
            jax.ShapeDtypeStruct((N, H, W, cout_p), y_dtype),
            jax.ShapeDtypeStruct((N, n_tiles, 2, cout_p), jnp.float32)),
        grid=(N, n_tiles),
        in_specs=in_specs,
        out_specs=(
            pl.BlockSpec((1, th, W, cout_p), lambda n, i: (n, i, 0, 0)),
            pl.BlockSpec((1, 1, 2, cout_p), lambda n, i: (n, i, 0, 0))),
        compiler_params=_compiler_params(vmem_limit),
        cost_estimate=pl.CostEstimate(
            flops=int(flops), transcendentals=0, bytes_accessed=bytes_accessed),
    )(*operands)
    return y, stats, th


def _bn_relu_apply(y, scale, shift, out_dtype, th, vmem_limit):
    """Pass 2: TH-row-tiled (y * scale + shift) -> ReLU."""
    N, H, W, C = y.shape
    return pl.pallas_call(
        _bn_relu_kernel,
        out_shape=jax.ShapeDtypeStruct((N, H, W, C), out_dtype),
        grid=(N, H // th),
        in_specs=[
            pl.BlockSpec((1, th, W, C), lambda n, i: (n, i, 0, 0)),
            pl.BlockSpec((1, C), lambda n, i: (0, 0)),
            pl.BlockSpec((1, C), lambda n, i: (0, 0)),
        ],
        out_specs=pl.BlockSpec((1, th, W, C), lambda n, i: (n, i, 0, 0)),
        compiler_params=_compiler_params(vmem_limit),
    )(y, scale, shift)


def _finalize_bn(stats, gamma, beta, count, cp):
    """Reduce per-tile partial sums; fold BN into per-channel scale/shift (f32)."""
    s = jnp.sum(stats[:, :, 0, :], axis=(0, 1))
    ss = jnp.sum(stats[:, :, 1, :], axis=(0, 1))
    mean = s / count
    var = jnp.maximum(ss / count - mean * mean, 0.0)   # biased var (torch train BN)
    g = jnp.zeros((cp,), jnp.float32).at[:gamma.shape[0]].set(gamma)
    b = jnp.zeros((cp,), jnp.float32).at[:beta.shape[0]].set(beta)
    scale = g * lax.rsqrt(var + EPS)
    shift = b - mean * scale
    return scale.reshape(1, cp), shift.reshape(1, cp)


def _prep_conv_w(w_oihw, cin_p, cout_p):
    """torch (Cout, Cin, 3, 3) -> per-tap (3, 3, Cin_p, Cout_p) bf16, zero padded."""
    cout, cin = w_oihw.shape[0], w_oihw.shape[1]
    wt = jnp.transpose(w_oihw, (2, 3, 1, 0))            # (3, 3, Cin, Cout)
    full = jnp.zeros((3, 3, cin_p, cout_p), jnp.float32)
    full = full.at[:, :, :cin, :cout].set(wt)
    return full.astype(jnp.bfloat16)


# -------------------------------- forward ----------------------------------

@jax.jit
def up_forward(x1_nchw, x2_nchw, params):
    """Up.forward(x1, x2).  Inputs/outputs NCHW (PyTorch convention)."""
    in_ch = x1_nchw.shape[1]
    c2 = x2_nchw.shape[1]
    co = params["up_w"].shape[1]                        # in_ch // 2
    mid = params["w1"].shape[0]
    cout = params["w2"].shape[0]

    cin_p, c2_p, co_p = _pad128(in_ch), _pad128(c2), _pad128(co)
    mid_p, cout_p = _pad128(mid), _pad128(cout)

    N, _, h, w = x1_nchw.shape
    H, W = 2 * h, 2 * w
    assert H % 2 == 0
    vmem_limit = _vmem_limit_bytes()

    # NCHW -> NHWC, bf16 MXU operands, channel pad to lane width.
    # x2's 3x3 halo is folded into the same pad (no extra round trip).
    x1 = jnp.pad(jnp.transpose(x1_nchw, (0, 2, 3, 1)).astype(jnp.bfloat16),
                 ((0, 0), (0, 0), (0, 0), (0, cin_p - in_ch)))
    x2p = jnp.pad(jnp.transpose(x2_nchw, (0, 2, 3, 1)).astype(jnp.bfloat16),
                  ((0, 0), (1, 1), (1, 1), (0, c2_p - c2)))

    # ConvTranspose2d(in, in//2, 2, 2) -- interleaved output written by the kernel.
    w_up = jnp.zeros((2, cin_p, 2, co_p), jnp.float32)
    w_up = w_up.at[:, :in_ch, :, :co].set(jnp.transpose(params["up_w"], (2, 0, 3, 1)))
    w_up = w_up.reshape(2, cin_p, 2 * co_p).astype(jnp.bfloat16)
    b_pad = jnp.zeros((co_p,), jnp.float32).at[:co].set(params["up_b"])
    b_up = jnp.broadcast_to(
        jnp.concatenate([b_pad, b_pad]).reshape(1, 1, 2 * co_p), (2, 1, 2 * co_p))
    x1_up = _conv_transpose_2x2(x1, w_up, b_up, vmem_limit)   # (N, H, W, co_p) bf16
    x1_upp = jnp.pad(x1_up, ((0, 0), (1, 1), (1, 1), (0, 0)))
    # TODO(synk): write the convT output with its halo ring in-kernel to drop this pad.

    count = N * H * W

    # Conv1 (+fused concat, torch cat order [x2, x1_up]) -> bf16 conv output + stats.
    w1a = _prep_conv_w(params["w1"][:, :c2], c2_p, mid_p)
    w1b = _prep_conv_w(params["w1"][:, c2:], co_p, mid_p)
    y1, st1, _ = _conv3x3_pass([x2p, x1_upp], [w1a, w1b], mid_p,
                               jnp.bfloat16, vmem_limit)
    sc1, sh1 = _finalize_bn(st1, params["g1"], params["b1"], count, mid_p)

    # Conv2 with conv1's BN-apply + ReLU fused on its input (a1 never hits HBM).
    y1p = jnp.pad(y1, ((0, 0), (1, 1), (1, 1), (0, 0)))
    # TODO(synk): handle conv2's H/W halo in-kernel to drop this bf16 pad pass too.
    w2 = _prep_conv_w(params["w2"], mid_p, cout_p)
    y2, st2, th2 = _conv3x3_pass([y1p], [w2], cout_p, jnp.bfloat16, vmem_limit,
                                 bn=[(sc1, sh1)])
    sc2, sh2 = _finalize_bn(st2, params["g2"], params["b2"], count, cout_p)

    # BN2 apply + ReLU (tiled), f32 output.
    out = _bn_relu_apply(y2, sc2, sh2, jnp.float32, th2, vmem_limit)

    return jnp.transpose(out[:, :, :, :cout], (0, 3, 1, 2))   # back to NCHW


# -------------------------- pure-JAX f32 reference ---------------------------

def _ref_up_forward(x1_nchw, x2_nchw, p):
    x1 = jnp.transpose(x1_nchw, (0, 2, 3, 1)).astype(jnp.float32)
    x2 = jnp.transpose(x2_nchw, (0, 2, 3, 1)).astype(jnp.float32)
    N, h, w, _ = x1.shape
    co = p["up_w"].shape[1]
    t = jnp.einsum("nijc,codk->nidjko", x1, p["up_w"],
                   precision=jax.lax.Precision.HIGHEST)
    t = t.reshape(N, 2 * h, 2 * w, co) + p["up_b"]
    x = jnp.concatenate([x2, t], axis=-1)

    def conv_bn_relu(x, w_oihw, gamma, beta):
        rhs = jnp.transpose(w_oihw, (2, 3, 1, 0))       # HWIO
        y = jax.lax.conv_general_dilated(
            x, rhs, window_strides=(1, 1), padding="SAME",
            dimension_numbers=("NHWC", "HWIO", "NHWC"),
            precision=jax.lax.Precision.HIGHEST)
        mean = jnp.mean(y, axis=(0, 1, 2))
        var = jnp.mean((y - mean) ** 2, axis=(0, 1, 2))
        z = (y - mean) * jax.lax.rsqrt(var + EPS) * gamma + beta
        return jnp.maximum(z, 0.0)

    y = conv_bn_relu(x, p["w1"], p["g1"], p["b1"])
    y = conv_bn_relu(y, p["w2"], p["g2"], p["b2"])
    return jnp.transpose(y, (0, 3, 1, 2))


# ------------------------------- example run --------------------------------

def _init_params(key, in_channels, out_channels):
    mid_channels = out_channels
    ks = jax.random.split(key, 8)
    return {
        "up_w": 0.1 * jax.random.normal(ks[0], (in_channels, in_channels // 2, 2, 2), jnp.float32),
        "up_b": 0.1 * jax.random.normal(ks[1], (in_channels // 2,), jnp.float32),
        "w1": 0.1 * jax.random.normal(ks[2], (mid_channels, in_channels, 3, 3), jnp.float32),
        "g1": 1.0 + 0.1 * jax.random.normal(ks[3], (mid_channels,), jnp.float32),
        "b1": 0.1 * jax.random.normal(ks[4], (mid_channels,), jnp.float32),
        "w2": 0.1 * jax.random.normal(ks[5], (out_channels, mid_channels, 3, 3), jnp.float32),
        "g2": 1.0 + 0.1 * jax.random.normal(ks[6], (out_channels,), jnp.float32),
        "b2": 0.1 * jax.random.normal(ks[7], (out_channels,), jnp.float32),
    }


if __name__ == "__main__":
    key = jax.random.PRNGKey(0)
    k_x1, k_x2, k_p = jax.random.split(key, 3)

    # Small correctness shapes only; do NOT use for perf tuning (C padded to 128).
    in_channels, out_channels = 4, 4
    N, h, w = 2, 8, 8                     # x1 (deep features), x2 has 2x spatial
    x1 = jax.random.normal(k_x1, (N, in_channels, h, w), jnp.float32)
    x2 = jax.random.normal(k_x2, (N, in_channels // 2, 2 * h, 2 * w), jnp.float32)
    params = _init_params(k_p, in_channels, out_channels)

    out = up_forward(x1, x2, params)
    jax.block_until_ready(out)
    assert out.shape == (N, out_channels, 2 * h, 2 * w), out.shape

    ref = _ref_up_forward(x1, x2, params)
    err = float(jnp.max(jnp.abs(out - ref)))
    assert err < 2e-1, f"mismatch vs reference: max abs err {err}"
    print("KERNEL_OK")
</pallas_src>

<mosaic_0001>
module attributes {stable_mosaic.version = 11 : i64} {
  func.func @_convt_kernel(%arg0: i32, %arg1: i32, %arg2: memref<1x8x8x128xbf16, #tpu.memory_space<vmem>>, %arg3: memref<2x128x256xbf16, #tpu.memory_space<vmem>>, %arg4: memref<2x1x256xf32, #tpu.memory_space<vmem>>, %arg5: memref<1x8x2x8x256xbf16, #tpu.memory_space<vmem>>) attributes {dimension_semantics = [#tpu.dimension_semantics<parallel>, #tpu.dimension_semantics<parallel>], iteration_bounds = array<i64: 2, 1>, scalar_prefetch = 0 : i64, scratch_operands = 0 : i64, tpu.core_type = #tpu.core_type<tc>, window_params = [{transform_indices = @transform_0, window_bounds = array<i64: 1, 8, 8, 128>}, {pipeline_mode = #tpu.pipeline_mode<synchronous>, transform_indices = @transform_1, window_bounds = array<i64: 2, 128, 256>}, {pipeline_mode = #tpu.pipeline_mode<synchronous>, transform_indices = @transform_2, window_bounds = array<i64: 2, 1, 256>}, {transform_indices = @transform_3, window_bounds = array<i64: 1, 8, 2, 8, 256>}]} {
    %c0 = arith.constant 0 : index
    %c0_0 = arith.constant 0 : index
    %c0_1 = arith.constant 0 : index
    %c0_2 = arith.constant 0 : index
    %0 = vector.load %arg2[%c0, %c0_0, %c0_1, %c0_2] : memref<1x8x8x128xbf16, #tpu.memory_space<vmem>>, vector<1x8x8x128xbf16>
    %1 = vector.shape_cast %0 : vector<1x8x8x128xbf16> to vector<8x8x128xbf16>
    %2 = vector.shape_cast %1 : vector<8x8x128xbf16> to vector<64x128xbf16>
    %c0_3 = arith.constant 0 : index
    %c0_4 = arith.constant 0 : index
    %c0_5 = arith.constant 0 : index
    %3 = vector.load %arg3[%c0_3, %c0_4, %c0_5] : memref<2x128x256xbf16, #tpu.memory_space<vmem>>, vector<1x128x256xbf16>
    %4 = vector.shape_cast %3 : vector<1x128x256xbf16> to vector<128x256xbf16>
    %cst = arith.constant dense<0.000000e+00> : vector<64x256xf32>
    %5 = tpu.matmul %2, %4, %cst {dimension_numbers = #tpu.dot_dimension_numbers<[1], [0], [0], [1], [0, 0, 1, 1], [], []>} : vector<64x128xbf16>, vector<128x256xbf16>, vector<64x256xf32> -> vector<64x256xf32>
    %c0_6 = arith.constant 0 : index
    %c0_7 = arith.constant 0 : index
    %c0_8 = arith.constant 0 : index
    %6 = vector.load %arg4[%c0_6, %c0_7, %c0_8] : memref<2x1x256xf32, #tpu.memory_space<vmem>>, vector<1x1x256xf32>
    %7 = vector.shape_cast %6 : vector<1x1x256xf32> to vector<1x256xf32>
    %8 = vector.broadcast %7 : vector<1x256xf32> to vector<64x256xf32>
    %9 = arith.addf %5, %8 : vector<64x256xf32>
    %10 = vector.shape_cast %9 : vector<64x256xf32> to vector<8x8x256xf32>
    %11 = arith.truncf %10 : vector<8x8x256xf32> to vector<8x8x256xbf16>
    %c0_9 = arith.constant 0 : index
    %c0_10 = arith.constant 0 : index
    %c0_11 = arith.constant 0 : index
    %c0_12 = arith.constant 0 : index
    %c0_13 = arith.constant 0 : index
    %12 = vector.load %arg5[%c0_9, %c0_10, %c0_11, %c0_12, %c0_13] : memref<1x8x2x8x256xbf16, #tpu.memory_space<vmem>>, vector<1x8x1x8x256xbf16>
    %13 = vector.shape_cast %12 : vector<1x8x1x8x256xbf16> to vector<8x8x256xbf16>
    %14 = vector.shape_cast %11 : vector<8x8x256xbf16> to vector<1x8x1x8x256xbf16>
    tpu.vector_store %arg5[%c0_9, %c0_10, %c0_11, %c0_12, %c0_13], %14 {strides = array<i32>} : memref<1x8x2x8x256xbf16, #tpu.memory_space<vmem>>, vector<1x8x1x8x256xbf16>,
    %c1 = arith.constant 1 : index
    %c0_14 = arith.constant 0 : index
    %c0_15 = arith.constant 0 : index
    %15 = vector.load %arg3[%c1, %c0_14, %c0_15] : memref<2x128x256xbf16, #tpu.memory_space<vmem>>, vector<1x128x256xbf16>
    %16 = vector.shape_cast %15 : vector<1x128x256xbf16> to vector<128x256xbf16>
    %cst_16 = arith.constant dense<0.000000e+00> : vector<64x256xf32>
    %17 = tpu.matmul %2, %16, %cst_16 {dimension_numbers = #tpu.dot_dimension_numbers<[1], [0], [0], [1], [0, 0, 1, 1], [], []>} : vector<64x128xbf16>, vector<128x256xbf16>, vector<64x256xf32> -> vector<64x256xf32>
    %c1_17 = arith.constant 1 : index
    %c0_18 = arith.constant 0 : index
    %c0_19 = arith.constant 0 : index
    %18 = vector.load %arg4[%c1_17, %c0_18, %c0_19] : memref<2x1x256xf32, #tpu.memory_space<vmem>>, vector<1x1x256xf32>
    %19 = vector.shape_cast %18 : vector<1x1x256xf32> to vector<1x256xf32>
    %20 = vector.broadcast %19 : vector<1x256xf32> to vector<64x256xf32>
    %21 = arith.addf %17, %20 : vector<64x256xf32>
    %22 = vector.shape_cast %21 : vector<64x256xf32> to vector<8x8x256xf32>
    %23 = arith.truncf %22 : vector<8x8x256xf32> to vector<8x8x256xbf16>
    %c0_20 = arith.constant 0 : index
    %c0_21 = arith.constant 0 : index
    %c1_22 = arith.constant 1 : index
    %c0_23 = arith.constant 0 : index
    %c0_24 = arith.constant 0 : index
    %24 = vector.load %arg5[%c0_20, %c0_21, %c1_22, %c0_23, %c0_24] : memref<1x8x2x8x256xbf16, #tpu.memory_space<vmem>>, vector<1x8x1x8x256xbf16>
    %25 = vector.shape_cast %24 : vector<1x8x1x8x256xbf16> to vector<8x8x256xbf16>
    %26 = vector.shape_cast %23 : vector<8x8x256xbf16> to vector<1x8x1x8x256xbf16>
    tpu.vector_store %arg5[%c0_20, %c0_21, %c1_22, %c0_23, %c0_24], %26 {strides = array<i32>} : memref<1x8x2x8x256xbf16, #tpu.memory_space<vmem>>, vector<1x8x1x8x256xbf16>,
    return
  }
  func.func @transform_0(%arg0: i32, %arg1: i32) -> (i32, i32, i32, i32) {
    %c0_i32 = arith.constant 0 : i32
    %c0_i32_0 = arith.constant 0 : i32
    %c0_i32_1 = arith.constant 0 : i32
    return %arg0, %arg1, %c0_i32, %c0_i32_0 : i32, i32, i32, i32
  }
  func.func @transform_1(%arg0: i32, %arg1: i32) -> (i32, i32, i32) {
    %c0_i32 = arith.constant 0 : i32
    %c0_i32_0 = arith.constant 0 : i32
    %c0_i32_1 = arith.constant 0 : i32
    %c0_i32_2 = arith.constant 0 : i32
    return %c0_i32, %c0_i32_0, %c0_i32_1 : i32, i32, i32
  }
  func.func @transform_2(%arg0: i32, %arg1: i32) -> (i32, i32, i32) {
    %c0_i32 = arith.constant 0 : i32
    %c0_i32_0 = arith.constant 0 : i32
    %c0_i32_1 = arith.constant 0 : i32
    %c0_i32_2 = arith.constant 0 : i32
    return %c0_i32, %c0_i32_0, %c0_i32_1 : i32, i32, i32
  }
  func.func @transform_3(%arg0: i32, %arg1: i32) -> (i32, i32, i32, i32, i32) {
    %c0_i32 = arith.constant 0 : i32
    %c0_i32_0 = arith.constant 0 : i32
    %c0_i32_1 = arith.constant 0 : i32
    %c0_i32_2 = arith.constant 0 : i32
    return %arg0, %arg1, %c0_i32, %c0_i32_0, %c0_i32_1 : i32, i32, i32, i32, i32
  }
}

module attributes {stable_mosaic.version = 11 : i64} {
  func.func @kernel(%arg0: i32, %arg1: i32, %arg2: memref<1x16x18x128xbf16, #tpu.memory_space<vmem>>, %arg3: memref<1x2x18x128xbf16, #tpu.memory_space<vmem>>, %arg4: memref<1x16x18x128xbf16, #tpu.memory_space<vmem>>, %arg5: memref<1x2x18x128xbf16, #tpu.memory_space<vmem>>, %arg6: memref<3x3x128x128xbf16, #tpu.memory_space<vmem>>, %arg7: memref<3x3x128x128xbf16, #tpu.memory_space<vmem>>, %arg8: memref<1x16x16x128xbf16, #tpu.memory_space<vmem>>, %arg9: memref<1x1x2x128xf32, #tpu.memory_space<vmem>>) attributes {dimension_semantics = [#tpu.dimension_semantics<parallel>, #tpu.dimension_semantics<parallel>], iteration_bounds = array<i64: 2, 1>, scalar_prefetch = 0 : i64, scratch_operands = 0 : i64, tpu.core_type = #tpu.core_type<tc>, window_params = [{transform_indices = @transform_0, window_bounds = array<i64: 1, 16, 18, 128>}, {transform_indices = @transform_1, window_bounds = array<i64: 1, 2, 18, 128>}, {transform_indices = @transform_2, window_bounds = array<i64: 1, 16, 18, 128>}, {transform_indices = @transform_3, window_bounds = array<i64: 1, 2, 18, 128>}, {pipeline_mode = #tpu.pipeline_mode<synchronous>, transform_indices = @transform_4, window_bounds = array<i64: 3, 3, 128, 128>}, {pipeline_mode = #tpu.pipeline_mode<synchronous>, transform_indices = @transform_5, window_bounds = array<i64: 3, 3, 128, 128>}, {transform_indices = @transform_6, window_bounds = array<i64: 1, 16, 16, 128>}, {transform_indices = @transform_7, window_bounds = array<i64: 1, 1, 2, 128>}]} {
    %cst = arith.constant 0.000000e+00 : f32
    %0 = vector.broadcast %cst : f32 to vector<256x128xf32>
    %c0 = arith.constant 0 : index
    %c0_0 = arith.constant 0 : index
    %c0_1 = arith.constant 0 : index
    %c0_2 = arith.constant 0 : index
    %1 = vector.load %arg2[%c0, %c0_0, %c0_1, %c0_2] : memref<1x16x18x128xbf16, #tpu.memory_space<vmem>>, vector<1x16x18x128xbf16>
    %2 = vector.shape_cast %1 : vector<1x16x18x128xbf16> to vector<16x18x128xbf16>
    %c0_3 = arith.constant 0 : index
    %c0_4 = arith.constant 0 : index
    %c0_5 = arith.constant 0 : index
    %c0_6 = arith.constant 0 : index
    %3 = vector.load %arg3[%c0_3, %c0_4, %c0_5, %c0_6] : memref<1x2x18x128xbf16, #tpu.memory_space<vmem>>, vector<1x2x18x128xbf16>
    %4 = vector.shape_cast %3 : vector<1x2x18x128xbf16> to vector<2x18x128xbf16>
    %5 = tpu.concatenate %2, %4 in 0 : vector<16x18x128xbf16>, vector<2x18x128xbf16> -> vector<18x18x128xbf16>
    %6 = vector.extract_strided_slice %5 {offsets = [0, 0, 0], sizes = [16, 18, 128], strides = [1, 1, 1]} : vector<18x18x128xbf16> to vector<16x18x128xbf16>
    %7 = vector.extract_strided_slice %6 {offsets = [0, 0, 0], sizes = [16, 16, 128], strides = [1, 1, 1]} : vector<16x18x128xbf16> to vector<16x16x128xbf16>
    %8 = vector.shape_cast %7 : vector<16x16x128xbf16> to vector<256x128xbf16>
    %c0_7 = arith.constant 0 : index
    %c0_8 = arith.constant 0 : index
    %c0_9 = arith.constant 0 : index
    %c0_10 = arith.constant 0 : index
    %9 = vector.load %arg6[%c0_7, %c0_8, %c0_9, %c0_10] : memref<3x3x128x128xbf16, #tpu.memory_space<vmem>>, vector<1x1x128x128xbf16>
    %10 = vector.shape_cast %9 : vector<1x1x128x128xbf16> to vector<128x128xbf16>
    %cst_11 = arith.constant dense<0.000000e+00> : vector<256x128xf32>
    %11 = tpu.matmul %8, %10, %cst_11 {dimension_numbers = #tpu.dot_dimension_numbers<[1], [0], [0], [1], [0, 0, 1, 1], [], []>} : vector<256x128xbf16>, vector<128x128xbf16>, vector<256x128xf32> -> vector<256x128xf32>
    %12 = arith.addf %0, %11 : vector<256x128xf32>
    %13 = vector.extract_strided_slice %6 {offsets = [0, 1, 0], sizes = [16, 16, 128], strides = [1, 1, 1]} : vector<16x18x128xbf16> to vector<16x16x128xbf16>
    %14 = vector.shape_cast %13 : vector<16x16x128xbf16> to vector<256x128xbf16>
    %c0_12 = arith.constant 0 : index
    %c1 = arith.constant 1 : index
    %c0_13 = arith.constant 0 : index
    %c0_14 = arith.constant 0 : index
    %15 = vector.load %arg6[%c0_12, %c1, %c0_13, %c0_14] : memref<3x3x128x128xbf16, #tpu.memory_space<vmem>>, vector<1x1x128x128xbf16>
    %16 = vector.shape_cast %15 : vector<1x1x128x128xbf16> to vector<128x128xbf16>
    %cst_15 = arith.constant dense<0.000000e+00> : vector<256x128xf32>
    %17 = tpu.matmul %14, %16, %cst_15 {dimension_numbers = #tpu.dot_dimension_numbers<[1], [0], [0], [1], [0, 0, 1, 1], [], []>} : vector<256x128xbf16>, vector<128x128xbf16>, vector<256x128xf32> -> vector<256x128xf32>
    %18 = arith.addf %12, %17 : vector<256x128xf32>
    %19 = vector.extract_strided_slice %6 {offsets = [0, 2, 0], sizes = [16, 16, 128], strides = [1, 1, 1]} : vector<16x18x128xbf16> to vector<16x16x128xbf16>
    %20 = vector.shape_cast %19 : vector<16x16x128xbf16> to vector<256x128xbf16>
    %c0_16 = arith.constant 0 : index
    %c2 = arith.constant 2 : index
    %c0_17 = arith.constant 0 : index
    %c0_18 = arith.constant 0 : index
    %21 = vector.load %arg6[%c0_16, %c2, %c0_17, %c0_18] : memref<3x3x128x128xbf16, #tpu.memory_space<vmem>>, vector<1x1x128x128xbf16>
    %22 = vector.shape_cast %21 : vector<1x1x128x128xbf16> to vector<128x128xbf16>
    %cst_19 = arith.constant dense<0.000000e+00> : vector<256x128xf32>
    %23 = tpu.matmul %20, %22, %cst_19 {dimension_numbers = #tpu.dot_dimension_numbers<[1], [0], [0], [1], [0, 0, 1, 1], [], []>} : vector<256x128xbf16>, vector<128x128xbf16>, vector<256x128xf32> -> vector<256x128xf32>
    %24 = arith.addf %18, %23 : vector<256x128xf32>
    %25 = vector.extract_strided_slice %5 {offsets = [1, 0, 0], sizes = [16, 18, 128], strides = [1, 1, 1]} : vector<18x18x128xbf16> to vector<16x18x128xbf16>
    %26 = vector.extract_strided_slice %25 {offsets = [0, 0, 0], sizes = [16, 16, 128], strides = [1, 1, 1]} : vector<16x18x128xbf16> to vector<16x16x128xbf16>
    %27 = vector.shape_cast %26 : vector<16x16x128xbf16> to vector<256x128xbf16>
    %c1_20 = arith.constant 1 : index
    %c0_21 = arith.constant 0 : index
    %c0_22 = arith.constant 0 : index
    %c0_23 = arith.constant 0 : index
    %28 = vector.load %arg6[%c1_20, %c0_21, %c0_22, %c0_23] : memref<3x3x128x128xbf16, #tpu.memory_space<vmem>>, vector<1x1x128x128xbf16>
    %29 = vector.shape_cast %28 : vector<1x1x128x128xbf16> to vector<128x128xbf16>
    %cst_24 = arith.constant dense<0.000000e+00> : vector<256x128xf32>
    %30 = tpu.matmul %27, %29, %cst_24 {dimension_numbers = #tpu.dot_dimension_numbers<[1], [0], [0], [1], [0, 0, 1, 1], [], []>} : vector<256x128xbf16>, vector<128x128xbf16>, vector<256x128xf32> -> vector<256x128xf32>
    %31 = arith.addf %24, %30 : vector<256x128xf32>
    %32 = vector.extract_strided_slice %25 {offsets = [0, 1, 0], sizes = [16, 16, 128], strides = [1, 1, 1]} : vector<16x18x128xbf16> to vector<16x16x128xbf16>
    %33 = vector.shape_cast %32 : vector<16x16x128xbf16> to vector<256x128xbf16>
    %c1_25 = arith.constant 1 : index
    %c1_26 = arith.constant 1 : index
    %c0_27 = arith.constant 0 : index
    %c0_28 = arith.constant 0 : index
    %34 = vector.load %arg6[%c1_25, %c1_26, %c0_27, %c0_28] : memref<3x3x128x128xbf16, #tpu.memory_space<vmem>>, vector<1x1x128x128xbf16>
    %35 = vector.shape_cast %34 : vector<1x1x128x128xbf16> to vector<128x128xbf16>
    %cst_29 = arith.constant dense<0.000000e+00> : vector<256x128xf32>
    %36 = tpu.matmul %33, %35, %cst_29 {dimension_numbers = #tpu.dot_dimension_numbers<[1], [0], [0], [1], [0, 0, 1, 1], [], []>} : vector<256x128xbf16>, vector<128x128xbf16>, vector<256x128xf32> -> vector<256x128xf32>
    %37 = arith.addf %31, %36 : vector<256x128xf32>
    %38 = vector.extract_strided_slice %25 {offsets = [0, 2, 0], sizes = [16, 16, 128], strides = [1, 1, 1]} : vector<16x18x128xbf16> to vector<16x16x128xbf16>
    %39 = vector.shape_cast %38 : vector<16x16x128xbf16> to vector<256x128xbf16>
    %c1_30 = arith.constant 1 : index
    %c2_31 = arith.constant 2 : index
    %c0_32 = arith.constant 0 : index
    %c0_33 = arith.constant 0 : index
    %40 = vector.load %arg6[%c1_30, %c2_31, %c0_32, %c0_33] : memref<3x3x128x128xbf16, #tpu.memory_space<vmem>>, vector<1x1x128x128xbf16>
    %41 = vector.shape_cast %40 : vector<1x1x128x128xbf16> to vector<128x128xbf16>
    %cst_34 = arith.constant dense<0.000000e+00> : vector<256x128xf32>
    %42 = tpu.matmul %39, %41, %cst_34 {dimension_numbers = #tpu.dot_dimension_numbers<[1], [0], [0], [1], [0, 0, 1, 1], [], []>} : vector<256x128xbf16>, vector<128x128xbf16>, vector<256x128xf32> -> vector<256x128xf32>
    %43 = arith.addf %37, %42 : vector<256x128xf32>
    %44 = vector.extract_strided_slice %5 {offsets = [2, 0, 0], sizes = [16, 18, 128], strides = [1, 1, 1]} : vector<18x18x128xbf16> to vector<16x18x128xbf16>
    %45 = vector.extract_strided_slice %44 {offsets = [0, 0, 0], sizes = [16, 16, 128], strides = [1, 1, 1]} : vector<16x18x128xbf16> to vector<16x16x128xbf16>
    %46 = vector.shape_cast %45 : vector<16x16x128xbf16> to vector<256x128xbf16>
    %c2_35 = arith.constant 2 : index
    %c0_36 = arith.constant 0 : index
    %c0_37 = arith.constant 0 : index
    %c0_38 = arith.constant 0 : index
    %47 = vector.load %arg6[%c2_35, %c0_36, %c0_37, %c0_38] : memref<3x3x128x128xbf16, #tpu.memory_space<vmem>>, vector<1x1x128x128xbf16>
    %48 = vector.shape_cast %47 : vector<1x1x128x128xbf16> to vector<128x128xbf16>
    %cst_39 = arith.constant dense<0.000000e+00> : vector<256x128xf32>
    %49 = tpu.matmul %46, %48, %cst_39 {dimension_numbers = #tpu.dot_dimension_numbers<[1], [0], [0], [1], [0, 0, 1, 1], [], []>} : vector<256x128xbf16>, vector<128x128xbf16>, vector<256x128xf32> -> vector<256x128xf32>
    %50 = arith.addf %43, %49 : vector<256x128xf32>
    %51 = vector.extract_strided_slice %44 {offsets = [0, 1, 0], sizes = [16, 16, 128], strides = [1, 1, 1]} : vector<16x18x128xbf16> to vector<16x16x128xbf16>
    %52 = vector.shape_cast %51 : vector<16x16x128xbf16> to vector<256x128xbf16>
    %c2_40 = arith.constant 2 : index
    %c1_41 = arith.constant 1 : index
    %c0_42 = arith.constant 0 : index
    %c0_43 = arith.constant 0 : index
    %53 = vector.load %arg6[%c2_40, %c1_41, %c0_42, %c0_43] : memref<3x3x128x128xbf16, #tpu.memory_space<vmem>>, vector<1x1x128x128xbf16>
    %54 = vector.shape_cast %53 : vector<1x1x128x128xbf16> to vector<128x128xbf16>
    %cst_44 = arith.constant dense<0.000000e+00> : vector<256x128xf32>
    %55 = tpu.matmul %52, %54, %cst_44 {dimension_numbers = #tpu.dot_dimension_numbers<[1], [0], [0], [1], [0, 0, 1, 1], [], []>} : vector<256x128xbf16>, vector<128x128xbf16>, vector<256x128xf32> -> vector<256x128xf32>
    %56 = arith.addf %50, %55 : vector<256x128xf32>
    %57 = vector.extract_strided_slice %44 {offsets = [0, 2, 0], sizes = [16, 16, 128], strides = [1, 1, 1]} : vector<16x18x128xbf16> to vector<16x16x128xbf16>
    %58 = vector.shape_cast %57 : vector<16x16x128xbf16> to vector<256x128xbf16>
    %c2_45 = arith.constant 2 : index
    %c2_46 = arith.constant 2 : index
    %c0_47 = arith.constant 0 : index
    %c0_48 = arith.constant 0 : index
    %59 = vector.load %arg6[%c2_45, %c2_46, %c0_47, %c0_48] : memref<3x3x128x128xbf16, #tpu.memory_space<vmem>>, vector<1x1x128x128xbf16>
    %60 = vector.shape_cast %59 : vector<1x1x128x128xbf16> to vector<128x128xbf16>
    %cst_49 = arith.constant dense<0.000000e+00> : vector<256x128xf32>
    %61 = tpu.matmul %58, %60, %cst_49 {dimension_numbers = #tpu.dot_dimension_numbers<[1], [0], [0], [1], [0, 0, 1, 1], [], []>} : vector<256x128xbf16>, vector<128x128xbf16>, vector<256x128xf32> -> vector<256x128xf32>
    %62 = arith.addf %56, %61 : vector<256x128xf32>
    %c0_50 = arith.constant 0 : index
    %c0_51 = arith.constant 0 : index
    %c0_52 = arith.constant 0 : index
    %c0_53 = arith.constant 0 : index
    %63 = vector.load %arg4[%c0_50, %c0_51, %c0_52, %c0_53] : memref<1x16x18x128xbf16, #tpu.memory_space<vmem>>, vector<1x16x18x128xbf16>
    %64 = vector.shape_cast %63 : vector<1x16x18x128xbf16> to vector<16x18x128xbf16>
    %c0_54 = arith.constant 0 : index
    %c0_55 = arith.constant 0 : index
    %c0_56 = arith.constant 0 : index
    %c0_57 = arith.constant 0 : index
    %65 = vector.load %arg5[%c0_54, %c0_55, %c0_56, %c0_57] : memref<1x2x18x128xbf16, #tpu.memory_space<vmem>>, vector<1x2x18x128xbf16>
    %66 = vector.shape_cast %65 : vector<1x2x18x128xbf16> to vector<2x18x128xbf16>
    %67 = tpu.concatenate %64, %66 in 0 : vector<16x18x128xbf16>, vector<2x18x128xbf16> -> vector<18x18x128xbf16>
    %68 = vector.extract_strided_slice %67 {offsets = [0, 0, 0], sizes = [16, 18, 128], strides = [1, 1, 1]} : vector<18x18x128xbf16> to vector<16x18x128xbf16>
    %69 = vector.extract_strided_slice %68 {offsets = [0, 0, 0], sizes = [16, 16, 128], strides = [1, 1, 1]} : vector<16x18x128xbf16> to vector<16x16x128xbf16>
    %70 = vector.shape_cast %69 : vector<16x16x128xbf16> to vector<256x128xbf16>
    %c0_58 = arith.constant 0 : index
    %c0_59 = arith.constant 0 : index
    %c0_60 = arith.constant 0 : index
    %c0_61 = arith.constant 0 : index
    %71 = vector.load %arg7[%c0_58, %c0_59, %c0_60, %c0_61] : memref<3x3x128x128xbf16, #tpu.memory_space<vmem>>, vector<1x1x128x128xbf16>
    %72 = vector.shape_cast %71 : vector<1x1x128x128xbf16> to vector<128x128xbf16>
    %cst_62 = arith.constant dense<0.000000e+00> : vector<256x128xf32>
    %73 = tpu.matmul %70, %72, %cst_62 {dimension_numbers = #tpu.dot_dimension_numbers<[1], [0], [0], [1], [0, 0, 1, 1], [], []>} : vector<256x128xbf16>, vector<128x128xbf16>, vector<256x128xf32> -> vector<256x128xf32>
    %74 = arith.addf %62, %73 : vector<256x128xf32>
    %75 = vector.extract_strided_slice %68 {offsets = [0, 1, 0], sizes = [16, 16, 128], strides = [1, 1, 1]} : vector<16x18x128xbf16> to vector<16x16x128xbf16>
    %76 = vector.shape_cast %75 : vector<16x16x128xbf16> to vector<256x128xbf16>
    %c0_63 = arith.constant 0 : index
    %c1_64 = arith.constant 1 : index
    %c0_65 = arith.constant 0 : index
    %c0_66 = arith.constant 0 : index
    %77 = vector.load %arg7[%c0_63, %c1_64, %c0_65, %c0_66] : memref<3x3x128x128xbf16, #tpu.memory_space<vmem>>, vector<1x1x128x128xbf16>
    %78 = vector.shape_cast %77 : vector<1x1x128x128xbf16> to vector<128x128xbf16>
    %cst_67 = arith.constant dense<0.000000e+00> : vector<256x128xf32>
    %79 = tpu.matmul %76, %78, %cst_67 {dimension_numbers = #tpu.dot_dimension_numbers<[1], [0], [0], [1], [0, 0, 1, 1], [], []>} : vector<256x128xbf16>, vector<128x128xbf16>, vector<256x128xf32> -> vector<256x128xf32>
    %80 = arith.addf %74, %79 : vector<256x128xf32>
    %81 = vector.extract_strided_slice %68 {offsets = [0, 2, 0], sizes = [16, 16, 128], strides = [1, 1, 1]} : vector<16x18x128xbf16> to vector<16x16x128xbf16>
    %82 = vector.shape_cast %81 : vector<16x16x128xbf16> to vector<256x128xbf16>
    %c0_68 = arith.constant 0 : index
    %c2_69 = arith.constant 2 : index
    %c0_70 = arith.constant 0 : index
    %c0_71 = arith.constant 0 : index
    %83 = vector.load %arg7[%c0_68, %c2_69, %c0_70, %c0_71] : memref<3x3x128x128xbf16, #tpu.memory_space<vmem>>, vector<1x1x128x128xbf16>
    %84 = vector.shape_cast %83 : vector<1x1x128x128xbf16> to vector<128x128xbf16>
    %cst_72 = arith.constant dense<0.000000e+00> : vector<256x128xf32>
    %85 = tpu.matmul %82, %84, %cst_72 {dimension_numbers = #tpu.dot_dimension_numbers<[1], [0], [0], [1], [0, 0, 1, 1], [], []>} : vector<256x128xbf16>, vector<128x128xbf16>, vector<256x128xf32> -> vector<256x128xf32>
    %86 = arith.addf %80, %85 : vector<256x128xf32>
    %87 = vector.extract_strided_slice %67 {offsets = [1, 0, 0], sizes = [16, 18, 128], strides = [1, 1, 1]} : vector<18x18x128xbf16> to vector<16x18x128xbf16>
    %88 = vector.extract_strided_slice %87 {offsets = [0, 0, 0], sizes = [16, 16, 128], strides = [1, 1, 1]} : vector<16x18x128xbf16> to vector<16x16x128xbf16>
    %89 = vector.shape_cast %88 : vector<16x16x128xbf16> to vector<256x128xbf16>
    %c1_73 = arith.constant 1 : index
    %c0_74 = arith.constant 0 : index
    %c0_75 = arith.constant 0 : index
    %c0_76 = arith.constant 0 : index
    %90 = vector.load %arg7[%c1_73, %c0_74, %c0_75, %c0_76] : memref<3x3x128x128xbf16, #tpu.memory_space<vmem>>, vector<1x1x128x128xbf16>
    %91 = vector.shape_cast %90 : vector<1x1x128x128xbf16> to vector<128x128xbf16>
    %cst_77 = arith.constant dense<0.000000e+00> : vector<256x128xf32>
    %92 = tpu.matmul %89, %91, %cst_77 {dimension_numbers = #tpu.dot_dimension_numbers<[1], [0], [0], [1], [0, 0, 1, 1], [], []>} : vector<256x128xbf16>, vector<128x128xbf16>, vector<256x128xf32> -> vector<256x128xf32>
    %93 = arith.addf %86, %92 : vector<256x128xf32>
    %94 = vector.extract_strided_slice %87 {offsets = [0, 1, 0], sizes = [16, 16, 128], strides = [1, 1, 1]} : vector<16x18x128xbf16> to vector<16x16x128xbf16>
    %95 = vector.shape_cast %94 : vector<16x16x128xbf16> to vector<256x128xbf16>
    %c1_78 = arith.constant 1 : index
    %c1_79 = arith.constant 1 : index
    %c0_80 = arith.constant 0 : index
    %c0_81 = arith.constant 0 : index
    %96 = vector.load %arg7[%c1_78, %c1_79, %c0_80, %c0_81] : memref<3x3x128x128xbf16, #tpu.memory_space<vmem>>, vector<1x1x128x128xbf16>
    %97 = vector.shape_cast %96 : vector<1x1x128x128xbf16> to vector<128x128xbf16>
    %cst_82 = arith.constant dense<0.000000e+00> : vector<256x128xf32>
    %98 = tpu.matmul %95, %97, %cst_82 {dimension_numbers = #tpu.dot_dimension_numbers<[1], [0], [0], [1], [0, 0, 1, 1], [], []>} : vector<256x128xbf16>, vector<128x128xbf16>, vector<256x128xf32> -> vector<256x128xf32>
    %99 = arith.addf %93, %98 : vector<256x128xf32>
    %100 = vector.extract_strided_slice %87 {offsets = [0, 2, 0], sizes = [16, 16, 128], strides = [1, 1, 1]} : vector<16x18x128xbf16> to vector<16x16x128xbf16>
    %101 = vector.shape_cast %100 : vector<16x16x128xbf16> to vector<256x128xbf16>
    %c1_83 = arith.constant 1 : index
    %c2_84 = arith.constant 2 : index
    %c0_85 = arith.constant 0 : index
    %c0_86 = arith.constant 0 : index
    %102 = vector.load %arg7[%c1_83, %c2_84, %c0_85, %c0_86] : memref<3x3x128x128xbf16, #tpu.memory_space<vmem>>, vector<1x1x128x128xbf16>
    %103 = vector.shape_cast %102 : vector<1x1x128x128xbf16> to vector<128x128xbf16>
    %cst_87 = arith.constant dense<0.000000e+00> : vector<256x128xf32>
    %104 = tpu.matmul %101, %103, %cst_87 {dimension_numbers = #tpu.dot_dimension_numbers<[1], [0], [0], [1], [0, 0, 1, 1], [], []>} : vector<256x128xbf16>, vector<128x128xbf16>, vector<256x128xf32> -> vector<256x128xf32>
    %105 = arith.addf %99, %104 : vector<256x128xf32>
    %106 = vector.extract_strided_slice %67 {offsets = [2, 0, 0], sizes = [16, 18, 128], strides = [1, 1, 1]} : vector<18x18x128xbf16> to vector<16x18x128xbf16>
    %107 = vector.extract_strided_slice %106 {offsets = [0, 0, 0], sizes = [16, 16, 128], strides = [1, 1, 1]} : vector<16x18x128xbf16> to vector<16x16x128xbf16>
    %108 = vector.shape_cast %107 : vector<16x16x128xbf16> to vector<256x128xbf16>
    %c2_88 = arith.constant 2 : index
    %c0_89 = arith.constant 0 : index
    %c0_90 = arith.constant 0 : index
    %c0_91 = arith.constant 0 : index
    %109 = vector.load %arg7[%c2_88, %c0_89, %c0_90, %c0_91] : memref<3x3x128x128xbf16, #tpu.memory_space<vmem>>, vector<1x1x128x128xbf16>
    %110 = vector.shape_cast %109 : vector<1x1x128x128xbf16> to vector<128x128xbf16>
    %cst_92 = arith.constant dense<0.000000e+00> : vector<256x128xf32>
    %111 = tpu.matmul %108, %110, %cst_92 {dimension_numbers = #tpu.dot_dimension_numbers<[1], [0], [0], [1], [0, 0, 1, 1], [], []>} : vector<256x128xbf16>, vector<128x128xbf16>, vector<256x128xf32> -> vector<256x128xf32>
    %112 = arith.addf %105, %111 : vector<256x128xf32>
    %113 = vector.extract_strided_slice %106 {offsets = [0, 1, 0], sizes = [16, 16, 128], strides = [1, 1, 1]} : vector<16x18x128xbf16> to vector<16x16x128xbf16>
    %114 = vector.shape_cast %113 : vector<16x16x128xbf16> to vector<256x128xbf16>
    %c2_93 = arith.constant 2 : index
    %c1_94 = arith.constant 1 : index
    %c0_95 = arith.constant 0 : index
    %c0_96 = arith.constant 0 : index
    %115 = vector.load %arg7[%c2_93, %c1_94, %c0_95, %c0_96] : memref<3x3x128x128xbf16, #tpu.memory_space<vmem>>, vector<1x1x128x128xbf16>
    %116 = vector.shape_cast %115 : vector<1x1x128x128xbf16> to vector<128x128xbf16>
    %cst_97 = arith.constant dense<0.000000e+00> : vector<256x128xf32>
    %117 = tpu.matmul %114, %116, %cst_97 {dimension_numbers = #tpu.dot_dimension_numbers<[1], [0], [0], [1], [0, 0, 1, 1], [], []>} : vector<256x128xbf16>, vector<128x128xbf16>, vector<256x128xf32> -> vector<256x128xf32>
    %118 = arith.addf %112, %117 : vector<256x128xf32>
    %119 = vector.extract_strided_slice %106 {offsets = [0, 2, 0], sizes = [16, 16, 128], strides = [1, 1, 1]} : vector<16x18x128xbf16> to vector<16x16x128xbf16>
    %120 = vector.shape_cast %119 : vector<16x16x128xbf16> to vector<256x128xbf16>
    %c2_98 = arith.constant 2 : index
    %c2_99 = arith.constant 2 : index
    %c0_100 = arith.constant 0 : index
    %c0_101 = arith.constant 0 : index
    %121 = vector.load %arg7[%c2_98, %c2_99, %c0_100, %c0_101] : memref<3x3x128x128xbf16, #tpu.memory_space<vmem>>, vector<1x1x128x128xbf16>
    %122 = vector.shape_cast %121 : vector<1x1x128x128xbf16> to vector<128x128xbf16>
    %cst_102 = arith.constant dense<0.000000e+00> : vector<256x128xf32>
    %123 = tpu.matmul %120, %122, %cst_102 {dimension_numbers = #tpu.dot_dimension_numbers<[1], [0], [0], [1], [0, 0, 1, 1], [], []>} : vector<256x128xbf16>, vector<128x128xbf16>, vector<256x128xf32> -> vector<256x128xf32>
    %124 = arith.addf %118, %123 : vector<256x128xf32>
    %125 = vector.shape_cast %124 : vector<256x128xf32> to vector<16x16x128xf32>
    %126 = arith.truncf %125 : vector<16x16x128xf32> to vector<16x16x128xbf16>
    %c0_103 = arith.constant 0 : index
    %c0_104 = arith.constant 0 : index
    %c0_105 = arith.constant 0 : index
    %c0_106 = arith.constant 0 : index
    %127 = vector.load %arg8[%c0_103, %c0_104, %c0_105, %c0_106] : memref<1x16x16x128xbf16, #tpu.memory_space<vmem>>, vector<1x16x16x128xbf16>
    %128 = vector.shape_cast %127 : vector<1x16x16x128xbf16> to vector<16x16x128xbf16>
    %129 = vector.shape_cast %126 : vector<16x16x128xbf16> to vector<1x16x16x128xbf16>
    tpu.vector_store %arg8[%c0_103, %c0_104, %c0_105, %c0_106], %129 {strides = array<i32>} : memref<1x16x16x128xbf16, #tpu.memory_space<vmem>>, vector<1x16x16x128xbf16>,
    %cst_107 = arith.constant dense<0.000000e+00> : vector<128xf32>
    %130 = vector.multi_reduction <add>, %124, %cst_107 [0] : vector<256x128xf32> to vector<128xf32>
    %131 = vector.shape_cast %130 : vector<128xf32> to vector<1x128xf32>
    %c0_108 = arith.constant 0 : index
    %c0_109 = arith.constant 0 : index
    %c0_110 = arith.constant 0 : index
    %c0_111 = arith.constant 0 : index
    %132 = vector.load %arg9[%c0_108, %c0_109, %c0_110, %c0_111] : memref<1x1x2x128xf32, #tpu.memory_space<vmem>>, vector<1x1x1x128xf32>
    %133 = vector.shape_cast %132 : vector<1x1x1x128xf32> to vector<1x128xf32>
    %134 = vector.shape_cast %131 : vector<1x128xf32> to vector<1x1x1x128xf32>
    tpu.vector_store %arg9[%c0_108, %c0_109, %c0_110, %c0_111], %134 {strides = array<i32>} : memref<1x1x2x128xf32, #tpu.memory_space<vmem>>, vector<1x1x1x128xf32>,
    %135 = arith.mulf %124, %124 : vector<256x128xf32>
    %cst_112 = arith.constant dense<0.000000e+00> : vector<128xf32>
    %136 = vector.multi_reduction <add>, %135, %cst_112 [0] : vector<256x128xf32> to vector<128xf32>
    %137 = vector.shape_cast %136 : vector<128xf32> to vector<1x128xf32>
    %c0_113 = arith.constant 0 : index
    %c0_114 = arith.constant 0 : index
    %c1_115 = arith.constant 1 : index
    %c0_116 = arith.constant 0 : index
    %138 = vector.load %arg9[%c0_113, %c0_114, %c1_115, %c0_116] : memref<1x1x2x128xf32, #tpu.memory_space<vmem>>, vector<1x1x1x128xf32>
    %139 = vector.shape_cast %138 : vector<1x1x1x128xf32> to vector<1x128xf32>
    %140 = vector.shape_cast %137 : vector<1x128xf32> to vector<1x1x1x128xf32>
    tpu.vector_store %arg9[%c0_113, %c0_114, %c1_115, %c0_116], %140 {strides = array<i32>} : memref<1x1x2x128xf32, #tpu.memory_space<vmem>>, vector<1x1x1x128xf32>,
    return
  }
  func.func @transform_0(%arg0: i32, %arg1: i32) -> (i32, i32, i32, i32) {
    %c0_i32 = arith.constant 0 : i32
    %c0_i32_0 = arith.constant 0 : i32
    %c0_i32_1 = arith.constant 0 : i32
    return %arg0, %arg1, %c0_i32, %c0_i32_0 : i32, i32, i32, i32
  }
  func.func @transform_1(%arg0: i32, %arg1: i32) -> (i32, i32, i32, i32) {
    %c1_i32 = arith.constant 1 : i32
    %0 = arith.addi %arg1, %c1_i32 : i32
    %c8_i32 = arith.constant 8 : i32
    %1 = arith.muli %0, %c8_i32 : i32
    %c0_i32 = arith.constant 0 : i32
    %c0_i32_0 = arith.constant 0 : i32
    %c0_i32_1 = arith.constant 0 : i32
    return %arg0, %1, %c0_i32, %c0_i32_0 : i32, i32, i32, i32
  }
  func.func @transform_2(%arg0: i32, %arg1: i32) -> (i32, i32, i32, i32) {
    %c0_i32 = arith.constant 0 : i32
    %c0_i32_0 = arith.constant 0 : i32
    %c0_i32_1 = arith.constant 0 : i32
    return %arg0, %arg1, %c0_i32, %c0_i32_0 : i32, i32, i32, i32
  }
  func.func @transform_3(%arg0: i32, %arg1: i32) -> (i32, i32, i32, i32) {
    %c1_i32 = arith.constant 1 : i32
    %0 = arith.addi %arg1, %c1_i32 : i32
    %c8_i32 = arith.constant 8 : i32
    %1 = arith.muli %0, %c8_i32 : i32
    %c0_i32 = arith.constant 0 : i32
    %c0_i32_0 = arith.constant 0 : i32
    %c0_i32_1 = arith.constant 0 : i32
    return %arg0, %1, %c0_i32, %c0_i32_0 : i32, i32, i32, i32
  }
  func.func @transform_4(%arg0: i32, %arg1: i32) -> (i32, i32, i32, i32) {
    %c0_i32 = arith.constant 0 : i32
    %c0_i32_0 = arith.constant 0 : i32
    %c0_i32_1 = arith.constant 0 : i32
    %c0_i32_2 = arith.constant 0 : i32
    %c0_i32_3 = arith.constant 0 : i32
    return %c0_i32, %c0_i32_0, %c0_i32_1, %c0_i32_2 : i32, i32, i32, i32
  }
  func.func @transform_5(%arg0: i32, %arg1: i32) -> (i32, i32, i32, i32) {
    %c0_i32 = arith.constant 0 : i32
    %c0_i32_0 = arith.constant 0 : i32
    %c0_i32_1 = arith.constant 0 : i32
    %c0_i32_2 = arith.constant 0 : i32
    %c0_i32_3 = arith.constant 0 : i32
    return %c0_i32, %c0_i32_0, %c0_i32_1, %c0_i32_2 : i32, i32, i32, i32
  }
  func.func @transform_6(%arg0: i32, %arg1: i32) -> (i32, i32, i32, i32) {
    %c0_i32 = arith.constant 0 : i32
    %c0_i32_0 = arith.constant 0 : i32
    %c0_i32_1 = arith.constant 0 : i32
    return %arg0, %arg1, %c0_i32, %c0_i32_0 : i32, i32, i32, i32
  }
  func.func @transform_7(%arg0: i32, %arg1: i32) -> (i32, i32, i32, i32) {
    %c0_i32 = arith.constant 0 : i32
    %c0_i32_0 = arith.constant 0 : i32
    %c0_i32_1 = arith.constant 0 : i32
    return %arg0, %arg1, %c0_i32, %c0_i32_0 : i32, i32, i32, i32
  }
}

module attributes {stable_mosaic.version = 11 : i64} {
  func.func @kernel(%arg0: i32, %arg1: i32, %arg2: memref<1x16x18x128xbf16, #tpu.memory_space<vmem>>, %arg3: memref<1x2x18x128xbf16, #tpu.memory_space<vmem>>, %arg4: memref<1x128xf32, #tpu.memory_space<vmem>>, %arg5: memref<1x128xf32, #tpu.memory_space<vmem>>, %arg6: memref<3x3x128x128xbf16, #tpu.memory_space<vmem>>, %arg7: memref<1x16x16x128xbf16, #tpu.memory_space<vmem>>, %arg8: memref<1x1x2x128xf32, #tpu.memory_space<vmem>>) attributes {dimension_semantics = [#tpu.dimension_semantics<parallel>, #tpu.dimension_semantics<parallel>], iteration_bounds = array<i64: 2, 1>, scalar_prefetch = 0 : i64, scratch_operands = 0 : i64, tpu.core_type = #tpu.core_type<tc>, window_params = [{transform_indices = @transform_0, window_bounds = array<i64: 1, 16, 18, 128>}, {transform_indices = @transform_1, window_bounds = array<i64: 1, 2, 18, 128>}, {pipeline_mode = #tpu.pipeline_mode<synchronous>, transform_indices = @transform_2, window_bounds = array<i64: 1, 128>}, {pipeline_mode = #tpu.pipeline_mode<synchronous>, transform_indices = @transform_3, window_bounds = array<i64: 1, 128>}, {pipeline_mode = #tpu.pipeline_mode<synchronous>, transform_indices = @transform_4, window_bounds = array<i64: 3, 3, 128, 128>}, {transform_indices = @transform_5, window_bounds = array<i64: 1, 16, 16, 128>}, {transform_indices = @transform_6, window_bounds = array<i64: 1, 1, 2, 128>}]} {
    %cst = arith.constant 0.000000e+00 : f32
    %0 = vector.broadcast %cst : f32 to vector<256x128xf32>
    %c0 = arith.constant 0 : index
    %c0_0 = arith.constant 0 : index
    %c0_1 = arith.constant 0 : index
    %c0_2 = arith.constant 0 : index
    %1 = vector.load %arg2[%c0, %c0_0, %c0_1, %c0_2] : memref<1x16x18x128xbf16, #tpu.memory_space<vmem>>, vector<1x16x18x128xbf16>
    %2 = vector.shape_cast %1 : vector<1x16x18x128xbf16> to vector<16x18x128xbf16>
    %c0_3 = arith.constant 0 : index
    %c0_4 = arith.constant 0 : index
    %c0_5 = arith.constant 0 : index
    %c0_6 = arith.constant 0 : index
    %3 = vector.load %arg3[%c0_3, %c0_4, %c0_5, %c0_6] : memref<1x2x18x128xbf16, #tpu.memory_space<vmem>>, vector<1x2x18x128xbf16>
    %4 = vector.shape_cast %3 : vector<1x2x18x128xbf16> to vector<2x18x128xbf16>
    %5 = tpu.concatenate %2, %4 in 0 : vector<16x18x128xbf16>, vector<2x18x128xbf16> -> vector<18x18x128xbf16>
    %c0_7 = arith.constant 0 : index
    %c0_8 = arith.constant 0 : index
    %6 = vector.load %arg4[%c0_7, %c0_8] : memref<1x128xf32, #tpu.memory_space<vmem>>, vector<1x128xf32>
    %c0_9 = arith.constant 0 : index
    %c0_10 = arith.constant 0 : index
    %7 = vector.load %arg5[%c0_9, %c0_10] : memref<1x128xf32, #tpu.memory_space<vmem>>, vector<1x128xf32>
    %8 = arith.extf %5 : vector<18x18x128xbf16> to vector<18x18x128xf32>
    %9 = vector.shape_cast %6 : vector<1x128xf32> to vector<1x1x128xf32>
    %10 = vector.broadcast %9 : vector<1x1x128xf32> to vector<18x18x128xf32>
    %11 = arith.mulf %8, %10 : vector<18x18x128xf32>
    %12 = vector.shape_cast %7 : vector<1x128xf32> to vector<1x1x128xf32>
    %13 = vector.broadcast %12 : vector<1x1x128xf32> to vector<18x18x128xf32>
    %14 = arith.addf %11, %13 : vector<18x18x128xf32>
    %cst_11 = arith.constant 0.000000e+00 : f32
    %15 = vector.broadcast %cst_11 : f32 to vector<18x18x128xf32>
    %16 = arith.maximumf %14, %15 : vector<18x18x128xf32>
    %17 = tpu.iota {dimensions = array<i32: 0>} : vector<18x18x1xi32>
    %18 = tpu.iota {dimensions = array<i32: 1>} : vector<18x18x1xi32>
    %c1_i32 = arith.constant 1 : i32
    %19 = vector.broadcast %c1_i32 : i32 to vector<18x18x1xi32>
    %20 = arith.cmpi sge, %18, %19 : vector<18x18x1xi32>
    %c16_i32 = arith.constant 16 : i32
    %21 = vector.broadcast %c16_i32 : i32 to vector<18x18x1xi32>
    %22 = arith.cmpi sle, %18, %21 : vector<18x18x1xi32>
    %23 = arith.andi %20, %22 : vector<18x18x1xi1>
    %c0_i32 = arith.constant 0 : i32
    %24 = vector.broadcast %c0_i32 : i32 to vector<18x18x1xi32>
    %25 = arith.cmpi ne, %17, %24 : vector<18x18x1xi32>
    %c0_i32_12 = arith.constant 0 : i32
    %26 = arith.cmpi ne, %arg1, %c0_i32_12 : i32
    %27 = vector.broadcast %26 : i1 to vector<18x18x1xi1>
    %28 = arith.ori %25, %27 : vector<18x18x1xi1>
    %29 = arith.andi %23, %28 : vector<18x18x1xi1>
    %c17_i32 = arith.constant 17 : i32
    %30 = vector.broadcast %c17_i32 : i32 to vector<18x18x1xi32>
    %31 = arith.cmpi ne, %17, %30 : vector<18x18x1xi32>
    %c0_i32_13 = arith.constant 0 : i32
    %32 = arith.cmpi ne, %arg1, %c0_i32_13 : i32
    %33 = vector.broadcast %32 : i1 to vector<18x18x1xi1>
    %34 = arith.ori %31, %33 : vector<18x18x1xi1>
    %35 = arith.andi %29, %34 : vector<18x18x1xi1>
    %cst_14 = arith.constant 0.000000e+00 : f32
    %36 = vector.shape_cast %35 : vector<18x18x1xi1> to vector<18x18x1xi1>
    %37 = vector.broadcast %36 : vector<18x18x1xi1> to vector<18x18x128xi1>
    %38 = vector.broadcast %cst_14 : f32 to vector<18x18x128xf32>
    %39 = arith.select %37, %16, %38 : vector<18x18x128xi1>, vector<18x18x128xf32>
    %40 = arith.truncf %39 : vector<18x18x128xf32> to vector<18x18x128xbf16>
    %41 = vector.extract_strided_slice %40 {offsets = [0, 0, 0], sizes = [16, 18, 128], strides = [1, 1, 1]} : vector<18x18x128xbf16> to vector<16x18x128xbf16>
    %42 = vector.extract_strided_slice %41 {offsets = [0, 0, 0], sizes = [16, 16, 128], strides = [1, 1, 1]} : vector<16x18x128xbf16> to vector<16x16x128xbf16>
    %43 = vector.shape_cast %42 : vector<16x16x128xbf16> to vector<256x128xbf16>
    %c0_15 = arith.constant 0 : index
    %c0_16 = arith.constant 0 : index
    %c0_17 = arith.constant 0 : index
    %c0_18 = arith.constant 0 : index
    %44 = vector.load %arg6[%c0_15, %c0_16, %c0_17, %c0_18] : memref<3x3x128x128xbf16, #tpu.memory_space<vmem>>, vector<1x1x128x128xbf16>
    %45 = vector.shape_cast %44 : vector<1x1x128x128xbf16> to vector<128x128xbf16>
    %cst_19 = arith.constant dense<0.000000e+00> : vector<256x128xf32>
    %46 = tpu.matmul %43, %45, %cst_19 {dimension_numbers = #tpu.dot_dimension_numbers<[1], [0], [0], [1], [0, 0, 1, 1], [], []>} : vector<256x128xbf16>, vector<128x128xbf16>, vector<256x128xf32> -> vector<256x128xf32>
    %47 = arith.addf %0, %46 : vector<256x128xf32>
    %48 = vector.extract_strided_slice %41 {offsets = [0, 1, 0], sizes = [16, 16, 128], strides = [1, 1, 1]} : vector<16x18x128xbf16> to vector<16x16x128xbf16>
    %49 = vector.shape_cast %48 : vector<16x16x128xbf16> to vector<256x128xbf16>
    %c0_20 = arith.constant 0 : index
    %c1 = arith.constant 1 : index
    %c0_21 = arith.constant 0 : index
    %c0_22 = arith.constant 0 : index
    %50 = vector.load %arg6[%c0_20, %c1, %c0_21, %c0_22] : memref<3x3x128x128xbf16, #tpu.memory_space<vmem>>, vector<1x1x128x128xbf16>
    %51 = vector.shape_cast %50 : vector<1x1x128x128xbf16> to vector<128x128xbf16>
    %cst_23 = arith.constant dense<0.000000e+00> : vector<256x128xf32>
    %52 = tpu.matmul %49, %51, %cst_23 {dimension_numbers = #tpu.dot_dimension_numbers<[1], [0], [0], [1], [0, 0, 1, 1], [], []>} : vector<256x128xbf16>, vector<128x128xbf16>, vector<256x128xf32> -> vector<256x128xf32>
    %53 = arith.addf %47, %52 : vector<256x128xf32>
    %54 = vector.extract_strided_slice %41 {offsets = [0, 2, 0], sizes = [16, 16, 128], strides = [1, 1, 1]} : vector<16x18x128xbf16> to vector<16x16x128xbf16>
    %55 = vector.shape_cast %54 : vector<16x16x128xbf16> to vector<256x128xbf16>
    %c0_24 = arith.constant 0 : index
    %c2 = arith.constant 2 : index
    %c0_25 = arith.constant 0 : index
    %c0_26 = arith.constant 0 : index
    %56 = vector.load %arg6[%c0_24, %c2, %c0_25, %c0_26] : memref<3x3x128x128xbf16, #tpu.memory_space<vmem>>, vector<1x1x128x128xbf16>
    %57 = vector.shape_cast %56 : vector<1x1x128x128xbf16> to vector<128x128xbf16>
    %cst_27 = arith.constant dense<0.000000e+00> : vector<256x128xf32>
    %58 = tpu.matmul %55, %57, %cst_27 {dimension_numbers = #tpu.dot_dimension_numbers<[1], [0], [0], [1], [0, 0, 1, 1], [], []>} : vector<256x128xbf16>, vector<128x128xbf16>, vector<256x128xf32> -> vector<256x128xf32>
    %59 = arith.addf %53, %58 : vector<256x128xf32>
    %60 = vector.extract_strided_slice %40 {offsets = [1, 0, 0], sizes = [16, 18, 128], strides = [1, 1, 1]} : vector<18x18x128xbf16> to vector<16x18x128xbf16>
    %61 = vector.extract_strided_slice %60 {offsets = [0, 0, 0], sizes = [16, 16, 128], strides = [1, 1, 1]} : vector<16x18x128xbf16> to vector<16x16x128xbf16>
    %62 = vector.shape_cast %61 : vector<16x16x128xbf16> to vector<256x128xbf16>
    %c1_28 = arith.constant 1 : index
    %c0_29 = arith.constant 0 : index
    %c0_30 = arith.constant 0 : index
    %c0_31 = arith.constant 0 : index
    %63 = vector.load %arg6[%c1_28, %c0_29, %c0_30, %c0_31] : memref<3x3x128x128xbf16, #tpu.memory_space<vmem>>, vector<1x1x128x128xbf16>
    %64 = vector.shape_cast %63 : vector<1x1x128x128xbf16> to vector<128x128xbf16>
    %cst_32 = arith.constant dense<0.000000e+00> : vector<256x128xf32>
    %65 = tpu.matmul %62, %64, %cst_32 {dimension_numbers = #tpu.dot_dimension_numbers<[1], [0], [0], [1], [0, 0, 1, 1], [], []>} : vector<256x128xbf16>, vector<128x128xbf16>, vector<256x128xf32> -> vector<256x128xf32>
    %66 = arith.addf %59, %65 : vector<256x128xf32>
    %67 = vector.extract_strided_slice %60 {offsets = [0, 1, 0], sizes = [16, 16, 128], strides = [1, 1, 1]} : vector<16x18x128xbf16> to vector<16x16x128xbf16>
    %68 = vector.shape_cast %67 : vector<16x16x128xbf16> to vector<256x128xbf16>
    %c1_33 = arith.constant 1 : index
    %c1_34 = arith.constant 1 : index
    %c0_35 = arith.constant 0 : index
    %c0_36 = arith.constant 0 : index
    %69 = vector.load %arg6[%c1_33, %c1_34, %c0_35, %c0_36] : memref<3x3x128x128xbf16, #tpu.memory_space<vmem>>, vector<1x1x128x128xbf16>
    %70 = vector.shape_cast %69 : vector<1x1x128x128xbf16> to vector<128x128xbf16>
    %cst_37 = arith.constant dense<0.000000e+00> : vector<256x128xf32>
    %71 = tpu.matmul %68, %70, %cst_37 {dimension_numbers = #tpu.dot_dimension_numbers<[1], [0], [0], [1], [0, 0, 1, 1], [], []>} : vector<256x128xbf16>, vector<128x128xbf16>, vector<256x128xf32> -> vector<256x128xf32>
    %72 = arith.addf %66, %71 : vector<256x128xf32>
    %73 = vector.extract_strided_slice %60 {offsets = [0, 2, 0], sizes = [16, 16, 128], strides = [1, 1, 1]} : vector<16x18x128xbf16> to vector<16x16x128xbf16>
    %74 = vector.shape_cast %73 : vector<16x16x128xbf16> to vector<256x128xbf16>
    %c1_38 = arith.constant 1 : index
    %c2_39 = arith.constant 2 : index
    %c0_40 = arith.constant 0 : index
    %c0_41 = arith.constant 0 : index
    %75 = vector.load %arg6[%c1_38, %c2_39, %c0_40, %c0_41] : memref<3x3x128x128xbf16, #tpu.memory_space<vmem>>, vector<1x1x128x128xbf16>
    %76 = vector.shape_cast %75 : vector<1x1x128x128xbf16> to vector<128x128xbf16>
    %cst_42 = arith.constant dense<0.000000e+00> : vector<256x128xf32>
    %77 = tpu.matmul %74, %76, %cst_42 {dimension_numbers = #tpu.dot_dimension_numbers<[1], [0], [0], [1], [0, 0, 1, 1], [], []>} : vector<256x128xbf16>, vector<128x128xbf16>, vector<256x128xf32> -> vector<256x128xf32>
    %78 = arith.addf %72, %77 : vector<256x128xf32>
    %79 = vector.extract_strided_slice %40 {offsets = [2, 0, 0], sizes = [16, 18, 128], strides = [1, 1, 1]} : vector<18x18x128xbf16> to vector<16x18x128xbf16>
    %80 = vector.extract_strided_slice %79 {offsets = [0, 0, 0], sizes = [16, 16, 128], strides = [1, 1, 1]} : vector<16x18x128xbf16> to vector<16x16x128xbf16>
    %81 = vector.shape_cast %80 : vector<16x16x128xbf16> to vector<256x128xbf16>
    %c2_43 = arith.constant 2 : index
    %c0_44 = arith.constant 0 : index
    %c0_45 = arith.constant 0 : index
    %c0_46 = arith.constant 0 : index
    %82 = vector.load %arg6[%c2_43, %c0_44, %c0_45, %c0_46] : memref<3x3x128x128xbf16, #tpu.memory_space<vmem>>, vector<1x1x128x128xbf16>
    %83 = vector.shape_cast %82 : vector<1x1x128x128xbf16> to vector<128x128xbf16>
    %cst_47 = arith.constant dense<0.000000e+00> : vector<256x128xf32>
    %84 = tpu.matmul %81, %83, %cst_47 {dimension_numbers = #tpu.dot_dimension_numbers<[1], [0], [0], [1], [0, 0, 1, 1], [], []>} : vector<256x128xbf16>, vector<128x128xbf16>, vector<256x128xf32> -> vector<256x128xf32>
    %85 = arith.addf %78, %84 : vector<256x128xf32>
    %86 = vector.extract_strided_slice %79 {offsets = [0, 1, 0], sizes = [16, 16, 128], strides = [1, 1, 1]} : vector<16x18x128xbf16> to vector<16x16x128xbf16>
    %87 = vector.shape_cast %86 : vector<16x16x128xbf16> to vector<256x128xbf16>
    %c2_48 = arith.constant 2 : index
    %c1_49 = arith.constant 1 : index
    %c0_50 = arith.constant 0 : index
    %c0_51 = arith.constant 0 : index
    %88 = vector.load %arg6[%c2_48, %c1_49, %c0_50, %c0_51] : memref<3x3x128x128xbf16, #tpu.memory_space<vmem>>, vector<1x1x128x128xbf16>
    %89 = vector.shape_cast %88 : vector<1x1x128x128xbf16> to vector<128x128xbf16>
    %cst_52 = arith.constant dense<0.000000e+00> : vector<256x128xf32>
    %90 = tpu.matmul %87, %89, %cst_52 {dimension_numbers = #tpu.dot_dimension_numbers<[1], [0], [0], [1], [0, 0, 1, 1], [], []>} : vector<256x128xbf16>, vector<128x128xbf16>, vector<256x128xf32> -> vector<256x128xf32>
    %91 = arith.addf %85, %90 : vector<256x128xf32>
    %92 = vector.extract_strided_slice %79 {offsets = [0, 2, 0], sizes = [16, 16, 128], strides = [1, 1, 1]} : vector<16x18x128xbf16> to vector<16x16x128xbf16>
    %93 = vector.shape_cast %92 : vector<16x16x128xbf16> to vector<256x128xbf16>
    %c2_53 = arith.constant 2 : index
    %c2_54 = arith.constant 2 : index
    %c0_55 = arith.constant 0 : index
    %c0_56 = arith.constant 0 : index
    %94 = vector.load %arg6[%c2_53, %c2_54, %c0_55, %c0_56] : memref<3x3x128x128xbf16, #tpu.memory_space<vmem>>, vector<1x1x128x128xbf16>
    %95 = vector.shape_cast %94 : vector<1x1x128x128xbf16> to vector<128x128xbf16>
    %cst_57 = arith.constant dense<0.000000e+00> : vector<256x128xf32>
    %96 = tpu.matmul %93, %95, %cst_57 {dimension_numbers = #tpu.dot_dimension_numbers<[1], [0], [0], [1], [0, 0, 1, 1], [], []>} : vector<256x128xbf16>, vector<128x128xbf16>, vector<256x128xf32> -> vector<256x128xf32>
    %97 = arith.addf %91, %96 : vector<256x128xf32>
    %98 = vector.shape_cast %97 : vector<256x128xf32> to vector<16x16x128xf32>
    %99 = arith.truncf %98 : vector<16x16x128xf32> to vector<16x16x128xbf16>
    %c0_58 = arith.constant 0 : index
    %c0_59 = arith.constant 0 : index
    %c0_60 = arith.constant 0 : index
    %c0_61 = arith.constant 0 : index
    %100 = vector.load %arg7[%c0_58, %c0_59, %c0_60, %c0_61] : memref<1x16x16x128xbf16, #tpu.memory_space<vmem>>, vector<1x16x16x128xbf16>
    %101 = vector.shape_cast %100 : vector<1x16x16x128xbf16> to vector<16x16x128xbf16>
    %102 = vector.shape_cast %99 : vector<16x16x128xbf16> to vector<1x16x16x128xbf16>
    tpu.vector_store %arg7[%c0_58, %c0_59, %c0_60, %c0_61], %102 {strides = array<i32>} : memref<1x16x16x128xbf16, #tpu.memory_space<vmem>>, vector<1x16x16x128xbf16>,
    %cst_62 = arith.constant dense<0.000000e+00> : vector<128xf32>
    %103 = vector.multi_reduction <add>, %97, %cst_62 [0] : vector<256x128xf32> to vector<128xf32>
    %104 = vector.shape_cast %103 : vector<128xf32> to vector<1x128xf32>
    %c0_63 = arith.constant 0 : index
    %c0_64 = arith.constant 0 : index
    %c0_65 = arith.constant 0 : index
    %c0_66 = arith.constant 0 : index
    %105 = vector.load %arg8[%c0_63, %c0_64, %c0_65, %c0_66] : memref<1x1x2x128xf32, #tpu.memory_space<vmem>>, vector<1x1x1x128xf32>
    %106 = vector.shape_cast %105 : vector<1x1x1x128xf32> to vector<1x128xf32>
    %107 = vector.shape_cast %104 : vector<1x128xf32> to vector<1x1x1x128xf32>
    tpu.vector_store %arg8[%c0_63, %c0_64, %c0_65, %c0_66], %107 {strides = array<i32>} : memref<1x1x2x128xf32, #tpu.memory_space<vmem>>, vector<1x1x1x128xf32>,
    %108 = arith.mulf %97, %97 : vector<256x128xf32>
    %cst_67 = arith.constant dense<0.000000e+00> : vector<128xf32>
    %109 = vector.multi_reduction <add>, %108, %cst_67 [0] : vector<256x128xf32> to vector<128xf32>
    %110 = vector.shape_cast %109 : vector<128xf32> to vector<1x128xf32>
    %c0_68 = arith.constant 0 : index
    %c0_69 = arith.constant 0 : index
    %c1_70 = arith.constant 1 : index
    %c0_71 = arith.constant 0 : index
    %111 = vector.load %arg8[%c0_68, %c0_69, %c1_70, %c0_71] : memref<1x1x2x128xf32, #tpu.memory_space<vmem>>, vector<1x1x1x128xf32>
    %112 = vector.shape_cast %111 : vector<1x1x1x128xf32> to vector<1x128xf32>
    %113 = vector.shape_cast %110 : vector<1x128xf32> to vector<1x1x1x128xf32>
    tpu.vector_store %arg8[%c0_68, %c0_69, %c1_70, %c0_71], %113 {strides = array<i32>} : memref<1x1x2x128xf32, #tpu.memory_space<vmem>>, vector<1x1x1x128xf32>,
    return
  }
  func.func @transform_0(%arg0: i32, %arg1: i32) -> (i32, i32, i32, i32) {
    %c0_i32 = arith.constant 0 : i32
    %c0_i32_0 = arith.constant 0 : i32
    %c0_i32_1 = arith.constant 0 : i32
    return %arg0, %arg1, %c0_i32, %c0_i32_0 : i32, i32, i32, i32
  }
  func.func @transform_1(%arg0: i32, %arg1: i32) -> (i32, i32, i32, i32) {
    %c1_i32 = arith.constant 1 : i32
    %0 = arith.addi %arg1, %c1_i32 : i32
    %c8_i32 = arith.constant 8 : i32
    %1 = arith.muli %0, %c8_i32 : i32
    %c0_i32 = arith.constant 0 : i32
    %c0_i32_0 = arith.constant 0 : i32
    %c0_i32_1 = arith.constant 0 : i32
    return %arg0, %1, %c0_i32, %c0_i32_0 : i32, i32, i32, i32
  }
  func.func @transform_2(%arg0: i32, %arg1: i32) -> (i32, i32) {
    %c0_i32 = arith.constant 0 : i32
    %c0_i32_0 = arith.constant 0 : i32
    %c0_i32_1 = arith.constant 0 : i32
    return %c0_i32, %c0_i32_0 : i32, i32
  }
  func.func @transform_3(%arg0: i32, %arg1: i32) -> (i32, i32) {
    %c0_i32 = arith.constant 0 : i32
    %c0_i32_0 = arith.constant 0 : i32
    %c0_i32_1 = arith.constant 0 : i32
    return %c0_i32, %c0_i32_0 : i32, i32
  }
  func.func @transform_4(%arg0: i32, %arg1: i32) -> (i32, i32, i32, i32) {
    %c0_i32 = arith.constant 0 : i32
    %c0_i32_0 = arith.constant 0 : i32
    %c0_i32_1 = arith.constant 0 : i32
    %c0_i32_2 = arith.constant 0 : i32
    %c0_i32_3 = arith.constant 0 : i32
    return %c0_i32, %c0_i32_0, %c0_i32_1, %c0_i32_2 : i32, i32, i32, i32
  }
  func.func @transform_5(%arg0: i32, %arg1: i32) -> (i32, i32, i32, i32) {
    %c0_i32 = arith.constant 0 : i32
    %c0_i32_0 = arith.constant 0 : i32
    %c0_i32_1 = arith.constant 0 : i32
    return %arg0, %arg1, %c0_i32, %c0_i32_0 : i32, i32, i32, i32
  }
  func.func @transform_6(%arg0: i32, %arg1: i32) -> (i32, i32, i32, i32) {
    %c0_i32 = arith.constant 0 : i32
    %c0_i32_0 = arith.constant 0 : i32
    %c0_i32_1 = arith.constant 0 : i32
    return %arg0, %arg1, %c0_i32, %c0_i32_0 : i32, i32, i32, i32
  }
}

module attributes {stable_mosaic.version = 11 : i64} {
  func.func @_bn_relu_kernel(%arg0: i32, %arg1: i32, %arg2: memref<1x16x16x128xbf16, #tpu.memory_space<vmem>>, %arg3: memref<1x128xf32, #tpu.memory_space<vmem>>, %arg4: memref<1x128xf32, #tpu.memory_space<vmem>>, %arg5: memref<1x16x16x128xf32, #tpu.memory_space<vmem>>) attributes {dimension_semantics = [#tpu.dimension_semantics<parallel>, #tpu.dimension_semantics<parallel>], iteration_bounds = array<i64: 2, 1>, scalar_prefetch = 0 : i64, scratch_operands = 0 : i64, tpu.core_type = #tpu.core_type<tc>, window_params = [{transform_indices = @transform_0, window_bounds = array<i64: 1, 16, 16, 128>}, {pipeline_mode = #tpu.pipeline_mode<synchronous>, transform_indices = @transform_1, window_bounds = array<i64: 1, 128>}, {pipeline_mode = #tpu.pipeline_mode<synchronous>, transform_indices = @transform_2, window_bounds = array<i64: 1, 128>}, {transform_indices = @transform_3, window_bounds = array<i64: 1, 16, 16, 128>}]} {
    %c0 = arith.constant 0 : index
    %c0_0 = arith.constant 0 : index
    %c0_1 = arith.constant 0 : index
    %c0_2 = arith.constant 0 : index
    %0 = vector.load %arg2[%c0, %c0_0, %c0_1, %c0_2] : memref<1x16x16x128xbf16, #tpu.memory_space<vmem>>, vector<1x16x16x128xbf16>
    %1 = vector.shape_cast %0 : vector<1x16x16x128xbf16> to vector<16x16x128xbf16>
    %2 = arith.extf %1 : vector<16x16x128xbf16> to vector<16x16x128xf32>
    %c0_3 = arith.constant 0 : index
    %c0_4 = arith.constant 0 : index
    %3 = vector.load %arg3[%c0_3, %c0_4] : memref<1x128xf32, #tpu.memory_space<vmem>>, vector<1x128xf32>
    %4 = vector.shape_cast %3 : vector<1x128xf32> to vector<1x1x128xf32>
    %5 = vector.broadcast %4 : vector<1x1x128xf32> to vector<16x16x128xf32>
    %6 = arith.mulf %2, %5 : vector<16x16x128xf32>
    %c0_5 = arith.constant 0 : index
    %c0_6 = arith.constant 0 : index
    %7 = vector.load %arg4[%c0_5, %c0_6] : memref<1x128xf32, #tpu.memory_space<vmem>>, vector<1x128xf32>
    %8 = vector.shape_cast %7 : vector<1x128xf32> to vector<1x1x128xf32>
    %9 = vector.broadcast %8 : vector<1x1x128xf32> to vector<16x16x128xf32>
    %10 = arith.addf %6, %9 : vector<16x16x128xf32>
    %cst = arith.constant 0.000000e+00 : f32
    %11 = vector.broadcast %cst : f32 to vector<16x16x128xf32>
    %12 = arith.maximumf %10, %11 : vector<16x16x128xf32>
    %c0_7 = arith.constant 0 : index
    %c0_8 = arith.constant 0 : index
    %c0_9 = arith.constant 0 : index
    %c0_10 = arith.constant 0 : index
    %13 = vector.load %arg5[%c0_7, %c0_8, %c0_9, %c0_10] : memref<1x16x16x128xf32, #tpu.memory_space<vmem>>, vector<1x16x16x128xf32>
    %14 = vector.shape_cast %13 : vector<1x16x16x128xf32> to vector<16x16x128xf32>
    %15 = vector.shape_cast %12 : vector<16x16x128xf32> to vector<1x16x16x128xf32>
    tpu.vector_store %arg5[%c0_7, %c0_8, %c0_9, %c0_10], %15 {strides = array<i32>} : memref<1x16x16x128xf32, #tpu.memory_space<vmem>>, vector<1x16x16x128xf32>,
    return
  }
  func.func @transform_0(%arg0: i32, %arg1: i32) -> (i32, i32, i32, i32) {
    %c0_i32 = arith.constant 0 : i32
    %c0_i32_0 = arith.constant 0 : i32
    %c0_i32_1 = arith.constant 0 : i32
    return %arg0, %arg1, %c0_i32, %c0_i32_0 : i32, i32, i32, i32
  }
  func.func @transform_1(%arg0: i32, %arg1: i32) -> (i32, i32) {
    %c0_i32 = arith.constant 0 : i32
    %c0_i32_0 = arith.constant 0 : i32
    %c0_i32_1 = arith.constant 0 : i32
    return %c0_i32, %c0_i32_0 : i32, i32
  }
  func.func @transform_2(%arg0: i32, %arg1: i32) -> (i32, i32) {
    %c0_i32 = arith.constant 0 : i32
    %c0_i32_0 = arith.constant 0 : i32
    %c0_i32_1 = arith.constant 0 : i32
    return %c0_i32, %c0_i32_0 : i32, i32
  }
  func.func @transform_3(%arg0: i32, %arg1: i32) -> (i32, i32, i32, i32) {
    %c0_i32 = arith.constant 0 : i32
    %c0_i32_0 = arith.constant 0 : i32
    %c0_i32_1 = arith.constant 0 : i32
    return %arg0, %arg1, %c0_i32, %c0_i32_0 : i32, i32, i32, i32
  }
}

</mosaic_0001>

<bundles_post_ra>
// kernel: up_forward.4
= control target key start
LH: loop header
LB: loop body
LE: loop exit
PB: predicated region body
PF: predicated region fallthrough
CT: control target
= control target key end

     0   :  { %s1075_s12 = smov 0   ;;  %s1077_s13 = smov 0   ;;  %s1290_s0 = inlined_call_operand.vmem [shape: bf16[2,8,8,128], index: 0, kind: input, shape index: {}]   ;;  %s1291_s1 = inlined_call_operand.vmem [shape: bf16[2,128,256], index: 1, kind: input, shape index: {}]   ;;  %s1292_s2 = inlined_call_operand.vmem [shape: f32[2,1,256], index: 2, kind: input, shape index: {}]   ;;  %s1293_s3 = inlined_call_operand.vmem [shape: bf16[2,8,2,8,256], index: 3, kind: output, shape index: {}]  }
   0x1   :  { %s1079_s14 = smov 0  }
   0x2 LB: > { %s25_s15 = sadd.s32 1, %s1048_s13  ;;  %p851_p0 = scmp.ge.s32.totalorder %s1052_s14, 1  ;;  %s1052_s14 = sphi %s1079_s14, %s13_s14   ;;  %s1048_s13 = sphi %s1077_s13, %s1295_s13   ;;  %s1044_s12 = sphi %s1075_s12, %s1294_s12  }
   0x3   : > { %p27_p1 = scmp.ge.s32.totalorder %s25_s15, 2  ;;  %p158_p2 = scmp.lt.s32.totalorder %s1052_s14, 3 }
   0x5   : > { %s1297_s15 = smov (%p27_p1, %s25_s15), 0  ;;  %p159_p3 = pnand %p851_p0, %p158_p2 }
   0x6   : > { %v978_v0 = vld [vmem:[%s1291_s1 + $0x4] ss:$8 sps:$4 sm:$0xff] (!%p159_p3)   ;;  %v1054_v2 = vmov (!%p159_p3), 0   ;;  %v982_v3 = vld [vmem:[%s1291_s1] ss:$8 sps:$4 sm:$0xff] (!%p159_p3)   ;;  %p192_p4 = scmp.lt.s32.totalorder (!%p159_p3), %s1044_s12, 1  ;;  %v239_v37 = vlaneseq (!%p159_p3) }
   0x7   : > { %162 = sbr.rel (%p159_p3) target bundleno = 284 (0x11c), region = 32  ;;  %v980_v1 = vld [vmem:[%s1291_s1 + $0x84] ss:$8 sps:$4 sm:$0xff] (!%p159_p3)   ;;  %385 = vmatprep.mubr.bf16.mxu0 (!%p159_p3), %v1054_v2  ;;  %640 = vmatprep.mubr.bf16.mxu1 (!%p159_p3), %v1054_v2  ;;  %v983_v4 = vld [vmem:[%s1291_s1 + $0x80] ss:$8 sps:$4 sm:$0xff] (!%p159_p3)  }
   0x8   : > { %353 = vmatprep.subr.bf16.mxu0 (!%p159_p3), %v978_v0  ;;  %608 = vmatprep.subr.bf16.mxu1 (!%p159_p3), %v980_v1  ;;  %v984_v5 = vld [vmem:[%s1291_s1 + $0x14] ss:$8 sps:$4 sm:$0xff] (!%p159_p3)   ;;  %v988_v7 = vld [vmem:[%s1291_s1 + $0x10] ss:$8 sps:$4 sm:$0xff] (!%p159_p3)   ;;  %v990_v9 = vld [vmem:[%s1291_s1 + $0x24] ss:$8 sps:$4 sm:$0xff] (!%p159_p3)  }
   0x9   : > { %354 = vmatpush1.bf16.msra.mxu0 (!%p159_p3), %v982_v3  ;;  %609 = vmatpush1.bf16.msra.mxu1 (!%p159_p3), %v983_v4  ;;  %v986_v6 = vld [vmem:[%s1291_s1 + $0x94] ss:$8 sps:$4 sm:$0xff] (!%p159_p3)   ;;  %v989_v8 = vld [vmem:[%s1291_s1 + $0x90] ss:$8 sps:$4 sm:$0xff] (!%p159_p3)   ;;  %v992_v10 = vld [vmem:[%s1291_s1 + $0xa4] ss:$8 sps:$4 sm:$0xff] (!%p159_p3)  }
   0xa   : > { %355 = vmatprep.subr.bf16.mxu0 (!%p159_p3), %v984_v5  ;;  %610 = vmatprep.subr.bf16.mxu1 (!%p159_p3), %v986_v6  ;;  %v994_v11 = vld [vmem:[%s1291_s1 + $0x20] ss:$8 sps:$4 sm:$0xff] (!%p159_p3)   ;;  %v996_v13 = vld [vmem:[%s1291_s1 + $0x34] ss:$8 sps:$4 sm:$0xff] (!%p159_p3)   ;;  %v1000_v15 = vld [vmem:[%s1291_s1 + $0x30] ss:$8 sps:$4 sm:$0xff] (!%p159_p3)  }
   0xb   : > { %v995_v12 = vld [vmem:[%s1291_s1 + $0xa0] ss:$8 sps:$4 sm:$0xff] (!%p159_p3)   ;;  %v998_v14 = vld [vmem:[%s1291_s1 + $0xb4] ss:$8 sps:$4 sm:$0xff] (!%p159_p3)   ;;  %v1001_v16 = vld [vmem:[%s1291_s1 + $0xb0] ss:$8 sps:$4 sm:$0xff] (!%p159_p3)  }
   0xc   : > { %v1002_v17 = vld [vmem:[%s1291_s1 + $0x44] ss:$8 sps:$4 sm:$0xff] (!%p159_p3)   ;;  %v1006_v19 = vld [vmem:[%s1291_s1 + $0x40] ss:$8 sps:$4 sm:$0xff] (!%p159_p3)   ;;  %v1008_v21 = vld [vmem:[%s1291_s1 + $0x54] ss:$8 sps:$4 sm:$0xff] (!%p159_p3)  }
   0xd   : > { %356 = vmatpush1.bf16.msra.mxu0 (!%p159_p3), %v988_v7  ;;  %611 = vmatpush1.bf16.msra.mxu1 (!%p159_p3), %v989_v8  ;;  %v1004_v18 = vld [vmem:[%s1291_s1 + $0xc4] ss:$8 sps:$4 sm:$0xff] (!%p159_p3)   ;;  %v1007_v20 = vld [vmem:[%s1291_s1 + $0xc0] ss:$8 sps:$4 sm:$0xff] (!%p159_p3)   ;;  %v1010_v22 = vld [vmem:[%s1291_s1 + $0xd4] ss:$8 sps:$4 sm:$0xff] (!%p159_p3)  }
   0xe   : > { %357 = vmatprep.subr.bf16.mxu0 %v990_v9  ;;  %612 = vmatprep.subr.bf16.mxu1 %v992_v10  ;;  %s1299_s12 = smov (!%p192_p4, %s1044_s12), 1  ;;  %v1012_v23 = vld [vmem:[%s1291_s1 + $0x50] ss:$8 sps:$4 sm:$0xff]   ;;  %v1014_v25 = vld [vmem:[%s1291_s1 + $0x64] ss:$8 sps:$4 sm:$0xff]   ;;  %v240_v38 = vshrl.u32 %v239_v37, 7 }
   0xf   : > { %s935_s10 = sshll.u32 %s1299_s12, 5  ;;  %v1013_v24 = vld [vmem:[%s1291_s1 + $0xd0] ss:$8 sps:$4 sm:$0xff]   ;;  %v1016_v26 = vld [vmem:[%s1291_s1 + $0xe4] ss:$8 sps:$4 sm:$0xff]   ;;  %s936_s19 = sshll.u32 %s1299_s12, 7 }
  0x10   : > { %s1180_s23 = scalar_lea.vmem %s1290_s0, %s935_s10  ;;  %v1018_v27 = vld [vmem:[%s1291_s1 + $0x60] ss:$8 sps:$4 sm:$0xff]   ;;  %v1020_v29 = vld [vmem:[%s1291_s1 + $0x74] ss:$8 sps:$4 sm:$0xff]   ;;  %v1024_v31 = vld [vmem:[%s1291_s1 + $0x70] ss:$8 sps:$4 sm:$0xff]   ;;  %s1235_s22 = scalar_lea.vmem %s1293_s3, %s936_s19 }
  0x11   : > { %358 = vmatpush1.bf16.msra.mxu0 %v994_v11  ;;  %613 = vmatpush1.bf16.msra.mxu1 %v995_v12  ;;  %v1019_v28 = vld [vmem:[%s1291_s1 + $0xe0] ss:$8 sps:$4 sm:$0xff]   ;;  %v1022_v30 = vld [vmem:[%s1291_s1 + $0xf4] ss:$8 sps:$4 sm:$0xff]   ;;  %v1025_v32 = vld [vmem:[%s1291_s1 + $0xf0] ss:$8 sps:$4 sm:$0xff]  }
  0x12   : > { %359 = vmatprep.subr.bf16.mxu0 %v996_v13  ;;  %614 = vmatprep.subr.bf16.mxu1 %v998_v14  ;;  %v1026_v33 = vld [vmem:[%s1180_s23] sm:$0xff]   ;;  %v1027_v34 = vld [vmem:[%s1180_s23 + $0x8] sm:$0xff]   ;;  %v1028_v35 = vld [vmem:[%s1180_s23 + $0x10] sm:$0xff]   ;;  %v241_v39 = vsub.s32 0, %v240_v38  ;;  %v245_v42 = vsub.s32 1, %v240_v38 }
  0x13   : > { %v1029_v36 = vld [vmem:[%s1180_s23 + $0x18] sm:$0xff]   ;;  %v237_v40 = vld [vmem:[%s1292_s2] sm:$0x3]  ;;  %v900_v41 = vld [vmem:[%s1292_s2 + $0x2] sm:$0x3] }
  0x14   : > { %v1219_v43 = vrot.slane %v237_v40, %v241_v39  ;;  %v1221_v44 = vrot.slane %v900_v41, %v241_v39  ;;  %v1223_v45 = vrot.slane %v237_v40, %v245_v42  ;;  %v1225_v46 = vrot.slane %v900_v41, %v245_v42 }
  0x15   : > { %360 = vmatpush1.bf16.msra.mxu0 %v1000_v15  ;;  %615 = vmatpush1.bf16.msra.mxu1 %v1001_v16 }
  0x16   : > { %361 = vmatprep.subr.bf16.mxu0 %v1002_v17  ;;  %616 = vmatprep.subr.bf16.mxu1 %v1004_v18 }
  0x19   : > { %362 = vmatpush1.bf16.msra.mxu0 %v1006_v19  ;;  %617 = vmatpush1.bf16.msra.mxu1 %v1007_v20 }
  0x1a   : > { %363 = vmatprep.subr.bf16.mxu0 %v1008_v21  ;;  %618 = vmatprep.subr.bf16.mxu1 %v1010_v22 }
  0x1d   : > { %364 = vmatpush1.bf16.msra.mxu0 %v1012_v23  ;;  %619 = vmatpush1.bf16.msra.mxu1 %v1013_v24 }
  0x1e   : > { %365 = vmatprep.subr.bf16.mxu0 %v1014_v25  ;;  %620 = vmatprep.subr.bf16.mxu1 %v1016_v26 }
  0x21   : > { %366 = vmatpush1.bf16.msra.mxu0 %v1018_v27  ;;  %621 = vmatpush1.bf16.msra.mxu1 %v1019_v28 }
  0x22   : > { %367 = vmatprep.subr.bf16.mxu0 %v1020_v29  ;;  %622 = vmatprep.subr.bf16.mxu1 %v1022_v30 }
  0x25   : > { %368 = vmatpush1.bf16.msra.mxu0 %v1024_v31  ;;  %623 = vmatpush1.bf16.msra.mxu1 %v1025_v32 }
  0x28   : > { %386 = vmatmul.mubr.bf16.vlgmr.msra.gmra.mrb[0].mxu0 %v1026_v33  ;;  %641 = vmatmul.mubr.bf16.vlgmr.msra.gmra.mrb[0].mxu1 %v1026_v33 }
  0x29   : > { %395 = vmatprep.mubr.bf16.mxu0 %v1054_v2  ;;  %650 = vmatprep.mubr.bf16.mxu1 %v1054_v2 }
  0x30   : > { %396 = vmatmul.mubr.bf16.gmra.mrb[4].mxu0 %v1027_v34  ;;  %651 = vmatmul.mubr.bf16.gmra.mrb[4].mxu1 %v1027_v34 }
  0x31   : > { %405 = vmatprep.mubr.bf16.mxu0 %v1054_v2  ;;  %660 = vmatprep.mubr.bf16.mxu1 %v1054_v2 }
  0x38   : > { %406 = vmatmul.mubr.bf16.gmra.mrb[8].mxu0 %v1028_v35  ;;  %661 = vmatmul.mubr.bf16.gmra.mrb[8].mxu1 %v1028_v35 }
  0x39   : > { %415 = vmatprep.mubr.bf16.mxu0 %v1054_v2  ;;  %670 = vmatprep.mubr.bf16.mxu1 %v1054_v2 }
  0x40   : > { %416 = vmatmul.mubr.bf16.gmra.mrb[12].mxu0 %v1029_v36  ;;  %671 = vmatmul.mubr.bf16.gmra.mrb[12].mxu1 %v1029_v36 }
  0xfb   : > { %v387_v47 = vpop.f32.mrb[0].mxu0  ;;  %v642_v48 = vpop.f32.mrb[0].mxu1 }
  0xfc   : > { %v388_v49 = vadd.f32 %v387_v47, %v1219_v43  ;;  %v643_v50 = vadd.f32 %v642_v48, %v1221_v44  ;;  %v389_v51 = vpop.f32.mrb[1].mxu0  ;;  %v644_v52 = vpop.f32.mrb[1].mxu1 }
  0xfd   : > { %v390_v53 = vadd.f32 %v389_v51, %v1223_v45  ;;  %v645_v54 = vadd.f32 %v644_v52, %v1225_v46  ;;  %v391_v55 = vpop.f32.mrb[2].mxu0  ;;  %v646_v56 = vpop.f32.mrb[2].mxu1 }
  0xfe   : > { %v392_v57 = vadd.f32 %v391_v55, %v1219_v43  ;;  %v647_v58 = vadd.f32 %v646_v56, %v1221_v44  ;;  %v393_v59 = vpop.f32.mrb[3].mxu0  ;;  %v648_v60 = vpop.f32.mrb[3].mxu1 }
  0xff   : > { %v937_v61 = vpack.c.bf16 %v390_v53, %v388_v49  ;;  %v945_v62 = vpack.c.bf16 %v645_v54, %v643_v50  ;;  %v394_v63 = vadd.f32 %v393_v59, %v1223_v45  ;;  %v649_v0 = vadd.f32 %v648_v60, %v1225_v46 }
 0x101   : > { %490 = vst [vmem:[%s1235_s22] sm:$0xff] %v937_v61  ;;  %925 = vst [vmem:[%s1235_s22 + $0x8] sm:$0xff] %v945_v62  ;;  %v938_v1 = vpack.c.bf16 %v394_v63, %v392_v57  ;;  %v946_v2 = vpack.c.bf16 %v649_v0, %v647_v58 }
 0x103   : > { %491 = vst [vmem:[%s1235_s22 + $0x10] sm:$0xff] %v938_v1  ;;  %926 = vst [vmem:[%s1235_s22 + $0x18] sm:$0xff] %v946_v2  ;;  %v397_v3 = vpop.f32.mrb[4].mxu0  ;;  %v652_v4 = vpop.f32.mrb[4].mxu1 }
 0x104   : > { %v398_v5 = vadd.f32 %v397_v3, %v1219_v43  ;;  %v653_v6 = vadd.f32 %v652_v4, %v1221_v44  ;;  %v399_v7 = vpop.f32.mrb[5].mxu0  ;;  %v654_v8 = vpop.f32.mrb[5].mxu1 }
 0x105   : > { %v400_v9 = vadd.f32 %v399_v7, %v1223_v45  ;;  %v655_v10 = vadd.f32 %v654_v8, %v1225_v46  ;;  %v401_v11 = vpop.f32.mrb[6].mxu0  ;;  %v656_v12 = vpop.f32.mrb[6].mxu1 }
 0x106   : > { %v402_v13 = vadd.f32 %v401_v11, %v1219_v43  ;;  %v657_v14 = vadd.f32 %v656_v12, %v1221_v44  ;;  %v403_v15 = vpop.f32.mrb[7].mxu0  ;;  %v658_v16 = vpop.f32.mrb[7].mxu1 }
 0x107   : > { %v939_v17 = vpack.c.bf16 %v400_v9, %v398_v5  ;;  %v947_v18 = vpack.c.bf16 %v655_v10, %v653_v6  ;;  %v404_v19 = vadd.f32 %v403_v15, %v1223_v45  ;;  %v659_v20 = vadd.f32 %v658_v16, %v1225_v46 }
 0x109   : > { %492 = vst [vmem:[%s1235_s22 + $0x20] sm:$0xff] %v939_v17  ;;  %927 = vst [vmem:[%s1235_s22 + $0x28] sm:$0xff] %v947_v18  ;;  %v940_v21 = vpack.c.bf16 %v404_v19, %v402_v13  ;;  %v948_v22 = vpack.c.bf16 %v659_v20, %v657_v14 }
 0x10b   : > { %493 = vst [vmem:[%s1235_s22 + $0x30] sm:$0xff] %v940_v21  ;;  %928 = vst [vmem:[%s1235_s22 + $0x38] sm:$0xff] %v948_v22  ;;  %v407_v23 = vpop.f32.mrb[8].mxu0  ;;  %v662_v24 = vpop.f32.mrb[8].mxu1 }
 0x10c   : > { %v408_v25 = vadd.f32 %v407_v23, %v1219_v43  ;;  %v663_v26 = vadd.f32 %v662_v24, %v1221_v44  ;;  %v409_v27 = vpop.f32.mrb[9].mxu0  ;;  %v664_v28 = vpop.f32.mrb[9].mxu1 }
 0x10d   : > { %v410_v29 = vadd.f32 %v409_v27, %v1223_v45  ;;  %v665_v30 = vadd.f32 %v664_v28, %v1225_v46  ;;  %v411_v31 = vpop.f32.mrb[10].mxu0  ;;  %v666_v32 = vpop.f32.mrb[10].mxu1 }
 0x10e   : > { %v412_v33 = vadd.f32 %v411_v31, %v1219_v43  ;;  %v667_v34 = vadd.f32 %v666_v32, %v1221_v44  ;;  %v413_v35 = vpop.f32.mrb[11].mxu0  ;;  %v668_v36 = vpop.f32.mrb[11].mxu1 }
 0x10f   : > { %v941_v37 = vpack.c.bf16 %v410_v29, %v408_v25  ;;  %v949_v38 = vpack.c.bf16 %v665_v30, %v663_v26  ;;  %v414_v39 = vadd.f32 %v413_v35, %v1223_v45  ;;  %v669_v40 = vadd.f32 %v668_v36, %v1225_v46 }
 0x111   : > { %494 = vst [vmem:[%s1235_s22 + $0x40] sm:$0xff] %v941_v37  ;;  %929 = vst [vmem:[%s1235_s22 + $0x48] sm:$0xff] %v949_v38  ;;  %v942_v41 = vpack.c.bf16 %v414_v39, %v412_v33  ;;  %v950_v42 = vpack.c.bf16 %v669_v40, %v667_v34 }
 0x113   : > { %495 = vst [vmem:[%s1235_s22 + $0x50] sm:$0xff] %v942_v41  ;;  %930 = vst [vmem:[%s1235_s22 + $0x58] sm:$0xff] %v950_v42  ;;  %v417_v47 = vpop.f32.mrb[12].mxu0  ;;  %v672_v48 = vpop.f32.mrb[12].mxu1 }
 0x114   : > { %v418_v49 = vadd.f32 %v417_v47, %v1219_v43  ;;  %v673_v50 = vadd.f32 %v672_v48, %v1221_v44  ;;  %v419_v51 = vpop.f32.mrb[13].mxu0  ;;  %v674_v52 = vpop.f32.mrb[13].mxu1 }
 0x115   : > { %v420_v53 = vadd.f32 %v419_v51, %v1223_v45  ;;  %v675_v54 = vadd.f32 %v674_v52, %v1225_v46  ;;  %v421_v55 = vpop.f32.mrb[14].mxu0  ;;  %v676_v56 = vpop.f32.mrb[14].mxu1 }
 0x116   : > { %v422_v57 = vadd.f32 %v421_v55, %v1219_v43  ;;  %v677_v58 = vadd.f32 %v676_v56, %v1221_v44  ;;  %v423_v59 = vpop.f32.mrb[15].mxu0  ;;  %v678_v60 = vpop.f32.mrb[15].mxu1 }
 0x117   : > { %v943_v61 = vpack.c.bf16 %v420_v53, %v418_v49  ;;  %v951_v62 = vpack.c.bf16 %v675_v54, %v673_v50  ;;  %v424_v63 = vadd.f32 %v423_v59, %v1223_v45  ;;  %v679_v0 = vadd.f32 %v678_v60, %v1225_v46 }
 0x119   : > { %496 = vst [vmem:[%s1235_s22 + $0x60] sm:$0xff] %v943_v61  ;;  %931 = vst [vmem:[%s1235_s22 + $0x68] sm:$0xff] %v951_v62  ;;  %v944_v1 = vpack.c.bf16 %v424_v63, %v422_v57  ;;  %v952_v2 = vpack.c.bf16 %v679_v0, %v677_v58 }
 0x11b   : > { %497 = vst [vmem:[%s1235_s22 + $0x70] sm:$0xff] %v944_v1  ;;  %932 = vst [vmem:[%s1235_s22 + $0x78] sm:$0xff] %v952_v2 }
 0x11c PF: > { %s13_s14 = sadd.s32 1, %s1052_s14   ;;  %s1294_s12 = smov %s1048_s13 }
 0x11d   : > { %p10_p5 = scmp.ge.s32.totalorder %s13_s14, 4   ;;  %s1295_s13 = smov %s1297_s15 }
 0x11f   :  { %12 = sbr.rel (!%p10_p5) target bundleno = 2 (0x2), region = 65 }

// kernel: up_forward.7
= control target key start
LH: loop header
LB: loop body
LE: loop exit
PB: predicated region body
PF: predicated region fallthrough
CT: control target
= control target key end

     0   :  { %s679_s12 = smov 0   ;;  %s681_s13 = smov 0   ;;  %s842_s0 = inlined_call_operand.vmem [shape: bf16[2,16,16,128], index: 0, kind: input, shape index: {}]   ;;  %s843_s1 = inlined_call_operand.vmem [shape: f32[1,128], index: 1, kind: input, shape index: {}]   ;;  %s844_s2 = inlined_call_operand.vmem [shape: f32[1,128], index: 2, kind: input, shape index: {}]   ;;  %s845_s3 = inlined_call_operand.vmem [shape: f32[2,16,16,128], index: 3, kind: output, shape index: {}]  }
   0x1   :  { %s683_s14 = smov 0  }
   0x2 LB: > { %s25_s15 = sadd.s32 1, %s653_s13  ;;  %p521_p0 = scmp.ge.s32.totalorder %s657_s14, 1  ;;  %s657_s14 = sphi %s683_s14, %s13_s14   ;;  %s653_s13 = sphi %s681_s13, %s847_s13   ;;  %s649_s12 = sphi %s679_s12, %s846_s12  }
   0x3   : > { %p27_p1 = scmp.ge.s32.totalorder %s25_s15, 2  ;;  %p159_p2 = scmp.lt.s32.totalorder %s657_s14, 3 }
   0x5   : > { %s849_s15 = smov (%p27_p1, %s25_s15), 0  ;;  %p160_p3 = pnand %p521_p0, %p159_p2 }
   0x6   : > { %p194_p4 = scmp.lt.s32.totalorder (!%p160_p3), %s649_s12, 1  ;;  %v708_v0 = vld [vmem:[%s843_s1] ss:$0 sm:$0xff] (!%p160_p3) }
   0x7   : > { %163 = sbr.rel (%p160_p3) target bundleno = 54 (0x36), region = 32  ;;  %v717_v9 = vld [vmem:[%s844_s2] ss:$0 sm:$0xff] (!%p160_p3) }
   0xe   : > { %s851_s12 = smov (!%p194_p4, %s649_s12), 1 }
   0xf   : > { %s530_s16 = sshll.u32 %s851_s12, 7  ;;  %s531_s24 = sshll.u32 %s851_s12, 8 }
  0x10   : > { %s703_s19 = scalar_lea.vmem %s842_s0, %s530_s16  ;;  %s735_s27 = scalar_lea.vmem %s845_s3, %s531_s24 }
  0x11   : > { %v533_v1 = vld [vmem:[%s703_s19] sm:$0xff]   ;;  %v596_v2 = vld [vmem:[%s703_s19 + $0x8] sm:$0xff]   ;;  %v597_v3 = vld [vmem:[%s703_s19 + $0x10] sm:$0xff]  }
  0x12   : > { %v534_v4 = vunpack.c.l.bf16 %v533_v1  ;;  %v535_v5 = vunpack.c.h.bf16 %v533_v1  ;;  %v538_v6 = vunpack.c.l.bf16 %v596_v2  ;;  %v539_v7 = vunpack.c.h.bf16 %v596_v2  ;;  %v598_v8 = vld [vmem:[%s703_s19 + $0x18] sm:$0xff]   ;;  %v599_v30 = vld [vmem:[%s703_s19 + $0x20] sm:$0xff]   ;;  %v600_v31 = vld [vmem:[%s703_s19 + $0x28] sm:$0xff]  }
  0x13   : > { %v542_v10 = vunpack.c.l.bf16 %v597_v3  ;;  %v543_v11 = vunpack.c.h.bf16 %v597_v3  ;;  %v546_v12 = vunpack.c.l.bf16 %v598_v8  ;;  %v547_v13 = vunpack.c.h.bf16 %v598_v8  ;;  %v601_v36 = vld [vmem:[%s703_s19 + $0x30] sm:$0xff]   ;;  %v602_v37 = vld [vmem:[%s703_s19 + $0x38] sm:$0xff]   ;;  %v603_v3 = vld [vmem:[%s703_s19 + $0x40] sm:$0xff]  }
  0x14   : > { %v286_v14 = vmul.f32 %v534_v4, %v708_v0  ;;  %v287_v15 = vmul.f32 %v535_v5, %v708_v0  ;;  %v288_v16 = vmul.f32 %v538_v6, %v708_v0  ;;  %v289_v17 = vmul.f32 %v539_v7, %v708_v0  ;;  %v604_v4 = vld [vmem:[%s703_s19 + $0x48] sm:$0xff]  }
  0x15   : > { %v290_v18 = vmul.f32 %v542_v10, %v708_v0  ;;  %v291_v19 = vmul.f32 %v543_v11, %v708_v0  ;;  %v292_v20 = vmul.f32 %v546_v12, %v708_v0  ;;  %v293_v21 = vmul.f32 %v547_v13, %v708_v0  ;;  %v605_v10 = vld [vmem:[%s703_s19 + $0x50] sm:$0xff]   ;;  %v606_v11 = vld [vmem:[%s703_s19 + $0x58] sm:$0xff]  }
  0x16   : > { %v325_v22 = vadd.f32 %v717_v9, %v286_v14  ;;  %v326_v23 = vadd.f32 %v717_v9, %v287_v15  ;;  %v327_v24 = vadd.f32 %v717_v9, %v288_v16  ;;  %v328_v25 = vadd.f32 %v717_v9, %v289_v17 }
  0x17   : > { %v329_v26 = vadd.f32 %v717_v9, %v290_v18  ;;  %v330_v27 = vadd.f32 %v717_v9, %v291_v19  ;;  %v331_v28 = vadd.f32 %v717_v9, %v292_v20  ;;  %v332_v29 = vadd.f32 %v717_v9, %v293_v21 }
  0x18   : > { %v357_v32 = vmax.f32 %v325_v22, 0.0  ;;  %v358_v33 = vmax.f32 %v326_v23, 0.0  ;;  %v359_v34 = vmax.f32 %v327_v24, 0.0  ;;  %v360_v35 = vmax.f32 %v328_v25, 0.0 }
  0x19   : > { %v361_v38 = vmax.f32 %v329_v26, 0.0  ;;  %v362_v39 = vmax.f32 %v330_v27, 0.0  ;;  %v363_v40 = vmax.f32 %v331_v28, 0.0  ;;  %v364_v41 = vmax.f32 %v332_v29, 0.0 }
  0x1a   : > { %389 = vst [vmem:[%s735_s27] sm:$0xff] %v357_v32  ;;  %390 = vst [vmem:[%s735_s27 + $0x8] sm:$0xff] %v358_v33  ;;  %v550_v42 = vunpack.c.l.bf16 %v599_v30  ;;  %v551_v43 = vunpack.c.h.bf16 %v599_v30  ;;  %v554_v44 = vunpack.c.l.bf16 %v600_v31  ;;  %v555_v45 = vunpack.c.h.bf16 %v600_v31 }
  0x1b   : > { %391 = vst [vmem:[%s735_s27 + $0x10] sm:$0xff] %v359_v34  ;;  %392 = vst [vmem:[%s735_s27 + $0x18] sm:$0xff] %v360_v35  ;;  %v558_v46 = vunpack.c.l.bf16 %v601_v36  ;;  %v559_v47 = vunpack.c.h.bf16 %v601_v36  ;;  %v562_v48 = vunpack.c.l.bf16 %v602_v37  ;;  %v563_v49 = vunpack.c.h.bf16 %v602_v37 }
  0x1c   : > { %393 = vst [vmem:[%s735_s27 + $0x20] sm:$0xff] %v361_v38  ;;  %394 = vst [vmem:[%s735_s27 + $0x28] sm:$0xff] %v362_v39  ;;  %v294_v50 = vmul.f32 %v550_v42, %v708_v0  ;;  %v295_v51 = vmul.f32 %v551_v43, %v708_v0  ;;  %v296_v52 = vmul.f32 %v554_v44, %v708_v0  ;;  %v566_v16 = vunpack.c.l.bf16 %v603_v3 }
  0x1d   : > { %395 = vst [vmem:[%s735_s27 + $0x30] sm:$0xff] %v363_v40  ;;  %396 = vst [vmem:[%s735_s27 + $0x38] sm:$0xff] %v364_v41  ;;  %v297_v53 = vmul.f32 %v555_v45, %v708_v0  ;;  %v298_v54 = vmul.f32 %v558_v46, %v708_v0  ;;  %v299_v55 = vmul.f32 %v559_v47, %v708_v0  ;;  %v567_v17 = vunpack.c.h.bf16 %v603_v3  ;;  %v607_v40 = vld [vmem:[%s703_s19 + $0x60] sm:$0xff]   ;;  %v608_v41 = vld [vmem:[%s703_s19 + $0x68] sm:$0xff]  }
  0x1e   : > { %v300_v56 = vmul.f32 %v562_v48, %v708_v0  ;;  %v301_v57 = vmul.f32 %v563_v49, %v708_v0  ;;  %v333_v58 = vadd.f32 %v717_v9, %v294_v50  ;;  %v334_v59 = vadd.f32 %v717_v9, %v295_v51  ;;  %v609_v46 = vld [vmem:[%s703_s19 + $0x70] sm:$0xff]   ;;  %v610_v47 = vld [vmem:[%s703_s19 + $0x78] sm:$0xff]  }
  0x1f   : > { %v335_v60 = vadd.f32 %v717_v9, %v296_v52  ;;  %v336_v61 = vadd.f32 %v717_v9, %v297_v53  ;;  %v337_v62 = vadd.f32 %v717_v9, %v298_v54  ;;  %v338_v63 = vadd.f32 %v717_v9, %v299_v55 }
  0x20   : > { %v339_v1 = vadd.f32 %v717_v9, %v300_v56  ;;  %v340_v2 = vadd.f32 %v717_v9, %v301_v57  ;;  %v365_v5 = vmax.f32 %v333_v58, 0.0  ;;  %v366_v6 = vmax.f32 %v334_v59, 0.0 }
  0x21   : > { %v367_v7 = vmax.f32 %v335_v60, 0.0  ;;  %v368_v8 = vmax.f32 %v336_v61, 0.0  ;;  %v369_v12 = vmax.f32 %v337_v62, 0.0  ;;  %v370_v13 = vmax.f32 %v338_v63, 0.0 }
  0x22   : > { %v371_v14 = vmax.f32 %v339_v1, 0.0  ;;  %v372_v15 = vmax.f32 %v340_v2, 0.0  ;;  %397 = vst [vmem:[%s735_s27 + $0x40] sm:$0xff] %v365_v5  ;;  %398 = vst [vmem:[%s735_s27 + $0x48] sm:$0xff] %v366_v6  ;;  %v570_v18 = vunpack.c.l.bf16 %v604_v4  ;;  %v571_v19 = vunpack.c.h.bf16 %v604_v4 }
  0x23   : > { %399 = vst [vmem:[%s735_s27 + $0x50] sm:$0xff] %v367_v7  ;;  %400 = vst [vmem:[%s735_s27 + $0x58] sm:$0xff] %v368_v8  ;;  %v574_v20 = vunpack.c.l.bf16 %v605_v10  ;;  %v575_v21 = vunpack.c.h.bf16 %v605_v10  ;;  %v578_v22 = vunpack.c.l.bf16 %v606_v11  ;;  %v579_v23 = vunpack.c.h.bf16 %v606_v11 }
  0x24   : > { %401 = vst [vmem:[%s735_s27 + $0x60] sm:$0xff] %v369_v12  ;;  %402 = vst [vmem:[%s735_s27 + $0x68] sm:$0xff] %v370_v13  ;;  %v302_v24 = vmul.f32 %v566_v16, %v708_v0  ;;  %v303_v25 = vmul.f32 %v567_v17, %v708_v0  ;;  %v304_v26 = vmul.f32 %v570_v18, %v708_v0  ;;  %v582_v52 = vunpack.c.l.bf16 %v607_v40 }
  0x25   : > { %403 = vst [vmem:[%s735_s27 + $0x70] sm:$0xff] %v371_v14  ;;  %404 = vst [vmem:[%s735_s27 + $0x78] sm:$0xff] %v372_v15  ;;  %v305_v27 = vmul.f32 %v571_v19, %v708_v0  ;;  %v306_v28 = vmul.f32 %v574_v20, %v708_v0  ;;  %v307_v29 = vmul.f32 %v575_v21, %v708_v0  ;;  %v583_v53 = vunpack.c.h.bf16 %v607_v40 }
  0x26   : > { %v308_v30 = vmul.f32 %v578_v22, %v708_v0  ;;  %v309_v31 = vmul.f32 %v579_v23, %v708_v0  ;;  %v341_v32 = vadd.f32 %v717_v9, %v302_v24  ;;  %v342_v33 = vadd.f32 %v717_v9, %v303_v25 }
  0x27   : > { %v343_v34 = vadd.f32 %v717_v9, %v304_v26  ;;  %v344_v35 = vadd.f32 %v717_v9, %v305_v27  ;;  %v345_v36 = vadd.f32 %v717_v9, %v306_v28  ;;  %v346_v37 = vadd.f32 %v717_v9, %v307_v29 }
  0x28   : > { %v347_v38 = vadd.f32 %v717_v9, %v308_v30  ;;  %v348_v39 = vadd.f32 %v717_v9, %v309_v31  ;;  %v373_v42 = vmax.f32 %v341_v32, 0.0  ;;  %v374_v43 = vmax.f32 %v342_v33, 0.0 }
  0x29   : > { %v375_v44 = vmax.f32 %v343_v34, 0.0  ;;  %v376_v45 = vmax.f32 %v344_v35, 0.0  ;;  %v377_v48 = vmax.f32 %v345_v36, 0.0  ;;  %v378_v49 = vmax.f32 %v346_v37, 0.0 }
  0x2a   : > { %v379_v50 = vmax.f32 %v347_v38, 0.0  ;;  %v380_v51 = vmax.f32 %v348_v39, 0.0  ;;  %405 = vst [vmem:[%s735_s27 + $0x80] sm:$0xff] %v373_v42  ;;  %406 = vst [vmem:[%s735_s27 + $0x88] sm:$0xff] %v374_v43  ;;  %v586_v54 = vunpack.c.l.bf16 %v608_v41  ;;  %v587_v55 = vunpack.c.h.bf16 %v608_v41 }
  0x2b   : > { %407 = vst [vmem:[%s735_s27 + $0x90] sm:$0xff] %v375_v44  ;;  %408 = vst [vmem:[%s735_s27 + $0x98] sm:$0xff] %v376_v45  ;;  %v590_v56 = vunpack.c.l.bf16 %v609_v46  ;;  %v591_v57 = vunpack.c.h.bf16 %v609_v46  ;;  %v594_v58 = vunpack.c.l.bf16 %v610_v47  ;;  %v595_v59 = vunpack.c.h.bf16 %v610_v47 }
  0x2c   : > { %409 = vst [vmem:[%s735_s27 + $0xa0] sm:$0xff] %v377_v48  ;;  %410 = vst [vmem:[%s735_s27 + $0xa8] sm:$0xff] %v378_v49  ;;  %v310_v60 = vmul.f32 %v582_v52, %v708_v0  ;;  %v311_v61 = vmul.f32 %v583_v53, %v708_v0  ;;  %v312_v62 = vmul.f32 %v586_v54, %v708_v0 }
  0x2d   : > { %411 = vst [vmem:[%s735_s27 + $0xb0] sm:$0xff] %v379_v50  ;;  %412 = vst [vmem:[%s735_s27 + $0xb8] sm:$0xff] %v380_v51  ;;  %v313_v63 = vmul.f32 %v587_v55, %v708_v0  ;;  %v314_v1 = vmul.f32 %v590_v56, %v708_v0  ;;  %v315_v2 = vmul.f32 %v591_v57, %v708_v0 }
  0x2e   : > { %v316_v3 = vmul.f32 %v594_v58, %v708_v0  ;;  %v317_v4 = vmul.f32 %v595_v59, %v708_v0  ;;  %v349_v5 = vadd.f32 %v717_v9, %v310_v60  ;;  %v350_v6 = vadd.f32 %v717_v9, %v311_v61 }
  0x2f   : > { %v351_v7 = vadd.f32 %v717_v9, %v312_v62  ;;  %v352_v8 = vadd.f32 %v717_v9, %v313_v63  ;;  %v353_v10 = vadd.f32 %v717_v9, %v314_v1  ;;  %v354_v11 = vadd.f32 %v717_v9, %v315_v2 }
  0x30   : > { %v355_v0 = vadd.f32 %v717_v9, %v316_v3  ;;  %v356_v12 = vadd.f32 %v717_v9, %v317_v4  ;;  %v381_v13 = vmax.f32 %v349_v5, 0.0  ;;  %v382_v14 = vmax.f32 %v350_v6, 0.0 }
  0x31   : > { %v383_v15 = vmax.f32 %v351_v7, 0.0  ;;  %v384_v16 = vmax.f32 %v352_v8, 0.0  ;;  %v385_v17 = vmax.f32 %v353_v10, 0.0  ;;  %v386_v18 = vmax.f32 %v354_v11, 0.0 }
  0x32   : > { %v387_v19 = vmax.f32 %v355_v0, 0.0  ;;  %v388_v20 = vmax.f32 %v356_v12, 0.0  ;;  %413 = vst [vmem:[%s735_s27 + $0xc0] sm:$0xff] %v381_v13  ;;  %414 = vst [vmem:[%s735_s27 + $0xc8] sm:$0xff] %v382_v14 }
  0x33   : > { %415 = vst [vmem:[%s735_s27 + $0xd0] sm:$0xff] %v383_v15  ;;  %416 = vst [vmem:[%s735_s27 + $0xd8] sm:$0xff] %v384_v16 }
  0x34   : > { %417 = vst [vmem:[%s735_s27 + $0xe0] sm:$0xff] %v385_v17  ;;  %418 = vst [vmem:[%s735_s27 + $0xe8] sm:$0xff] %v386_v18 }
  0x35   : > { %419 = vst [vmem:[%s735_s27 + $0xf0] sm:$0xff] %v387_v19  ;;  %420 = vst [vmem:[%s735_s27 + $0xf8] sm:$0xff] %v388_v20 }
  0x36 PF: > { %s13_s14 = sadd.s32 1, %s657_s14   ;;  %s846_s12 = smov %s653_s13 }
  0x37   : > { %p10_p5 = scmp.ge.s32.totalorder %s13_s14, 4   ;;  %s847_s13 = smov %s849_s15 }
  0x39   :  { %12 = sbr.rel (!%p10_p5) target bundleno = 2 (0x2), region = 62 }

// kernel: up_forward.6
= control target key start
LH: loop header
LB: loop body
LE: loop exit
PB: predicated region body
PF: predicated region fallthrough
CT: control target
= control target key end

     0   :  { %s5489_s21 = smov 0   ;;  %s5491_s22 = smov 0   ;;  %s6754_s0 = inlined_call_operand.vmem [shape: bf16[2,18,18,128], index: 0, kind: input, shape index: {}, may-alias: {0,1}]   ;;  %s6755_s1 = inlined_call_operand.vmem [shape: bf16[2,18,18,128], index: 1, kind: input, shape index: {}, may-alias: {0,1}]   ;;  %s6756_s2 = inlined_call_operand.vmem [shape: f32[1,128], index: 2, kind: input, shape index: {}]   ;;  %s6757_s3 = inlined_call_operand.vmem [shape: f32[1,128], index: 3, kind: input, shape index: {}]   ;;  %s6758_s4 = inlined_call_operand.vmem [shape: bf16[3,3,128,128], index: 4, kind: input, shape index: {}]   ;;  %s6759_s5 = inlined_call_operand.vmem [shape: bf16[2,16,16,128], index: 5, kind: output, shape index: {0}]   ;;  %s6760_s6 = inlined_call_operand.vmem [shape: f32[2,1,2,128], index: 6, kind: output, shape index: {1}]  }
   0x1   :  { %s5493_s23 = smov 0  }
   0x2 LB: > { %s29_s24 = sadd.s32 1, %s5445_s22  ;;  %p3846_p0 = scmp.ge.s32.totalorder %s5449_s23, 1  ;;  %s5449_s23 = sphi %s5493_s23, %s17_s23   ;;  %s5445_s22 = sphi %s5491_s22, %s6881_s22   ;;  %s5441_s21 = sphi %s5489_s21, %s6880_s21  }
   0x3   : > { %p31_p1 = scmp.ge.s32.totalorder %s29_s24, 2  ;;  %p275_p2 = scmp.lt.s32.totalorder %s5449_s23, 3 }
   0x5   : > { %s6883_s24 = smov (%p31_p1, %s29_s24), 0  ;;  %p276_p3 = pnand %p3846_p0, %p275_p2 }
   0x7   : > { %279 = sbr.rel (%p276_p3) target bundleno = 589 (0x24d), region = 40 }
   0xe   : > { %v5345_v0 = vld [vmem:[%s6758_s4 + $0x40] sm:$0xff]   ;;  %v5451_v2 = vmov 0   ;;  %v5347_v4 = vld [vmem:[%s6758_s4 + $0x48] sm:$0xff]   ;;  %p345_p4 = scmp.lt.s32.totalorder %s5441_s21, 1  ;;  %v5349_v6 = vld [vmem:[%s6758_s4 + $0x50] sm:$0xff]   ;;  %v678_v9 = vlaneseq  ;;  %vm1507_vm3 = vcmask 1046528  }
   0xf   : > { %v5346_v1 = vld [vmem:[%s6758_s4 + $0x100] sm:$0xff]   ;;  %v5513_v3 = vrot.slane %v5451_v2, 1  ;;  %4611 = vmatprep.subr.bf16.mxu1 %v5345_v0  ;;  %v5348_v5 = vld [vmem:[%s6758_s4 + $0x108] sm:$0xff]   ;;  %v5350_v7 = vld [vmem:[%s6758_s4 + $0x110] sm:$0xff]   ;;  %vm831_vm2 = vsmask.f32 7424 }
  0x10   : > { %4803 = vmatprep.subr.bf16.mxu0 %v5346_v1  ;;  %4612 = vmatpush3.bf16.msra.mxu1 %v5345_v0  ;;  %s6885_s21 = smov (!%p345_p4, %s5441_s21), 1  ;;  %v5351_v8 = vld [vmem:[%s6758_s4 + $0x58] sm:$0xff]   ;;  %v5353_v11 = vld [vmem:[%s6758_s4 + $0x60] sm:$0xff]   ;;  %v5540_v12 = vshrl.u32 %v678_v9, 7  ;;  %v5355_v14 = vld [vmem:[%s6758_s4 + $0x68] sm:$0xff]   ;;  %vm5453_vm4 = vmmov 1  }
  0x11   : > { %6813 = vst [vmem:[#allocation2_spill] sm:$0xff] %v5513_v3  ;;  %4804 = vmatpush3.bf16.msra.mxu0 %v5346_v1  ;;  %4613 = vmatprep.subr.bf16.mxu1 %v5347_v4  ;;  %v5352_v10 = vld [vmem:[%s6758_s4 + $0x118] sm:$0xff]   ;;  %s5315_s17 = smul.u32 216, %s6885_s21  ;;  %v5354_v13 = vld [vmem:[%s6758_s4 + $0x120] sm:$0xff]   ;;  %v5356_v19 = vld [vmem:[%s6758_s4 + $0x128] sm:$0xff]   ;;  %s3851_s7 = sshll.u32 %s6885_s21, 1 }
  0x12   : > { %4805 = vmatprep.subr.bf16.mxu0 %v5348_v5  ;;  %4627 = vmatprep.mubr.bf16.mxu1 %v5513_v3  ;;  %v5560_v17 = vld [vmem:[%s6756_s2] ss:$0 sm:$0xff]  ;;  %v5563_v18 = vadd.s32 16, %v5540_v12  ;;  %vm682_vm0 = vcmp.ge.s32.totalorder %v5540_v12, 1  ;;  %v5357_v30 = vld [vmem:[%s6758_s4 + $0x70] sm:$0xff]   ;;  %v5359_v48 = vld [vmem:[%s6758_s4 + $0x78] sm:$0xff]   ;;  %s392_s10 = scalar_lea.vmem %s6760_s6, %s3851_s7 }
  0x13   : > { %s5550_s28 = scalar_lea.vmem %s6754_s0, %s5315_s17  ;;  %v5571_v23 = vld [vmem:[%s6757_s3] ss:$0 sm:$0xff]  ;;  %v5358_v33 = vld [vmem:[%s6758_s4 + $0x130] sm:$0xff]   ;;  %v5360_v53 = vld [vmem:[%s6758_s4 + $0x138] sm:$0xff]   ;;  %s4227_s27 = sadd.s32 192, %s5315_s17 }
  0x14   : > { %4614 = vmatpush3.bf16.msra.mxu1 %v5347_v4  ;;  %v397_v15 = vld [vmem:[%s5550_s28 + $0xc] sm:$0xff]   ;;  %v399_v16 = vld [vmem:[%s5550_s28 + $0x14] sm:$0x1]  ;;  %v4373_v24 = vld [vmem:[%s5550_s28 + $0x18] sm:$0xff]   ;;  %vm687_vm1 = vcmp.le.s32.totalorder %v5563_v18, 16  ;;  %s371_s30 = scalar_lea.vmem %s6755_s1, %s4227_s27  ;;  %s4228_s27 = sshll.u32 %s6885_s21, 7 }
  0x15   : > { %4806 = vmatpush3.bf16.msra.mxu0 %v5348_v5  ;;  %4615 = vmatprep.subr.bf16.mxu1 %v5349_v6  ;;  %v453_v20 = vunpack.c.l.bf16 %v397_v15  ;;  %v454_v21 = vunpack.c.h.bf16 %v397_v15  ;;  %v455_v22 = vunpack.c.l.bf16 %v399_v16  ;;  %v4263_v28 = vunpack.c.l.bf16 %v4373_v24  ;;  %v402_v29 = vld [vmem:[%s5550_s28 + $0x20] sm:$0x1]  ;;  %v403_v38 = vld [vmem:[%s5550_s28 + $0x24] sm:$0xff]   ;;  %v405_v39 = vld [vmem:[%s5550_s28 + $0x2c] sm:$0x1] }
  0x16   : > { %4807 = vmatprep.subr.bf16.mxu0 %v5350_v7  ;;  %v4264_v31 = vunpack.c.h.bf16 %v4373_v24  ;;  %v458_v32 = vunpack.c.l.bf16 %v402_v29  ;;  %v459_v42 = vunpack.c.l.bf16 %v403_v38  ;;  %v460_v43 = vunpack.c.h.bf16 %v403_v38  ;;  %v5361_v60 = vld [vmem:[%s6758_s4] sm:$0xff]   ;;  %v4374_v5 = vld [vmem:[%s5550_s28 + $0x30] sm:$0xff]   ;;  %v408_v15 = vld [vmem:[%s5550_s28 + $0x38] sm:$0x1] }
  0x17   : > { %v513_v25 = vmul.f32 %v5560_v17, %v453_v20  ;;  %v514_v26 = vmul.f32 %v5560_v17, %v454_v21  ;;  %v515_v27 = vmul.f32 %v5560_v17, %v455_v22  ;;  %v516_v37 = vmul.f32 %v4263_v28, %v5560_v17  ;;  %v5630_v0 = vld [vmem:[%s6758_s4 + $0x140] sm:$0xff]   ;;  %vm6322_vm5 = vmpackc.low %vm5453_vm4, %vm682_vm0 }
  0x18   : > { %4616 = vmatpush3.bf16.msra.mxu1 %v5349_v6  ;;  %v517_v40 = vmul.f32 %v4264_v31, %v5560_v17  ;;  %v518_v41 = vmul.f32 %v5560_v17, %v458_v32  ;;  %v461_v51 = vunpack.c.l.bf16 %v405_v39  ;;  %v519_v52 = vmul.f32 %v5560_v17, %v459_v42  ;;  %v409_v32 = vld [vmem:[%s5550_s28 + $0x3c] sm:$0xff]  }
  0x19   : > { %4808 = vmatpush3.bf16.msra.mxu0 %v5350_v7  ;;  %4617 = vmatprep.subr.bf16.mxu1 %v5351_v8  ;;  %v573_v34 = vadd.f32 %v5571_v23, %v513_v25  ;;  %v574_v35 = vadd.f32 %v5571_v23, %v514_v26  ;;  %v575_v36 = vadd.f32 %v5571_v23, %v515_v27  ;;  %v4267_v21 = vunpack.c.l.bf16 %v4374_v5 }
  0x1a   : > { %4809 = vmatprep.subr.bf16.mxu0 %v5352_v10  ;;  %v5595_v47 = vadd.f32 %v5571_v23, %v516_v37  ;;  %v5601_v49 = vadd.f32 %v5571_v23, %v517_v40  ;;  %v578_v50 = vadd.f32 %v5571_v23, %v518_v41  ;;  %v520_v1 = vmul.f32 %v5560_v17, %v460_v43  ;;  %v411_v41 = vld [vmem:[%s5550_s28 + $0x44] sm:$0x1] }
  0x1b   : > { %v627_v44 = vmax.f32 %v573_v34, 0.0  ;;  %v628_v45 = vmax.f32 %v574_v35, 0.0  ;;  %v629_v46 = vmax.f32 %v575_v36, 0.0  ;;  %v521_v2 = vmul.f32 %v5560_v17, %v461_v51 }
  0x1c   : > { %4618 = vmatpush3.bf16.msra.mxu1 %v5351_v8  ;;  %v6770_v57 = vmax.f32 %v5595_v47, 0.0  ;;  %v6769_v61 = vmax.f32 %v5601_v49, 0.0  ;;  %v632_v62 = vmax.f32 %v578_v50, 0.0  ;;  %v5635_v4 = vadd.f32 %v5571_v23, %v519_v52 }
  0x1d   : > { %4810 = vmatpush3.bf16.msra.mxu0 %v5352_v10  ;;  %4619 = vmatprep.subr.bf16.mxu1 %v5353_v11  ;;  %v728_v54 = vsel %vm682_vm0, %v627_v44, 0.0  ;;  %v730_v55 = vsel %vm687_vm1, %v629_v46, 0.0  ;;  %v5612_v56 = vpack.c.bf16 %v628_v45, %v627_v44  ;;  %v4268_v31 = vunpack.c.h.bf16 %v4374_v5  ;;  %v5363_v46 = vld [vmem:[%s6758_s4 + $0x148] sm:$0xff]  }
  0x1e   : > { %4811 = vmatprep.subr.bf16.mxu0 %v5354_v13  ;;  %v5615_v58 = vpack.c.bf16 %v628_v45, %v728_v54  ;;  %v5617_v59 = vpack.c.bf16 %v730_v55, %v730_v55  ;;  %v731_v63 = vsel %vm682_vm0, %v6770_v57, 0.0  ;;  %v733_v9 = vsel %vm687_vm1, %v632_v62, 0.0  ;;  %v5367_v62 = vld [vmem:[%s6758_s4 + $0x10] sm:$0xff]  }
  0x1f   : > { %v5645_v10 = vpack.c.bf16 %v6769_v61, %v731_v63  ;;  %v6768_v20 = vmax.f32 %v5635_v4, 0.0  ;;  %v464_v36 = vunpack.c.l.bf16 %v408_v15  ;;  %v522_v39 = vmul.f32 %v4267_v21, %v5560_v17  ;;  %v4375_v63 = vld [vmem:[%s5550_s28 + $0x48] sm:$0xff]   ;;  %v5365_v21 = vld [vmem:[%s6758_s4 + $0x150] sm:$0xff]  }
  0x20   : > { %4620 = vmatpush3.bf16.msra.mxu1 %v5353_v11  ;;  %v845_v6 = vshrl.u32 %v5615_v58, 16  ;;  %v847_v7 = vshll.u32 %v5615_v58, 16  ;;  %v852_v8 = vshll.u32 %v5617_v59, 16  ;;  %v5647_v11 = vpack.c.bf16 %v733_v9, %v733_v9 }
  0x21   : > { %4812 = vmatpush3.bf16.msra.mxu0 %v5354_v13  ;;  %4621 = vmatprep.subr.bf16.mxu1 %v5355_v14  ;;  %v5650_v13 = vadd.f32 %v5571_v23, %v520_v1  ;;  %v857_v22 = vshrl.u32 %v5645_v10, 16  ;;  %v859_v24 = vshll.u32 %v5645_v10, 16  ;;  %v734_v29 = vsel %vm682_vm0, %v6768_v20, 0.0  ;;  %v414_v1 = vld [vmem:[%s5550_s28 + $0x50] sm:$0x1] }
  0x22   : > { %4813 = vmatprep.subr.bf16.mxu0 %v5356_v19  ;;  %v849_v16 = vrot.slane %v847_v7, 1  ;;  %v864_v25 = vshll.u32 %v5647_v11, 16  ;;  %v523_v40 = vmul.f32 %v4268_v31, %v5560_v17  ;;  %v5687_v50 = vadd.f32 %v5571_v23, %v522_v39  ;;  %v5366_v39 = vld [vmem:[%s6758_s4 + $0x158] sm:$0xff]  }
  0x23   : > { %v6767_v26 = vmax.f32 %v5650_v13, 0.0  ;;  %v465_v52 = vunpack.c.l.bf16 %v409_v32  ;;  %v467_v7 = vunpack.c.l.bf16 %v411_v41  ;;  %v6853_v18 = vmax.f32 %v5635_v4, 0.0  ;;  %v5387_v4 = vld [vmem:[%s6758_s4 + $0x98] sm:$0xff]  }
  0x24   : > { %4622 = vmatpush3.bf16.msra.mxu1 %v5355_v14  ;;  %v581_v14 = vadd.f32 %v5571_v23, %v521_v2  ;;  %v850_v27 = vor.u32 %v849_v16, %v845_v6  ;;  %v866_v34 = vrot.slane %v864_v25, 1  ;;  %v5690_v51 = vadd.f32 %v5571_v23, %v523_v40 }
  0x25   : > { %4814 = vmatpush3.bf16.msra.mxu0 %v5356_v19  ;;  %4623 = vmatprep.subr.bf16.mxu1 %v5357_v30  ;;  %v854_v19 = vrot.slane %v852_v8, 1  ;;  %v5670_v35 = vpack.c.bf16 %v6767_v26, %v734_v29  ;;  %v6766_v5 = vmax.f32 %v5687_v50, 0.0  ;;  %v5370_v29 = vld [vmem:[%s6758_s4 + $0x18] sm:$0xff]  }
  0x26   : > { %4815 = vmatprep.subr.bf16.mxu0 %v5358_v33  ;;  %v635_v28 = vmax.f32 %v581_v14, 0.0  ;;  %v6765_v6 = vmax.f32 %v5690_v51, 0.0  ;;  %v525_v14 = vmul.f32 %v5560_v17, %v465_v52 }
  0x27   : > { %v855_v37 = vsel %vm831_vm2, %v850_v27, %v854_v19  ;;  %v869_v44 = vshrl.u32 %v5670_v35, 16  ;;  %v871_v45 = vshll.u32 %v5670_v35, 16  ;;  %v737_v19 = vsel %vm682_vm0, %v6766_v5, 0.0  ;;  %v4377_v5 = vld [vmem:[%s5550_s28 + $0x78] sm:$0xff]  }
  0x28   : > { %4624 = vmatpush3.bf16.msra.mxu1 %v5357_v30  ;;  %v5364_v30 = vld [vmem:[%s6758_s4 + $0x8] sm:$0xff]   ;;  %v736_v38 = vsel %vm687_vm1, %v635_v28, 0.0  ;;  %4819 = vmatprep.mubr.bf16.mxu0 %v855_v37  ;;  %v5722_v25 = vpack.c.bf16 %v6765_v6, %v737_v19  ;;  %v5725_v27 = vadd.f32 %v5571_v23, %v525_v14 }
  0x29   : > { %4816 = vmatpush3.bf16.msra.mxu0 %v5358_v33  ;;  %4625 = vmatprep.subr.bf16.mxu1 %v5359_v48  ;;  %v861_v33 = vrot.slane %v859_v24, 1  ;;  %v5678_v43 = vpack.c.bf16 %v736_v38, %v736_v38  ;;  %v873_v54 = vrot.slane %v871_v45, 1 }
  0x2a   : > { %4817 = vmatprep.subr.bf16.mxu0 %v5360_v53  ;;  %v6764_v38 = vmax.f32 %v5725_v27, 0.0 }
  0x2b   : > { %v862_v42 = vor.u32 %v861_v33, %v857_v22  ;;  %v876_v55 = vshll.u32 %v5678_v43, 16  ;;  %v874_v8 = vor.u32 %v873_v54, %v869_v44  ;;  %v4271_v22 = vunpack.c.l.bf16 %v4375_v63  ;;  %v417_v54 = vld [vmem:[%s5550_s28 + $0x5c] sm:$0x1] }
  0x2c   : > { %4626 = vmatpush3.bf16.msra.mxu1 %v5359_v48  ;;  %v524_v48 = vmul.f32 %v5560_v17, %v464_v36  ;;  %v470_v33 = vunpack.c.l.bf16 %v414_v1  ;;  %v881_v36 = vshrl.u32 %v5722_v25, 16 }
  0x2d   : > { %4818 = vmatpush3.bf16.msra.mxu0 %v5360_v53  ;;  %4659 = vmatprep.subr.bf16.mxu1 %v5361_v60  ;;  %v5693_v53 = vsel %vm831_vm2, %v862_v42, %v866_v34  ;;  %v878_v9 = vrot.slane %v876_v55, 1  ;;  %v528_v42 = vmul.f32 %v4271_v22, %v5560_v17  ;;  %v5373_v55 = vld [vmem:[%s6758_s4 + $0x20] sm:$0xff]  }
  0x2e   : > { %4851 = vmatprep.subr.bf16.mxu0 %v5630_v0  ;;  %6814 = vst [vmem:[#allocation3_spill] sm:$0xff] %v5693_v53  ;;  %v584_v2 = vadd.f32 %v5571_v23, %v524_v48  ;;  %v740_v48 = vsel %vm682_vm0, %v6764_v38, 0.0  ;;  %v530_v52 = vmul.f32 %v5560_v17, %v470_v33  ;;  %v5368_v22 = vld [vmem:[%s6758_s4 + $0x160] sm:$0xff]  }
  0x2f   : > { %4628 = vmatmul.mubr.bf16.vlgmr.msra.gmra.mrb[0].mxu1 %v855_v37  ;;  %v5718_v24 = vsel %vm831_vm2, %v874_v8, %v878_v9  ;;  %v883_v37 = vshll.u32 %v5722_v25, 16  ;;  %v4376_v33 = vld [vmem:[%s5550_s28 + $0x60] sm:$0xff]  }
  0x30   : > { %4660 = vmatpush3.bf16.msra.mxu1 %v5361_v60  ;;  %v466_v60 = vunpack.c.h.bf16 %v409_v32  ;;  %4820 = vmatmul.mubr.bf16.vlgmr.msra.gmra.mrb[0].mxu0 %v5693_v53  ;;  %v638_v16 = vmax.f32 %v584_v2, 0.0  ;;  %6815 = vst [vmem:[#allocation4_spill] sm:$0xff] %v5718_v24  ;;  %v4272_v32 = vunpack.c.h.bf16 %v4375_v63  ;;  %v5766_v63 = vadd.f32 %v5571_v23, %v528_v42  ;;  %v415_v2 = vld [vmem:[%s5550_s28 + $0x54] sm:$0xff]   ;;  %v5879_v38 = vld [vmem:[%s6758_s4 + $0x80] sm:$0xff]  }
  0x31   : > { %4661 = vmatprep.subr.bf16.mxu1 %v5364_v30  ;;  %4631 = vmatprep.mubr.bf16.mxu1 %v5693_v53  ;;  %v885_v45 = vrot.slane %v883_v37, 1  ;;  %v590_v14 = vadd.f32 %v5571_v23, %v530_v52  ;;  %v473_v42 = vunpack.c.l.bf16 %v417_v54 }
  0x32   : > { %4852 = vmatpush3.bf16.msra.mxu0 %v5630_v0  ;;  %v526_v15 = vmul.f32 %v5560_v17, %v466_v60  ;;  %v527_v0 = vmul.f32 %v5560_v17, %v467_v7  ;;  %4823 = vmatprep.mubr.bf16.mxu0 %v5718_v24  ;;  %v529_v44 = vmul.f32 %v4272_v32, %v5560_v17  ;;  %v6762_v19 = vmax.f32 %v5766_v63, 0.0 }
  0x33   : > { %4853 = vmatprep.subr.bf16.mxu0 %v5363_v46  ;;  %6816 = vst [vmem:[#allocation5_spill] sm:$0xff] %v5766_v63  ;;  %v886_v7 = vor.u32 %v885_v45, %v881_v36  ;;  %v471_v32 = vunpack.c.l.bf16 %v415_v2  ;;  %v5375_v36 = vld [vmem:[%s6758_s4 + $0x28] sm:$0xff]   ;;  %v533_v54 = vmul.f32 %v5560_v17, %v473_v42  ;;  %v4276_v42 = vunpack.c.h.bf16 %v4376_v33 }
  0x34   : > { %4662 = vmatpush3.bf16.msra.mxu1 %v5364_v30  ;;  %v5728_v28 = vadd.f32 %v5571_v23, %v526_v15  ;;  %v739_v30 = vsel %vm687_vm1, %v638_v16, 0.0  ;;  %v587_v31 = vadd.f32 %v5571_v23, %v527_v0  ;;  %v5769_v1 = vadd.f32 %v5571_v23, %v529_v44 }
  0x35   : > { %4663 = vmatprep.subr.bf16.mxu1 %v5367_v62  ;;  %v5738_v34 = vpack.c.bf16 %v739_v30, %v739_v30 }
  0x36   : > { %4854 = vmatpush3.bf16.msra.mxu0 %v5363_v46  ;;  %v6763_v40 = vmax.f32 %v5728_v28, 0.0  ;;  %v641_v41 = vmax.f32 %v587_v31, 0.0  ;;  %6817 = vst [vmem:[#allocation6_spill] sm:$0xff] %v5769_v1  ;;  %v6761_v0 = vmax.f32 %v5769_v1, 0.0  ;;  %v644_v31 = vmax.f32 %v590_v14, 0.0  ;;  %v5369_v14 = vld [vmem:[%s6758_s4 + $0x168] sm:$0xff]  }
  0x37   : > { %4632 = vmatmul.mubr.bf16.gmra.mrb[4].mxu1 %v5718_v24  ;;  %4855 = vmatprep.subr.bf16.mxu0 %v5365_v21  ;;  %v888_v46 = vshll.u32 %v5738_v34, 16  ;;  %v433_v24 = vld [vmem:[%s5550_s28 + $0x9c] sm:$0xff]  }
  0x38   : > { %4664 = vmatpush3.bf16.msra.mxu1 %v5367_v62  ;;  %v742_v60 = vsel %vm687_vm1, %v641_v41, 0.0  ;;  %v5763_v62 = vpack.c.bf16 %v6763_v40, %v740_v48  ;;  %v472_v41 = vunpack.c.h.bf16 %v415_v2  ;;  %v745_v45 = vsel %vm687_vm1, %v644_v31, 0.0 }
  0x39   : > { %4665 = vmatprep.subr.bf16.mxu1 %v5370_v29  ;;  %v890_v8 = vrot.slane %v888_v46, 1  ;;  %v5772_v9 = vpack.c.bf16 %v742_v60, %v742_v60  ;;  %v531_v48 = vmul.f32 %v5560_v17, %v471_v32  ;;  %v5803_v60 = vpack.c.bf16 %v745_v45, %v745_v45 }
  0x3a   : > { %4856 = vmatpush3.bf16.msra.mxu0 %v5365_v21  ;;  %v893_v15 = vshrl.u32 %v5763_v62, 16  ;;  %v895_v16 = vshll.u32 %v5763_v62, 16 }
  0x3b   : > { %4857 = vmatprep.subr.bf16.mxu0 %v5366_v39  ;;  %v5783_v21 = vsel %vm831_vm2, %v886_v7, %v890_v8  ;;  %v900_v30 = vshll.u32 %v5772_v9, 16  ;;  %v532_v7 = vmul.f32 %v5560_v17, %v472_v41  ;;  %v912_v31 = vshll.u32 %v5803_v60, 16 }
  0x3c   : > { %4666 = vmatpush3.bf16.msra.mxu1 %v5370_v29  ;;  %6818 = vst [vmem:[#allocation7_spill] sm:$0xff] %v5783_v21  ;;  %4824 = vmatmul.mubr.bf16.gmra.mrb[4].mxu0 %v5783_v21  ;;  %v897_v37 = vrot.slane %v895_v16, 1  ;;  %v743_v29 = vsel %vm682_vm0, %v6762_v19, 0.0  ;;  %v5814_v16 = vadd.f32 %v5571_v23, %v531_v48 }
  0x3d   : > { %4667 = vmatprep.subr.bf16.mxu1 %v5373_v55  ;;  %4635 = vmatprep.mubr.bf16.mxu1 %v5783_v21  ;;  %v902_v44 = vrot.slane %v900_v30, 1  ;;  %v5800_v46 = vpack.c.bf16 %v6761_v0, %v743_v29  ;;  %v5821_v32 = vadd.f32 %v5571_v23, %v532_v7  ;;  %v5377_v29 = vld [vmem:[%s6758_s4 + $0x30] sm:$0xff]   ;;  %v914_v45 = vrot.slane %v912_v31, 1 }
  0x3e   : > { %4858 = vmatpush3.bf16.msra.mxu0 %v5366_v39  ;;  %v898_v52 = vor.u32 %v897_v37, %v893_v15  ;;  %v420_v39 = vld [vmem:[%s5550_s28 + $0x68] sm:$0x1]  ;;  %v4275_v15 = vunpack.c.l.bf16 %v4376_v33  ;;  %v593_v37 = vadd.f32 %v5571_v23, %v533_v54  ;;  %v6774_v41 = vmax.f32 %v5814_v16, 0.0  ;;  %v5371_v54 = vld [vmem:[%s6758_s4 + $0x170] sm:$0xff]  }
  0x3f   : > { %4859 = vmatprep.subr.bf16.mxu0 %v5368_v22  ;;  %v905_v2 = vshrl.u32 %v5800_v46, 16  ;;  %v907_v8 = vshll.u32 %v5800_v46, 16  ;;  %v6772_v48 = vmax.f32 %v5821_v32, 0.0  ;;  %v421_v0 = vld [vmem:[%s5550_s28 + $0x6c] sm:$0xff]   ;;  %v1524_v21 = vrot.slane %v5772_v9, 1 }
  0x40   : > { %4668 = vmatpush3.bf16.msra.mxu1 %v5373_v55  ;;  %v5817_v30 = vsel %vm831_vm2, %v898_v52, %v902_v44  ;;  %v476_v44 = vunpack.c.l.bf16 %v420_v39  ;;  %v647_v52 = vmax.f32 %v593_v37, 0.0  ;;  %v534_v7 = vmul.f32 %v4275_v15, %v5560_v17 }
  0x41   : > { %6819 = vst [vmem:[#allocation8_spill] sm:$0xff] %v5817_v30  ;;  %4669 = vmatprep.subr.bf16.mxu1 %v5375_v36  ;;  %4827 = vmatprep.mubr.bf16.mxu0 %v5817_v30  ;;  %v909_v55 = vrot.slane %v907_v8, 1  ;;  %v746_v33 = vsel %vm682_vm0, %v6774_v41, 0.0  ;;  %v535_v39 = vmul.f32 %v4276_v42, %v5560_v17  ;;  %v5379_v8 = vld [vmem:[%s6758_s4 + $0x38] sm:$0xff]   ;;  %v1511_v37 = vrot.slane %v5615_v58, 1 }
  0x42   : > { %4636 = vmatmul.mubr.bf16.gmra.mrb[8].mxu1 %v5817_v30  ;;  %4860 = vmatpush3.bf16.msra.mxu0 %v5368_v22  ;;  %v536_v22 = vmul.f32 %v5560_v17, %v476_v44  ;;  %v748_v15 = vsel %vm687_vm1, %v647_v52, 0.0  ;;  %v5852_v31 = vadd.f32 %v5571_v23, %v534_v7  ;;  %v477_v40 = vunpack.c.l.bf16 %v421_v0 }
  0x43   : > { %v910_v19 = vor.u32 %v909_v55, %v905_v2  ;;  %4861 = vmatprep.subr.bf16.mxu0 %v5369_v14  ;;  %v5849_v2 = vpack.c.bf16 %v6772_v48, %v746_v33  ;;  %v5858_v55 = vpack.c.bf16 %v748_v15, %v748_v15  ;;  %v5861_v42 = vadd.f32 %v5571_v23, %v535_v39  ;;  %v5372_v15 = vld [vmem:[%s6758_s4 + $0x178] sm:$0xff]  }
  0x44   : > { %4670 = vmatpush3.bf16.msra.mxu1 %v5375_v36  ;;  %v596_v44 = vadd.f32 %v5571_v23, %v536_v22  ;;  %v6771_v58 = vmax.f32 %v5852_v31, 0.0  ;;  %v478_v6 = vunpack.c.h.bf16 %v421_v0  ;;  %v1514_v48 = vrot.slane %v5645_v10, 1 }
  0x45   : > { %4671 = vmatprep.subr.bf16.mxu1 %v5377_v29  ;;  %v5856_v36 = vsel %vm831_vm2, %v910_v19, %v914_v45  ;;  %v917_v52 = vshrl.u32 %v5849_v2, 16  ;;  %v919_v7 = vshll.u32 %v5849_v2, 16  ;;  %v1512_v19 = vrot.slane %v5617_v59, 1  ;;  %v423_v45 = vld [vmem:[%s5550_s28 + $0x74] sm:$0x1] }
  0x46   : > { %6820 = vst [vmem:[#allocation9_spill] sm:$0xff] %v5856_v36  ;;  %4828 = vmatmul.mubr.bf16.gmra.mrb[8].mxu0 %v5856_v36  ;;  %4639 = vmatprep.mubr.bf16.mxu1 %v5856_v36  ;;  %v924_v33 = vshll.u32 %v5858_v55, 16  ;;  %v6773_v39 = vmax.f32 %v5861_v42, 0.0  ;;  %v650_v22 = vmax.f32 %v596_v44, 0.0 }
  0x47   : > { %4862 = vmatpush3.bf16.msra.mxu0 %v5369_v14  ;;  %v921_v59 = vrot.slane %v919_v7, 1  ;;  %v749_v14 = vsel %vm682_vm0, %v6771_v58, 0.0  ;;  %v5886_v44 = vsel %vm1507_vm3, %v1511_v37, %v1512_v19  ;;  %v479_v7 = vunpack.c.l.bf16 %v423_v45  ;;  %v426_v19 = vld [vmem:[%s5550_s28 + $0x80] sm:$0x1] }
  0x48   : > { %4672 = vmatpush3.bf16.msra.mxu1 %v5377_v29  ;;  %4863 = vmatprep.subr.bf16.mxu0 %v5371_v54  ;;  %6821 = vst [vmem:[#allocation10_spill] sm:$0xff] %v5886_v44  ;;  %v926_v29 = vrot.slane %v924_v33, 1  ;;  %v751_v26 = vsel %vm687_vm1, %v650_v22, 0.0  ;;  %v5893_v20 = vpack.c.bf16 %v6773_v39, %v749_v14  ;;  %v537_v58 = vmul.f32 %v5560_v17, %v477_v40 }
  0x49   : > { %4673 = vmatprep.subr.bf16.mxu1 %v5379_v8  ;;  %v922_v61 = vor.u32 %v921_v59, %v917_v52  ;;  %v5895_v57 = vpack.c.bf16 %v751_v26, %v751_v26  ;;  %v538_v37 = vmul.f32 %v5560_v17, %v478_v6  ;;  %v539_v22 = vmul.f32 %v5560_v17, %v479_v7 }
  0x4a   : > { %v929_v0 = vshrl.u32 %v5893_v20, 16  ;;  %v931_v33 = vshll.u32 %v5893_v20, 16  ;;  %v5909_v40 = vadd.f32 %v5571_v23, %v537_v58  ;;  %v4279_v52 = vunpack.c.l.bf16 %v4377_v5 }
  0x4b   : > { %4864 = vmatpush3.bf16.msra.mxu0 %v5371_v54  ;;  %v5905_v45 = vsel %vm831_vm2, %v922_v61, %v926_v29  ;;  %v936_v26 = vshll.u32 %v5895_v57, 16  ;;  %v5912_v6 = vadd.f32 %v5571_v23, %v538_v37  ;;  %v5917_v54 = vld [vmem:[%s6758_s4 + $0x180] sm:$0xff]   ;;  %v599_v10 = vadd.f32 %v5571_v23, %v539_v22 }
  0x4c   : > { %4674 = vmatpush3.bf16.msra.mxu1 %v5379_v8  ;;  %6822 = vst [vmem:[#allocation11_spill] sm:$0xff] %v5905_v45  ;;  %4865 = vmatprep.subr.bf16.mxu0 %v5372_v15  ;;  %v933_v61 = vrot.slane %v931_v33, 1  ;;  %v1515_v8 = vrot.slane %v5647_v11, 1  ;;  %v6776_v59 = vmax.f32 %v5909_v40, 0.0  ;;  %v4280_v29 = vunpack.c.h.bf16 %v4377_v5  ;;  %v427_v33 = vld [vmem:[%s5550_s28 + $0x84] sm:$0xff]  }
  0x4d   : > { %4707 = vmatprep.subr.bf16.mxu1 %v5879_v38  ;;  %4831 = vmatprep.mubr.bf16.mxu0 %v5905_v45  ;;  %v938_v58 = vrot.slane %v936_v26, 1  ;;  %v6775_v14 = vmax.f32 %v5912_v6, 0.0  ;;  %v653_v37 = vmax.f32 %v599_v10, 0.0  ;;  %v482_v41 = vunpack.c.l.bf16 %v426_v19 }
  0x4e   : > { %4640 = vmatmul.mubr.bf16.gmra.mrb[12].mxu1 %v5905_v45  ;;  %v934_v7 = vor.u32 %v933_v61, %v929_v0  ;;  %v5927_v39 = vsel %vm1507_vm3, %v1514_v48, %v1515_v8  ;;  %v752_v11 = vsel %vm682_vm0, %v6776_v59, 0.0  ;;  %v540_v22 = vmul.f32 %v4279_v52, %v5560_v17 }
  0x4f   : > { %4866 = vmatpush3.bf16.msra.mxu0 %v5372_v15  ;;  %6823 = vst [vmem:[#allocation12_spill] sm:$0xff] %v5927_v39  ;;  %v541_v26 = vmul.f32 %v4280_v29, %v5560_v17  ;;  %v1517_v5 = vrot.slane %v5670_v35, 1  ;;  %v429_v15 = vld [vmem:[%s5550_s28 + $0x8c] sm:$0x1]  ;;  %v754_v48 = vsel %vm687_vm1, %v653_v37, 0.0  ;;  %v5946_v19 = vpack.c.bf16 %v6775_v14, %v752_v11 }
  0x50   : > { %4899 = vmatprep.subr.bf16.mxu0 %v5917_v54  ;;  %v5940_v0 = vsel %vm831_vm2, %v934_v7, %v938_v58  ;;  %v542_v61 = vmul.f32 %v5560_v17, %v482_v41  ;;  %v5951_v10 = vpack.c.bf16 %v754_v48, %v754_v48  ;;  %v5954_v35 = vadd.f32 %v5571_v23, %v540_v22 }
  0x51   : > { %6824 = vst [vmem:[#allocation13_spill] sm:$0xff] %v5940_v0  ;;  %4832 = vmatmul.mubr.bf16.gmra.mrb[12].mxu0 %v5940_v0  ;;  %4643 = vmatprep.mubr.bf16.mxu1 %v5940_v0  ;;  %v5957_v8 = vadd.f32 %v5571_v23, %v541_v26  ;;  %v1518_v52 = vrot.slane %v5678_v43, 1  ;;  %v941_v58 = vshrl.u32 %v5946_v19, 16  ;;  %v943_v41 = vshll.u32 %v5946_v19, 16 }
  0x52   : > { %4867 = vmatprep.mubr.bf16.mxu0 %v5886_v44  ;;  %v602_v29 = vadd.f32 %v5571_v23, %v542_v61  ;;  %v483_v7 = vunpack.c.l.bf16 %v427_v33  ;;  %v948_v37 = vshll.u32 %v5951_v10, 16  ;;  %v6780_v11 = vmax.f32 %v5954_v35, 0.0 }
  0x53   : > { %v5968_v26 = vsel %vm1507_vm3, %v1517_v5, %v1518_v52  ;;  %v945_v48 = vrot.slane %v943_v41, 1  ;;  %v484_v14 = vunpack.c.h.bf16 %v427_v33  ;;  %v485_v59 = vunpack.c.l.bf16 %v429_v15  ;;  %v5376_v15 = vld [vmem:[%s6758_s4 + $0x188] sm:$0xff]  }
  0x54   : > { %6825 = vst [vmem:[#allocation14_spill] sm:$0xff] %v5968_v26  ;;  %v656_v43 = vmax.f32 %v602_v29, 0.0  ;;  %v950_v3 = vrot.slane %v948_v37, 1  ;;  %v755_v61 = vsel %vm682_vm0, %v6780_v11, 0.0  ;;  %v543_v0 = vmul.f32 %v5560_v17, %v483_v7  ;;  %v4378_v37 = vld [vmem:[%s5550_s28 + $0x90] sm:$0xff]  }
  0x55   : > { %v1520_v45 = vrot.slane %v5722_v25, 1  ;;  %v946_v22 = vor.u32 %v945_v48, %v941_v58  ;;  %v6826_v52 = vmax.f32 %v5957_v8, 0.0  ;;  %v544_v33 = vmul.f32 %v5560_v17, %v484_v14 }
  0x56   : > { %v757_v5 = vsel %vm687_vm1, %v656_v43, 0.0  ;;  %v545_v7 = vmul.f32 %v5560_v17, %v485_v59  ;;  %v5990_v25 = vadd.f32 %v5571_v23, %v543_v0  ;;  %v1521_v58 = vrot.slane %v5738_v34, 1 }
  0x57   : > { %v5980_v41 = vpack.c.bf16 %v6826_v52, %v755_v61  ;;  %v5986_v29 = vpack.c.bf16 %v757_v5, %v757_v5  ;;  %v5995_v48 = vsel %vm831_vm2, %v946_v22, %v950_v3  ;;  %v6000_v61 = vadd.f32 %v5571_v23, %v544_v33  ;;  %v432_v5 = vld [vmem:[%s5550_s28 + $0x98] sm:$0x1] }
  0x58   : > { %6827 = vst [vmem:[#allocation15_spill] sm:$0xff] %v5995_v48  ;;  %4644 = vmatmul.mubr.bf16.gmra.mrb[16].mxu1 %v5995_v48  ;;  %v605_v34 = vadd.f32 %v5571_v23, %v545_v7  ;;  %v6785_v0 = vmax.f32 %v5990_v25, 0.0  ;;  %v6009_v3 = vsel %vm1507_vm3, %v1520_v45, %v1521_v58  ;;  %v4283_v33 = vunpack.c.l.bf16 %v4378_v37 }
  0x59   : > { %v953_v43 = vshrl.u32 %v5980_v41, 16  ;;  %v955_v14 = vshll.u32 %v5980_v41, 16  ;;  %4868 = vmatmul.mubr.bf16.vlgmr.msra.gmra.mrb[0].mxu0 %v5927_v39  ;;  %v960_v59 = vshll.u32 %v5986_v29, 16  ;;  %6828 = vst [vmem:[#allocation16_spill] sm:$0xff] %v6009_v3  ;;  %v6788_v52 = vmax.f32 %v6000_v61, 0.0  ;;  %v439_v39 = vld [vmem:[%s5550_s28 + $0xb4] sm:$0xff]  }
  0x5a   : > { %4900 = vmatpush3.bf16.msra.mxu0 %v5917_v54  ;;  %4871 = vmatprep.mubr.bf16.mxu0 %v5968_v26  ;;  %v4284_v11 = vunpack.c.h.bf16 %v4378_v37  ;;  %v659_v36 = vmax.f32 %v605_v34, 0.0  ;;  %v758_v7 = vsel %vm682_vm0, %v6785_v0, 0.0  ;;  %v488_v45 = vunpack.c.l.bf16 %v432_v5  ;;  %v5378_v54 = vld [vmem:[%s6758_s4 + $0x190] sm:$0xff]   ;;  %v435_v34 = vld [vmem:[%s5550_s28 + $0xa4] sm:$0x1] }
  0x5b   : > { %v957_v22 = vrot.slane %v955_v14, 1  ;;  %v962_v48 = vrot.slane %v960_v59, 1  ;;  %4901 = vmatprep.subr.bf16.mxu0 %v5376_v15  ;;  %v6023_v14 = vpack.c.bf16 %v6788_v52, %v758_v7  ;;  %v546_v37 = vmul.f32 %v4283_v33, %v5560_v17  ;;  %v4379_v52 = vld [vmem:[%s5550_s28 + $0xa8] sm:$0xff]  }
  0x5c   : > { %v547_v59 = vmul.f32 %v4284_v11, %v5560_v17  ;;  %v760_v30 = vsel %vm687_vm1, %v659_v36, 0.0  ;;  %v548_v0 = vmul.f32 %v5560_v17, %v488_v45  ;;  %v1523_v5 = vrot.slane %v5763_v62, 1 }
  0x5d   : > { %v958_v58 = vor.u32 %v957_v22, %v953_v43  ;;  %v6037_v22 = vpack.c.bf16 %v760_v30, %v760_v30  ;;  %v965_v33 = vshrl.u32 %v6023_v14, 16  ;;  %v967_v11 = vshll.u32 %v6023_v14, 16  ;;  %v5380_v30 = vld [vmem:[%s6758_s4 + $0x198] sm:$0xff]  }
  0x5e   : > { %4902 = vmatpush3.bf16.msra.mxu0 %v5376_v15  ;;  %v6043_v36 = vadd.f32 %v5571_v23, %v546_v37  ;;  %v6046_v17 = vadd.f32 %v5571_v23, %v547_v59  ;;  %v608_v62 = vadd.f32 %v5571_v23, %v548_v0  ;;  %v6050_v9 = vsel %vm1507_vm3, %v1523_v5, %v1524_v21  ;;  %v6063_v5 = vld [vmem:[%s6756_s2] ss:$0 sm:$0xff] }
  0x5f   : > { %v6035_v43 = vsel %vm831_vm2, %v958_v58, %v962_v48  ;;  %6830 = vst [vmem:[#allocation18_spill] sm:$0xff] %v6050_v9  ;;  %v969_v48 = vrot.slane %v967_v11, 1  ;;  %v972_v15 = vshll.u32 %v6037_v22, 16  ;;  %v489_v7 = vunpack.c.l.bf16 %v433_v24  ;;  %4903 = vmatprep.subr.bf16.mxu0 %v5378_v54 }
  0x60   : > { %6829 = vst [vmem:[#allocation17_spill] sm:$0xff] %v6035_v43  ;;  %4647 = vmatprep.mubr.bf16.mxu1 %v6035_v43  ;;  %v490_v45 = vunpack.c.h.bf16 %v433_v24  ;;  %v6789_v58 = vmax.f32 %v6043_v36, 0.0  ;;  %v6790_v23 = vmax.f32 %v6046_v17, 0.0  ;;  %v662_v21 = vmax.f32 %v608_v62, 0.0 }
  0x61   : > { %4872 = vmatmul.mubr.bf16.gmra.mrb[4].mxu0 %v6009_v3  ;;  %v491_v0 = vunpack.c.l.bf16 %v435_v34  ;;  %v970_v37 = vor.u32 %v969_v48, %v965_v33  ;;  %v974_v59 = vrot.slane %v972_v15, 1  ;;  %v549_v24 = vmul.f32 %v6063_v5, %v489_v7  ;;  %v438_v15 = vld [vmem:[%s5550_s28 + $0xb0] sm:$0x1]  ;;  %v5382_v7 = vld [vmem:[%s6758_s4 + $0x1a0] sm:$0xff]  }
  0x62   : > { %4875 = vmatprep.mubr.bf16.mxu0 %v6050_v9  ;;  %v550_v11 = vmul.f32 %v6063_v5, %v490_v45  ;;  %4904 = vmatpush3.bf16.msra.mxu0 %v5378_v54  ;;  %v761_v34 = vsel %vm682_vm0, %v6789_v58, 0.0  ;;  %v763_v33 = vsel %vm687_vm1, %v662_v21, 0.0  ;;  %v1526_v48 = vrot.slane %v5800_v46, 1  ;;  %v6092_v21 = vld [vmem:[%s6757_s3] ss:$0 sm:$0xff] }
  0x63   : > { %v551_v62 = vmul.f32 %v6063_v5, %v491_v0  ;;  %4905 = vmatprep.subr.bf16.mxu0 %v5380_v30  ;;  %v6081_v54 = vsel %vm831_vm2, %v970_v37, %v974_v59  ;;  %v6085_v45 = vpack.c.bf16 %v6790_v23, %v761_v34  ;;  %v6087_v58 = vpack.c.bf16 %v763_v33, %v763_v33 }
  0x64   : > { %6831 = vst [vmem:[#allocation19_spill] sm:$0xff] %v6081_v54  ;;  %v6095_v46 = vadd.f32 %v6092_v21, %v549_v24  ;;  %4648 = vmatmul.mubr.bf16.gmra.mrb[20].mxu1 %v6081_v54  ;;  %v6099_v0 = vadd.f32 %v6092_v21, %v550_v11  ;;  %v1527_v59 = vrot.slane %v5803_v60, 1  ;;  %v4287_v34 = vunpack.c.l.bf16 %v4379_v52  ;;  %v5384_v60 = vld [vmem:[%s6758_s4 + $0x1a8] sm:$0xff]  }
  0x65   : > { %v611_v37 = vadd.f32 %v6092_v21, %v551_v62  ;;  %v977_v33 = vshrl.u32 %v6085_v45, 16  ;;  %v979_v23 = vshll.u32 %v6085_v45, 16  ;;  %v984_v43 = vshll.u32 %v6087_v58, 16 }
  0x66   : > { %v6802_v9 = vmax.f32 %v6095_v46, 0.0  ;;  %4906 = vmatpush3.bf16.msra.mxu0 %v5380_v30  ;;  %v6805_v24 = vmax.f32 %v6099_v0, 0.0  ;;  %v6109_v11 = vsel %vm1507_vm3, %v1526_v48, %v1527_v59  ;;  %v4288_v53 = vunpack.c.h.bf16 %v4379_v52 }
  0x67   : > { %v665_v54 = vmax.f32 %v611_v37, 0.0  ;;  %6832 = vst [vmem:[#allocation20_spill] sm:$0xff] %v6109_v11  ;;  %4907 = vmatprep.subr.bf16.mxu0 %v5382_v7  ;;  %v981_v62 = vrot.slane %v979_v23, 1  ;;  %v986_v3 = vrot.slane %v984_v43, 1  ;;  %v494_v26 = vunpack.c.l.bf16 %v438_v15 }
  0x68   : > { %v764_v30 = vsel %vm682_vm0, %v6802_v9, 0.0  ;;  %v552_v48 = vmul.f32 %v6063_v5, %v4287_v34  ;;  %v553_v23 = vmul.f32 %v6063_v5, %v4288_v53  ;;  %v1529_v15 = vrot.slane %v5849_v2, 1  ;;  %v5386_v53 = vld [vmem:[%s6758_s4 + $0x1b0] sm:$0xff]  }
  0x69   : > { %v766_v37 = vsel %vm687_vm1, %v665_v54, 0.0  ;;  %v6122_v52 = vpack.c.bf16 %v6805_v24, %v764_v30  ;;  %4876 = vmatmul.mubr.bf16.gmra.mrb[8].mxu0 %v6109_v11  ;;  %v982_v43 = vor.u32 %v981_v62, %v977_v33  ;;  %v554_v9 = vmul.f32 %v6063_v5, %v494_v26  ;;  %v441_v62 = vld [vmem:[%s5550_s28 + $0xbc] sm:$0x1] }
  0x6a   : > { %v6127_v59 = vpack.c.bf16 %v766_v37, %v766_v37  ;;  %4908 = vmatpush3.bf16.msra.mxu0 %v5382_v7  ;;  %v6135_v24 = vadd.f32 %v6092_v21, %v552_v48  ;;  %v6138_v34 = vadd.f32 %v6092_v21, %v553_v23  ;;  %v1530_v33 = vrot.slane %v5858_v55, 1 }
  0x6b   : > { %v989_v54 = vshrl.u32 %v6122_v52, 16  ;;  %v991_v30 = vshll.u32 %v6122_v52, 16  ;;  %4909 = vmatprep.subr.bf16.mxu0 %v5384_v60  ;;  %v6144_v26 = vsel %vm831_vm2, %v982_v43, %v986_v3  ;;  %v614_v7 = vadd.f32 %v6092_v21, %v554_v9 }
  0x6c   : > { %v996_v2 = vshll.u32 %v6127_v59, 16  ;;  %4651 = vmatprep.mubr.bf16.mxu1 %v6144_v26  ;;  %v6812_v48 = vmax.f32 %v6135_v24, 0.0  ;;  %v6811_v23 = vmax.f32 %v6138_v34, 0.0  ;;  %v495_v11 = vunpack.c.l.bf16 %v439_v39 }
  0x6d   : > { %v993_v37 = vrot.slane %v991_v30, 1  ;;  %v668_v1 = vmax.f32 %v614_v7, 0.0  ;;  %v6154_v3 = vsel %vm1507_vm3, %v1529_v15, %v1530_v33  ;;  %v496_v43 = vunpack.c.h.bf16 %v439_v39 }
  0x6e   : > { %v998_v44 = vrot.slane %v996_v2, 1  ;;  %4910 = vmatpush3.bf16.msra.mxu0 %v5384_v60  ;;  %v767_v55 = vsel %vm682_vm0, %v6812_v48, 0.0  ;;  %4879 = vmatprep.mubr.bf16.mxu0 %v6154_v3  ;;  %v497_v9 = vunpack.c.l.bf16 %v441_v62  ;;  %v555_v30 = vmul.f32 %v6063_v5, %v495_v11  ;;  %v5388_v2 = vld [vmem:[%s6758_s4 + $0x1b8] sm:$0xff]  }
  0x6f   : > { %v994_v63 = vor.u32 %v993_v37, %v989_v54  ;;  %4911 = vmatprep.subr.bf16.mxu0 %v5386_v53  ;;  %v769_v39 = vsel %vm687_vm1, %v668_v1, 0.0  ;;  %v6169_v60 = vpack.c.bf16 %v6811_v23, %v767_v55  ;;  %v556_v15 = vmul.f32 %v6063_v5, %v496_v43 }
  0x70   : > { %v1532_v54 = vrot.slane %v5893_v20, 1  ;;  %v6176_v11 = vpack.c.bf16 %v769_v39, %v769_v39  ;;  %v557_v33 = vmul.f32 %v6063_v5, %v497_v9  ;;  %v6180_v62 = vadd.f32 %v6092_v21, %v555_v30  ;;  %v6196_v30 = vld [vmem:[%s6758_s4 + $0x1c0] sm:$0xff]  }
  0x71   : > { %v6174_v7 = vsel %vm831_vm2, %v994_v63, %v998_v44  ;;  %v1001_v1 = vshrl.u32 %v6169_v60, 16  ;;  %v1003_v37 = vshll.u32 %v6169_v60, 16  ;;  %v6186_v43 = vadd.f32 %v6092_v21, %v556_v15 }
  0x72   : > { %4652 = vmatmul.mubr.bf16.gmra.mrb[24].mxu1 %v6174_v7  ;;  %v1533_v20 = vrot.slane %v5895_v57, 1  ;;  %4912 = vmatpush3.bf16.msra.mxu0 %v5386_v53  ;;  %v1008_v63 = vshll.u32 %v6176_v11, 16  ;;  %v617_v44 = vadd.f32 %v6092_v21, %v557_v33  ;;  %v669_v55 = vmax.f32 %v6180_v62, 0.0 }
  0x73   : > { %v1535_v9 = vrot.slane %v5946_v19, 1  ;;  %4913 = vmatprep.subr.bf16.mxu0 %v5388_v2  ;;  %v1005_v39 = vrot.slane %v1003_v37, 1  ;;  %v670_v15 = vmax.f32 %v6186_v43, 0.0  ;;  %v1536_v53 = vrot.slane %v5951_v10, 1 }
  0x74   : > { %v6200_v57 = vsel %vm1507_vm3, %v1532_v54, %v1533_v20  ;;  %v1010_v23 = vrot.slane %v1008_v63, 1  ;;  %v671_v33 = vmax.f32 %v617_v44, 0.0  ;;  %v770_v19 = vsel %vm682_vm0, %v669_v55, 0.0 }
  0x75   : > { %4880 = vmatmul.mubr.bf16.gmra.mrb[12].mxu0 %v6200_v57  ;;  %v1538_v48 = vrot.slane %v5980_v41, 1  ;;  %v1006_v37 = vor.u32 %v1005_v39, %v1001_v1  ;;  %v6211_v43 = vpack.c.bf16 %v670_v15, %v770_v19  ;;  %v6214_v54 = vsel %vm1507_vm3, %v1535_v9, %v1536_v53  ;;  %v4290_v39 = vld [vmem:[%s371_s30] sm:$0xff]   ;;  %v444_v19 = vld [vmem:[%s371_s30 + $0x8] sm:$0x1]  ;;  %s6717_s30 = scalar_lea.vmem %s6759_s5, %s4228_s27 }
  0x76   : > { %v1539_v10 = vrot.slane %v5986_v29, 1  ;;  %4914 = vmatpush3.bf16.msra.mxu0 %v5388_v2  ;;  %v772_v20 = vsel %vm687_vm1, %v671_v33, 0.0  ;;  %4883 = vmatprep.mubr.bf16.mxu0 %v6214_v54  ;;  %v1541_v63 = vrot.slane %v6023_v14, 1  ;;  %v1542_v41 = vrot.slane %v6037_v22, 1 }
  0x77   : > { %4947 = vmatprep.subr.bf16.mxu0 %v6196_v30  ;;  %v6224_v1 = vsel %vm831_vm2, %v1006_v37, %v1010_v23  ;;  %v6226_v44 = vpack.c.bf16 %v772_v20, %v772_v20  ;;  %v1013_v9 = vshrl.u32 %v6211_v43, 16  ;;  %v1015_v29 = vshll.u32 %v6211_v43, 16 }
  0x78   : > { %4655 = vmatprep.mubr.bf16.mxu1 %v6224_v1  ;;  %v6236_v2 = vsel %vm1507_vm3, %v1538_v48, %v1539_v10  ;;  %v6239_v23 = vsel %vm1507_vm3, %v1541_v63, %v1542_v41  ;;  %v1544_v37 = vrot.slane %v6085_v45, 1  ;;  %v1545_v20 = vrot.slane %v6087_v58, 1 }
  0x79   : > { %v1017_v14 = vrot.slane %v1015_v29, 1  ;;  %v1020_v22 = vshll.u32 %v6226_v44, 16  ;;  %v1547_v48 = vrot.slane %v6122_v52, 1  ;;  %v6833_v10 = vmax.f32 %v5814_v16, 0.0 }
  0x7a   : > { %v6834_v63 = vmax.f32 %v5821_v32, 0.0  ;;  %v1548_v45 = vrot.slane %v6127_v59, 1  ;;  %v500_v58 = vunpack.c.l.bf16 %v444_v19  ;;  %v5452_v52 = vmov 0.0|0.0  }
  0x7b   : > { %v1018_v53 = vor.u32 %v1017_v14, %v1013_v9  ;;  %v1022_v33 = vrot.slane %v1020_v22, 1  ;;  %v4291_v9 = vunpack.c.l.bf16 %v4290_v39  ;;  %v4292_v14 = vunpack.c.h.bf16 %v4290_v39 }
  0x7c   : > { %v6253_v41 = vpack.c.bf16 %v6834_v63, %v6833_v10  ;;  %v6835_v22 = vmax.f32 %v5852_v31, 0.0  ;;  %v6837_v32 = vmax.f32 %v5909_v40, 0.0  ;;  %v6838_v10 = vmax.f32 %v5912_v6, 0.0 }
  0x7d   : > { %4884 = vmatmul.mubr.bf16.gmra.mrb[16].mxu0 %v6236_v2  ;;  %v6245_v29 = vsel %vm831_vm2, %v1018_v53, %v1022_v33  ;;  %v6836_v53 = vmax.f32 %v5861_v42, 0.0  ;;  %v558_v16 = vmul.f32 %v6063_v5, %v4291_v9  ;;  %v6839_v59 = vmax.f32 %v5954_v35, 0.0 }
  0x7e   : > { %4887 = vmatprep.mubr.bf16.mxu0 %v6239_v23  ;;  %4656 = vmatmul.mubr.bf16.gmra.mrb[28].mxu1 %v6245_v29  ;;  %v6269_v63 = vpack.c.bf16 %v6838_v10, %v6837_v32  ;;  %v6840_v39 = vmax.f32 %v5957_v8, 0.0  ;;  %v6841_v42 = vmax.f32 %v5990_v25, 0.0  ;;  %v6842_v19 = vmax.f32 %v6000_v61, 0.0 }
  0x7f   : > { %v6261_v33 = vpack.c.bf16 %v6836_v53, %v6835_v22  ;;  %4675 = vmatprep.mubr.bf16.mxu1 %v5452_v52  ;;  %v559_v9 = vmul.f32 %v6063_v5, %v4292_v14  ;;  %v560_v40 = vmul.f32 %v6063_v5, %v500_v58  ;;  %v6843_v6 = vmax.f32 %v6043_v36, 0.0 }
  0x80   : > { %v6275_v31 = vpack.c.bf16 %v6840_v39, %v6839_v59  ;;  %v6281_v22 = vpack.c.bf16 %v6842_v19, %v6841_v42  ;;  %v6844_v53 = vmax.f32 %v6046_v17, 0.0  ;;  %v6845_v35 = vmax.f32 %v6095_v46, 0.0 }
  0x81   : > { %v6846_v8 = vmax.f32 %v6099_v0, 0.0  ;;  %v6298_v25 = vsel %vm1507_vm3, %v1544_v37, %v1545_v20  ;;  %v6301_v61 = vadd.f32 %v6092_v21, %v558_v16  ;;  %v6847_v5 = vmax.f32 %v6135_v24, 0.0  ;;  %v5383_v20 = vld [vmem:[%s6758_s4 + $0x88] sm:$0xff]  }
  0x82   : > { %v6289_v32 = vpack.c.bf16 %v6844_v53, %v6843_v6  ;;  %v6848_v36 = vmax.f32 %v6138_v34, 0.0  ;;  %v6311_v17 = vpack.c.bf16 %v670_v15, %v669_v55  ;;  %v6314_v46 = vsel %vm1507_vm3, %v1547_v48, %v1548_v45 }
  0x83   : > { %v6295_v10 = vpack.c.bf16 %v6846_v8, %v6845_v35  ;;  %v6317_v0 = vadd.f32 %v6092_v21, %v559_v9  ;;  %v620_v37 = vadd.f32 %v6092_v21, %v560_v40  ;;  %v6851_v34 = vmax.f32 %v5595_v47, 0.0  ;;  %v6859_v8 = vld [vmem:[#allocation5_spill] sm:$0xff] }
  0x84   : > { %v6307_v14 = vpack.c.bf16 %v6848_v36, %v6847_v5  ;;  %v6852_v62 = vmax.f32 %v5601_v49, 0.0  ;;  %v672_v15 = vmax.f32 %v6301_v61, 0.0  ;;  %v1550_v48 = vrot.slane %v6169_v60, 1  ;;  %v6861_v36 = vld [vmem:[#allocation6_spill] sm:$0xff]  ;;  %v6866_v61 = vld [vmem:[#allocation16_spill] sm:$0xff] }
  0x85   : > { %4888 = vmatmul.mubr.bf16.gmra.mrb[20].mxu0 %v6298_v25  ;;  %v674_v21 = vmax.f32 %v620_v37, 0.0  ;;  %v1551_v45 = vrot.slane %v6176_v11, 1  ;;  %v673_v47 = vmax.f32 %v6317_v0, 0.0  ;;  %v1553_v49 = vrot.slane %v6211_v43, 1  ;;  %v5385_v11 = vld [vmem:[%s6758_s4 + $0x90] sm:$0xff]   ;;  %v5405_v0 = vld [vmem:[%s6758_s4 + $0xe0] sm:$0xff]  }
  0x86   : > { %v6330_v55 = vpack.c.bf16 %v6852_v62, %v6851_v34  ;;  %4891 = vmatprep.mubr.bf16.mxu0 %v6314_v46  ;;  %4676 = vmatmul.mubr.msk.bf16.vlgmr.msra.gmra.mrb[0].mxu1 %vm6322_vm5, %v5612_v56  ;;  %v1554_v58 = vrot.slane %v6226_v44, 1  ;;  %v773_v16 = vsel %vm682_vm0, %v672_v15, 0.0  ;;  %v6855_v42 = vmax.f32 %v5687_v50, 0.0  ;;  %v5389_v50 = vld [vmem:[%s6758_s4 + $0xa0] sm:$0xff]   ;;  %v5391_v62 = vld [vmem:[%s6758_s4 + $0xa8] sm:$0xff]  }
  0x87   : > { %v775_v60 = vsel %vm687_vm1, %v674_v21, 0.0  ;;  %4708 = vmatpush3.bf16.msra.mxu1 %v5879_v38  ;;  %v6360_v43 = vsel %vm1507_vm3, %v1550_v48, %v1551_v45  ;;  %v811_v12 = vpack.c.bf16 %v673_v47, %v773_v16  ;;  %v6854_v38 = vmax.f32 %v5650_v13, 0.0  ;;  %v5393_v21 = vld [vmem:[%s6758_s4 + $0xb0] sm:$0xff]   ;;  %v5395_v16 = vld [vmem:[%s6758_s4 + $0xb8] sm:$0xff]  }
  0x88   : > { %4679 = vmatprep.mubr.msk.bf16.mxu1 %vm6322_vm5, %v6330_v55  ;;  %4709 = vmatprep.subr.bf16.mxu1 %v5383_v20  ;;  %v812_v44 = vpack.c.bf16 %v775_v60, %v775_v60  ;;  %v6371_v39 = vsel %vm1507_vm3, %v1553_v49, %v1554_v58  ;;  %v6856_v19 = vmax.f32 %v5690_v51, 0.0  ;;  %v6857_v6 = vmax.f32 %v5725_v27, 0.0  ;;  %v5392_v49 = vld [vmem:[%s6758_s4 + $0x1c8] sm:$0xff]  }
  0x89   : > { %v6368_v59 = vpack.c.bf16 %v6854_v38, %v6853_v18  ;;  %v2361_v13 = vrot.slane %v811_v12, 1  ;;  %v6858_v53 = vmax.f32 %v5728_v28, 0.0  ;;  %v6860_v5 = vmax.f32 %v6859_v8, 0.0  ;;  %v5400_v18 = vld [vmem:[%s6758_s4 + $0x1e8] sm:$0xff]   ;;  %v5402_v38 = vld [vmem:[%s6758_s4 + $0x1f0] sm:$0xff]   ;;  %v5403_v8 = vld [vmem:[%s6758_s4 + $0xd8] sm:$0xff]  }
  0x8a   : > { %v6377_v9 = vpack.c.bf16 %v6856_v19, %v6855_v42  ;;  %v2362_v40 = vrot.slane %v812_v44, 1  ;;  %v6862_v37 = vmax.f32 %v6861_v36, 0.0  ;;  %v2091_v27 = vshll.u32 %v811_v12, 16  ;;  %v5404_v42 = vld [vmem:[%s6758_s4 + $0x1f8] sm:$0xff]   ;;  %v5406_v19 = vld [vmem:[%s6758_s4 + $0x200] sm:$0xff]  }
  0x8b   : > { %4710 = vmatpush3.bf16.msra.mxu1 %v5383_v20  ;;  %v6400_v35 = vpack.c.bf16 %v6858_v53, %v6857_v6  ;;  %v2089_v28 = vshrl.u32 %v811_v12, 16  ;;  %v2096_v20 = vshll.u32 %v812_v44, 16  ;;  %v5396_v12 = vld [vmem:[%s6758_s4 + $0x1d8] sm:$0xff]   ;;  %v5398_v44 = vld [vmem:[%s6758_s4 + $0x1e0] sm:$0xff]   ;;  %v5401_v6 = vld [vmem:[%s6758_s4 + $0xd0] sm:$0xff]   ;;  %v6537_v53 = vpack.c.bf16 %v673_v47, %v672_v15 }
  0x8c   : > { %4711 = vmatprep.subr.bf16.mxu1 %v5385_v11  ;;  %v6394_v51 = vsel %vm1507_vm3, %v2361_v13, %v2362_v40  ;;  %v6406_v34 = vpack.c.bf16 %v6862_v37, %v6860_v5  ;;  %v2093_v48 = vrot.slane %v2091_v27, 1  ;;  %v5399_v13 = vld [vmem:[%s6758_s4 + $0xc8] sm:$0xff]   ;;  %v6863_v40 = vld [vmem:[#allocation10_spill] sm:$0xff]  ;;  %v6869_v37 = vld [vmem:[#allocation20_spill] sm:$0xff] }
  0x8d   : > { %4892 = vmatmul.mubr.bf16.gmra.mrb[24].mxu0 %v6360_v43  ;;  %v2098_v45 = vrot.slane %v2096_v20, 1  ;;  %v6865_v5 = vld [vmem:[#allocation14_spill] sm:$0xff]  ;;  %v5407_v15 = vld [vmem:[%s6758_s4 + $0xe8] sm:$0xff]   ;;  %v6870_v27 = vld [vmem:[#allocation4_spill] sm:$0xff] }
  0x8e   : > { %4895 = vmatprep.mubr.bf16.mxu0 %v6371_v39  ;;  %4680 = vmatmul.mubr.msk.bf16.gmra.mrb[4].mxu1 %vm6322_vm5, %v6368_v59  ;;  %v2094_v58 = vor.u32 %v2093_v48, %v2089_v28  ;;  %v6867_v47 = vld [vmem:[#allocation3_spill] sm:$0xff]  ;;  %v6868_v36 = vld [vmem:[#allocation18_spill] sm:$0xff]  ;;  %v5411_v28 = vld [vmem:[%s6758_s4 + $0xf8] sm:$0xff]  }
  0x8f   : > { %4683 = vmatprep.mubr.msk.bf16.mxu1 %vm6322_vm5, %v6377_v9  ;;  %4712 = vmatpush3.bf16.msra.mxu1 %v5385_v11  ;;  %v5394_v11 = vld [vmem:[%s6758_s4 + $0x1d0] sm:$0xff]   ;;  %v6871_v20 = vld [vmem:[#allocation7_spill] sm:$0xff]  ;;  %v5412_v48 = vld [vmem:[%s6758_s4 + $0x218] sm:$0xff]  }
  0x90   : > { %4713 = vmatprep.subr.bf16.mxu1 %v5387_v4  ;;  %v6434_v60 = vsel %vm831_vm2, %v2094_v58, %v2098_v45  ;;  %v6872_v45 = vld [vmem:[#allocation8_spill] sm:$0xff]  ;;  %v6873_v58 = vld [vmem:[#allocation9_spill] sm:$0xff] }
  0x93   : > { %4714 = vmatpush3.bf16.msra.mxu1 %v5387_v4  ;;  %v6507_v4 = vrot.slane %v5452_v52, 1 }
  0x94   : > { %4715 = vmatprep.subr.bf16.mxu1 %v5389_v50 }
  0x95   : > { %4896 = vmatmul.mubr.bf16.gmra.mrb[28].mxu0 %v6394_v51 }
  0x96   : > { %4915 = vmatprep.mubr.msk.bf16.mxu0 %vm6322_vm5, %v6330_v55  ;;  %4684 = vmatmul.mubr.msk.bf16.gmra.mrb[8].mxu1 %vm6322_vm5, %v6400_v35 }
  0x97   : > { %4687 = vmatprep.mubr.msk.bf16.mxu1 %vm6322_vm5, %v6406_v34  ;;  %4716 = vmatpush3.bf16.msra.mxu1 %v5389_v50  ;;  %v6864_v50 = vld [vmem:[#allocation12_spill] sm:$0xff] }
  0x98   : > { %4717 = vmatprep.subr.bf16.mxu1 %v5391_v62 }
  0x9b   : > { %4718 = vmatpush3.bf16.msra.mxu1 %v5391_v62  ;;  %v5409_v62 = vld [vmem:[%s6758_s4 + $0xf0] sm:$0xff]  }
  0x9c   : > { %4719 = vmatprep.subr.bf16.mxu1 %v5393_v21 }
  0x9d   : > { %4916 = vmatmul.mubr.msk.bf16.vlgmr.msra.gmra.mrb[0].mxu0 %vm6322_vm5, %v6368_v59 }
  0x9e   : > { %4948 = vmatpush3.bf16.msra.mxu0 %v6196_v30  ;;  %4919 = vmatprep.mubr.msk.bf16.mxu0 %vm6322_vm5, %v6377_v9  ;;  %v5397_v30 = vld [vmem:[%s6758_s4 + $0xc0] sm:$0xff]  }
  0x9f   : > { %4688 = vmatmul.mubr.msk.bf16.gmra.mrb[12].mxu1 %vm6322_vm5, %v6253_v41  ;;  %4949 = vmatprep.subr.bf16.mxu0 %v5392_v49 }
  0xa0   : > { %4691 = vmatprep.mubr.msk.bf16.mxu1 %vm6322_vm5, %v6261_v33  ;;  %4720 = vmatpush3.bf16.msra.mxu1 %v5393_v21  ;;  %v5410_v21 = vld [vmem:[%s6758_s4 + $0x210] sm:$0xff]  }
  0xa1   : > { %4721 = vmatprep.subr.bf16.mxu1 %v5395_v16 }
  0xa2   : > { %4950 = vmatpush3.bf16.msra.mxu0 %v5392_v49  ;;  %v5419_v49 = vld [vmem:[%s6758_s4 + $0x100] sm:$0xff]  }
  0xa3   : > { %4951 = vmatprep.subr.bf16.mxu0 %v5394_v11 }
  0xa4   : > { %4722 = vmatpush3.bf16.msra.mxu1 %v5395_v16  ;;  %v5413_v16 = vld [vmem:[%s6758_s4 + $0x220] sm:$0xff]  }
  0xa5   : > { %4920 = vmatmul.mubr.msk.bf16.gmra.mrb[4].mxu0 %vm6322_vm5, %v6400_v35  ;;  %4755 = vmatprep.subr.bf16.mxu1 %v5397_v30 }
  0xa6   : > { %4923 = vmatprep.mubr.msk.bf16.mxu0 %vm6322_vm5, %v6406_v34  ;;  %4952 = vmatpush3.bf16.msra.mxu0 %v5394_v11  ;;  %v5414_v11 = vld [vmem:[%s6758_s4 + $0x228] sm:$0xff]  }
  0xa7   : > { %4692 = vmatmul.mubr.msk.bf16.gmra.mrb[16].mxu1 %vm6322_vm5, %v6269_v63  ;;  %4953 = vmatprep.subr.bf16.mxu0 %v5396_v12 }
  0xa8   : > { %4695 = vmatprep.mubr.msk.bf16.mxu1 %vm6322_vm5, %v6275_v31 }
  0xaa   : > { %4954 = vmatpush3.bf16.msra.mxu0 %v5396_v12  ;;  %v6875_v12 = vld [vmem:[#allocation13_spill] sm:$0xff] }
  0xab   : > { %4955 = vmatprep.subr.bf16.mxu0 %v5398_v44 }
  0xad   : > { %4924 = vmatmul.mubr.msk.bf16.gmra.mrb[8].mxu0 %vm6322_vm5, %v6253_v41 }
  0xae   : > { %4927 = vmatprep.mubr.msk.bf16.mxu0 %vm6322_vm5, %v6261_v33  ;;  %4956 = vmatpush3.bf16.msra.mxu0 %v5398_v44  ;;  %v5415_v44 = vld [vmem:[%s6758_s4 + $0x230] sm:$0xff]  }
  0xaf   : > { %4696 = vmatmul.mubr.msk.bf16.gmra.mrb[20].mxu1 %vm6322_vm5, %v6281_v22  ;;  %4957 = vmatprep.subr.bf16.mxu0 %v5400_v18 }
  0xb0   : > { %4699 = vmatprep.mubr.msk.bf16.mxu1 %vm6322_vm5, %v6289_v32 }
  0xb2   : > { %4958 = vmatpush3.bf16.msra.mxu0 %v5400_v18  ;;  %v5416_v18 = vld [vmem:[%s6758_s4 + $0x238] sm:$0xff]  }
  0xb3   : > { %4959 = vmatprep.subr.bf16.mxu0 %v5402_v38 }
  0xb5   : > { %4928 = vmatmul.mubr.msk.bf16.gmra.mrb[12].mxu0 %vm6322_vm5, %v6269_v63 }
  0xb6   : > { %4931 = vmatprep.mubr.msk.bf16.mxu0 %vm6322_vm5, %v6275_v31  ;;  %4960 = vmatpush3.bf16.msra.mxu0 %v5402_v38  ;;  %v6876_v38 = vld [vmem:[#allocation15_spill] sm:$0xff] }
  0xb7   : > { %4700 = vmatmul.mubr.msk.bf16.gmra.mrb[24].mxu1 %vm6322_vm5, %v6295_v10  ;;  %4961 = vmatprep.subr.bf16.mxu0 %v5404_v42 }
  0xb8   : > { %4703 = vmatprep.mubr.msk.bf16.mxu1 %vm6322_vm5, %v6307_v14 }
  0xba   : > { %4962 = vmatpush3.bf16.msra.mxu0 %v5404_v42  ;;  %v6877_v42 = vld [vmem:[#allocation17_spill] sm:$0xff] }
  0xbb   : > { %4995 = vmatprep.subr.bf16.mxu0 %v5406_v19 }
  0xbd   : > { %4932 = vmatmul.mubr.msk.bf16.gmra.mrb[16].mxu0 %vm6322_vm5, %v6281_v22 }
  0xbe   : > { %4935 = vmatprep.mubr.msk.bf16.mxu0 %vm6322_vm5, %v6289_v32 }
  0xbf   : > { %4704 = vmatmul.mubr.msk.bf16.gmra.mrb[28].mxu1 %vm6322_vm5, %v6311_v17 }
  0xc0   : > { %4723 = vmatprep.mubr.bf16.mxu1 %v6507_v4 }
  0xc5   : > { %4936 = vmatmul.mubr.msk.bf16.gmra.mrb[20].mxu0 %vm6322_vm5, %v6295_v10 }
  0xc6   : > { %4939 = vmatprep.mubr.msk.bf16.mxu0 %vm6322_vm5, %v6307_v14 }
  0xc7   : > { %4724 = vmatmul.mubr.bf16.vlgmr.msra.gmra.mrb[0].mxu1 %v6863_v40  ;;  %v5423_v40 = vld [vmem:[%s6758_s4 + $0x120] sm:$0xff]  }
  0xc8   : > { %4756 = vmatpush3.bf16.msra.mxu1 %v5397_v30  ;;  %4727 = vmatprep.mubr.bf16.mxu1 %v6864_v50  ;;  %v6874_v30 = vld [vmem:[#allocation11_spill] sm:$0xff] }
  0xc9   : > { %4757 = vmatprep.subr.bf16.mxu1 %v5399_v13 }
  0xcc   : > { %4758 = vmatpush3.bf16.msra.mxu1 %v5399_v13  ;;  %v5420_v13 = vld [vmem:[%s6758_s4 + $0x108] sm:$0xff]  }
  0xcd   : > { %4759 = vmatprep.subr.bf16.mxu1 %v5401_v6  ;;  %4940 = vmatmul.mubr.msk.bf16.gmra.mrb[24].mxu0 %vm6322_vm5, %v6311_v17 }
  0xce   : > { %4943 = vmatprep.mubr.msk.bf16.mxu0 %vm6322_vm5, %v6537_v53 }
  0xcf   : > { %4728 = vmatmul.mubr.bf16.gmra.mrb[4].mxu1 %v6865_v5 }
  0xd0   : > { %4731 = vmatprep.mubr.bf16.mxu1 %v6866_v61  ;;  %4760 = vmatpush3.bf16.msra.mxu1 %v5401_v6 }
  0xd1   : > { %4761 = vmatprep.subr.bf16.mxu1 %v5403_v8 }
  0xd4   : > { %4762 = vmatpush3.bf16.msra.mxu1 %v5403_v8 }
  0xd5   : > { %4944 = vmatmul.mubr.bf16.gmra.mrb[28].mxu0 %v5452_v52  ;;  %4763 = vmatprep.subr.bf16.mxu1 %v5405_v0  ;;  %v5408_v52 = vld [vmem:[%s6758_s4 + $0x208] sm:$0xff]  }
  0xd6   : > { %4963 = vmatprep.mubr.bf16.mxu0 %v6867_v47 }
  0xd7   : > { %4732 = vmatmul.mubr.bf16.gmra.mrb[8].mxu1 %v6868_v36 }
  0xd8   : > { %4735 = vmatprep.mubr.bf16.mxu1 %v6869_v37  ;;  %4764 = vmatpush3.bf16.msra.mxu1 %v5405_v0 }
  0xd9   : > { %4765 = vmatprep.subr.bf16.mxu1 %v5407_v15 }
  0xdc   : > { %4766 = vmatpush3.bf16.msra.mxu1 %v5407_v15 }
  0xdd   : > { %4964 = vmatmul.mubr.bf16.vlgmr.msra.gmra.mrb[0].mxu0 %v6870_v27  ;;  %4767 = vmatprep.subr.bf16.mxu1 %v5409_v62 }
  0xde   : > { %4996 = vmatpush3.bf16.msra.mxu0 %v5406_v19  ;;  %4967 = vmatprep.mubr.bf16.mxu0 %v6871_v20  ;;  %v6878_v19 = vld [vmem:[#allocation19_spill] sm:$0xff] }
  0xdf   : > { %4736 = vmatmul.mubr.bf16.gmra.mrb[12].mxu1 %v6154_v3  ;;  %4997 = vmatprep.subr.bf16.mxu0 %v5408_v52 }
  0xe0   : > { %4739 = vmatprep.mubr.bf16.mxu1 %v6200_v57  ;;  %4768 = vmatpush3.bf16.msra.mxu1 %v5409_v62 }
  0xe1   : > { %4769 = vmatprep.subr.bf16.mxu1 %v5411_v28 }
  0xe2   : > { %4998 = vmatpush3.bf16.msra.mxu0 %v5408_v52 }
  0xe3   : > { %4999 = vmatprep.subr.bf16.mxu0 %v5410_v21 }
  0xe4   : > { %4770 = vmatpush3.bf16.msra.mxu1 %v5411_v28 }
  0xe5   : > { %4968 = vmatmul.mubr.bf16.gmra.mrb[4].mxu0 %v6872_v45  ;;  %5043 = vmatprep.subr.bf16.mxu1 %v5419_v49 }
  0xe6   : > { %4971 = vmatprep.mubr.bf16.mxu0 %v6873_v58  ;;  %5000 = vmatpush3.bf16.msra.mxu0 %v5410_v21 }
  0xe7   : > { %4740 = vmatmul.mubr.bf16.gmra.mrb[16].mxu1 %v6214_v54  ;;  %5001 = vmatprep.subr.bf16.mxu0 %v5412_v48 }
  0xe8   : > { %4743 = vmatprep.mubr.bf16.mxu1 %v6236_v2 }
  0xea   : > { %5002 = vmatpush3.bf16.msra.mxu0 %v5412_v48 }
  0xeb   : > { %5003 = vmatprep.subr.bf16.mxu0 %v5413_v16 }
  0xed   : > { %4972 = vmatmul.mubr.bf16.gmra.mrb[8].mxu0 %v6874_v30 }
  0xee   : > { %4975 = vmatprep.mubr.bf16.mxu0 %v6875_v12  ;;  %5004 = vmatpush3.bf16.msra.mxu0 %v5413_v16 }
  0xef   : > { %4744 = vmatmul.mubr.bf16.gmra.mrb[20].mxu1 %v6239_v23  ;;  %5005 = vmatprep.subr.bf16.mxu0 %v5414_v11 }
  0xf0   : > { %4747 = vmatprep.mubr.bf16.mxu1 %v6298_v25 }
  0xf2   : > { %5006 = vmatpush3.bf16.msra.mxu0 %v5414_v11 }
  0xf3   : > { %5007 = vmatprep.subr.bf16.mxu0 %v5415_v44 }
  0xf5   : > { %4976 = vmatmul.mubr.bf16.gmra.mrb[12].mxu0 %v6876_v38 }
  0xf6   : > { %4979 = vmatprep.mubr.bf16.mxu0 %v6877_v42  ;;  %5008 = vmatpush3.bf16.msra.mxu0 %v5415_v44 }
  0xf7   : > { %4748 = vmatmul.mubr.bf16.gmra.mrb[24].mxu1 %v6314_v46  ;;  %5009 = vmatprep.subr.bf16.mxu0 %v5416_v18 }
  0xf8   : > { %4751 = vmatprep.mubr.bf16.mxu1 %v6360_v43 }
  0xfa   : > { %5010 = vmatpush3.bf16.msra.mxu0 %v5416_v18 }
  0xfd   : > { %4980 = vmatmul.mubr.bf16.gmra.mrb[16].mxu0 %v6878_v19 }
  0xfe   : > { %4983 = vmatprep.mubr.bf16.mxu0 %v6144_v26 }
  0xff   : > { %4752 = vmatmul.mubr.bf16.gmra.mrb[28].mxu1 %v6371_v39 }
 0x100   : > { %4771 = vmatprep.mubr.msk.bf16.mxu1 %vm6322_vm5, %v5612_v56  ;;  %v5421_v56 = vld [vmem:[%s6758_s4 + $0x110] sm:$0xff]  }
 0x105   : > { %4984 = vmatmul.mubr.bf16.gmra.mrb[20].mxu0 %v6174_v7 }
 0x106   : > { %4987 = vmatprep.mubr.bf16.mxu0 %v6224_v1 }
 0x107   : > { %4772 = vmatmul.mubr.msk.bf16.vlgmr.msra.gmra.mrb[0].mxu1 %vm6322_vm5, %v6330_v55  ;;  %v5422_v55 = vld [vmem:[%s6758_s4 + $0x118] sm:$0xff]  }
 0x108   : > { %5051 = vmatpush3.bf16.msra.mxu1 %v5419_v49  ;;  %4775 = vmatprep.mubr.msk.bf16.mxu1 %vm6322_vm5, %v6368_v59  ;;  %v6879_v59 = vld [vmem:[#allocation2_spill] sm:$0xff] }
 0x109   : > { %5044 = vmatprep.subr.bf16.mxu1 %v5420_v13 }
 0x10c   : > { %5052 = vmatpush3.bf16.msra.mxu1 %v5420_v13 }
 0x10d   : > { %5045 = vmatprep.subr.bf16.mxu1 %v5421_v56  ;;  %4988 = vmatmul.mubr.bf16.gmra.mrb[24].mxu0 %v6245_v29 }
 0x10e   : > { %4991 = vmatprep.mubr.bf16.mxu0 %v6434_v60 }
 0x10f   : > { %4776 = vmatmul.mubr.msk.bf16.gmra.mrb[4].mxu1 %vm6322_vm5, %v6377_v9  ;;  %v5424_v9 = vld [vmem:[%s6758_s4 + $0x128] sm:$0xff]  }
 0x110   : > { %4779 = vmatprep.mubr.msk.bf16.mxu1 %vm6322_vm5, %v6400_v35  ;;  %5053 = vmatpush3.bf16.msra.mxu1 %v5421_v56  ;;  %v5425_v35 = vld [vmem:[%s6758_s4 + $0x130] sm:$0xff]  }
 0x111   : > { %5046 = vmatprep.subr.bf16.mxu1 %v5422_v55 }
 0x114   : > { %5054 = vmatpush3.bf16.msra.mxu1 %v5422_v55 }
 0x115   : > { %4992 = vmatmul.mubr.bf16.gmra.mrb[28].mxu0 %v6879_v59  ;;  %5047 = vmatprep.subr.bf16.mxu1 %v5423_v40 }
 0x116   : > { %5011 = vmatprep.mubr.bf16.mxu0 %v6864_v50 }
 0x117   : > { %4780 = vmatmul.mubr.msk.bf16.gmra.mrb[8].mxu1 %vm6322_vm5, %v6406_v34 }
 0x118   : > { %4783 = vmatprep.mubr.msk.bf16.mxu1 %vm6322_vm5, %v6253_v41  ;;  %5055 = vmatpush3.bf16.msra.mxu1 %v5423_v40  ;;  %v5426_v41 = vld [vmem:[%s6758_s4 + $0x138] sm:$0xff]  }
 0x119   : > { %5048 = vmatprep.subr.bf16.mxu1 %v5424_v9 }
 0x11c   : > { %5056 = vmatpush3.bf16.msra.mxu1 %v5424_v9 }
 0x11d   : > { %5012 = vmatmul.mubr.bf16.vlgmr.msra.gmra.mrb[0].mxu0 %v6865_v5  ;;  %5049 = vmatprep.subr.bf16.mxu1 %v5425_v35 }
 0x11e   : > { %5015 = vmatprep.mubr.bf16.mxu0 %v6866_v61 }
 0x11f   : > { %4784 = vmatmul.mubr.msk.bf16.gmra.mrb[12].mxu1 %vm6322_vm5, %v6261_v33 }
 0x120   : > { %4787 = vmatprep.mubr.msk.bf16.mxu1 %vm6322_vm5, %v6269_v63  ;;  %5057 = vmatpush3.bf16.msra.mxu1 %v5425_v35 }
 0x121   : > { %5050 = vmatprep.subr.bf16.mxu1 %v5426_v41 }
 0x124   : > { %5058 = vmatpush3.bf16.msra.mxu1 %v5426_v41 }
 0x125   : > { %5016 = vmatmul.mubr.bf16.gmra.mrb[4].mxu0 %v6868_v36 }
 0x126   : > { %5019 = vmatprep.mubr.bf16.mxu0 %v6869_v37 }
 0x127   : > { %4788 = vmatmul.mubr.msk.bf16.gmra.mrb[16].mxu1 %vm6322_vm5, %v6275_v31 }
 0x128   : > { %4791 = vmatprep.mubr.msk.bf16.mxu1 %vm6322_vm5, %v6281_v22 }
 0x12d   : > { %5020 = vmatmul.mubr.bf16.gmra.mrb[8].mxu0 %v6154_v3 }
 0x12e   : > { %5023 = vmatprep.mubr.bf16.mxu0 %v6200_v57 }
 0x12f   : > { %4792 = vmatmul.mubr.msk.bf16.gmra.mrb[20].mxu1 %vm6322_vm5, %v6289_v32 }
 0x130   : > { %4795 = vmatprep.mubr.msk.bf16.mxu1 %vm6322_vm5, %v6295_v10 }
 0x135   : > { %5024 = vmatmul.mubr.bf16.gmra.mrb[12].mxu0 %v6214_v54 }
 0x136   : > { %5027 = vmatprep.mubr.bf16.mxu0 %v6236_v2 }
 0x137   : > { %4796 = vmatmul.mubr.msk.bf16.gmra.mrb[24].mxu1 %vm6322_vm5, %v6307_v14 }
 0x138   : > { %4799 = vmatprep.mubr.msk.bf16.mxu1 %vm6322_vm5, %v6311_v17 }
 0x13d   : > { %5028 = vmatmul.mubr.bf16.gmra.mrb[16].mxu0 %v6239_v23 }
 0x13e   : > { %5031 = vmatprep.mubr.bf16.mxu0 %v6298_v25 }
 0x13f   : > { %4800 = vmatmul.mubr.msk.bf16.gmra.mrb[28].mxu1 %vm6322_vm5, %v6537_v53 }
 0x140   : > { %4835 = vmatprep.mubr.bf16.mxu1 %v6876_v38 }
 0x145   : > { %5032 = vmatmul.mubr.bf16.gmra.mrb[20].mxu0 %v6314_v46 }
 0x146   : > { %5035 = vmatprep.mubr.bf16.mxu0 %v6360_v43 }
 0x147   : > { %4836 = vmatmul.mubr.bf16.vlgmr.msra.gmra.mrb[16].mxu1 %v6877_v42 }
 0x148   : > { %4839 = vmatprep.mubr.bf16.mxu1 %v6878_v19 }
 0x14d   : > { %5036 = vmatmul.mubr.bf16.gmra.mrb[24].mxu0 %v6371_v39 }
 0x14e   : > { %5039 = vmatprep.mubr.bf16.mxu0 %v6394_v51 }
 0x14f   : > { %4840 = vmatmul.mubr.bf16.gmra.mrb[20].mxu1 %v6144_v26 }
 0x150   : > { %4843 = vmatprep.mubr.bf16.mxu1 %v6174_v7 }
 0x155   : > { %5040 = vmatmul.mubr.bf16.gmra.mrb[28].mxu0 %v6507_v4 }
 0x157   : > { %4844 = vmatmul.mubr.bf16.gmra.mrb[24].mxu1 %v6224_v1 }
 0x158   : > { %4847 = vmatprep.mubr.bf16.mxu1 %v6245_v29 }
 0x15f   : > { %4848 = vmatmul.mubr.bf16.gmra.mrb[28].mxu1 %v6434_v60 }
 0x1da   : > { %v4773_v3 = vpop.f32.mrb[0].mxu1 }
 0x1db   : > { %v1929_v57 = vpop.f32.mrb[1].mxu1 }
 0x1dc   : > { %v4774_v54 = vpop.f32.mrb[2].mxu1 }
 0x1dd   : > { %v1932_v2 = vpop.f32.mrb[3].mxu1 }
 0x1e2   : > { %v4777_v23 = vpop.f32.mrb[4].mxu1 }
 0x1e3   : > { %v1945_v33 = vpop.f32.mrb[5].mxu1 }
 0x1e4   : > { %v4778_v63 = vpop.f32.mrb[6].mxu1 }
 0x1e5   : > { %v1948_v31 = vpop.f32.mrb[7].mxu1 }
 0x1ea   : > { %v4781_v26 = vpop.f32.mrb[8].mxu1 }
 0x1eb   : > { %v1961_v22 = vpop.f32.mrb[9].mxu1 }
 0x1ec   : > { %v4782_v7 = vpop.f32.mrb[10].mxu1 }
 0x1ed   : > { %v1964_v32 = vpop.f32.mrb[11].mxu1 }
 0x1f0   : > { %v5013_v10 = vpop.f32.mrb[0].mxu0 }
 0x1f1   : > { %v5059_v25 = vadd.f32 %v5013_v10, %v4773_v3  ;;  %v3257_v1 = vpop.f32.mrb[1].mxu0 }
 0x1f2   : > { %v6708_v29 = vpop.f32.mrb[12].mxu1  ;;  %v5060_v14 = vadd.f32 %v3257_v1, %v1929_v57  ;;  %v5014_v17 = vpop.f32.mrb[2].mxu0 }
 0x1f3   : > { %v6710_v46 = vpop.f32.mrb[13].mxu1  ;;  %v5061_v24 = vadd.f32 %v5014_v17, %v4774_v54  ;;  %v3260_v43 = vpop.f32.mrb[3].mxu0  ;;  %v3616_v8 = vmul.f32 %v5059_v25, %v5059_v25 }
 0x1f4   : > { %v6712_v39 = vpop.f32.mrb[14].mxu1  ;;  %v5062_v51 = vadd.f32 %v3260_v43, %v1932_v2  ;;  %v3614_v4 = vmul.f32 %v5060_v14, %v5060_v14 }
 0x1f5   : > { %v6719_v34 = vpop.f32.mrb[15].mxu1  ;;  %v4301_v60 = vpack.c.bf16 %v5061_v24, %v5059_v25  ;;  %v3617_v36 = vmul.f32 %v5061_v24, %v5061_v24 }
 0x1f6   : > { %v4296_v50 = vpack.c.bf16 %v5062_v51, %v5060_v14  ;;  %v3576_v6 = vadd.f32 %v5062_v51, %v5060_v14  ;;  %v3615_v53 = vmul.f32 %v5062_v51, %v5062_v51 }
 0x1f7   : > { %4380 = vst [vmem:[%s6717_s30 + $0x8] sm:$0xff] %v4301_v60  }
 0x1f8   : > { %4297 = vst [vmem:[%s6717_s30] sm:$0xff] %v4296_v50   ;;  %v3577_v5 = vadd.f32 %v5059_v25, %v3576_v6  ;;  %v3646_v61 = vadd.f32 %v3615_v53, %v3614_v4  ;;  %v5017_v0 = vpop.f32.mrb[4].mxu0 }
 0x1f9   : > { %v5063_v15 = vadd.f32 %v5017_v0, %v4777_v23  ;;  %v3273_v47 = vpop.f32.mrb[5].mxu0 }
 0x1fa   : > { %v3647_v37 = vadd.f32 %v3646_v61, %v3616_v8  ;;  %v5064_v62 = vadd.f32 %v3273_v47, %v1945_v33  ;;  %v3578_v52 = vadd.f32 %v5061_v24, %v3577_v5  ;;  %v5018_v27 = vpop.f32.mrb[6].mxu0 }
 0x1fb   : > { %v5065_v28 = vadd.f32 %v5018_v27, %v4778_v63  ;;  %v3276_v20 = vpop.f32.mrb[7].mxu0  ;;  %v3620_v44 = vmul.f32 %v5063_v15, %v5063_v15 }
 0x1fc   : > { %v3579_v21 = vadd.f32 %v5064_v62, %v3578_v52  ;;  %v3618_v48 = vmul.f32 %v5064_v62, %v5064_v62  ;;  %v3648_v45 = vadd.f32 %v3647_v37, %v3617_v36  ;;  %v5066_v49 = vadd.f32 %v3276_v20, %v1948_v31 }
 0x1fd   : > { %v4311_v58 = vpack.c.bf16 %v5065_v28, %v5063_v15  ;;  %v3621_v56 = vmul.f32 %v5065_v28, %v5065_v28 }
 0x1fe   : > { %v3649_v16 = vadd.f32 %v3648_v45, %v3618_v48  ;;  %v4306_v11 = vpack.c.bf16 %v5066_v49, %v5064_v62  ;;  %v3580_v30 = vadd.f32 %v5066_v49, %v3579_v21  ;;  %v3619_v12 = vmul.f32 %v5066_v49, %v5066_v49 }
 0x1ff   : > { %4382 = vst [vmem:[%s6717_s30 + $0x18] sm:$0xff] %v4311_v58  }
 0x200   : > { %4381 = vst [vmem:[%s6717_s30 + $0x10] sm:$0xff] %v4306_v11   ;;  %v3581_v18 = vadd.f32 %v5063_v15, %v3580_v30  ;;  %v3650_v38 = vadd.f32 %v3649_v16, %v3619_v12  ;;  %v5021_v42 = vpop.f32.mrb[8].mxu0 }
 0x201   : > { %v5067_v19 = vadd.f32 %v5021_v42, %v4781_v26  ;;  %v3289_v13 = vpop.f32.mrb[9].mxu0 }
 0x202   : > { %v3651_v55 = vadd.f32 %v3650_v38, %v3620_v44  ;;  %v5068_v59 = vadd.f32 %v3289_v13, %v1961_v22  ;;  %v3582_v40 = vadd.f32 %v5065_v28, %v3581_v18  ;;  %v5022_v9 = vpop.f32.mrb[10].mxu0 }
 0x203   : > { %v5069_v35 = vadd.f32 %v5022_v9, %v4782_v7  ;;  %v3292_v41 = vpop.f32.mrb[11].mxu0  ;;  %v3624_v26 = vmul.f32 %v5067_v19, %v5067_v19 }
 0x204   : > { %v3583_v3 = vadd.f32 %v5068_v59, %v3582_v40  ;;  %v3622_v57 = vmul.f32 %v5068_v59, %v5068_v59  ;;  %v3652_v54 = vadd.f32 %v3651_v55, %v3621_v56  ;;  %v5070_v2 = vadd.f32 %v3292_v41, %v1964_v32 }
 0x205   : > { %v4321_v23 = vpack.c.bf16 %v5069_v35, %v5067_v19  ;;  %v3625_v7 = vmul.f32 %v5069_v35, %v5069_v35 }
 0x206   : > { %v3653_v33 = vadd.f32 %v3652_v54, %v3622_v57  ;;  %v4316_v63 = vpack.c.bf16 %v5070_v2, %v5068_v59  ;;  %v3584_v31 = vadd.f32 %v5070_v2, %v3583_v3  ;;  %v3623_v10 = vmul.f32 %v5070_v2, %v5070_v2 }
 0x207   : > { %4384 = vst [vmem:[%s6717_s30 + $0x28] sm:$0xff] %v4321_v23  }
 0x208   : > { %4383 = vst [vmem:[%s6717_s30 + $0x20] sm:$0xff] %v4316_v63   ;;  %v3585_v25 = vadd.f32 %v5067_v19, %v3584_v31  ;;  %v3654_v1 = vadd.f32 %v3653_v33, %v3623_v10  ;;  %v5025_v22 = vpop.f32.mrb[12].mxu0 }
 0x209   : > { %v5071_v14 = vadd.f32 %v5025_v22, %v6708_v29  ;;  %v3305_v17 = vpop.f32.mrb[13].mxu0 }
 0x20a   : > { %v3655_v24 = vadd.f32 %v3654_v1, %v3624_v26  ;;  %v5072_v43 = vadd.f32 %v3305_v17, %v6710_v46  ;;  %v3586_v32 = vadd.f32 %v5069_v35, %v3585_v25  ;;  %v5026_v51 = vpop.f32.mrb[14].mxu0 }
 0x20b   : > { %v5073_v60 = vadd.f32 %v5026_v51, %v6712_v39  ;;  %v3308_v4 = vpop.f32.mrb[15].mxu0  ;;  %v3628_v47 = vmul.f32 %v5071_v14, %v5071_v14 }
 0x20c   : > { %v3587_v50 = vadd.f32 %v5072_v43, %v3586_v32  ;;  %v3626_v6 = vmul.f32 %v5072_v43, %v5072_v43  ;;  %v3656_v53 = vadd.f32 %v3655_v24, %v3625_v7  ;;  %v5074_v8 = vadd.f32 %v3308_v4, %v6719_v34 }
 0x20d   : > { %v4331_v5 = vpack.c.bf16 %v5073_v60, %v5071_v14  ;;  %v3629_v52 = vmul.f32 %v5073_v60, %v5073_v60 }
 0x20e   : > { %v3657_v61 = vadd.f32 %v3656_v53, %v3626_v6  ;;  %v4326_v29 = vpack.c.bf16 %v5074_v8, %v5072_v43  ;;  %v3588_v0 = vadd.f32 %v5074_v8, %v3587_v50  ;;  %v3627_v15 = vmul.f32 %v5074_v8, %v5074_v8 }
 0x20f   : > { %4386 = vst [vmem:[%s6717_s30 + $0x38] sm:$0xff] %v4331_v5  }
 0x210   : > { %4385 = vst [vmem:[%s6717_s30 + $0x30] sm:$0xff] %v4326_v29   ;;  %v3589_v46 = vadd.f32 %v5071_v14, %v3588_v0  ;;  %v3658_v36 = vadd.f32 %v3657_v61, %v3627_v15  ;;  %v5029_v37 = vpop.f32.mrb[16].mxu0 }
 0x211   : > { %v3321_v62 = vpop.f32.mrb[17].mxu0 }
 0x212   : > { %v3659_v39 = vadd.f32 %v3658_v36, %v3628_v47  ;;  %v3590_v27 = vadd.f32 %v5073_v60, %v3589_v46  ;;  %v5030_v28 = vpop.f32.mrb[18].mxu0 }
 0x213   : > { %v3324_v20 = vpop.f32.mrb[19].mxu0 }
 0x214   : > { %v3660_v21 = vadd.f32 %v3659_v39, %v3629_v52 }
 0x218   : > { %v5033_v48 = vpop.f32.mrb[20].mxu0 }
 0x219   : > { %v3337_v34 = vpop.f32.mrb[21].mxu0 }
 0x21a   : > { %v4837_v45 = vpop.f32.mrb[16].mxu1  ;;  %v5034_v49 = vpop.f32.mrb[22].mxu0 }
 0x21b   : > { %v5075_v58 = vadd.f32 %v5029_v37, %v4837_v45  ;;  %v2264_v16 = vpop.f32.mrb[17].mxu1  ;;  %v3340_v11 = vpop.f32.mrb[23].mxu0 }
 0x21c   : > { %v5076_v30 = vadd.f32 %v3321_v62, %v2264_v16  ;;  %v4838_v12 = vpop.f32.mrb[18].mxu1 }
 0x21d   : > { %v5077_v44 = vadd.f32 %v5030_v28, %v4838_v12  ;;  %v2267_v18 = vpop.f32.mrb[19].mxu1  ;;  %v3632_v41 = vmul.f32 %v5075_v58, %v5075_v58 }
 0x21e   : > { %v3591_v38 = vadd.f32 %v5076_v30, %v3590_v27  ;;  %v3630_v42 = vmul.f32 %v5076_v30, %v5076_v30  ;;  %v5078_v19 = vadd.f32 %v3324_v20, %v2267_v18 }
 0x21f   : > { %v4341_v13 = vpack.c.bf16 %v5077_v44, %v5075_v58  ;;  %v3633_v31 = vmul.f32 %v5077_v44, %v5077_v44 }
 0x220   : > { %v3661_v56 = vadd.f32 %v3660_v21, %v3630_v42  ;;  %v4336_v55 = vpack.c.bf16 %v5078_v19, %v5076_v30  ;;  %v3592_v59 = vadd.f32 %v5078_v19, %v3591_v38  ;;  %v3631_v40 = vmul.f32 %v5078_v19, %v5078_v19  ;;  %v5037_v9 = vpop.f32.mrb[24].mxu0 }
 0x221   : > { %4388 = vst [vmem:[%s6717_s30 + $0x48] sm:$0xff] %v4341_v13   ;;  %v3353_v35 = vpop.f32.mrb[25].mxu0 }
 0x222   : > { %4387 = vst [vmem:[%s6717_s30 + $0x40] sm:$0xff] %v4336_v55   ;;  %v3593_v3 = vadd.f32 %v5075_v58, %v3592_v59  ;;  %v3662_v57 = vadd.f32 %v3661_v56, %v3631_v40  ;;  %v4841_v54 = vpop.f32.mrb[20].mxu1  ;;  %v5038_v2 = vpop.f32.mrb[26].mxu0 }
 0x223   : > { %v5079_v23 = vadd.f32 %v5033_v48, %v4841_v54  ;;  %v2280_v33 = vpop.f32.mrb[21].mxu1  ;;  %v3356_v63 = vpop.f32.mrb[27].mxu0 }
 0x224   : > { %v3663_v10 = vadd.f32 %v3662_v57, %v3632_v41  ;;  %v5080_v26 = vadd.f32 %v3337_v34, %v2280_v33  ;;  %v3594_v25 = vadd.f32 %v5077_v44, %v3593_v3  ;;  %v4842_v1 = vpop.f32.mrb[22].mxu1 }
 0x225   : > { %v5081_v22 = vadd.f32 %v5034_v49, %v4842_v1  ;;  %v2283_v14 = vpop.f32.mrb[23].mxu1  ;;  %v3636_v8 = vmul.f32 %v5079_v23, %v5079_v23 }
 0x226   : > { %v3595_v17 = vadd.f32 %v5080_v26, %v3594_v25  ;;  %v3634_v7 = vmul.f32 %v5080_v26, %v5080_v26  ;;  %v3664_v24 = vadd.f32 %v3663_v10, %v3633_v31  ;;  %v5082_v43 = vadd.f32 %v3340_v11, %v2283_v14 }
 0x227   : > { %v4351_v32 = vpack.c.bf16 %v5081_v22, %v5079_v23  ;;  %v3637_v36 = vmul.f32 %v5081_v22, %v5081_v22 }
 0x228   : > { %v3665_v51 = vadd.f32 %v3664_v24, %v3634_v7  ;;  %v4346_v60 = vpack.c.bf16 %v5082_v43, %v5080_v26  ;;  %v3596_v4 = vadd.f32 %v5082_v43, %v3595_v17  ;;  %v3635_v50 = vmul.f32 %v5082_v43, %v5082_v43  ;;  %v5041_v6 = vpop.f32.mrb[28].mxu0 }
 0x229   : > { %4390 = vst [vmem:[%s6717_s30 + $0x58] sm:$0xff] %v4351_v32   ;;  %v3369_v53 = vpop.f32.mrb[29].mxu0 }
 0x22a   : > { %4389 = vst [vmem:[%s6717_s30 + $0x50] sm:$0xff] %v4346_v60   ;;  %v3597_v5 = vadd.f32 %v5079_v23, %v3596_v4  ;;  %v3666_v61 = vadd.f32 %v3665_v51, %v3635_v50  ;;  %v4845_v29 = vpop.f32.mrb[24].mxu1  ;;  %v5042_v0 = vpop.f32.mrb[30].mxu0 }
 0x22b   : > { %v5083_v15 = vadd.f32 %v5037_v9, %v4845_v29  ;;  %v2296_v47 = vpop.f32.mrb[25].mxu1  ;;  %v3372_v46 = vpop.f32.mrb[31].mxu0 }
 0x22c   : > { %v3667_v37 = vadd.f32 %v3666_v61, %v3636_v8  ;;  %v5084_v62 = vadd.f32 %v3353_v35, %v2296_v47  ;;  %v3598_v52 = vadd.f32 %v5081_v22, %v3597_v5  ;;  %v4846_v39 = vpop.f32.mrb[26].mxu1 }
 0x22d   : > { %v5085_v27 = vadd.f32 %v5038_v2, %v4846_v39  ;;  %v2299_v28 = vpop.f32.mrb[27].mxu1  ;;  %v3640_v30 = vmul.f32 %v5083_v15, %v5083_v15 }
 0x22e   : > { %v3599_v20 = vadd.f32 %v5084_v62, %v3598_v52  ;;  %v3638_v21 = vmul.f32 %v5084_v62, %v5084_v62  ;;  %v3668_v48 = vadd.f32 %v3667_v37, %v3637_v36  ;;  %v5086_v34 = vadd.f32 %v3356_v63, %v2299_v28 }
 0x22f   : > { %v4361_v45 = vpack.c.bf16 %v5085_v27, %v5083_v15  ;;  %v3641_v19 = vmul.f32 %v5085_v27, %v5085_v27 }
 0x230   : > { %v3669_v49 = vadd.f32 %v3668_v48, %v3638_v21  ;;  %v4356_v58 = vpack.c.bf16 %v5086_v34, %v5084_v62  ;;  %v3600_v16 = vadd.f32 %v5086_v34, %v3599_v20  ;;  %v3639_v11 = vmul.f32 %v5086_v34, %v5086_v34 }
 0x231   : > { %4392 = vst [vmem:[%s6717_s30 + $0x68] sm:$0xff] %v4361_v45  }
 0x232   : > { %4391 = vst [vmem:[%s6717_s30 + $0x60] sm:$0xff] %v4356_v58   ;;  %v3601_v12 = vadd.f32 %v5083_v15, %v3600_v16  ;;  %v3670_v44 = vadd.f32 %v3669_v49, %v3639_v11  ;;  %v4849_v18 = vpop.f32.mrb[28].mxu1 }
 0x233   : > { %v5087_v38 = vadd.f32 %v5041_v6, %v4849_v18  ;;  %v2312_v42 = vpop.f32.mrb[29].mxu1 }
 0x234   : > { %v3671_v13 = vadd.f32 %v3670_v44, %v3640_v30  ;;  %v5088_v56 = vadd.f32 %v3369_v53, %v2312_v42  ;;  %v3602_v55 = vadd.f32 %v5085_v27, %v3601_v12  ;;  %v4850_v59 = vpop.f32.mrb[30].mxu1 }
 0x235   : > { %v5089_v40 = vadd.f32 %v5042_v0, %v4850_v59  ;;  %v2315_v9 = vpop.f32.mrb[31].mxu1  ;;  %v3644_v31 = vmul.f32 %v5087_v38, %v5087_v38 }
 0x236   : > { %v3603_v35 = vadd.f32 %v5088_v56, %v3602_v55  ;;  %v3642_v41 = vmul.f32 %v5088_v56, %v5088_v56  ;;  %v3672_v3 = vadd.f32 %v3671_v13, %v3641_v19  ;;  %v5090_v57 = vadd.f32 %v3372_v46, %v2315_v9 }
 0x237   : > { %v4371_v54 = vpack.c.bf16 %v5089_v40, %v5087_v38  ;;  %v3645_v25 = vmul.f32 %v5089_v40, %v5089_v40 }
 0x238   : > { %v3673_v2 = vadd.f32 %v3672_v3, %v3642_v41  ;;  %v4366_v23 = vpack.c.bf16 %v5090_v57, %v5088_v56  ;;  %v3604_v33 = vadd.f32 %v5090_v57, %v3603_v35  ;;  %v3643_v63 = vmul.f32 %v5090_v57, %v5090_v57 }
 0x239   : > { %4394 = vst [vmem:[%s6717_s30 + $0x78] sm:$0xff] %v4371_v54  }
 0x23a   : > { %4393 = vst [vmem:[%s6717_s30 + $0x70] sm:$0xff] %v4366_v23   ;;  %v3605_v10 = vadd.f32 %v5087_v38, %v3604_v33  ;;  %v3674_v26 = vadd.f32 %v3673_v2, %v3643_v63 }
 0x23c   : > { %v3606_v1 = vadd.f32 %v5089_v40, %v3605_v10  ;;  %v3675_v22 = vadd.f32 %v3674_v26, %v3644_v31 }
 0x23e   : > { %v3607_v14 = vrot.slane %v3606_v1, 4  ;;  %v3676_v17 = vadd.f32 %v3675_v22, %v3645_v25 }
 0x240   : > { %v3608_v7 = vadd.f32 %v3607_v14, %v3606_v1  ;;  %v3677_v24 = vrot.slane %v3676_v17, 4 }
 0x242   : > { %v3609_v43 = vrot.slane %v3608_v7, 2  ;;  %v3678_v32 = vadd.f32 %v3677_v24, %v3676_v17 }
 0x244   : > { %v3610_v51 = vadd.f32 %v3609_v43, %v3608_v7  ;;  %v3679_v60 = vrot.slane %v3678_v32, 2 }
 0x246   : > { %v3611_v4 = vrot.slane %v3610_v51, 1  ;;  %v3680_v50 = vadd.f32 %v3679_v60, %v3678_v32 }
 0x248   : > { %v3612_v6 = vadd.f32 %v3611_v4, %v3610_v51  ;;  %v3681_v53 = vrot.slane %v3680_v50, 1 }
 0x24a   : > { %3613 = vst [vmem:[%s392_s10] sm:$0x1] %v3612_v6  ;;  %v3682_v8 = vadd.f32 %v3681_v53, %v3680_v50 }
 0x24c   : > { %3683 = vst [vmem:[%s392_s10 + $0x1] sm:$0x1] %v3682_v8 }
 0x24d PF: > { %s17_s23 = sadd.s32 1, %s5449_s23   ;;  %s6880_s21 = smov %s5445_s22 }
 0x24e   : > { %p14_p5 = scmp.ge.s32.totalorder %s17_s23, 4   ;;  %s6881_s22 = smov %s6883_s24 }
 0x250   :  { %16 = sbr.rel (!%p14_p5) target bundleno = 2 (0x2), region = 93 }

// kernel: up_forward.5
= control target key start
LH: loop header
LB: loop body
LE: loop exit
PB: predicated region body
PF: predicated region fallthrough
CT: control target
= control target key end

     0   :  { %s10263_s24 = smov 0   ;;  %s10265_s25 = smov 0   ;;  %s12321_s0 = inlined_call_operand.vmem [shape: bf16[2,18,18,128], index: 0, kind: input, shape index: {}, may-alias: {0,1}]   ;;  %s12322_s1 = inlined_call_operand.vmem [shape: bf16[2,18,18,128], index: 1, kind: input, shape index: {}, may-alias: {0,1}]   ;;  %s12323_s2 = inlined_call_operand.vmem [shape: bf16[2,18,18,128], index: 2, kind: input, shape index: {}, may-alias: {2,3}]   ;;  %s12324_s3 = inlined_call_operand.vmem [shape: bf16[2,18,18,128], index: 3, kind: input, shape index: {}, may-alias: {2,3}]   ;;  %s12325_s4 = inlined_call_operand.vmem [shape: bf16[3,3,128,128], index: 4, kind: input, shape index: {}]   ;;  %s12326_s5 = inlined_call_operand.vmem [shape: bf16[3,3,128,128], index: 5, kind: input, shape index: {}]   ;;  %s12327_s6 = inlined_call_operand.vmem [shape: bf16[2,16,16,128], index: 6, kind: output, shape index: {0}]   ;;  %s12328_s7 = inlined_call_operand.vmem [shape: f32[2,1,2,128], index: 7, kind: output, shape index: {1}]  }
   0x1   :  { %s10267_s26 = smov 0  }
   0x2 LB: > { %s30_s27 = sadd.s32 1, %s10217_s25  ;;  %p7358_p0 = scmp.ge.s32.totalorder %s10221_s26, 1  ;;  %s10221_s26 = sphi %s10267_s26, %s18_s26   ;;  %s10217_s25 = sphi %s10265_s25, %s12749_s25   ;;  %s10213_s24 = sphi %s10263_s24, %s12748_s24  }
   0x3   : > { %p32_p1 = scmp.ge.s32.totalorder %s30_s27, 2  ;;  %p354_p2 = scmp.lt.s32.totalorder %s10221_s26, 3 }
   0x5   : > { %s12751_s27 = smov (%p32_p1, %s30_s27), 0  ;;  %p355_p3 = pnand %p7358_p0, %p354_p2 }
   0x7   : > { %358 = sbr.rel (%p355_p3) target bundleno = 875 (0x36b), region = 44 }
   0xe   : > { %v9943_v0 = vld [vmem:[%s12325_s4 + $0x40] sm:$0xff]   ;;  %p453_p4 = scmp.lt.s32.totalorder %s10213_s24, 1  ;;  %v9945_v2 = vld [vmem:[%s12325_s4 + $0x48] sm:$0xff]   ;;  %v9947_v4 = vld [vmem:[%s12325_s4 + $0x50] sm:$0xff]   ;;  %vm608_vm0 = vsmask.f32 3328 }
   0xf   : > { %v9944_v1 = vld [vmem:[%s12326_s5] sm:$0xff]   ;;  %8508 = vmatprep.subr.bf16.mxu1 %v9943_v0  ;;  %v9946_v3 = vld [vmem:[%s12326_s5 + $0x8] sm:$0xff]   ;;  %v9948_v5 = vld [vmem:[%s12326_s5 + $0x10] sm:$0xff]   ;;  %vm609_vm1 = vsmask.f32 7440  ;;  %v12482_v38 = vmov 0 }
  0x10   : > { %8940 = vmatprep.subr.bf16.mxu0 %v9944_v1  ;;  %8509 = vmatpush3.bf16.msra.mxu1 %v9943_v0  ;;  %s12753_s24 = smov (!%p453_p4, %s10213_s24), 1  ;;  %v9949_v6 = vld [vmem:[%s12325_s4 + $0x58] sm:$0xff]   ;;  %v9951_v8 = vld [vmem:[%s12325_s4 + $0x60] sm:$0xff]   ;;  %v9953_v10 = vld [vmem:[%s12325_s4 + $0x68] sm:$0xff]   ;;  %vm1606_vm3 = vcmask 1042432   ;;  %vm1607_vm4 = vcmask 1046532  }
  0x11   : > { %8941 = vmatpush3.bf16.msra.mxu0 %v9944_v1  ;;  %8510 = vmatprep.subr.bf16.mxu1 %v9945_v2  ;;  %v9950_v7 = vld [vmem:[%s12326_s5 + $0x18] sm:$0xff]   ;;  %s10308_s21 = smul.u32 216, %s12753_s24  ;;  %v9952_v9 = vld [vmem:[%s12326_s5 + $0x20] sm:$0xff]   ;;  %v9954_v11 = vld [vmem:[%s12326_s5 + $0x28] sm:$0xff]   ;;  %s7365_s20 = sshll.u32 %s12753_s24, 1 }
  0x12   : > { %8942 = vmatprep.subr.bf16.mxu0 %v9946_v3  ;;  %v9955_v26 = vld [vmem:[%s12325_s4 + $0x70] sm:$0xff]   ;;  %v9957_v37 = vld [vmem:[%s12325_s4 + $0x78] sm:$0xff]   ;;  %vm10366_vm2 = vmor %vm608_vm0, %vm609_vm1  ;;  %s536_s28 = scalar_lea.vmem %s12328_s7, %s7365_s20 }
  0x13   : > { %s10320_s9 = scalar_lea.vmem %s12321_s0, %s10308_s21  ;;  %s10332_s16 = scalar_lea.vmem %s12323_s2, %s10308_s21  ;;  %v9956_v31 = vld [vmem:[%s12326_s5 + $0x30] sm:$0xff]   ;;  %v12483_v38 = vsel %vm10366_vm2, 4294967295, %v12482_v38  ;;  %v9958_v52 = vld [vmem:[%s12326_s5 + $0x38] sm:$0xff]   ;;  %v9960_v60 = vld [vmem:[%s12325_s4] sm:$0xff]  }
  0x14   : > { %8511 = vmatpush3.bf16.msra.mxu1 %v9945_v2  ;;  %v538_v12 = vld [vmem:[%s10320_s9] sm:$0xf]  ;;  %v539_v13 = vld [vmem:[%s10320_s9 + $0x4] sm:$0xf]  ;;  %v10337_v14 = vld [vmem:[%s10320_s9 + $0x8] sm:$0x1] }
  0x15   : > { %8943 = vmatpush3.bf16.msra.mxu0 %v9946_v3  ;;  %8512 = vmatprep.subr.bf16.mxu1 %v9947_v4  ;;  %12479 = vst [vmem:[#allocation2_spill] sm:$0xff] %v10337_v14  ;;  %v612_v15 = vshrl.u32 %v538_v12, 16  ;;  %v615_v16 = vshll.u32 %v538_v12, 16  ;;  %v621_v17 = vshll.u32 %v539_v13, 16  ;;  %v625_v18 = vshrl.u32 %v539_v13, 16  ;;  %12484 = vst [vmem:[#allocation5_spill] sm:$0xff] %v12483_v38 }
  0x16   : > { %8944 = vmatprep.subr.bf16.mxu0 %v9948_v5  ;;  %v631_v19 = vshll.u32 %v10337_v14, 16  ;;  %v10341_v20 = vld [vmem:[%s10332_s16] sm:$0xf]  ;;  %v10344_v23 = vld [vmem:[%s10332_s16 + $0x4] sm:$0xf]  ;;  %vm11311_vm5 = vmor %vm1606_vm3, %vm1607_vm4  ;;  %s7945_s30 = sadd.s32 192, %s10308_s21 }
  0x17   : > { %12480 = vst [vmem:[#allocation3_spill] sm:$0xff] %v10341_v20  ;;  %v614_v21 = vrot.slane %v612_v15, 4  ;;  %v617_v22 = vrot.slane %v615_v16, 5  ;;  %12481 = vst [vmem:[#allocation4_spill] sm:$0xff] %v10344_v23  ;;  %v4091_v24 = vshrl.u32 %v10341_v20, 16  ;;  %v4094_v25 = vshll.u32 %v10341_v20, 16  ;;  %s11805_s11 = scalar_lea.vmem %s12324_s3, %s7945_s30 }
  0x18   : > { %8513 = vmatpush3.bf16.msra.mxu1 %v9947_v4  ;;  %v623_v27 = vrot.slane %v621_v17, 5  ;;  %v627_v28 = vrot.slane %v625_v18, 4  ;;  %v7638_v29 = vcombine.low %v10341_v20, %v10344_v23  ;;  %v541_v30 = vld [vmem:[%s10320_s9 + $0xc] sm:$0xf]  ;;  %v633_v33 = vrot.slane %v631_v19, 5 }
  0x19   : > { %8945 = vmatpush3.bf16.msra.mxu0 %v9948_v5  ;;  %8514 = vmatprep.subr.bf16.mxu1 %v9949_v6  ;;  %v618_v32 = vor.u32 %v617_v22, %v614_v21  ;;  %v10358_v35 = vrot.slane %v4091_v24, 4  ;;  %v542_v36 = vld [vmem:[%s10320_s9 + $0x10] sm:$0xf]  ;;  %v10370_v40 = vrot.slane %v4094_v25, 5  ;;  %v4100_v41 = vshll.u32 %v10344_v23, 16 }
  0x1a   : > { %8946 = vmatprep.subr.bf16.mxu0 %v9950_v7  ;;  %v628_v39 = vor.u32 %v627_v28, %v623_v27  ;;  %8956 = vmatprep.mubr.bf16.mxu0 %v7638_v29  ;;  %v4104_v42 = vshrl.u32 %v10344_v23, 16  ;;  %v543_v43 = vld [vmem:[%s10320_s9 + $0x14] sm:$0x1]  ;;  %v636_v46 = vshrl.u32 %v541_v30, 16  ;;  %v639_v47 = vshll.u32 %v541_v30, 16 }
  0x1b   : > { %v619_v44 = vrot.slane %v618_v32, 4  ;;  %v645_v50 = vshll.u32 %v542_v36, 16  ;;  %v649_v51 = vshrl.u32 %v542_v36, 16  ;;  %v655_v56 = vshll.u32 %v543_v43, 16  ;;  %v3686_v61 = vld [vmem:[%s10332_s16 + $0xc] sm:$0xf] }
  0x1c   : > { %8515 = vmatpush3.bf16.msra.mxu1 %v9949_v6  ;;  %v629_v48 = vrot.slane %v628_v39, 4  ;;  %v638_v54 = vrot.slane %v636_v46, 4  ;;  %v641_v55 = vrot.slane %v639_v47, 5  ;;  %v10389_v62 = vld [vmem:[%s10332_s16 + $0x10] sm:$0xf]  ;;  %v10391_v0 = vrot.slane %v4100_v41, 5 }
  0x1d   : > { %8947 = vmatpush3.bf16.msra.mxu0 %v9950_v7  ;;  %8516 = vmatprep.subr.bf16.mxu1 %v9951_v8  ;;  %v624_v53 = vsel %vm10366_vm2, %v619_v44, %v623_v27  ;;  %v647_v58 = vrot.slane %v645_v50, 5  ;;  %v651_v59 = vrot.slane %v649_v51, 4  ;;  %12485 = vst [vmem:[#allocation6_spill] sm:$0xff] %v10389_v62  ;;  %v657_v2 = vrot.slane %v655_v56, 5  ;;  %v9962_v7 = vld [vmem:[%s12326_s5 + $0x40] sm:$0xff]   ;;  %v9964_v27 = vld [vmem:[%s12325_s4 + $0x8] sm:$0xff]  }
  0x1e   : > { %8948 = vmatprep.subr.bf16.mxu0 %v9952_v9  ;;  %v634_v57 = vsel %vm10366_vm2, %v629_v48, %v633_v33  ;;  %v642_v1 = vor.u32 %v641_v55, %v638_v54  ;;  %v4115_v4 = vshrl.u32 %v3686_v61, 16  ;;  %v4118_v5 = vshll.u32 %v3686_v61, 16  ;;  %v545_v13 = vld [vmem:[%s10320_s9 + $0x1c] sm:$0xf]  ;;  %v546_v24 = vld [vmem:[%s10320_s9 + $0x20] sm:$0x1] }
  0x1f   : > { %v7382_v63 = vcombine.low %v624_v53, %v634_v57  ;;  %v652_v3 = vor.u32 %v651_v59, %v647_v58  ;;  %v4124_v6 = vshll.u32 %v10389_v62, 16  ;;  %v10408_v21 = vcombine.low %v3686_v61, %v10389_v62  ;;  %v10420_v32 = vld [vmem:[%s10332_s16 + $0x1c] sm:$0xf]  ;;  %v547_v33 = vld [vmem:[%s10320_s9 + $0x24] sm:$0xf]  ;;  %v9966_v36 = vld [vmem:[%s12326_s5 + $0x48] sm:$0xff]  }
  0x20   : > { %8517 = vmatpush3.bf16.msra.mxu1 %v9951_v8  ;;  %v544_v8 = vld [vmem:[%s10320_s9 + $0x18] sm:$0xf]  ;;  %v4117_v16 = vrot.slane %v4115_v4, 4  ;;  %v4120_v17 = vrot.slane %v4118_v5, 5  ;;  %v548_v43 = vld [vmem:[%s10320_s9 + $0x28] sm:$0xf] }
  0x21   : > { %8949 = vmatpush3.bf16.msra.mxu0 %v9952_v9  ;;  %8518 = vmatprep.subr.bf16.mxu1 %v9953_v10  ;;  %v10398_v9 = vrot.slane %v4104_v42, 4  ;;  %v653_v15 = vrot.slane %v652_v3, 4  ;;  %v10403_v18 = vrot.slane %v4124_v6, 5  ;;  %12486 = vst [vmem:[#allocation7_spill] sm:$0xff] %v10408_v21  ;;  %v660_v25 = vshrl.u32 %v544_v8, 16  ;;  %v9968_v61 = vld [vmem:[%s12325_s4 + $0x10] sm:$0xff]  }
  0x22   : > { %8950 = vmatprep.subr.bf16.mxu0 %v9954_v11  ;;  %8524 = vmatprep.mubr.bf16.mxu1 %v7382_v63  ;;  %v4121_v29 = vor.u32 %v4120_v17, %v4117_v16  ;;  %v663_v30 = vshll.u32 %v544_v8, 16  ;;  %v673_v42 = vshrl.u32 %v545_v13, 16  ;;  %v549_v44 = vld [vmem:[%s10320_s9 + $0x2c] sm:$0x1]  ;;  %v679_v50 = vshll.u32 %v546_v24, 16  ;;  %v9970_v4 = vld [vmem:[%s12326_s5 + $0x50] sm:$0xff]  }
  0x23   : > { %v658_v28 = vsel %vm10366_vm2, %v653_v15, %v657_v2  ;;  %v662_v41 = vrot.slane %v660_v25, 4  ;;  %v10445_v59 = vld [vmem:[%s10332_s16 + $0x24] sm:$0xf]  ;;  %v687_v2 = vshll.u32 %v547_v33, 16  ;;  %v693_v3 = vshll.u32 %v548_v43, 16  ;;  %v9972_v16 = vld [vmem:[%s12325_s4 + $0x18] sm:$0xff]  }
  0x24   : > { %8519 = vmatpush3.bf16.msra.mxu1 %v9953_v10  ;;  %v643_v10 = vrot.slane %v642_v1, 4  ;;  %v10431_v46 = vrot.slane %v4121_v29, 4  ;;  %v665_v47 = vrot.slane %v663_v30, 5  ;;  %v681_v56 = vrot.slane %v679_v50, 5  ;;  %v550_v25 = vld [vmem:[%s10320_s9 + $0x30] sm:$0xf] }
  0x25   : > { %8951 = vmatpush3.bf16.msra.mxu0 %v9954_v11  ;;  %8520 = vmatprep.subr.bf16.mxu1 %v9955_v26  ;;  %v4128_v11 = vshrl.u32 %v10389_v62, 16  ;;  %v684_v1 = vshrl.u32 %v547_v33, 16  ;;  %v697_v6 = vshrl.u32 %v548_v43, 16  ;;  %v695_v15 = vrot.slane %v693_v3, 5  ;;  %v558_v34 = vld [vmem:[%s10320_s9 + $0x50] sm:$0x1] }
  0x26   : > { %8952 = vmatprep.subr.bf16.mxu0 %v9956_v31  ;;  %v648_v19 = vsel %vm10366_vm2, %v643_v10, %v647_v58  ;;  %v666_v55 = vor.u32 %v665_v47, %v662_v41  ;;  %v711_v43 = vshll.u32 %v550_v25, 16  ;;  %v10485_v47 = vld [vmem:[%s10332_s16 + $0x34] sm:$0xf]  ;;  %v10549_v12 = vld [vmem:[%s10332_s16 + $0x48] sm:$0xf] }
  0x27   : > { %v4130_v22 = vrot.slane %v4128_v11, 4  ;;  %v686_v11 = vrot.slane %v684_v1, 4  ;;  %v559_v49 = vld [vmem:[%s10320_s9 + $0x54] sm:$0xf]  ;;  %v10638_v58 = vld [vmem:[%s10320_s9 + $0x6c] sm:$0xf] }
  0x28   : > { %8521 = vmatpush3.bf16.msra.mxu1 %v9955_v26  ;;  %v10412_v26 = vld [vmem:[%s10332_s16 + $0x18] sm:$0xf]  ;;  %v667_v5 = vrot.slane %v666_v55, 4  ;;  %v10585_v24 = vld [vmem:[%s10332_s16 + $0x54] sm:$0xf] }
  0x29   : > { %8953 = vmatpush3.bf16.msra.mxu0 %v9956_v31  ;;  %8522 = vmatprep.subr.bf16.mxu1 %v9957_v37  ;;  %v669_v31 = vshll.u32 %v545_v13, 16  ;;  %v4131_v39 = vor.u32 %v4130_v22, %v10403_v18  ;;  %v10439_v53 = vcombine.low %v10412_v26, %v10420_v32  ;;  %v689_v13 = vrot.slane %v687_v2, 5  ;;  %v10772_v62 = vld [vmem:[%s10320_s9 + $0x9c] sm:$0xf] }
  0x2a   : > { %8954 = vmatprep.subr.bf16.mxu0 %v9958_v52  ;;  %v713_v2 = vrot.slane %v711_v43, 5  ;;  %v10518_v43 = vld [vmem:[%s10332_s16 + $0x40] sm:$0xf]  ;;  %12516 = vst [vmem:[#allocation37_spill] sm:$0xff] %v10772_v62 }
  0x2b   : > { %v671_v48 = vrot.slane %v669_v31, 5  ;;  %v10435_v51 = vrot.slane %v4131_v39, 4  ;;  %12488 = vst [vmem:[#allocation9_spill] sm:$0xff] %v10439_v53  ;;  %v690_v30 = vor.u32 %v689_v13, %v686_v11  ;;  %v10476_v39 = vld [vmem:[%s10320_s9 + $0x34] sm:$0xf] }
  0x2c   : > { %8523 = vmatpush3.bf16.msra.mxu1 %v9957_v37  ;;  %v10426_v37 = vcombine.low %v648_v19, %v658_v28  ;;  %v699_v19 = vrot.slane %v697_v6, 4  ;;  %v9974_v28 = vld [vmem:[%s12326_s5 + $0x58] sm:$0xff]   ;;  %v717_v50 = vshll.u32 %v10476_v39, 16  ;;  %v9976_v6 = vld [vmem:[%s12325_s4 + $0x20] sm:$0xff]  }
  0x2d   : > { %8955 = vmatpush3.bf16.msra.mxu0 %v9958_v52  ;;  %8556 = vmatprep.subr.bf16.mxu1 %v9960_v60  ;;  %v675_v52 = vrot.slane %v673_v42, 4  ;;  %v672_v17 = vsel %vm10366_vm2, %v667_v5, %v671_v48  ;;  %v708_v42 = vshrl.u32 %v550_v25, 16  ;;  %v554_v5 = vld [vmem:[%s10320_s9 + $0x40] sm:$0xf] }
  0x2e   : > { %12487 = vst [vmem:[#allocation8_spill] sm:$0xff] %v10426_v37  ;;  %8988 = vmatprep.subr.bf16.mxu0 %v9962_v7  ;;  %v700_v41 = vor.u32 %v699_v19, %v695_v15  ;;  %v9978_v19 = vld [vmem:[%s12326_s5 + $0x60] sm:$0xff]  }
  0x2f   : > { %8525 = vmatmul.mubr.bf16.vlgmr.msra.gmra.mrb[0].mxu1 %v10426_v37  ;;  %v676_v63 = vor.u32 %v675_v52, %v671_v48  ;;  %v691_v48 = vrot.slane %v690_v30, 4  ;;  %v721_v52 = vshrl.u32 %v10476_v39, 16  ;;  %v710_v1 = vrot.slane %v708_v42, 4  ;;  %v10515_v42 = vld [vmem:[%s10332_s16 + $0x3c] sm:$0xf] }
  0x30   : > { %8957 = vmatmul.mubr.bf16.vlgmr.msra.gmra.mrb[0].mxu0 %v10408_v21  ;;  %8557 = vmatpush3.bf16.msra.mxu1 %v9960_v60  ;;  %v10452_v60 = vld [vmem:[%s10332_s16 + $0x28] sm:$0xf]  ;;  %v10678_v37 = vld [vmem:[%s10320_s9 + $0x78] sm:$0xf] }
  0x31   : > { %8989 = vmatpush3.bf16.msra.mxu0 %v9962_v7  ;;  %8960 = vmatprep.mubr.bf16.mxu0 %v10439_v53  ;;  %v703_v7 = vshll.u32 %v549_v44, 16  ;;  %v10459_v8 = vcombine.low %v10445_v59, %v10452_v60  ;;  %v677_v10 = vrot.slane %v676_v63, 4  ;;  %v10482_v44 = vld [vmem:[%s10332_s16 + $0x30] sm:$0xf]  ;;  %v701_v63 = vrot.slane %v700_v41, 4  ;;  %12502 = vst [vmem:[#allocation23_spill] sm:$0xff] %v10678_v37 }
  0x32   : > { %8558 = vmatprep.subr.bf16.mxu1 %v9964_v27  ;;  %8990 = vmatprep.subr.bf16.mxu0 %v9966_v36  ;;  %v10494_v3 = vcombine.low %v10482_v44, %v10485_v47  ;;  %v723_v11 = vrot.slane %v721_v52, 4  ;;  %v714_v25 = vor.u32 %v713_v2, %v710_v1  ;;  %v745_v52 = vshrl.u32 %v554_v5, 16 }
  0x33   : > { %12489 = vst [vmem:[#allocation10_spill] sm:$0xff] %v10459_v8  ;;  %v705_v22 = vrot.slane %v703_v7, 5  ;;  %v682_v29 = vsel %vm10366_vm2, %v677_v10, %v681_v56  ;;  %v553_v56 = vld [vmem:[%s10320_s9 + $0x3c] sm:$0xf]  ;;  %v696_v7 = vsel %vm10366_vm2, %v691_v48, %v695_v15  ;;  %v719_v10 = vrot.slane %v717_v50, 5 }
  0x34   : > { %8559 = vmatpush3.bf16.msra.mxu1 %v9964_v27  ;;  %v552_v27 = vld [vmem:[%s10320_s9 + $0x38] sm:$0x1]  ;;  %12491 = vst [vmem:[#allocation12_spill] sm:$0xff] %v10494_v3  ;;  %v732_v41 = vshrl.u32 %v553_v56, 16  ;;  %v715_v48 = vrot.slane %v714_v25, 4  ;;  %v741_v50 = vshll.u32 %v554_v5, 16  ;;  %v10523_v2 = vcombine.low %v10515_v42, %v10518_v43 }
  0x35   : > { %8991 = vmatpush3.bf16.msra.mxu0 %v9966_v36  ;;  %8560 = vmatprep.subr.bf16.mxu1 %v9968_v61  ;;  %v10479_v36 = vcombine.low %v672_v17, %v682_v29  ;;  %v727_v55 = vshll.u32 %v552_v27, 16  ;;  %v555_v17 = vld [vmem:[%s10320_s9 + $0x44] sm:$0x1]  ;;  %v724_v27 = vor.u32 %v723_v11, %v719_v10  ;;  %v747_v11 = vrot.slane %v745_v52, 4  ;;  %v9986_v52 = vld [vmem:[%s12326_s5 + $0x70] sm:$0xff]  }
  0x36   : > { %8992 = vmatprep.subr.bf16.mxu0 %v9970_v4  ;;  %v751_v1 = vshll.u32 %v555_v17, 16  ;;  %12493 = vst [vmem:[#allocation14_spill] sm:$0xff] %v10523_v2  ;;  %v560_v29 = vld [vmem:[%s10320_s9 + $0x58] sm:$0xf] }
  0x37   : > { %12490 = vst [vmem:[#allocation11_spill] sm:$0xff] %v10479_v36  ;;  %8528 = vmatprep.mubr.bf16.mxu1 %v10479_v36  ;;  %v729_v13 = vrot.slane %v727_v55, 5  ;;  %v725_v55 = vrot.slane %v724_v27, 4 }
  0x38   : > { %8961 = vmatmul.mubr.bf16.gmra.mrb[4].mxu0 %v10459_v8  ;;  %8561 = vmatpush3.bf16.msra.mxu1 %v9968_v61  ;;  %v706_v61 = vsel %vm10366_vm2, %v701_v63, %v705_v22  ;;  %v735_v22 = vshll.u32 %v553_v56, 16  ;;  %v734_v63 = vrot.slane %v732_v41, 4  ;;  %v720_v56 = vsel %vm10366_vm2, %v715_v48, %v719_v10  ;;  %v10542_v41 = vld [vmem:[%s10320_s9 + $0x4c] sm:$0xf] }
  0x39   : > { %8993 = vmatpush3.bf16.msra.mxu0 %v9970_v4  ;;  %8562 = vmatprep.subr.bf16.mxu1 %v9972_v16  ;;  %v10511_v30 = vcombine.low %v696_v7, %v706_v61  ;;  %v9980_v7 = vld [vmem:[%s12325_s4 + $0x28] sm:$0xff]   ;;  %v730_v17 = vsel %vm10366_vm2, %v725_v55, %v729_v13  ;;  %v753_v25 = vrot.slane %v751_v1, 5  ;;  %v9984_v13 = vld [vmem:[%s12325_s4 + $0x30] sm:$0xff]  }
  0x3a   : > { %8964 = vmatprep.mubr.bf16.mxu0 %v10494_v3  ;;  %8994 = vmatprep.subr.bf16.mxu0 %v9974_v28  ;;  %v737_v5 = vrot.slane %v735_v22, 5  ;;  %v10531_v61 = vld [vmem:[%s10320_s9 + $0x48] sm:$0xf]  ;;  %v10544_v48 = vcombine.low %v720_v56, %v730_v17  ;;  %v765_v56 = vshll.u32 %v10542_v41, 16  ;;  %v775_v17 = vshll.u32 %v558_v34, 16  ;;  %v9988_v34 = vld [vmem:[%s12325_s4 + $0x38] sm:$0xff]  }
  0x3b   : > { %12492 = vst [vmem:[#allocation13_spill] sm:$0xff] %v10511_v30  ;;  %8529 = vmatmul.mubr.bf16.gmra.mrb[4].mxu1 %v10511_v30  ;;  %v756_v55 = vshrl.u32 %v10531_v61, 16  ;;  %v759_v1 = vshll.u32 %v10531_v61, 16  ;;  %v10711_v3 = vld [vmem:[%s10320_s9 + $0x88] sm:$0xf] }
  0x3c   : > { %8563 = vmatpush3.bf16.msra.mxu1 %v9972_v16  ;;  %v743_v16 = vrot.slane %v741_v50, 5  ;;  %12494 = vst [vmem:[#allocation15_spill] sm:$0xff] %v10544_v48  ;;  %v738_v22 = vor.u32 %v737_v5, %v734_v63  ;;  %v769_v63 = vshrl.u32 %v10542_v41, 16  ;;  %v10559_v5 = vld [vmem:[%s10332_s16 + $0x4c] sm:$0xf]  ;;  %8532 = vmatprep.mubr.bf16.mxu1 %v10544_v48  ;;  %v777_v15 = vrot.slane %v775_v17, 5 }
  0x3d   : > { %8995 = vmatpush3.bf16.msra.mxu0 %v9974_v28  ;;  %8564 = vmatprep.subr.bf16.mxu1 %v9976_v6  ;;  %v9982_v28 = vld [vmem:[%s12326_s5 + $0x68] sm:$0xff]   ;;  %v10564_v45 = vcombine.low %v10549_v12, %v10559_v5  ;;  %v758_v27 = vrot.slane %v756_v55, 4  ;;  %v761_v10 = vrot.slane %v759_v1, 5  ;;  %v561_v1 = vld [vmem:[%s10320_s9 + $0x5c] sm:$0x1]  ;;  %v789_v17 = vshll.u32 %v560_v29, 16 }
  0x3e   : > { %8996 = vmatprep.subr.bf16.mxu0 %v9978_v19  ;;  %v748_v50 = vor.u32 %v747_v11, %v743_v16  ;;  %v771_v4 = vrot.slane %v769_v63, 4  ;;  %12507 = vst [vmem:[#allocation28_spill] sm:$0xff] %v10711_v3  ;;  %v573_v8 = vld [vmem:[%s10320_s9 + $0x8c] sm:$0x1] }
  0x3f   : > { %12495 = vst [vmem:[#allocation16_spill] sm:$0xff] %v10564_v45  ;;  %v762_v63 = vor.u32 %v761_v10, %v758_v27  ;;  %v799_v27 = vshll.u32 %v561_v1, 16 }
  0x40   : > { %8965 = vmatmul.mubr.bf16.gmra.mrb[8].mxu0 %v10523_v2  ;;  %8565 = vmatpush3.bf16.msra.mxu1 %v9976_v6  ;;  %v739_v6 = vrot.slane %v738_v22, 4  ;;  %v749_v11 = vrot.slane %v748_v50, 4 }
  0x41   : > { %8997 = vmatpush3.bf16.msra.mxu0 %v9978_v19  ;;  %8566 = vmatprep.subr.bf16.mxu1 %v9980_v7  ;;  %v767_v19 = vrot.slane %v765_v56, 5 }
  0x42   : > { %8998 = vmatprep.subr.bf16.mxu0 %v9982_v28  ;;  %v744_v22 = vsel %vm10366_vm2, %v739_v6, %v743_v16  ;;  %v754_v50 = vsel %vm10366_vm2, %v749_v11, %v753_v25  ;;  %8968 = vmatprep.mubr.bf16.mxu0 %v10564_v45  ;;  %v9990_v16 = vld [vmem:[%s12326_s5 + $0x78] sm:$0xff]   ;;  %v780_v6 = vshrl.u32 %v559_v49, 16  ;;  %v783_v11 = vshll.u32 %v559_v49, 16 }
  0x43   : > { %v10581_v56 = vcombine.low %v744_v22, %v754_v50  ;;  %v772_v33 = vor.u32 %v771_v4, %v767_v19  ;;  %v763_v4 = vrot.slane %v762_v63, 4  ;;  %v10598_v22 = vld [vmem:[%s12325_s4 + $0x80] sm:$0xff]   ;;  %v791_v49 = vrot.slane %v789_v17, 5 }
  0x44   : > { %8567 = vmatpush3.bf16.msra.mxu1 %v9980_v7  ;;  %v10592_v7 = vld [vmem:[%s10332_s16 + $0x58] sm:$0xf]  ;;  %v782_v50 = vrot.slane %v780_v6, 4  ;;  %v785_v25 = vrot.slane %v783_v11, 5  ;;  %v801_v6 = vrot.slane %v799_v27, 5 }
  0x45   : > { %12496 = vst [vmem:[#allocation17_spill] sm:$0xff] %v10581_v56  ;;  %8999 = vmatpush3.bf16.msra.mxu0 %v9982_v28  ;;  %8568 = vmatprep.subr.bf16.mxu1 %v9984_v13  ;;  %v773_v10 = vrot.slane %v772_v33, 4  ;;  %v793_v28 = vshrl.u32 %v560_v29, 16  ;;  %v10602_v31 = vcombine.low %v10585_v24, %v10592_v7  ;;  %v10607_v33 = vld [vmem:[%s12326_s5 + $0x80] sm:$0xff]   ;;  %v768_v29 = vsel %vm10366_vm2, %v763_v4, %v767_v19 }
  0x46   : > { %9000 = vmatprep.subr.bf16.mxu0 %v9986_v52  ;;  %8533 = vmatmul.mubr.bf16.gmra.mrb[8].mxu1 %v10581_v56  ;;  %v10614_v11 = vld [vmem:[%s10320_s9 + $0x60] sm:$0xf]  ;;  %v10617_v17 = vld [vmem:[%s10320_s9 + $0x64] sm:$0xf]  ;;  %v786_v55 = vor.u32 %v785_v25, %v782_v50  ;;  %v10645_v56 = vld [vmem:[%s10320_s9 + $0x70] sm:$0xf] }
  0x47   : > { %12497 = vst [vmem:[#allocation18_spill] sm:$0xff] %v10602_v31  ;;  %v778_v1 = vsel %vm10366_vm2, %v773_v10, %v777_v15  ;;  %v795_v63 = vrot.slane %v793_v28, 4  ;;  %v564_v15 = vld [vmem:[%s10320_s9 + $0x68] sm:$0x1]  ;;  %v10626_v10 = vld [vmem:[%s10332_s16 + $0x60] sm:$0xf] }
  0x48   : > { %8569 = vmatpush3.bf16.msra.mxu1 %v9984_v13  ;;  %v10619_v13 = vcombine.low %v768_v29, %v778_v1  ;;  %8969 = vmatmul.mubr.bf16.gmra.mrb[12].mxu0 %v10602_v31  ;;  %v807_v29 = vshll.u32 %v10614_v11, 16  ;;  %v10632_v25 = vld [vmem:[%s10332_s16 + $0x64] sm:$0xf]  ;;  %v787_v50 = vrot.slane %v786_v55, 4  ;;  %v813_v1 = vshll.u32 %v10617_v17, 16 }
  0x49   : > { %9001 = vmatpush3.bf16.msra.mxu0 %v9986_v52  ;;  %8570 = vmatprep.subr.bf16.mxu1 %v9988_v34  ;;  %v796_v28 = vor.u32 %v795_v63, %v791_v49  ;;  %v804_v52 = vshrl.u32 %v10614_v11, 16  ;;  %v817_v4 = vshrl.u32 %v10617_v17, 16  ;;  %v823_v19 = vshll.u32 %v564_v15, 16  ;;  %v10693_v31 = vld [vmem:[%s10332_s16 + $0x78] sm:$0xf] }
  0x4a   : > { %12498 = vst [vmem:[#allocation19_spill] sm:$0xff] %v10619_v13  ;;  %9002 = vmatprep.subr.bf16.mxu0 %v9990_v16  ;;  %8536 = vmatprep.mubr.bf16.mxu1 %v10619_v13  ;;  %v809_v57 = vrot.slane %v807_v29, 5  ;;  %v10642_v54 = vcombine.low %v10626_v10, %v10632_v25  ;;  %v792_v55 = vsel %vm10366_vm2, %v787_v50, %v791_v49  ;;  %v815_v15 = vrot.slane %v813_v1, 5  ;;  %v10665_v1 = vld [vmem:[%s10332_s16 + $0x70] sm:$0xf] }
  0x4b   : > { %v797_v63 = vrot.slane %v796_v28, 4  ;;  %v806_v27 = vrot.slane %v804_v52, 4  ;;  %v819_v13 = vrot.slane %v817_v4, 4  ;;  %v567_v28 = vld [vmem:[%s10320_s9 + $0x74] sm:$0x1] }
  0x4c   : > { %8571 = vmatpush3.bf16.msra.mxu1 %v9988_v34  ;;  %12499 = vst [vmem:[#allocation20_spill] sm:$0xff] %v10642_v54  ;;  %v825_v34 = vrot.slane %v823_v19, 5  ;;  %8972 = vmatprep.mubr.bf16.mxu0 %v10642_v54  ;;  %v828_v19 = vshrl.u32 %v10638_v58, 16  ;;  %v10662_v4 = vld [vmem:[%s10332_s16 + $0x6c] sm:$0xf] }
  0x4d   : > { %9003 = vmatpush3.bf16.msra.mxu0 %v9990_v16  ;;  %8604 = vmatprep.subr.bf16.mxu1 %v10598_v22  ;;  %v802_v52 = vsel %vm10366_vm2, %v797_v63, %v801_v6  ;;  %v810_v29 = vor.u32 %v809_v57, %v806_v27  ;;  %v820_v49 = vor.u32 %v819_v13, %v815_v15  ;;  %v831_v57 = vshll.u32 %v10638_v58, 16  ;;  %v10686_v54 = vld [vmem:[%s10320_s9 + $0x7c] sm:$0xf] }
  0x4e   : > { %9036 = vmatprep.subr.bf16.mxu0 %v10607_v33  ;;  %v10657_v30 = vcombine.low %v792_v55, %v802_v52  ;;  %v837_v27 = vshll.u32 %v10645_v56, 16  ;;  %v841_v63 = vshrl.u32 %v10645_v56, 16  ;;  %v830_v55 = vrot.slane %v828_v19, 4  ;;  %12503 = vst [vmem:[#allocation24_spill] sm:$0xff] %v10686_v54 }
  0x4f   : > { %v811_v6 = vrot.slane %v810_v29, 4  ;;  %v821_v13 = vrot.slane %v820_v49, 4  ;;  %v847_v52 = vshll.u32 %v567_v28, 16  ;;  %v10673_v50 = vcombine.low %v10662_v4, %v10665_v1  ;;  %v10700_v28 = vld [vmem:[%s10332_s16 + $0x7c] sm:$0xf] }
  0x50   : > { %12500 = vst [vmem:[#allocation21_spill] sm:$0xff] %v10657_v30  ;;  %8537 = vmatmul.mubr.bf16.gmra.mrb[12].mxu1 %v10657_v30  ;;  %v833_v48 = vrot.slane %v831_v57, 5  ;;  %v839_v16 = vrot.slane %v837_v27, 5  ;;  %v843_v36 = vrot.slane %v841_v63, 4  ;;  %v570_v63 = vld [vmem:[%s10320_s9 + $0x80] sm:$0x1] }
  0x51   : > { %12501 = vst [vmem:[#allocation22_spill] sm:$0xff] %v10673_v50  ;;  %v816_v29 = vsel %vm10366_vm2, %v811_v6, %v815_v15  ;;  %v826_v30 = vsel %vm10366_vm2, %v821_v13, %v825_v34  ;;  %v849_v49 = vrot.slane %v847_v52, 5  ;;  %8973 = vmatmul.mubr.bf16.gmra.mrb[16].mxu0 %v10673_v50  ;;  %v852_v34 = vshrl.u32 %v10678_v37, 16 }
  0x52   : > { %v10688_v15 = vcombine.low %v816_v29, %v826_v30  ;;  %v834_v6 = vor.u32 %v833_v48, %v830_v55  ;;  %v844_v57 = vor.u32 %v843_v36, %v839_v16  ;;  %v855_v13 = vshll.u32 %v10678_v37, 16  ;;  %v10708_v29 = vld [vmem:[%s10320_s9 + $0x84] sm:$0xf] }
  0x53   : > { %v861_v52 = vshll.u32 %v10686_v54, 16  ;;  %v865_v19 = vshrl.u32 %v10686_v54, 16  ;;  %v871_v48 = vshll.u32 %v570_v63, 16  ;;  %v10705_v55 = vcombine.low %v10693_v31, %v10700_v28  ;;  %12506 = vst [vmem:[#allocation27_spill] sm:$0xff] %v10708_v29  ;;  %v585_v54 = vld [vmem:[%s10320_s9 + $0xbc] sm:$0x1] }
  0x54   : > { %12504 = vst [vmem:[#allocation25_spill] sm:$0xff] %v10688_v15  ;;  %8540 = vmatprep.mubr.bf16.mxu1 %v10688_v15  ;;  %v835_v36 = vrot.slane %v834_v6, 4  ;;  %v845_v30 = vrot.slane %v844_v57, 4  ;;  %v854_v27 = vrot.slane %v852_v34, 4  ;;  %v857_v50 = vrot.slane %v855_v13, 5 }
  0x55   : > { %12505 = vst [vmem:[#allocation26_spill] sm:$0xff] %v10705_v55  ;;  %v863_v45 = vrot.slane %v861_v52, 5  ;;  %v867_v2 = vrot.slane %v865_v19, 4  ;;  %v873_v57 = vrot.slane %v871_v48, 5  ;;  %8976 = vmatprep.mubr.bf16.mxu0 %v10705_v55  ;;  %v10724_v52 = vld [vmem:[%s10332_s16 + $0x84] sm:$0xf] }
  0x56   : > { %v840_v15 = vsel %vm10366_vm2, %v835_v36, %v839_v16  ;;  %v850_v6 = vsel %vm10366_vm2, %v845_v30, %v849_v49  ;;  %v858_v34 = vor.u32 %v857_v50, %v854_v27  ;;  %v876_v16 = vshrl.u32 %v10708_v29, 16  ;;  %v10731_v30 = vld [vmem:[%s10332_s16 + $0x88] sm:$0xf]  ;;  %v10744_v55 = vld [vmem:[%s10320_s9 + $0x90] sm:$0xf] }
  0x57   : > { %v10720_v53 = vcombine.low %v840_v15, %v850_v6  ;;  %v868_v13 = vor.u32 %v867_v2, %v863_v45  ;;  %v879_v49 = vshll.u32 %v10708_v29, 16  ;;  %v885_v36 = vshll.u32 %v10711_v3, 16  ;;  %12510 = vst [vmem:[#allocation31_spill] sm:$0xff] %v10744_v55 }
  0x58   : > { %v859_v50 = vrot.slane %v858_v34, 4  ;;  %v889_v15 = vshrl.u32 %v10711_v3, 16  ;;  %v895_v27 = vshll.u32 %v573_v8, 16  ;;  %v878_v48 = vrot.slane %v876_v16, 4  ;;  %v10747_v8 = vld [vmem:[%s10320_s9 + $0x94] sm:$0xf] }
  0x59   : > { %12508 = vst [vmem:[#allocation29_spill] sm:$0xff] %v10720_v53  ;;  %8541 = vmatmul.mubr.bf16.gmra.mrb[16].mxu1 %v10720_v53  ;;  %v869_v2 = vrot.slane %v868_v13, 4  ;;  %v881_v6 = vrot.slane %v879_v49, 5  ;;  %v887_v21 = vrot.slane %v885_v36, 5  ;;  %v10737_v19 = vcombine.low %v10724_v52, %v10731_v30  ;;  %12511 = vst [vmem:[#allocation32_spill] sm:$0xff] %v10747_v8 }
  0x5a   : > { %v864_v63 = vsel %vm10366_vm2, %v859_v50, %v863_v45  ;;  %v891_v34 = vrot.slane %v889_v15, 4  ;;  %v897_v13 = vrot.slane %v895_v27, 5  ;;  %v576_v45 = vld [vmem:[%s10320_s9 + $0x98] sm:$0x1]  ;;  %v10756_v50 = vld [vmem:[%s10332_s16 + $0x90] sm:$0xf] }
  0x5b   : > { %12509 = vst [vmem:[#allocation30_spill] sm:$0xff] %v10737_v19  ;;  %v874_v53 = vsel %vm10366_vm2, %v869_v2, %v873_v57  ;;  %v882_v49 = vor.u32 %v881_v6, %v878_v48  ;;  %8977 = vmatmul.mubr.bf16.gmra.mrb[20].mxu0 %v10737_v19  ;;  %12513 = vst [vmem:[#allocation34_spill] sm:$0xff] %v10756_v50  ;;  %v900_v15 = vshrl.u32 %v10744_v55, 16  ;;  %v903_v27 = vshll.u32 %v10744_v55, 16  ;;  %v10777_v55 = vld [vmem:[%s10320_s9 + $0xa0] sm:$0xf] }
  0x5c   : > { %v10749_v16 = vcombine.low %v864_v63, %v874_v53  ;;  %v892_v57 = vor.u32 %v891_v34, %v887_v21  ;;  %v10762_v53 = vld [vmem:[%s10332_s16 + $0x94] sm:$0xf]  ;;  %v909_v48 = vshll.u32 %v10747_v8, 16  ;;  %v913_v6 = vshrl.u32 %v10747_v8, 16  ;;  %12517 = vst [vmem:[#allocation38_spill] sm:$0xff] %v10777_v55 }
  0x5d   : > { %12514 = vst [vmem:[#allocation35_spill] sm:$0xff] %v10762_v53  ;;  %v883_v63 = vrot.slane %v882_v49, 4  ;;  %v919_v14 = vshll.u32 %v576_v45, 16  ;;  %v902_v34 = vrot.slane %v900_v15, 4  ;;  %v905_v19 = vrot.slane %v903_v27, 5 }
  0x5e   : > { %12512 = vst [vmem:[#allocation33_spill] sm:$0xff] %v10749_v16  ;;  %8544 = vmatprep.mubr.bf16.mxu1 %v10749_v16  ;;  %v893_v36 = vrot.slane %v892_v57, 4  ;;  %v10769_v2 = vcombine.low %v10756_v50, %v10762_v53  ;;  %v911_v16 = vrot.slane %v909_v48, 5  ;;  %v915_v20 = vrot.slane %v913_v6, 4  ;;  %v579_v15 = vld [vmem:[%s10320_s9 + $0xa4] sm:$0x1] }
  0x5f   : > { %v888_v49 = vsel %vm10366_vm2, %v883_v63, %v887_v21  ;;  %v921_v23 = vrot.slane %v919_v14, 5  ;;  %v906_v57 = vor.u32 %v905_v19, %v902_v34  ;;  %v924_v3 = vshrl.u32 %v10772_v62, 16  ;;  %v10788_v21 = vld [vmem:[%s10332_s16 + $0x9c] sm:$0xf]  ;;  %v10791_v14 = vld [vmem:[%s10332_s16 + $0xa0] sm:$0xf] }
  0x60   : > { %12515 = vst [vmem:[#allocation36_spill] sm:$0xff] %v10769_v2  ;;  %v898_v45 = vsel %vm10366_vm2, %v893_v36, %v897_v13  ;;  %8980 = vmatprep.mubr.bf16.mxu0 %v10769_v2  ;;  %v916_v8 = vor.u32 %v915_v20, %v911_v16  ;;  %v927_v48 = vshll.u32 %v10772_v62, 16  ;;  %v933_v19 = vshll.u32 %v10777_v55, 16  ;;  %v10804_v2 = vld [vmem:[%s10320_s9 + $0xa8] sm:$0xf] }
  0x61   : > { %v10783_v27 = vcombine.low %v888_v49, %v898_v45  ;;  %v907_v63 = vrot.slane %v906_v57, 4  ;;  %v937_v13 = vshrl.u32 %v10777_v55, 16  ;;  %v926_v36 = vrot.slane %v924_v3, 4  ;;  %12520 = vst [vmem:[#allocation41_spill] sm:$0xff] %v10804_v2  ;;  %v10812_v62 = vld [vmem:[%s10320_s9 + $0xac] sm:$0xf] }
  0x62   : > { %v917_v20 = vrot.slane %v916_v8, 4  ;;  %v943_v6 = vshll.u32 %v579_v15, 16  ;;  %v10799_v34 = vcombine.low %v10788_v21, %v10791_v14  ;;  %v929_v45 = vrot.slane %v927_v48, 5  ;;  %12521 = vst [vmem:[#allocation42_spill] sm:$0xff] %v10812_v62  ;;  %v10819_v55 = vld [vmem:[%s10332_s16 + $0xa8] sm:$0xf] }
  0x63   : > { %12518 = vst [vmem:[#allocation39_spill] sm:$0xff] %v10783_v27  ;;  %8545 = vmatmul.mubr.bf16.gmra.mrb[20].mxu1 %v10783_v27  ;;  %v912_v49 = vsel %vm10366_vm2, %v907_v63, %v911_v16  ;;  %v935_v57 = vrot.slane %v933_v19, 5  ;;  %v939_v29 = vrot.slane %v937_v13, 4  ;;  %v582_v13 = vld [vmem:[%s10320_s9 + $0xb0] sm:$0x1]  ;;  %v961_v8 = vshrl.u32 %v10812_v62, 16 }
  0x64   : > { %12519 = vst [vmem:[#allocation40_spill] sm:$0xff] %v10799_v34  ;;  %v922_v27 = vsel %vm10366_vm2, %v917_v20, %v921_v23  ;;  %v945_v15 = vrot.slane %v943_v6, 5  ;;  %8981 = vmatmul.mubr.bf16.gmra.mrb[24].mxu0 %v10799_v34  ;;  %v930_v63 = vor.u32 %v929_v45, %v926_v36  ;;  %v948_v23 = vshrl.u32 %v10804_v2, 16  ;;  %v10826_v3 = vld [vmem:[%s10332_s16 + $0xac] sm:$0xf] }
  0x65   : > { %v10814_v16 = vcombine.low %v912_v49, %v922_v27  ;;  %v940_v48 = vor.u32 %v939_v29, %v935_v57  ;;  %v951_v20 = vshll.u32 %v10804_v2, 16  ;;  %v957_v6 = vshll.u32 %v10812_v62, 16  ;;  %v10834_v45 = vld [vmem:[%s10320_s9 + $0xb4] sm:$0xf]  ;;  %v10837_v62 = vld [vmem:[%s10320_s9 + $0xb8] sm:$0xf] }
  0x66   : > { %v931_v29 = vrot.slane %v930_v63, 4  ;;  %v967_v36 = vshll.u32 %v582_v13, 16  ;;  %v10831_v49 = vcombine.low %v10819_v55, %v10826_v3  ;;  %12524 = vst [vmem:[#allocation45_spill] sm:$0xff] %v10834_v45  ;;  %v950_v19 = vrot.slane %v948_v23, 4  ;;  %12525 = vst [vmem:[#allocation46_spill] sm:$0xff] %v10837_v62 }
  0x67   : > { %12522 = vst [vmem:[#allocation43_spill] sm:$0xff] %v10814_v16  ;;  %8548 = vmatprep.mubr.bf16.mxu1 %v10814_v16  ;;  %v941_v27 = vrot.slane %v940_v48, 4  ;;  %v953_v34 = vrot.slane %v951_v20, 5  ;;  %v959_v2 = vrot.slane %v957_v6, 5  ;;  %v963_v37 = vrot.slane %v961_v8, 4 }
  0x68   : > { %12523 = vst [vmem:[#allocation44_spill] sm:$0xff] %v10831_v49  ;;  %v936_v16 = vsel %vm10366_vm2, %v931_v29, %v935_v57  ;;  %8984 = vmatprep.mubr.bf16.mxu0 %v10831_v49  ;;  %v969_v6 = vrot.slane %v967_v36, 5  ;;  %v10850_v53 = vld [vmem:[%s10332_s16 + $0xb4] sm:$0xf]  ;;  %v972_v57 = vshrl.u32 %v10834_v45, 16  ;;  %v981_v29 = vshll.u32 %v10837_v62, 16 }
  0x69   : > { %v946_v63 = vsel %vm10366_vm2, %v941_v27, %v945_v15  ;;  %v954_v20 = vor.u32 %v953_v34, %v950_v19  ;;  %v964_v8 = vor.u32 %v963_v37, %v959_v2  ;;  %v975_v15 = vshll.u32 %v10834_v45, 16  ;;  %v10857_v27 = vld [vmem:[%s10332_s16 + $0xb8] sm:$0xf] }
  0x6a   : > { %v10847_v23 = vcombine.low %v936_v16, %v946_v63  ;;  %v985_v37 = vshrl.u32 %v10837_v62, 16  ;;  %v991_v34 = vshll.u32 %v585_v54, 16  ;;  %v974_v19 = vrot.slane %v972_v57, 4 }
  0x6b   : > { %v955_v16 = vrot.slane %v954_v20, 4  ;;  %v965_v63 = vrot.slane %v964_v8, 4  ;;  %v977_v36 = vrot.slane %v975_v15, 5  ;;  %v983_v50 = vrot.slane %v981_v29, 5  ;;  %v10878_v29 = vld [vmem:[%s10332_s16 + $0x14] sm:$0x1] }
  0x6c   : > { %12526 = vst [vmem:[#allocation47_spill] sm:$0xff] %v10847_v23  ;;  %8549 = vmatmul.mubr.bf16.gmra.mrb[24].mxu1 %v10847_v23  ;;  %v10863_v13 = vcombine.low %v10850_v53, %v10857_v27  ;;  %v987_v8 = vrot.slane %v985_v37, 4  ;;  %v10871_v23 = vld [vmem:[%s10332_s16 + $0x8] sm:$0x1]  ;;  %v993_v15 = vrot.slane %v991_v34, 5  ;;  %v4107_v37 = vor.u32 %v10398_v9, %v10391_v0 }
  0x6d   : > { %v960_v48 = vsel %vm10366_vm2, %v955_v16, %v959_v2  ;;  %v970_v49 = vsel %vm10366_vm2, %v965_v63, %v969_v6  ;;  %v978_v57 = vor.u32 %v977_v36, %v974_v19  ;;  %v4097_v63 = vor.u32 %v10370_v40, %v10358_v35  ;;  %v10905_v16 = vld [vmem:[%s10332_s16 + $0x20] sm:$0x1] }
  0x6e   : > { %12527 = vst [vmem:[#allocation48_spill] sm:$0xff] %v10863_v13  ;;  %v10873_v45 = vcombine.low %v960_v48, %v970_v49  ;;  %8985 = vmatmul.mubr.bf16.gmra.mrb[28].mxu0 %v10863_v13  ;;  %v988_v2 = vor.u32 %v987_v8, %v983_v50  ;;  %v4110_v34 = vshll.u32 %v10871_v23, 16  ;;  %v4127_v8 = vsel %vm10366_vm2, %v10431_v46, %v10403_v18  ;;  %v10900_v48 = vld [vmem:[%s10320_s9 + $0x4] sm:$0xf] }
  0x6f   : > { %v979_v49 = vrot.slane %v978_v57, 4  ;;  %v4098_v36 = vrot.slane %v4097_v63, 4  ;;  %v4134_v35 = vshll.u32 %v10878_v29, 16  ;;  %v10897_v57 = vld [vmem:[%s10320_s9] sm:$0xf] }
  0x70   : > { %12528 = vst [vmem:[#allocation49_spill] sm:$0xff] %v10873_v45  ;;  %8552 = vmatprep.mubr.bf16.mxu1 %v10873_v45  ;;  %v989_v19 = vrot.slane %v988_v2, 4  ;;  %v7406_v9 = vcombine.low %v10897_v57, %v10900_v48  ;;  %v4108_v2 = vrot.slane %v4107_v37, 4  ;;  %v4112_v63 = vrot.slane %v4110_v34, 5 }
  0x71   : > { %v984_v40 = vsel %vm10366_vm2, %v979_v49, %v983_v50  ;;  %v4103_v46 = vsel %vm10366_vm2, %v4098_v36, %v10391_v0  ;;  %v4136_v50 = vrot.slane %v4134_v35, 5  ;;  %v12529_v49 = vshrl.u32 %v10412_v26, 16  ;;  %v10928_v35 = vld [vmem:[%s10332_s16 + $0x2c] sm:$0x1] }
  0x72   : > { %v994_v18 = vsel %vm10366_vm2, %v989_v19, %v993_v15  ;;  %v4113_v37 = vsel %vm10366_vm2, %v4108_v2, %v4112_v63  ;;  %v12531_v34 = vshll.u32 %v10412_v26, 16  ;;  %v4148_v45 = vshll.u32 %v10420_v32, 16  ;;  %12533 = vst [vmem:[#allocation51_spill] sm:$0xff] %v10928_v35  ;;  %v10935_v26 = vld [vmem:[%s10320_s9 + $0x10] sm:$0xf] }
  0x73   : > { %v4141_v6 = vrot.slane %v12529_v49, 4  ;;  %v10914_v54 = vcombine.low %v984_v40, %v994_v18  ;;  %v7678_v13 = vcombine.low %v4103_v46, %v4113_v37  ;;  %v4137_v15 = vsel %vm10366_vm2, %v10435_v51, %v4136_v50  ;;  %v10932_v40 = vld [vmem:[%s10320_s9 + $0xc] sm:$0xf] }
  0x74   : > { %v4144_v20 = vrot.slane %v12531_v34, 5  ;;  %v12532_v0 = vshrl.u32 %v10420_v32, 16  ;;  %v4158_v36 = vshll.u32 %v10905_v16, 16  ;;  %v10939_v2 = vcombine.low %v10932_v40, %v10935_v26  ;;  %v9998_v18 = vld [vmem:[%s12326_s5 + $0x88] sm:$0xff]  }
  0x75   : > { %12530 = vst [vmem:[#allocation50_spill] sm:$0xff] %v10914_v54  ;;  %8553 = vmatmul.mubr.bf16.gmra.mrb[28].mxu1 %v10914_v54  ;;  %v10941_v63 = vcombine.low %v4127_v8, %v4137_v15  ;;  %v4150_v32 = vrot.slane %v4148_v45, 5  ;;  %9004 = vmatprep.mubr.bf16.mxu0 %v7678_v13  ;;  %v12535_v50 = vshrl.u32 %v10445_v59, 16  ;;  %v12536_v37 = vshll.u32 %v10445_v59, 16  ;;  %v10957_v13 = vld [vmem:[%s10320_s9 + $0x18] sm:$0xf] }
  0x76   : > { %v4154_v19 = vrot.slane %v12532_v0, 4  ;;  %v4145_v51 = vor.u32 %v4144_v20, %v4141_v6  ;;  %8572 = vmatprep.mubr.bf16.mxu1 %v7406_v9  ;;  %v4160_v46 = vrot.slane %v4158_v36, 5  ;;  %v4172_v8 = vshll.u32 %v10452_v60, 16  ;;  %12538 = vst [vmem:[#allocation53_spill] sm:$0xff] %v10957_v13  ;;  %v10960_v0 = vld [vmem:[%s10320_s9 + $0x1c] sm:$0xf] }
  0x77   : > { %12534 = vst [vmem:[#allocation52_spill] sm:$0xff] %v10941_v63  ;;  %v4165_v49 = vrot.slane %v12535_v50, 4  ;;  %v4168_v34 = vrot.slane %v12536_v37, 5  ;;  %9005 = vmatmul.mubr.bf16.vlgmr.msra.gmra.mrb[0].mxu0 %v10941_v63  ;;  %v12537_v6 = vshrl.u32 %v10452_v60, 16  ;;  %v4182_v9 = vshll.u32 %v10928_v35, 16 }
  0x78   : > { %v4146_v20 = vrot.slane %v4145_v51, 4  ;;  %v4155_v45 = vor.u32 %v4154_v19, %v4150_v32  ;;  %9037 = vmatpush3.bf16.msra.mxu0 %v10607_v33  ;;  %v10964_v59 = vcombine.low %v10957_v13, %v10960_v0  ;;  %v4174_v50 = vrot.slane %v4172_v8, 5  ;;  %v10967_v19 = vld [vmem:[%s10332_s16 + $0x38] sm:$0x1]  ;;  %v11005_v13 = vld [vmem:[%s10332_s16 + $0x44] sm:$0x1] }
  0x79   : > { %v4178_v15 = vrot.slane %v12537_v6, 4  ;;  %v4169_v36 = vor.u32 %v4168_v34, %v4165_v49  ;;  %12540 = vst [vmem:[#allocation55_spill] sm:$0xff] %v10967_v19  ;;  %v12541_v60 = vshrl.u32 %v10482_v44, 16  ;;  %v4184_v6 = vrot.slane %v4182_v9, 5  ;;  %9038 = vmatprep.subr.bf16.mxu0 %v9998_v18  ;;  %v10002_v49 = vld [vmem:[%s12326_s5 + $0x90] sm:$0xff]   ;;  %v9997_v34 = vld [vmem:[%s12325_s4 + $0x88] sm:$0xff]  }
  0x7a   : > { %12539 = vst [vmem:[#allocation54_spill] sm:$0xff] %v10964_v59  ;;  %v4151_v33 = vsel %vm10366_vm2, %v4146_v20, %v4150_v32  ;;  %v4156_v37 = vrot.slane %v4155_v45, 4  ;;  %v12542_v54 = vshll.u32 %v10482_v44, 16  ;;  %v4196_v35 = vshll.u32 %v10485_v47, 16  ;;  %v10990_v45 = vld [vmem:[%s10320_s9 + $0x28] sm:$0xf] }
  0x7b   : > { %v4189_v51 = vrot.slane %v12541_v60, 4  ;;  %v4170_v8 = vrot.slane %v4169_v36, 4  ;;  %v4179_v60 = vor.u32 %v4178_v15, %v4174_v50  ;;  %v12543_v32 = vshrl.u32 %v10485_v47, 16  ;;  %12545 = vst [vmem:[#allocation57_spill] sm:$0xff] %v10990_v45  ;;  %v10006_v15 = vld [vmem:[%s12326_s5 + $0x98] sm:$0xff]  }
  0x7c   : > { %v4192_v63 = vrot.slane %v12542_v54, 5  ;;  %v4161_v44 = vsel %vm10366_vm2, %v4156_v37, %v4160_v46  ;;  %v10987_v54 = vld [vmem:[%s10320_s9 + $0x24] sm:$0xf]  ;;  %v4206_v36 = vshll.u32 %v10967_v19, 16  ;;  %9039 = vmatpush3.bf16.msra.mxu0 %v9998_v18  ;;  %v12547_v19 = vshrl.u32 %v10515_v42, 16 }
  0x7d   : > { %v4202_v20 = vrot.slane %v12543_v32, 4  ;;  %12544 = vst [vmem:[#allocation56_spill] sm:$0xff] %v10987_v54  ;;  %v10994_v9 = vcombine.low %v10987_v54, %v10990_v45  ;;  %v11000_v47 = vcombine.low %v4151_v33, %v4161_v44  ;;  %v4175_v46 = vsel %vm10366_vm2, %v4170_v8, %v4174_v50  ;;  %8573 = vmatmul.mubr.bf16.vlgmr.msra.gmra.mrb[0].mxu1 %v10939_v2 }
  0x7e   : > { %v4193_v62 = vor.u32 %v4192_v63, %v4189_v51  ;;  %v4180_v37 = vrot.slane %v4179_v60, 4  ;;  %v4198_v32 = vrot.slane %v4196_v35, 5  ;;  %v4208_v51 = vrot.slane %v4206_v36, 5  ;;  %9040 = vmatprep.subr.bf16.mxu0 %v10002_v49  ;;  %8605 = vmatpush3.bf16.msra.mxu1 %v10598_v22 }
  0x7f   : > { %12546 = vst [vmem:[#allocation58_spill] sm:$0xff] %v11000_v47  ;;  %v4213_v54 = vrot.slane %v12547_v19, 4  ;;  %v12548_v45 = vshll.u32 %v10515_v42, 16  ;;  %8576 = vmatprep.mubr.bf16.mxu1 %v10964_v59  ;;  %v4220_v50 = vshll.u32 %v10518_v43, 16  ;;  %9008 = vmatprep.mubr.bf16.mxu0 %v11000_v47  ;;  %v11023_v19 = vld [vmem:[%s10320_s9 + $0x30] sm:$0xf] }
  0x80   : > { %v4194_v63 = vrot.slane %v4193_v62, 4  ;;  %v4185_v35 = vsel %vm10366_vm2, %v4180_v37, %v4184_v6  ;;  %v4203_v18 = vor.u32 %v4202_v20, %v4198_v32  ;;  %v12549_v62 = vshrl.u32 %v10518_v43, 16  ;;  %8606 = vmatprep.subr.bf16.mxu1 %v9997_v34  ;;  %v10001_v6 = vld [vmem:[%s12325_s4 + $0x90] sm:$0xff]   ;;  %9041 = vmatpush3.bf16.msra.mxu0 %v10002_v49 }
  0x81   : > { %v4216_v33 = vrot.slane %v12548_v45, 5  ;;  %v11020_v42 = vcombine.low %v4175_v46, %v4185_v35  ;;  %v11027_v22 = vcombine.low %v11023_v19, %v10476_v39  ;;  %v4230_v20 = vshll.u32 %v11005_v13, 16  ;;  %v11034_v43 = vld [vmem:[%s10332_s16 + $0x50] sm:$0x1]  ;;  %9042 = vmatprep.subr.bf16.mxu0 %v10006_v15 }
  0x82   : > { %v4226_v8 = vrot.slane %v12549_v62, 4  ;;  %v4199_v44 = vsel %vm10366_vm2, %v4194_v63, %v4198_v32  ;;  %v4204_v45 = vrot.slane %v4203_v18, 4  ;;  %v4222_v36 = vrot.slane %v4220_v50, 5  ;;  %8607 = vmatpush3.bf16.msra.mxu1 %v9997_v34 }
  0x83   : > { %12550 = vst [vmem:[#allocation59_spill] sm:$0xff] %v11020_v42  ;;  %v4217_v60 = vor.u32 %v4216_v33, %v4213_v54  ;;  %v12551_v46 = vshrl.u32 %v10549_v12, 16  ;;  %9009 = vmatmul.mubr.bf16.gmra.mrb[4].mxu0 %v11020_v42  ;;  %v4232_v35 = vrot.slane %v4230_v20, 5  ;;  %v12552_v54 = vshll.u32 %v10549_v12, 16  ;;  %v11055_v20 = vld [vmem:[%s10320_s9 + $0x3c] sm:$0xf]  ;;  %8608 = vmatprep.subr.bf16.mxu1 %v10001_v6 }
  0x84   : > { %v4244_v62 = vshll.u32 %v10559_v5, 16  ;;  %v4209_v32 = vsel %vm10366_vm2, %v4204_v45, %v4208_v51  ;;  %v4227_v49 = vor.u32 %v4226_v8, %v4222_v36  ;;  %v12553_v63 = vshrl.u32 %v10559_v5, 16  ;;  %v11065_v8 = vld [vmem:[%s10332_s16 + $0x5c] sm:$0x1]  ;;  %v10010_v45 = vld [vmem:[%s12326_s5 + $0xa0] sm:$0xff]   ;;  %9043 = vmatpush3.bf16.msra.mxu0 %v10006_v15 }
  0x85   : > { %v4237_v39 = vrot.slane %v12551_v46, 4  ;;  %v4218_v37 = vrot.slane %v4217_v60, 4  ;;  %v4240_v33 = vrot.slane %v12552_v54, 5  ;;  %v4254_v50 = vshll.u32 %v11034_v43, 16  ;;  %v10005_v60 = vld [vmem:[%s12325_s4 + $0x98] sm:$0xff]   ;;  %8577 = vmatmul.mubr.bf16.gmra.mrb[4].mxu1 %v10994_v9  ;;  %9044 = vmatprep.subr.bf16.mxu0 %v10010_v45 }
  0x86   : > { %v4250_v18 = vrot.slane %v12553_v63, 4  ;;  %v11052_v12 = vcombine.low %v4199_v44, %v4209_v32  ;;  %v11058_v46 = vld [vmem:[%s10320_s9 + $0x40] sm:$0xf]  ;;  %v4246_v5 = vrot.slane %v4244_v62, 5  ;;  %v4228_v54 = vrot.slane %v4227_v49, 4  ;;  %8580 = vmatprep.mubr.bf16.mxu1 %v11027_v22  ;;  %8609 = vmatpush3.bf16.msra.mxu1 %v10001_v6 }
  0x87   : > { %v11062_v34 = vcombine.low %v11055_v20, %v11058_v46  ;;  %v4241_v51 = vor.u32 %v4240_v33, %v4237_v39  ;;  %v4223_v44 = vsel %vm10366_vm2, %v4218_v37, %v4222_v36  ;;  %v4256_v32 = vrot.slane %v4254_v50, 5  ;;  %v10014_v36 = vld [vmem:[%s12326_s5 + $0xa8] sm:$0xff]   ;;  %8610 = vmatprep.subr.bf16.mxu1 %v10005_v60 }
  0x88   : > { %12554 = vst [vmem:[#allocation60_spill] sm:$0xff] %v11052_v12  ;;  %v12555_v63 = vshrl.u32 %v10585_v24, 16  ;;  %9012 = vmatprep.mubr.bf16.mxu0 %v11052_v12  ;;  %v4251_v33 = vor.u32 %v4250_v18, %v4246_v5  ;;  %v12556_v62 = vshll.u32 %v10585_v24, 16  ;;  %v4268_v59 = vshll.u32 %v10592_v7, 16  ;;  %9045 = vmatpush3.bf16.msra.mxu0 %v10010_v45 }
  0x89   : > { %v4242_v39 = vrot.slane %v4241_v51, 4  ;;  %v4233_v15 = vsel %vm10366_vm2, %v4228_v54, %v4232_v35  ;;  %v11087_v37 = vcombine.low %v10531_v61, %v10542_v41  ;;  %v12558_v24 = vshrl.u32 %v10592_v7, 16  ;;  %v11097_v35 = vld [vmem:[%s10332_s16 + $0x68] sm:$0x1]  ;;  %v10009_v61 = vld [vmem:[%s12325_s4 + $0xa0] sm:$0xff]   ;;  %9046 = vmatprep.subr.bf16.mxu0 %v10014_v36 }
  0x8a   : > { %v4261_v42 = vrot.slane %v12555_v63, 4  ;;  %v4264_v47 = vrot.slane %v12556_v62, 5  ;;  %v4278_v18 = vshll.u32 %v11065_v8, 16  ;;  %v11092_v50 = vcombine.low %v4223_v44, %v4233_v15  ;;  %8611 = vmatpush3.bf16.msra.mxu1 %v10005_v60 }
  0x8b   : > { %12557 = vst [vmem:[#allocation61_spill] sm:$0xff] %v11087_v37  ;;  %v4274_v49 = vrot.slane %v12558_v24, 4  ;;  %v4247_v51 = vsel %vm10366_vm2, %v4242_v39, %v4246_v5  ;;  %v4252_v63 = vrot.slane %v4251_v33, 4  ;;  %v4270_v41 = vrot.slane %v4268_v59, 5  ;;  %v11107_v24 = vld [vmem:[%s10332_s16 + $0x74] sm:$0x1]  ;;  %8612 = vmatprep.subr.bf16.mxu1 %v10009_v61 }
  0x8c   : > { %12559 = vst [vmem:[#allocation62_spill] sm:$0xff] %v11092_v50  ;;  %v4265_v62 = vor.u32 %v4264_v47, %v4261_v42  ;;  %v4280_v7 = vrot.slane %v4278_v18, 5  ;;  %v12560_v6 = vshrl.u32 %v10626_v10, 16  ;;  %v12561_v44 = vshll.u32 %v10626_v10, 16  ;;  %9013 = vmatmul.mubr.bf16.gmra.mrb[8].mxu0 %v11092_v50  ;;  %v10018_v10 = vld [vmem:[%s12326_s5 + $0xb0] sm:$0xff]  }
  0x8d   : > { %v4257_v47 = vsel %vm10366_vm2, %v4252_v63, %v4256_v32  ;;  %v4292_v5 = vshll.u32 %v10632_v25, 16  ;;  %v12562_v59 = vshrl.u32 %v10632_v25, 16  ;;  %v4275_v45 = vor.u32 %v4274_v49, %v4270_v41  ;;  %v10013_v32 = vld [vmem:[%s12325_s4 + $0xa8] sm:$0xff]   ;;  %9047 = vmatpush3.bf16.msra.mxu0 %v10014_v36  ;;  %8581 = vmatmul.mubr.bf16.gmra.mrb[8].mxu1 %v11062_v34  ;;  %v11147_v36 = vld [vmem:[%s10320_s9 + $0x58] sm:$0xf] }
  0x8e   : > { %v4285_v54 = vrot.slane %v12560_v6, 4  ;;  %v4288_v15 = vrot.slane %v12561_v44, 5  ;;  %v4266_v42 = vrot.slane %v4265_v62, 4  ;;  %v11118_v33 = vcombine.low %v4247_v51, %v4257_v47  ;;  %v11132_v47 = vld [vmem:[%s10332_s16 + $0x80] sm:$0x1]  ;;  %9048 = vmatprep.subr.bf16.mxu0 %v10018_v10  ;;  %8584 = vmatprep.mubr.bf16.mxu1 %v11087_v37  ;;  %v10017_v37 = vld [vmem:[%s12325_s4 + $0xb0] sm:$0xff]  }
  0x8f   : > { %v4298_v39 = vrot.slane %v12562_v59, 4  ;;  %v4302_v6 = vshll.u32 %v11097_v35, 16  ;;  %v4294_v63 = vrot.slane %v4292_v5, 5  ;;  %v12564_v62 = vshrl.u32 %v10662_v4, 16  ;;  %8613 = vmatpush3.bf16.msra.mxu1 %v10009_v61 }
  0x90   : > { %12563 = vst [vmem:[#allocation63_spill] sm:$0xff] %v11118_v33  ;;  %v4289_v18 = vor.u32 %v4288_v15, %v4285_v54  ;;  %v4271_v25 = vsel %vm10366_vm2, %v4266_v42, %v4270_v41  ;;  %9016 = vmatprep.mubr.bf16.mxu0 %v11118_v33  ;;  %v4276_v60 = vrot.slane %v4275_v45, 4  ;;  %v12565_v54 = vshll.u32 %v10662_v4, 16  ;;  %v10022_v45 = vld [vmem:[%s12326_s5 + $0xb8] sm:$0xff]   ;;  %v11144_v4 = vld [vmem:[%s10320_s9 + $0x54] sm:$0xf]  ;;  %8614 = vmatprep.subr.bf16.mxu1 %v10013_v32 }
  0x91   : > { %v4309_v44 = vrot.slane %v12564_v62, 4  ;;  %v4304_v51 = vrot.slane %v4302_v6, 5  ;;  %v4299_v41 = vor.u32 %v4298_v39, %v4294_v63  ;;  %v4316_v42 = vshll.u32 %v10665_v1, 16  ;;  %9049 = vmatpush3.bf16.msra.mxu0 %v10018_v10 }
  0x92   : > { %v4290_v49 = vrot.slane %v4289_v18, 4  ;;  %v4312_v15 = vrot.slane %v12565_v54, 5  ;;  %v12566_v5 = vshrl.u32 %v10665_v1, 16  ;;  %v4326_v62 = vshll.u32 %v11107_v24, 16  ;;  %9050 = vmatprep.subr.bf16.mxu0 %v10022_v45 }
  0x93   : > { %v11151_v39 = vcombine.low %v11144_v4, %v11147_v36  ;;  %v4281_v1 = vsel %vm10366_vm2, %v4276_v60, %v4280_v7  ;;  %v12568_v6 = vshrl.u32 %v10693_v31, 16  ;;  %v4300_v50 = vrot.slane %v4299_v41, 4  ;;  %v11167_v7 = vld [vmem:[%s12326_s5 + $0xc0] sm:$0xff]   ;;  %8615 = vmatpush3.bf16.msra.mxu1 %v10013_v32 }
  0x94   : > { %v4322_v59 = vrot.slane %v12566_v5, 4  ;;  %v4313_v18 = vor.u32 %v4312_v15, %v4309_v44  ;;  %v11157_v5 = vcombine.low %v4271_v25, %v4281_v1  ;;  %v4295_v33 = vsel %vm10366_vm2, %v4290_v49, %v4294_v63  ;;  %v11173_v63 = vld [vmem:[%s10332_s16 + $0x8c] sm:$0x1]  ;;  %8616 = vmatprep.subr.bf16.mxu1 %v10017_v37 }
  0x95   : > { %12567 = vst [vmem:[#allocation64_spill] sm:$0xff] %v11151_v39  ;;  %v4333_v54 = vrot.slane %v12568_v6, 4  ;;  %v4318_v12 = vrot.slane %v4316_v42, 5  ;;  %v4328_v44 = vrot.slane %v4326_v62, 5  ;;  %v12570_v25 = vshll.u32 %v10693_v31, 16  ;;  %9051 = vmatpush3.bf16.msra.mxu0 %v10022_v45  ;;  %8585 = vmatmul.mubr.bf16.gmra.mrb[12].mxu1 %v11151_v39 }
  0x96   : > { %12569 = vst [vmem:[#allocation65_spill] sm:$0xff] %v11157_v5  ;;  %v4314_v61 = vrot.slane %v4313_v18, 4  ;;  %v4340_v15 = vshll.u32 %v10700_v28, 16  ;;  %9017 = vmatmul.mubr.bf16.gmra.mrb[12].mxu0 %v11157_v5  ;;  %v4305_v49 = vsel %vm10366_vm2, %v4300_v50, %v4304_v51  ;;  %v12571_v42 = vshrl.u32 %v10700_v28, 16  ;;  %9084 = vmatprep.subr.bf16.mxu0 %v11167_v7 }
  0x97   : > { %v4336_v60 = vrot.slane %v12570_v25, 5  ;;  %v4323_v41 = vor.u32 %v4322_v59, %v4318_v12  ;;  %v4350_v18 = vshll.u32 %v11132_v47, 16  ;;  %v11183_v31 = vcombine.low %v10614_v11, %v10617_v17  ;;  %v10021_v11 = vld [vmem:[%s12325_s4 + $0xb8] sm:$0xff]   ;;  %8617 = vmatpush3.bf16.msra.mxu1 %v10017_v37 }
  0x98   : > { %v4346_v1 = vrot.slane %v12571_v42, 4  ;;  %v11185_v62 = vcombine.low %v4295_v33, %v4305_v49  ;;  %v4342_v6 = vrot.slane %v4340_v15, 5  ;;  %v4319_v50 = vsel %vm10366_vm2, %v4314_v61, %v4318_v12  ;;  %v11199_v12 = vld [vmem:[%s10332_s16 + $0x98] sm:$0x1]  ;;  %8618 = vmatprep.subr.bf16.mxu1 %v10021_v11 }
  0x99   : > { %12572 = vst [vmem:[#allocation66_spill] sm:$0xff] %v11183_v31  ;;  %v4337_v10 = vor.u32 %v4336_v60, %v4333_v54  ;;  %v4324_v51 = vrot.slane %v4323_v41, 4  ;;  %v4352_v59 = vrot.slane %v4350_v18, 5  ;;  %v12574_v28 = vshrl.u32 %v10724_v52, 16  ;;  %8588 = vmatprep.mubr.bf16.mxu1 %v11183_v31  ;;  %v12579_v18 = vld [vmem:[#allocation34_spill] sm:$0xff] }
  0x9a   : > { %12573 = vst [vmem:[#allocation67_spill] sm:$0xff] %v11185_v62  ;;  %9020 = vmatprep.mubr.bf16.mxu0 %v11185_v62  ;;  %v4347_v33 = vor.u32 %v4346_v1, %v4342_v6  ;;  %v12575_v54 = vshll.u32 %v10724_v52, 16  ;;  %v4364_v60 = vshll.u32 %v10731_v30, 16  ;;  %v11204_v61 = vcombine.low %v10638_v58, %v10645_v56 }
  0x9b   : > { %v4357_v25 = vrot.slane %v12574_v28, 4  ;;  %v4338_v17 = vrot.slane %v4337_v10, 4  ;;  %v4329_v15 = vsel %vm10366_vm2, %v4324_v51, %v4328_v44  ;;  %v12577_v49 = vshrl.u32 %v10731_v30, 16  ;;  %v11220_v44 = vld [vmem:[%s12325_s4 + $0xc0] sm:$0xff]   ;;  %8619 = vmatpush3.bf16.msra.mxu1 %v10021_v11 }
  0x9c   : > { %v4360_v32 = vrot.slane %v12575_v54, 5  ;;  %12576 = vst [vmem:[#allocation68_spill] sm:$0xff] %v11204_v61  ;;  %v4374_v52 = vshll.u32 %v11173_v63, 16  ;;  %v11213_v45 = vcombine.low %v4319_v50, %v4329_v15  ;;  %v4348_v58 = vrot.slane %v4347_v33, 4  ;;  %v11227_v54 = vld [vmem:[%s10332_s16 + $0xa4] sm:$0x1]  ;;  %8652 = vmatprep.subr.bf16.mxu1 %v11220_v44 }
  0x9d   : > { %v4370_v41 = vrot.slane %v12577_v49, 4  ;;  %v4343_v42 = vsel %vm10366_vm2, %v4338_v17, %v4342_v6  ;;  %v4366_v30 = vrot.slane %v4364_v60, 5  ;;  %v12580_v10 = vshrl.u32 %v12579_v18, 16  ;;  %8589 = vmatmul.mubr.bf16.gmra.mrb[16].mxu1 %v11204_v61 }
  0x9e   : > { %12578 = vst [vmem:[#allocation69_spill] sm:$0xff] %v11213_v45  ;;  %v4361_v56 = vor.u32 %v4360_v32, %v4357_v25  ;;  %v4376_v1 = vrot.slane %v4374_v52, 5  ;;  %v12581_v28 = vshll.u32 %v12579_v18, 16  ;;  %v4353_v6 = vsel %vm10366_vm2, %v4348_v58, %v4352_v59  ;;  %v12582_v25 = vld [vmem:[#allocation35_spill] sm:$0xff]  ;;  %9021 = vmatmul.mubr.bf16.gmra.mrb[16].mxu0 %v11213_v45  ;;  %v12585_v18 = vld [vmem:[#allocation24_spill] sm:$0xff] }
  0x9f   : > { %v4381_v51 = vrot.slane %v12580_v10, 4  ;;  %v4388_v17 = vshll.u32 %v12582_v25, 16  ;;  %v12583_v33 = vshrl.u32 %v12582_v25, 16  ;;  %v11235_v60 = vcombine.low %v4343_v42, %v4353_v6  ;;  %v12586_v10 = vld [vmem:[#allocation23_spill] sm:$0xff] }
  0xa0   : > { %v4384_v50 = vrot.slane %v12581_v28, 5  ;;  %v4362_v37 = vrot.slane %v4361_v56, 4  ;;  %v4371_v15 = vor.u32 %v4370_v41, %v4366_v30  ;;  %v4398_v52 = vshll.u32 %v11199_v12, 16 }
  0xa1   : > { %v4394_v32 = vrot.slane %v12583_v33, 4  ;;  %12584 = vst [vmem:[#allocation34_spill] sm:$0xff] %v11235_v60  ;;  %v11240_v28 = vcombine.low %v12586_v10, %v12585_v18  ;;  %v4390_v58 = vrot.slane %v4388_v17, 5  ;;  %v12588_v56 = vshrl.u32 %v10788_v21, 16  ;;  %9024 = vmatprep.mubr.bf16.mxu0 %v11235_v60  ;;  %v11250_v33 = vld [vmem:[%s10332_s16 + $0xb0] sm:$0x1] }
  0xa2   : > { %v4385_v49 = vor.u32 %v4384_v50, %v4381_v51  ;;  %v4367_v59 = vsel %vm10366_vm2, %v4362_v37, %v4366_v30  ;;  %v4372_v42 = vrot.slane %v4371_v15, 4  ;;  %v4400_v41 = vrot.slane %v4398_v52, 5  ;;  %v12591_v15 = vld [vmem:[#allocation28_spill] sm:$0xff] }
  0xa3   : > { %12587 = vst [vmem:[#allocation35_spill] sm:$0xff] %v11240_v28  ;;  %v4405_v25 = vrot.slane %v12588_v56, 4  ;;  %v12589_v51 = vshll.u32 %v10788_v21, 16  ;;  %v4395_v18 = vor.u32 %v4394_v32, %v4390_v58  ;;  %v4412_v30 = vshll.u32 %v10791_v14, 16  ;;  %8592 = vmatprep.mubr.bf16.mxu1 %v11240_v28 }
  0xa4   : > { %v4386_v6 = vrot.slane %v4385_v49, 4  ;;  %v12590_v37 = vshrl.u32 %v10791_v14, 16  ;;  %v4422_v11 = vshll.u32 %v11227_v54, 16  ;;  %v12592_v49 = vld [vmem:[#allocation27_spill] sm:$0xff]  ;;  %v4377_v21 = vsel %vm10366_vm2, %v4372_v42, %v4376_v1  ;;  %v11275_v42 = vld [vmem:[%s10332_s16 + $0xbc] sm:$0x1] }
  0xa5   : > { %v4408_v50 = vrot.slane %v12589_v51, 5  ;;  %v11260_v52 = vcombine.low %v12592_v49, %v12591_v15  ;;  %v11267_v14 = vcombine.low %v4367_v59, %v4377_v21  ;;  %v4396_v56 = vrot.slane %v4395_v18, 4  ;;  %v12598_v18 = vld [vmem:[#allocation32_spill] sm:$0xff] }
  0xa6   : > { %v4418_v17 = vrot.slane %v12590_v37, 4  ;;  %v4391_v32 = vsel %vm10366_vm2, %v4386_v6, %v4390_v58  ;;  %v4414_v51 = vrot.slane %v4412_v30, 5  ;;  %v4424_v37 = vrot.slane %v4422_v11, 5 }
  0xa7   : > { %12593 = vst [vmem:[#allocation24_spill] sm:$0xff] %v11260_v52  ;;  %v4409_v10 = vor.u32 %v4408_v50, %v4405_v25  ;;  %12594 = vst [vmem:[#allocation23_spill] sm:$0xff] %v11267_v14  ;;  %v12595_v45 = vshrl.u32 %v10819_v55, 16  ;;  %v12596_v15 = vshll.u32 %v10819_v55, 16  ;;  %v4436_v1 = vshll.u32 %v10826_v3, 16  ;;  %9025 = vmatmul.mubr.bf16.gmra.mrb[20].mxu0 %v11267_v14  ;;  %8593 = vmatmul.mubr.bf16.gmra.mrb[20].mxu1 %v11260_v52 }
  0xa8   : > { %v4401_v58 = vsel %vm10366_vm2, %v4396_v56, %v4400_v41  ;;  %v4419_v25 = vor.u32 %v4418_v17, %v4414_v51  ;;  %v12597_v59 = vshrl.u32 %v10826_v3, 16  ;;  %v4446_v50 = vshll.u32 %v11250_v33, 16 }
  0xa9   : > { %v4410_v60 = vrot.slane %v4409_v10, 4  ;;  %v4429_v62 = vrot.slane %v12595_v45, 4  ;;  %v4432_v49 = vrot.slane %v12596_v15, 5  ;;  %v12599_v45 = vld [vmem:[#allocation31_spill] sm:$0xff]  ;;  %v11287_v55 = vcombine.low %v4391_v32, %v4401_v58 }
  0xaa   : > { %v4442_v6 = vrot.slane %v12597_v59, 4  ;;  %v11285_v30 = vcombine.low %v12599_v45, %v12598_v18  ;;  %v4438_v21 = vrot.slane %v4436_v1, 5  ;;  %v4420_v41 = vrot.slane %v4419_v25, 4 }
  0xab   : > { %12601 = vst [vmem:[#allocation27_spill] sm:$0xff] %v11287_v55  ;;  %v4433_v11 = vor.u32 %v4432_v49, %v4429_v62  ;;  %v4415_v10 = vsel %vm10366_vm2, %v4410_v60, %v4414_v51  ;;  %v4448_v17 = vrot.slane %v4446_v50, 5  ;;  %v12602_v3 = vshrl.u32 %v10850_v53, 16  ;;  %9028 = vmatprep.mubr.bf16.mxu0 %v11287_v55 }
  0xac   : > { %12600 = vst [vmem:[#allocation28_spill] sm:$0xff] %v11285_v30  ;;  %v4443_v59 = vor.u32 %v4442_v6, %v4438_v21  ;;  %v12603_v18 = vshll.u32 %v10850_v53, 16  ;;  %v4460_v32 = vshll.u32 %v10857_v27, 16  ;;  %v4425_v62 = vsel %vm10366_vm2, %v4420_v41, %v4424_v37  ;;  %v10136_v6 = vld [vmem:[%s10332_s16 + $0xc] sm:$0xf]  ;;  %8596 = vmatprep.mubr.bf16.mxu1 %v11285_v30 }
  0xad   : > { %v4453_v56 = vrot.slane %v12602_v3, 4  ;;  %v4434_v15 = vrot.slane %v4433_v11, 4  ;;  %v12604_v60 = vshrl.u32 %v10857_v27, 16  ;;  %v4470_v49 = vshll.u32 %v11275_v42, 16 }
  0xae   : > { %v4456_v45 = vrot.slane %v12603_v18, 5  ;;  %v11303_v1 = vcombine.low %v4415_v10, %v4425_v62  ;;  %v4444_v53 = vrot.slane %v4443_v59, 4  ;;  %v7703_v50 = vrot.slane %v10136_v6, 9  ;;  %v12617_v6 = vld [vmem:[#allocation37_spill] sm:$0xff] }
  0xaf   : > { %v4466_v51 = vrot.slane %v12604_v60, 4  ;;  %v4439_v58 = vsel %vm10366_vm2, %v4434_v15, %v4438_v21  ;;  %v4462_v37 = vrot.slane %v4460_v32, 5  ;;  %v4472_v11 = vrot.slane %v4470_v49, 5  ;;  %v12608_v21 = vld [vmem:[#allocation4_spill] sm:$0xff]  ;;  %v12612_v32 = vld [vmem:[#allocation3_spill] sm:$0xff]  ;;  %v12614_v49 = vld [vmem:[#allocation6_spill] sm:$0xff] }
  0xb0   : > { %12605 = vst [vmem:[#allocation32_spill] sm:$0xff] %v11303_v1  ;;  %v4457_v25 = vor.u32 %v4456_v45, %v4453_v56  ;;  %v4449_v27 = vsel %vm10366_vm2, %v4444_v53, %v4448_v17  ;;  %v1611_v10 = vrot.slane %v10900_v48, 5  ;;  %v12609_v15 = vrot.slane %v12608_v21, 5  ;;  %v12616_v48 = vld [vmem:[#allocation38_spill] sm:$0xff]  ;;  %9029 = vmatmul.mubr.bf16.gmra.mrb[24].mxu0 %v11303_v1 }
  0xb1   : > { %v11318_v59 = vcombine.low %v4439_v58, %v4449_v27  ;;  %v4467_v18 = vor.u32 %v4466_v51, %v4462_v37  ;;  %v12613_v62 = vrot.slane %v12612_v32, 9  ;;  %v4817_v60 = vrot.slane %v10871_v23, 5  ;;  %v12619_v51 = vld [vmem:[#allocation42_spill] sm:$0xff]  ;;  %v12620_v58 = vld [vmem:[#allocation41_spill] sm:$0xff] }
  0xb2   : > { %v4458_v41 = vrot.slane %v4457_v25, 4  ;;  %v4816_v56 = vrot.slane %v12609_v15, 4  ;;  %v12611_v45 = vmov %v12609_v15  ;;  %v12615_v53 = vrot.slane %v12614_v49, 5  ;;  %v12624_v49 = vld [vmem:[#allocation2_spill] sm:$0xff] }
  0xb3   : > { %12610 = vst [vmem:[#allocation31_spill] sm:$0xff] %v11318_v59  ;;  %v4815_v17 = vsel %vm11311_vm5, %v12613_v62, %v12611_v45  ;;  %v11331_v55 = vcombine.low %v12617_v6, %v12616_v48  ;;  %v11336_v27 = vcombine.low %v12620_v58, %v12619_v51  ;;  %v7430_v21 = vrot.slane %v10897_v57, 9  ;;  %9032 = vmatprep.mubr.bf16.mxu0 %v11318_v59  ;;  %v12633_v59 = vld [vmem:[#allocation55_spill] sm:$0xff] }
  0xb4   : > { %v4823_v25 = vrot.slane %v12615_v53, 4  ;;  %v4463_v23 = vsel %vm10366_vm2, %v4458_v41, %v4462_v37  ;;  %v4468_v15 = vrot.slane %v4467_v18, 4  ;;  %v4818_v45 = vsel %vm11311_vm5, %v4816_v56, %v4817_v60  ;;  %v10137_v41 = vld [vmem:[%s10320_s9 + $0x14] sm:$0x1] }
  0xb5   : > { %12618 = vst [vmem:[#allocation4_spill] sm:$0xff] %v11331_v55  ;;  %12621 = vst [vmem:[#allocation3_spill] sm:$0xff] %v11336_v27  ;;  %v12622_v32 = vmov %v12615_v53  ;;  %v1613_v53 = vrot.slane %v1611_v10, 4  ;;  %v7734_v48 = vcombine.low %v4815_v17, %v4818_v45  ;;  %v4824_v57 = vrot.slane %v10878_v29, 5  ;;  %8597 = vmatmul.mubr.bf16.gmra.mrb[24].mxu1 %v11331_v55  ;;  %v10138_v17 = vld [vmem:[%s10332_s16 + $0x1c] sm:$0xf] }
  0xb6   : > { %v4822_v62 = vsel %vm11311_vm5, %v7703_v50, %v12622_v32  ;;  %v4473_v6 = vsel %vm10366_vm2, %v4468_v15, %v4472_v11  ;;  %v1618_v37 = vrot.slane %v10935_v26, 5  ;;  %v1621_v18 = vrot.slane %v10137_v41, 5  ;;  %8600 = vmatprep.mubr.bf16.mxu1 %v11336_v27  ;;  %v12628_v41 = vld [vmem:[#allocation45_spill] sm:$0xff] }
  0xb7   : > { %v11354_v56 = vcombine.low %v4463_v23, %v4473_v6  ;;  %v4825_v60 = vsel %vm11311_vm5, %v4823_v25, %v4824_v57  ;;  %v1625_v29 = vrot.slane %v10960_v0, 5  ;;  %v4828_v11 = vrot.slane %v10138_v17, 5  ;;  %v10139_v23 = vld [vmem:[%s10332_s16 + $0x18] sm:$0xf]  ;;  %v12627_v6 = vld [vmem:[#allocation46_spill] sm:$0xff] }
  0xb8   : > { %v11359_v50 = vcombine.low %v4822_v62, %v4825_v60  ;;  %v1612_v26 = vsel %vm11311_vm5, %v7430_v21, %v1611_v10  ;;  %v12625_v51 = vrot.slane %v12624_v49, 5  ;;  %v7704_v25 = vrot.slane %v10139_v23, 9  ;;  %v12626_v62 = vld [vmem:[#allocation53_spill] sm:$0xff]  ;;  %v10140_v10 = vld [vmem:[%s10332_s16 + $0x28] sm:$0xf] }
  0xb9   : > { %12623 = vst [vmem:[#allocation6_spill] sm:$0xff] %v11354_v56  ;;  %v4831_v15 = vrot.slane %v10905_v16, 5  ;;  %v7431_v45 = vrot.slane %v10932_v40, 9  ;;  %v1620_v32 = vrot.slane %v1618_v37, 4  ;;  %v7432_v0 = vrot.slane %v12626_v62, 9  ;;  %9033 = vmatmul.mubr.bf16.gmra.mrb[28].mxu0 %v11354_v56  ;;  %v12630_v23 = vld [vmem:[#allocation57_spill] sm:$0xff] }
  0xba   : > { %v1615_v58 = vsel %vm11311_vm5, %v1613_v53, %v12625_v51  ;;  %v4830_v57 = vrot.slane %v4828_v11, 4  ;;  %v11375_v60 = vcombine.low %v12628_v41, %v12627_v6  ;;  %v4835_v21 = vrot.slane %v10140_v10, 5  ;;  %9052 = vmatprep.mubr.bf16.mxu0 %v7734_v48  ;;  %v10141_v16 = vld [vmem:[%s10320_s9 + $0x20] sm:$0x1] }
  0xbb   : > { %v7462_v53 = vcombine.low %v1612_v26, %v1615_v58  ;;  %v1627_v17 = vrot.slane %v1625_v29, 4  ;;  %v1628_v49 = vrot.slane %v10141_v16, 5  ;;  %v4829_v40 = vsel %vm11311_vm5, %v7704_v25, %v4828_v11  ;;  %v12631_v58 = vld [vmem:[#allocation56_spill] sm:$0xff]  ;;  %v10142_v11 = vld [vmem:[%s10332_s16 + $0x24] sm:$0xf] }
  0xbc   : > { %12629 = vst [vmem:[#allocation38_spill] sm:$0xff] %v11375_v60  ;;  %v4832_v51 = vsel %vm11311_vm5, %v4830_v57, %v4831_v15  ;;  %v1632_v62 = vrot.slane %v12630_v23, 5  ;;  %v1619_v6 = vsel %vm11311_vm5, %v7431_v45, %v1618_v37  ;;  %v1622_v26 = vsel %vm11311_vm5, %v1620_v32, %v1621_v18  ;;  %v12632_v57 = vld [vmem:[#allocation51_spill] sm:$0xff]  ;;  %v10143_v45 = vld [vmem:[%s10332_s16 + $0x34] sm:$0xf] }
  0xbd   : > { %v1626_v48 = vsel %vm11311_vm5, %v7432_v0, %v1625_v29  ;;  %v7433_v41 = vrot.slane %v12631_v58, 9  ;;  %8601 = vmatmul.mubr.bf16.gmra.mrb[28].mxu1 %v11375_v60  ;;  %v7705_v25 = vrot.slane %v10142_v11, 9  ;;  %v4837_v15 = vrot.slane %v4835_v21, 4  ;;  %v10026_v37 = vld [vmem:[%s12326_s5 + $0xc8] sm:$0xff]   ;;  %v10145_v23 = vld [vmem:[%s10320_s9 + $0x34] sm:$0xf] }
  0xbe   : > { %v4838_v10 = vrot.slane %v12632_v57, 5  ;;  %v4842_v18 = vrot.slane %v10143_v45, 5  ;;  %8620 = vmatprep.mubr.bf16.mxu1 %v7462_v53  ;;  %v1629_v29 = vsel %vm11311_vm5, %v1627_v17, %v1628_v49  ;;  %v11401_v32 = vcombine.low %v4829_v40, %v4832_v51  ;;  %v10144_v0 = vld [vmem:[%s10320_s9 + $0x2c] sm:$0x1]  ;;  %v10146_v57 = vld [vmem:[%s10332_s16 + $0x30] sm:$0xf] }
  0xbf   : > { %v1635_v16 = vrot.slane %v10144_v0, 5  ;;  %v1639_v58 = vrot.slane %v10145_v23, 5  ;;  %v1634_v11 = vrot.slane %v1632_v62, 4  ;;  %v7706_v38 = vrot.slane %v10146_v57, 9  ;;  %v10147_v40 = vld [vmem:[%s10320_s9 + $0x38] sm:$0x1] }
  0xc0   : > { %v4844_v56 = vrot.slane %v4842_v18, 4  ;;  %v4845_v1 = vrot.slane %v12633_v59, 5  ;;  %v11407_v14 = vcombine.low %v1619_v6, %v1622_v26  ;;  %v7434_v53 = vrot.slane %v11023_v19, 9  ;;  %v10148_v45 = vld [vmem:[%s10332_s16 + $0x40] sm:$0xf] }
  0xc1   : > { %9053 = vmatmul.mubr.bf16.vlgmr.msra.gmra.mrb[0].mxu0 %v11359_v50  ;;  %v4836_v17 = vsel %vm11311_vm5, %v7705_v25, %v4835_v21  ;;  %v4839_v49 = vsel %vm11311_vm5, %v4837_v15, %v4838_v10  ;;  %v1642_v51 = vrot.slane %v10147_v40, 5  ;;  %v4849_v0 = vrot.slane %v10148_v45, 5  ;;  %v10025_v25 = vld [vmem:[%s12325_s4 + $0xc8] sm:$0xff]  }
  0xc2   : > { %9085 = vmatpush3.bf16.msra.mxu0 %v11167_v7  ;;  %v11418_v59 = vcombine.low %v1626_v48, %v1629_v29  ;;  %9056 = vmatprep.mubr.bf16.mxu0 %v11401_v32  ;;  %v1641_v19 = vrot.slane %v1639_v58, 4  ;;  %v1646_v6 = vrot.slane %v11058_v46, 5  ;;  %v1633_v21 = vsel %vm11311_vm5, %v7433_v41, %v1632_v62  ;;  %v10028_v46 = vld [vmem:[%s12326_s5 + $0xd0] sm:$0xff]   ;;  %v10149_v41 = vld [vmem:[%s10320_s9 + $0x4c] sm:$0xf] }
  0xc3   : > { %v1636_v26 = vsel %vm11311_vm5, %v1634_v11, %v1635_v16  ;;  %9086 = vmatprep.subr.bf16.mxu0 %v10026_v37  ;;  %v4843_v7 = vsel %vm11311_vm5, %v7706_v38, %v4842_v18  ;;  %v4846_v48 = vsel %vm11311_vm5, %v4844_v56, %v4845_v1  ;;  %v11436_v15 = vcombine.low %v4836_v17, %v4839_v49  ;;  %v10150_v29 = vld [vmem:[%s10332_s16 + $0x4c] sm:$0xf]  ;;  %v10151_v1 = vld [vmem:[%s10332_s16 + $0x3c] sm:$0xf]  ;;  %v10027_v17 = vld [vmem:[%s12325_s4 + $0xd0] sm:$0xff]  }
  0xc4   : > { %v1640_v62 = vsel %vm11311_vm5, %v7434_v53, %v1639_v58  ;;  %v1653_v10 = vrot.slane %v10149_v41, 5  ;;  %v4856_v16 = vrot.slane %v10150_v29, 5  ;;  %v7435_v38 = vrot.slane %v11055_v20, 9  ;;  %v10152_v53 = vld [vmem:[%s10320_s9 + $0x44] sm:$0x1] }
  0xc5   : > { %8621 = vmatmul.mubr.bf16.vlgmr.msra.gmra.mrb[0].mxu1 %v11407_v14  ;;  %v7707_v56 = vrot.slane %v10151_v1, 9  ;;  %v4851_v18 = vrot.slane %v4849_v0, 4  ;;  %v4852_v23 = vrot.slane %v11005_v13, 5  ;;  %v1643_v58 = vsel %vm11311_vm5, %v1641_v19, %v1642_v51  ;;  %v10030_v13 = vld [vmem:[%s12326_s5 + $0xd8] sm:$0xff]   ;;  %v10154_v40 = vld [vmem:[%s10332_s16 + $0x48] sm:$0xf] }
  0xc6   : > { %8653 = vmatpush3.bf16.msra.mxu1 %v11220_v44  ;;  %8624 = vmatprep.mubr.bf16.mxu1 %v11418_v59  ;;  %v11450_v11 = vcombine.low %v4843_v7, %v4846_v48  ;;  %v1648_v57 = vrot.slane %v1646_v6, 4  ;;  %v1649_v20 = vrot.slane %v10152_v53, 5  ;;  %v10153_v44 = vld [vmem:[%s10320_s9 + $0x48] sm:$0xf]  ;;  %v7708_v51 = vrot.slane %v10154_v40, 9 }
  0xc7   : > { %8654 = vmatprep.subr.bf16.mxu1 %v10025_v25  ;;  %9087 = vmatpush3.bf16.msra.mxu0 %v10026_v37  ;;  %v7436_v49 = vrot.slane %v10153_v44, 9  ;;  %v4858_v45 = vrot.slane %v4856_v16, 4  ;;  %v4859_v19 = vrot.slane %v11034_v43, 5  ;;  %v1655_v7 = vrot.slane %v1653_v10, 4  ;;  %v10155_v48 = vld [vmem:[%s10320_s9 + $0x50] sm:$0x1] }
  0xc8   : > { %9088 = vmatprep.subr.bf16.mxu0 %v10028_v46  ;;  %v1656_v41 = vrot.slane %v10155_v48, 5  ;;  %v11463_v29 = vcombine.low %v1633_v21, %v1636_v26  ;;  %v4850_v1 = vsel %vm11311_vm5, %v7707_v56, %v4849_v0  ;;  %v4853_v37 = vsel %vm11311_vm5, %v4851_v18, %v4852_v23  ;;  %v10156_v53 = vld [vmem:[%s10332_s16 + $0x58] sm:$0xf]  ;;  %v10032_v18 = vld [vmem:[%s12326_s5 + $0xe0] sm:$0xff]   ;;  %v10158_v23 = vld [vmem:[%s10320_s9 + $0x5c] sm:$0x1] }
  0xc9   : > { %9057 = vmatmul.mubr.bf16.gmra.mrb[4].mxu0 %v11436_v15  ;;  %v4863_v44 = vrot.slane %v10156_v53, 5  ;;  %v11471_v40 = vcombine.low %v1640_v62, %v1643_v58  ;;  %v1647_v43 = vsel %vm11311_vm5, %v7435_v38, %v1646_v6  ;;  %v1660_v21 = vrot.slane %v11147_v36, 5  ;;  %v10029_v62 = vld [vmem:[%s12325_s4 + $0xd8] sm:$0xff]   ;;  %v10157_v6 = vld [vmem:[%s10332_s16 + $0x64] sm:$0xf] }
  0xca   : > { %8655 = vmatpush3.bf16.msra.mxu1 %v10025_v25  ;;  %9060 = vmatprep.mubr.bf16.mxu0 %v11450_v11  ;;  %v1650_v26 = vsel %vm11311_vm5, %v1648_v57, %v1649_v20  ;;  %v4857_v0 = vsel %vm11311_vm5, %v7708_v51, %v4856_v16  ;;  %v4860_v25 = vsel %vm11311_vm5, %v4858_v45, %v4859_v19  ;;  %v4870_v38 = vrot.slane %v10157_v6, 5  ;;  %v10159_v57 = vld [vmem:[%s10332_s16 + $0x54] sm:$0xf]  ;;  %v10160_v45 = vld [vmem:[%s10320_s9 + $0x64] sm:$0xf] }
  0xcb   : > { %8656 = vmatprep.subr.bf16.mxu1 %v10027_v17  ;;  %9089 = vmatpush3.bf16.msra.mxu0 %v10028_v46  ;;  %v11487_v36 = vcombine.low %v4850_v1, %v4853_v37  ;;  %v1654_v56 = vsel %vm11311_vm5, %v7436_v49, %v1653_v10  ;;  %v1657_v46 = vsel %vm11311_vm5, %v1655_v7, %v1656_v41  ;;  %v7437_v16 = vrot.slane %v11144_v4, 9  ;;  %v10161_v7 = vld [vmem:[%s10332_s16 + $0x60] sm:$0xf] }
  0xcc   : > { %9090 = vmatprep.subr.bf16.mxu0 %v10030_v13  ;;  %v1663_v58 = vrot.slane %v10158_v23, 5  ;;  %v7709_v20 = vrot.slane %v10159_v57, 9  ;;  %v4865_v51 = vrot.slane %v4863_v44, 4  ;;  %v4866_v10 = vrot.slane %v11065_v8, 5  ;;  %v10031_v41 = vld [vmem:[%s12325_s4 + $0xe0] sm:$0xff]  }
  0xcd   : > { %8625 = vmatmul.mubr.bf16.gmra.mrb[4].mxu1 %v11463_v29  ;;  %v11502_v49 = vcombine.low %v4857_v0, %v4860_v25  ;;  %v1662_v4 = vrot.slane %v1660_v21, 4  ;;  %v1667_v19 = vrot.slane %v10160_v45, 5  ;;  %v7710_v48 = vrot.slane %v10161_v7, 9  ;;  %v10162_v25 = vld [vmem:[%s10332_s16 + $0x70] sm:$0xf] }
  0xce   : > { %8628 = vmatprep.mubr.bf16.mxu1 %v11471_v40  ;;  %8657 = vmatpush3.bf16.msra.mxu1 %v10027_v17  ;;  %v4872_v1 = vrot.slane %v4870_v38, 4  ;;  %v4873_v8 = vrot.slane %v11097_v35, 5  ;;  %v11510_v37 = vcombine.low %v1647_v43, %v1650_v26  ;;  %v10034_v17 = vld [vmem:[%s12326_s5 + $0xe8] sm:$0xff]   ;;  %v11516_v53 = vcombine.low %v1654_v56, %v1657_v46 }
  0xcf   : > { %8658 = vmatprep.subr.bf16.mxu1 %v10029_v62  ;;  %9091 = vmatpush3.bf16.msra.mxu0 %v10030_v13  ;;  %v4864_v0 = vsel %vm11311_vm5, %v7709_v20, %v4863_v44  ;;  %v4867_v13 = vsel %vm11311_vm5, %v4865_v51, %v4866_v10  ;;  %v4877_v35 = vrot.slane %v10162_v25, 5  ;;  %v10033_v43 = vld [vmem:[%s12325_s4 + $0xe8] sm:$0xff]   ;;  %v1661_v26 = vsel %vm11311_vm5, %v7437_v16, %v1660_v21  ;;  %v10163_v44 = vld [vmem:[%s10320_s9 + $0x60] sm:$0xf]  ;;  %v10165_v21 = vld [vmem:[%s10332_s16 + $0x7c] sm:$0xf] }
  0xd0   : > { %9092 = vmatprep.subr.bf16.mxu0 %v10032_v18  ;;  %12634 = vst [vmem:[#allocation37_spill] sm:$0xff] %v11516_v53  ;;  %v1664_v6 = vsel %vm11311_vm5, %v1662_v4, %v1663_v58  ;;  %v7438_v56 = vrot.slane %v10163_v44, 9  ;;  %v10164_v46 = vld [vmem:[%s10320_s9 + $0x68] sm:$0x1]  ;;  %v1669_v57 = vrot.slane %v1667_v19, 4  ;;  %v4871_v20 = vsel %vm11311_vm5, %v7710_v48, %v4870_v38  ;;  %v10036_v4 = vld [vmem:[%s12326_s5 + $0xf0] sm:$0xff]  }
  0xd1   : > { %9061 = vmatmul.mubr.bf16.gmra.mrb[8].mxu0 %v11487_v36  ;;  %v1670_v23 = vrot.slane %v10164_v46, 5  ;;  %v4874_v51 = vsel %vm11311_vm5, %v4872_v1, %v4873_v8  ;;  %v4884_v16 = vrot.slane %v10165_v21, 5  ;;  %v11538_v10 = vcombine.low %v4864_v0, %v4867_v13  ;;  %v10167_v38 = vld [vmem:[%s10332_s16 + $0x6c] sm:$0xf]  ;;  %v10168_v48 = vld [vmem:[%s10320_s9 + $0x7c] sm:$0xf] }
  0xd2   : > { %9064 = vmatprep.mubr.bf16.mxu0 %v11502_v49  ;;  %8659 = vmatpush3.bf16.msra.mxu1 %v10029_v62  ;;  %v10166_v62 = vld [vmem:[%s10320_s9 + $0x70] sm:$0xf]  ;;  %v7711_v45 = vrot.slane %v10167_v38, 9  ;;  %v4879_v7 = vrot.slane %v4877_v35, 4  ;;  %v1681_v1 = vrot.slane %v10168_v48, 5  ;;  %v11552_v0 = vcombine.low %v1661_v26, %v1664_v6  ;;  %v10038_v21 = vld [vmem:[%s12326_s5 + $0xf8] sm:$0xff]  }
  0xd3   : > { %8660 = vmatprep.subr.bf16.mxu1 %v10031_v41  ;;  %9093 = vmatpush3.bf16.msra.mxu0 %v10032_v18  ;;  %12635 = vst [vmem:[#allocation42_spill] sm:$0xff] %v11538_v10  ;;  %v1674_v58 = vrot.slane %v10166_v62, 5  ;;  %v4880_v18 = vrot.slane %v11107_v24, 5  ;;  %v10035_v8 = vld [vmem:[%s12325_s4 + $0xf0] sm:$0xff]   ;;  %v11554_v13 = vcombine.low %v4871_v20, %v4874_v51  ;;  %v10169_v25 = vld [vmem:[%s10320_s9 + $0x6c] sm:$0xf]  ;;  %v1668_v62 = vsel %vm11311_vm5, %v7438_v56, %v1667_v19 }
  0xd4   : > { %9094 = vmatprep.subr.bf16.mxu0 %v10034_v17  ;;  %12636 = vst [vmem:[#allocation41_spill] sm:$0xff] %v11552_v0  ;;  %v7439_v44 = vrot.slane %v10169_v25, 9  ;;  %v10170_v46 = vld [vmem:[%s10332_s16 + $0x78] sm:$0xf]  ;;  %v1671_v26 = vsel %vm11311_vm5, %v1669_v57, %v1670_v23  ;;  %v4886_v6 = vrot.slane %v4884_v16, 4  ;;  %v4887_v20 = vrot.slane %v11132_v47, 5 }
  0xd5   : > { %8629 = vmatmul.mubr.bf16.gmra.mrb[8].mxu1 %v11510_v37  ;;  %12637 = vst [vmem:[#allocation2_spill] sm:$0xff] %v11554_v13  ;;  %v7712_v24 = vrot.slane %v10170_v46, 9  ;;  %v1676_v51 = vrot.slane %v1674_v58, 4  ;;  %v10172_v48 = vld [vmem:[%s10320_s9 + $0x78] sm:$0xf]  ;;  %v4878_v19 = vsel %vm11311_vm5, %v7711_v45, %v4877_v35  ;;  %v4881_v56 = vsel %vm11311_vm5, %v4879_v7, %v4880_v18 }
  0xd6   : > { %8632 = vmatprep.mubr.bf16.mxu1 %v11516_v53  ;;  %8661 = vmatpush3.bf16.msra.mxu1 %v10031_v41  ;;  %v10171_v41 = vld [vmem:[%s10320_s9 + $0x74] sm:$0x1]  ;;  %v7440_v25 = vrot.slane %v10172_v48, 9  ;;  %v10173_v46 = vld [vmem:[%s10320_s9 + $0x80] sm:$0x1]  ;;  %v1683_v47 = vrot.slane %v1681_v1, 4  ;;  %v11575_v57 = vcombine.low %v1668_v62, %v1671_v26  ;;  %v4888_v35 = vsel %vm11311_vm5, %v4886_v6, %v4887_v20 }
  0xd7   : > { %8662 = vmatprep.subr.bf16.mxu1 %v10033_v43  ;;  %9095 = vmatpush3.bf16.msra.mxu0 %v10034_v17  ;;  %v1677_v38 = vrot.slane %v10171_v41, 5  ;;  %v1684_v53 = vrot.slane %v10173_v46, 5  ;;  %v10174_v23 = vld [vmem:[%s10332_s16 + $0x88] sm:$0xf]  ;;  %v1675_v41 = vsel %vm11311_vm5, %v7439_v44, %v1674_v58  ;;  %v4885_v48 = vsel %vm11311_vm5, %v7712_v24, %v4884_v16  ;;  %v10175_v45 = vld [vmem:[%s10332_s16 + $0x94] sm:$0xf] }
  0xd8   : > { %9096 = vmatprep.subr.bf16.mxu0 %v10036_v4  ;;  %v4891_v17 = vrot.slane %v10174_v23, 5  ;;  %12638 = vst [vmem:[#allocation53_spill] sm:$0xff] %v11575_v57  ;;  %v4898_v7 = vrot.slane %v10175_v45, 5  ;;  %v10037_v18 = vld [vmem:[%s12325_s4 + $0xf8] sm:$0xff]   ;;  %v11590_v58 = vcombine.low %v4878_v19, %v4881_v56  ;;  %v1682_v16 = vsel %vm11311_vm5, %v7440_v25, %v1681_v1  ;;  %v10176_v44 = vld [vmem:[%s10320_s9 + $0x88] sm:$0xf] }
  0xd9   : > { %9065 = vmatmul.mubr.bf16.gmra.mrb[12].mxu0 %v11538_v10  ;;  %v1688_v24 = vrot.slane %v10176_v44, 5  ;;  %v1685_v62 = vsel %vm11311_vm5, %v1683_v47, %v1684_v53  ;;  %v10177_v26 = vld [vmem:[%s10332_s16 + $0x84] sm:$0xf]  ;;  %v11606_v1 = vcombine.low %v4885_v48, %v4888_v35  ;;  %v10179_v46 = vld [vmem:[%s10332_s16 + $0x90] sm:$0xf]  ;;  %v4901_v53 = vrot.slane %v11199_v12, 5 }
  0xda   : > { %9068 = vmatprep.mubr.bf16.mxu0 %v11554_v13  ;;  %8663 = vmatpush3.bf16.msra.mxu1 %v10033_v43  ;;  %v1678_v43 = vsel %vm11311_vm5, %v1676_v51, %v1677_v38  ;;  %12639 = vst [vmem:[#allocation46_spill] sm:$0xff] %v11590_v58  ;;  %v7713_v6 = vrot.slane %v10177_v26, 9  ;;  %v4893_v20 = vrot.slane %v4891_v17, 4  ;;  %v4894_v51 = vrot.slane %v11173_v63, 5  ;;  %v10178_v38 = vld [vmem:[%s10320_s9 + $0x94] sm:$0xf] }
  0xdb   : > { %8664 = vmatprep.subr.bf16.mxu1 %v10035_v8  ;;  %9097 = vmatpush3.bf16.msra.mxu0 %v10036_v4  ;;  %v11598_v4 = vld [vmem:[%s12326_s5 + $0x100] sm:$0xff]   ;;  %12640 = vst [vmem:[#allocation45_spill] sm:$0xff] %v11606_v1  ;;  %v1695_v25 = vrot.slane %v10178_v38, 5  ;;  %v7714_v19 = vrot.slane %v10179_v46, 9  ;;  %v4900_v45 = vrot.slane %v4898_v7, 4  ;;  %v11617_v47 = vcombine.low %v1675_v41, %v1678_v43 }
  0xdc   : > { %9098 = vmatprep.subr.bf16.mxu0 %v10038_v21  ;;  %v10180_v56 = vld [vmem:[%s10320_s9 + $0x84] sm:$0xf]  ;;  %v11619_v48 = vcombine.low %v1682_v16, %v1685_v62  ;;  %v10181_v35 = vld [vmem:[%s10320_s9 + $0x8c] sm:$0x1]  ;;  %v4892_v12 = vsel %vm11311_vm5, %v7713_v6, %v4891_v17  ;;  %v11629_v41 = vld [vmem:[%s10320_s9 + $0xa0] sm:$0xf] }
  0xdd   : > { %8633 = vmatmul.mubr.bf16.gmra.mrb[12].mxu1 %v11552_v0  ;;  %v7441_v23 = vrot.slane %v10180_v56, 9  ;;  %v11615_v63 = vld [vmem:[%s12325_s4 + $0x100] sm:$0xff]   ;;  %12641 = vst [vmem:[#allocation57_spill] sm:$0xff] %v11617_v47  ;;  %v1691_v44 = vrot.slane %v10181_v35, 5  ;;  %v10184_v26 = vld [vmem:[%s10320_s9 + $0x90] sm:$0xf]  ;;  %v4899_v6 = vsel %vm11311_vm5, %v7714_v19, %v4898_v7 }
  0xde   : > { %8636 = vmatprep.mubr.bf16.mxu1 %v11575_v57  ;;  %8665 = vmatpush3.bf16.msra.mxu1 %v10035_v8  ;;  %12642 = vst [vmem:[#allocation56_spill] sm:$0xff] %v11619_v48  ;;  %v1690_v8 = vrot.slane %v1688_v24, 4  ;;  %v10183_v16 = vld [vmem:[%s10332_s16 + $0xa0] sm:$0xf]  ;;  %v7442_v38 = vrot.slane %v10184_v26, 9  ;;  %v1697_v46 = vrot.slane %v1695_v25, 4 }
  0xdf   : > { %8666 = vmatprep.subr.bf16.mxu1 %v10037_v18  ;;  %9099 = vmatpush3.bf16.msra.mxu0 %v10038_v21  ;;  %v4895_v21 = vsel %vm11311_vm5, %v4893_v20, %v4894_v51  ;;  %v4905_v62 = vrot.slane %v10183_v16, 5  ;;  %v10185_v56 = vld [vmem:[%s10320_s9 + $0x98] sm:$0x1]  ;;  %v4902_v20 = vsel %vm11311_vm5, %v4900_v45, %v4901_v53  ;;  %v10186_v51 = vld [vmem:[%s10320_s9 + $0x9c] sm:$0xf]  ;;  %v1689_v26 = vsel %vm11311_vm5, %v7441_v23, %v1688_v24 }
  0xe0   : > { %9132 = vmatprep.subr.bf16.mxu0 %v11598_v4  ;;  %v1698_v17 = vrot.slane %v10185_v56, 5  ;;  %v7443_v35 = vrot.slane %v10186_v51, 9  ;;  %v10187_v16 = vld [vmem:[%s10320_s9 + $0xa4] sm:$0x1]  ;;  %v11646_v56 = vcombine.low %v4892_v12, %v4895_v21  ;;  %v10189_v7 = vld [vmem:[%s10332_s16 + $0x9c] sm:$0xf]  ;;  %v1692_v24 = vsel %vm11311_vm5, %v1690_v8, %v1691_v44 }
  0xe1   : > { %9069 = vmatmul.mubr.bf16.gmra.mrb[16].mxu0 %v11590_v58  ;;  %v1705_v43 = vrot.slane %v10187_v16, 5  ;;  %v10190_v19 = vld [vmem:[%s10320_s9 + $0xac] sm:$0xf]  ;;  %v12643_v53 = vrot.slane %v11629_v41, 5  ;;  %v4907_v16 = vrot.slane %v4905_v62, 4  ;;  %v11658_v23 = vcombine.low %v4899_v6, %v4902_v20 }
  0xe2   : > { %9072 = vmatprep.mubr.bf16.mxu0 %v11606_v1  ;;  %8667 = vmatpush3.bf16.msra.mxu1 %v10037_v18  ;;  %v10188_v1 = vld [vmem:[%s10332_s16 + $0xac] sm:$0xf]  ;;  %v7715_v18 = vrot.slane %v10189_v7, 9  ;;  %v1709_v45 = vrot.slane %v10190_v19, 5  ;;  %v10191_v58 = vld [vmem:[%s10320_s9 + $0xa8] sm:$0xf] }
  0xe3   : > { %v4912_v57 = vrot.slane %v10188_v1, 5  ;;  %8700 = vmatprep.subr.bf16.mxu1 %v11615_v63  ;;  %v1704_v51 = vrot.slane %v12643_v53, 4  ;;  %v4908_v1 = vrot.slane %v11227_v54, 5  ;;  %v7444_v13 = vrot.slane %v10191_v58, 9  ;;  %v10192_v12 = vld [vmem:[%s10320_s9 + $0xb0] sm:$0x1] }
  0xe4   : > { %v1712_v21 = vrot.slane %v10192_v12, 5  ;;  %v10193_v7 = vld [vmem:[%s10332_s16 + $0xa8] sm:$0xf]  ;;  %v1696_v53 = vsel %vm11311_vm5, %v7442_v38, %v1695_v25  ;;  %v1699_v54 = vsel %vm11311_vm5, %v1697_v46, %v1698_v17  ;;  %v4915_v58 = vrot.slane %v11250_v33, 5  ;;  %v10194_v0 = vld [vmem:[%s10320_s9 + $0xb4] sm:$0xf] }
  0xe5   : > { %8637 = vmatmul.mubr.bf16.gmra.mrb[16].mxu1 %v11617_v47  ;;  %v7716_v19 = vrot.slane %v10193_v7, 9  ;;  %v4914_v47 = vrot.slane %v4912_v57, 4  ;;  %v7445_v10 = vrot.slane %v10194_v0, 9  ;;  %v10195_v8 = vld [vmem:[%s10320_s9 + $0xb8] sm:$0xf]  ;;  %v11670_v12 = vcombine.low %v1689_v26, %v1692_v24 }
  0xe6   : > { %8640 = vmatprep.mubr.bf16.mxu1 %v11619_v48  ;;  %v1711_v48 = vrot.slane %v1709_v45, 4  ;;  %v1716_v44 = vrot.slane %v10195_v8, 5  ;;  %v10196_v6 = vld [vmem:[%s10332_s16 + $0xb8] sm:$0xf]  ;;  %v4906_v25 = vsel %vm11311_vm5, %v7715_v18, %v4905_v62  ;;  %v4909_v38 = vsel %vm11311_vm5, %v4907_v16, %v4908_v1  ;;  %v10197_v26 = vld [vmem:[%s10320_s9 + $0xbc] sm:$0x1] }
  0xe7   : > { %v4919_v20 = vrot.slane %v10196_v6, 5  ;;  %v11677_v33 = vcombine.low %v1696_v53, %v1699_v54  ;;  %v4913_v0 = vsel %vm11311_vm5, %v7716_v19, %v4912_v57  ;;  %v4916_v46 = vsel %vm11311_vm5, %v4914_v47, %v4915_v58  ;;  %v10198_v62 = vld [vmem:[%s10332_s16 + $0xb4] sm:$0xf]  ;;  %v10042_v8 = vld [vmem:[%s12326_s5 + $0x108] sm:$0xff]   ;;  %v12648_v6 = vld [vmem:[#allocation9_spill] sm:$0xff]  ;;  %s11818_s16 = scalar_lea.vmem %s12322_s1, %s7945_s30 }
  0xe8   : > { %v11684_v17 = vcombine.low %v4906_v25, %v4909_v38  ;;  %v1719_v24 = vrot.slane %v10197_v26, 5  ;;  %v7717_v18 = vrot.slane %v10198_v62, 9  ;;  %v4922_v16 = vrot.slane %v11275_v42, 5  ;;  %v12650_v25 = vld [vmem:[#allocation54_spill] sm:$0xff]  ;;  %v12651_v38 = vld [vmem:[#allocation12_spill] sm:$0xff] }
  0xe9   : > { %9073 = vmatmul.mubr.bf16.gmra.mrb[20].mxu0 %v11646_v56  ;;  %v4921_v7 = vrot.slane %v4919_v20, 4  ;;  %v12645_v1 = vrot.slane %v11629_v41, 5  ;;  %v1706_v47 = vsel %vm11311_vm5, %v1704_v51, %v1705_v43  ;;  %v11697_v19 = vcombine.low %v4913_v0, %v4916_v46  ;;  %v12652_v0 = vld [vmem:[#allocation14_spill] sm:$0xff]  ;;  %v12653_v62 = vld [vmem:[#allocation16_spill] sm:$0xff] }
  0xea   : > { %9076 = vmatprep.mubr.bf16.mxu0 %v11658_v23  ;;  %12644 = vst [vmem:[#allocation51_spill] sm:$0xff] %v11684_v17  ;;  %v1710_v53 = vsel %vm11311_vm5, %v7444_v13, %v1709_v45  ;;  %v1713_v54 = vsel %vm11311_vm5, %v1711_v48, %v1712_v21  ;;  %v1718_v41 = vrot.slane %v1716_v44, 4  ;;  %v4920_v43 = vsel %vm11311_vm5, %v7717_v18, %v4919_v20  ;;  %v12647_v21 = vld [vmem:[#allocation7_spill] sm:$0xff]  ;;  %v10044_v20 = vld [vmem:[%s12326_s5 + $0x110] sm:$0xff]   ;;  %v10048_v46 = vld [vmem:[%s12326_s5 + $0x120] sm:$0xff]  }
  0xeb   : > { %v1703_v57 = vsel %vm11311_vm5, %v7443_v35, %v12645_v1  ;;  %v11706_v42 = vcombine.low %v1710_v53, %v1713_v54  ;;  %v4923_v35 = vsel %vm11311_vm5, %v4921_v7, %v4922_v16  ;;  %v1717_v48 = vsel %vm11311_vm5, %v7445_v10, %v1716_v44  ;;  %v10041_v10 = vld [vmem:[%s12325_s4 + $0x108] sm:$0xff]   ;;  %v12649_v44 = vld [vmem:[#allocation10_spill] sm:$0xff]  ;;  %v10052_v16 = vld [vmem:[%s12326_s5 + $0x130] sm:$0xff]  }
  0xec   : > { %v11703_v58 = vcombine.low %v1703_v57, %v1706_v47  ;;  %v11714_v13 = vcombine.low %v4920_v43, %v4923_v35  ;;  %v1720_v45 = vsel %vm11311_vm5, %v1718_v41, %v1719_v24  ;;  %v10047_v26 = vld [vmem:[%s12325_s4 + $0x120] sm:$0xff]   ;;  %v10050_v24 = vld [vmem:[%s12326_s5 + $0x128] sm:$0xff]   ;;  %v12655_v1 = vld [vmem:[#allocation61_spill] sm:$0xff] }
  0xed   : > { %8641 = vmatmul.mubr.bf16.gmra.mrb[20].mxu1 %v11670_v12  ;;  %v11721_v51 = vcombine.low %v1717_v48, %v1720_v45  ;;  %v12654_v18 = vld [vmem:[#allocation18_spill] sm:$0xff]  ;;  %v10049_v7 = vld [vmem:[%s12325_s4 + $0x128] sm:$0xff]   ;;  %v10051_v57 = vld [vmem:[%s12325_s4 + $0x130] sm:$0xff]  }
  0xee   : > { %8644 = vmatprep.mubr.bf16.mxu1 %v11677_v33  ;;  %12646 = vst [vmem:[#allocation55_spill] sm:$0xff] %v11714_v13  ;;  %v10056_v47 = vld [vmem:[%s12326_s5 + $0x138] sm:$0xff]   ;;  %v12656_v53 = vld [vmem:[#allocation20_spill] sm:$0xff]  ;;  %v12657_v54 = vld [vmem:[#allocation22_spill] sm:$0xff] }
  0xef   : > { %v10054_v41 = vld [vmem:[%s12325_s4 + $0x138] sm:$0xff]   ;;  %v10058_v43 = vld [vmem:[%s12326_s5 + $0x140] sm:$0xff]  }
  0xf0   : > { %v10057_v35 = vld [vmem:[%s12325_s4 + $0x140] sm:$0xff]  }
  0xf1   : > { %9077 = vmatmul.mubr.bf16.gmra.mrb[24].mxu0 %v11684_v17  ;;  %v12658_v48 = vld [vmem:[#allocation26_spill] sm:$0xff] }
  0xf2   : > { %9080 = vmatprep.mubr.bf16.mxu0 %v11697_v19  ;;  %v12659_v45 = vld [vmem:[#allocation30_spill] sm:$0xff] }
  0xf5   : > { %8645 = vmatmul.mubr.bf16.gmra.mrb[24].mxu1 %v11703_v58 }
  0xf6   : > { %8648 = vmatprep.mubr.bf16.mxu1 %v11706_v42 }
  0xf9   : > { %9081 = vmatmul.mubr.bf16.gmra.mrb[28].mxu0 %v11714_v13 }
  0xfa   : > { %9100 = vmatprep.mubr.bf16.mxu0 %v12647_v21  ;;  %v12660_v21 = vld [vmem:[#allocation36_spill] sm:$0xff] }
  0xfd   : > { %8649 = vmatmul.mubr.bf16.gmra.mrb[28].mxu1 %v11721_v51 }
  0xfe   : > { %8668 = vmatprep.mubr.bf16.mxu1 %v10939_v2  ;;  %v10043_v2 = vld [vmem:[%s12325_s4 + $0x110] sm:$0xff]  }
 0x101   : > { %9101 = vmatmul.mubr.bf16.vlgmr.msra.gmra.mrb[0].mxu0 %v12648_v6 }
 0x102   : > { %9133 = vmatpush3.bf16.msra.mxu0 %v11598_v4  ;;  %9104 = vmatprep.mubr.bf16.mxu0 %v12649_v44  ;;  %v10046_v4 = vld [vmem:[%s12326_s5 + $0x118] sm:$0xff]  }
 0x103   : > { %9134 = vmatprep.subr.bf16.mxu0 %v10042_v8 }
 0x105   : > { %8669 = vmatmul.mubr.bf16.vlgmr.msra.gmra.mrb[0].mxu1 %v12650_v25 }
 0x106   : > { %8701 = vmatpush3.bf16.msra.mxu1 %v11615_v63  ;;  %8672 = vmatprep.mubr.bf16.mxu1 %v10994_v9  ;;  %v10045_v63 = vld [vmem:[%s12325_s4 + $0x118] sm:$0xff]  }
 0x107   : > { %8702 = vmatprep.subr.bf16.mxu1 %v10041_v10  ;;  %9135 = vmatpush3.bf16.msra.mxu0 %v10042_v8  ;;  %v12661_v8 = vld [vmem:[#allocation40_spill] sm:$0xff] }
 0x108   : > { %9136 = vmatprep.subr.bf16.mxu0 %v10044_v20 }
 0x109   : > { %9105 = vmatmul.mubr.bf16.gmra.mrb[4].mxu0 %v12651_v38 }
 0x10a   : > { %8703 = vmatpush3.bf16.msra.mxu1 %v10041_v10  ;;  %9108 = vmatprep.mubr.bf16.mxu0 %v12652_v0  ;;  %v12662_v10 = vld [vmem:[#allocation44_spill] sm:$0xff] }
 0x10b   : > { %8704 = vmatprep.subr.bf16.mxu1 %v10043_v2  ;;  %9137 = vmatpush3.bf16.msra.mxu0 %v10044_v20  ;;  %v12663_v20 = vld [vmem:[#allocation48_spill] sm:$0xff] }
 0x10c   : > { %9138 = vmatprep.subr.bf16.mxu0 %v10046_v4 }
 0x10d   : > { %8673 = vmatmul.mubr.bf16.gmra.mrb[4].mxu1 %v11027_v22 }
 0x10e   : > { %8676 = vmatprep.mubr.bf16.mxu1 %v11062_v34  ;;  %8705 = vmatpush3.bf16.msra.mxu1 %v10043_v2  ;;  %v11810_v2 = vld [vmem:[%s11805_s11] sm:$0xf] }
 0x10f   : > { %8706 = vmatprep.subr.bf16.mxu1 %v10045_v63  ;;  %9139 = vmatpush3.bf16.msra.mxu0 %v10046_v4  ;;  %v11813_v4 = vld [vmem:[%s11805_s11 + $0x4] sm:$0xf] }
 0x110   : > { %9140 = vmatprep.subr.bf16.mxu0 %v10048_v46 }
 0x111   : > { %9109 = vmatmul.mubr.bf16.gmra.mrb[8].mxu0 %v12653_v62 }
 0x112   : > { %9112 = vmatprep.mubr.bf16.mxu0 %v12654_v18  ;;  %8707 = vmatpush3.bf16.msra.mxu1 %v10045_v63  ;;  %v11823_v63 = vcombine.low %v11810_v2, %v11813_v4 }
 0x113   : > { %8708 = vmatprep.subr.bf16.mxu1 %v10047_v26  ;;  %9141 = vmatpush3.bf16.msra.mxu0 %v10048_v46  ;;  %v11827_v46 = vld [vmem:[%s11818_s16] sm:$0xf] }
 0x114   : > { %9142 = vmatprep.subr.bf16.mxu0 %v10050_v24  ;;  %12664 = vst [vmem:[#allocation7_spill] sm:$0xff] %v11823_v63 }
 0x115   : > { %8677 = vmatmul.mubr.bf16.gmra.mrb[8].mxu1 %v12655_v1 }
 0x116   : > { %8680 = vmatprep.mubr.bf16.mxu1 %v11151_v39  ;;  %8709 = vmatpush3.bf16.msra.mxu1 %v10047_v26  ;;  %v11830_v26 = vld [vmem:[%s11818_s16 + $0x4] sm:$0xf]  ;;  %v11929_v39 = vld [vmem:[%s11818_s16 + $0x8] sm:$0x1] }
 0x117   : > { %8710 = vmatprep.subr.bf16.mxu1 %v10049_v7  ;;  %9143 = vmatpush3.bf16.msra.mxu0 %v10050_v24  ;;  %v11834_v24 = vcombine.low %v11827_v46, %v11830_v26 }
 0x118   : > { %9144 = vmatprep.subr.bf16.mxu0 %v10052_v16 }
 0x119   : > { %9113 = vmatmul.mubr.bf16.gmra.mrb[12].mxu0 %v12656_v53  ;;  %12665 = vst [vmem:[#allocation9_spill] sm:$0xff] %v11834_v24 }
 0x11a   : > { %9116 = vmatprep.mubr.bf16.mxu0 %v12657_v54  ;;  %8711 = vmatpush3.bf16.msra.mxu1 %v10049_v7  ;;  %v12666_v7 = vld [vmem:[#allocation52_spill] sm:$0xff] }
 0x11b   : > { %8712 = vmatprep.subr.bf16.mxu1 %v10051_v57  ;;  %9145 = vmatpush3.bf16.msra.mxu0 %v10052_v16  ;;  %v12667_v16 = vld [vmem:[#allocation8_spill] sm:$0xff] }
 0x11c   : > { %9146 = vmatprep.subr.bf16.mxu0 %v10056_v47 }
 0x11d   : > { %8681 = vmatmul.mubr.bf16.gmra.mrb[12].mxu1 %v11183_v31 }
 0x11e   : > { %8684 = vmatprep.mubr.bf16.mxu1 %v11204_v61  ;;  %8713 = vmatpush3.bf16.msra.mxu1 %v10051_v57  ;;  %v10060_v57 = vld [vmem:[%s12326_s5 + $0x148] sm:$0xff]  }
 0x11f   : > { %8714 = vmatprep.subr.bf16.mxu1 %v10054_v41  ;;  %9147 = vmatpush3.bf16.msra.mxu0 %v10056_v47  ;;  %v12668_v47 = vld [vmem:[#allocation58_spill] sm:$0xff] }
 0x120   : > { %9180 = vmatprep.subr.bf16.mxu0 %v10058_v43 }
 0x121   : > { %9117 = vmatmul.mubr.bf16.gmra.mrb[16].mxu0 %v12658_v48  ;;  %v12688_v48 = vld [vmem:[#allocation32_spill] sm:$0xff] }
 0x122   : > { %9120 = vmatprep.mubr.bf16.mxu0 %v12659_v45  ;;  %8715 = vmatpush3.bf16.msra.mxu1 %v10054_v41  ;;  %v12669_v41 = vld [vmem:[#allocation59_spill] sm:$0xff] }
 0x123   : > { %8748 = vmatprep.subr.bf16.mxu1 %v10057_v35 }
 0x125   : > { %8685 = vmatmul.mubr.bf16.gmra.mrb[16].mxu1 %v11240_v28 }
 0x126   : > { %8688 = vmatprep.mubr.bf16.mxu1 %v11260_v52  ;;  %v12687_v52 = vld [vmem:[#allocation27_spill] sm:$0xff] }
 0x129   : > { %9121 = vmatmul.mubr.bf16.gmra.mrb[20].mxu0 %v12660_v21 }
 0x12a   : > { %9124 = vmatprep.mubr.bf16.mxu0 %v12661_v8 }
 0x12d   : > { %8689 = vmatmul.mubr.bf16.gmra.mrb[20].mxu1 %v11285_v30 }
 0x12e   : > { %8692 = vmatprep.mubr.bf16.mxu1 %v11331_v55  ;;  %v12686_v55 = vld [vmem:[#allocation39_spill] sm:$0xff] }
 0x131   : > { %9125 = vmatmul.mubr.bf16.gmra.mrb[24].mxu0 %v12662_v10 }
 0x132   : > { %9128 = vmatprep.mubr.bf16.mxu0 %v12663_v20  ;;  %v12685_v20 = vld [vmem:[#allocation33_spill] sm:$0xff] }
 0x135   : > { %8693 = vmatmul.mubr.bf16.gmra.mrb[24].mxu1 %v11336_v27  ;;  %v2317_v27 = vshll.u32 %v11830_v26, 16 }
 0x136   : > { %8696 = vmatprep.mubr.bf16.mxu1 %v11375_v60  ;;  %v10059_v60 = vld [vmem:[%s12325_s4 + $0x148] sm:$0xff]  }
 0x137   : > { %v2319_v28 = vrot.slane %v2317_v27, 5 }
 0x139   : > { %9129 = vmatmul.mubr.bf16.gmra.mrb[28].mxu0 %v11823_v63  ;;  %v12673_v63 = vld [vmem:[#allocation62_spill] sm:$0xff] }
 0x13a   : > { %9148 = vmatprep.mubr.bf16.mxu0 %v12666_v7  ;;  %v10062_v7 = vld [vmem:[%s12326_s5 + $0x150] sm:$0xff]  }
 0x13d   : > { %8697 = vmatmul.mubr.bf16.gmra.mrb[28].mxu1 %v11834_v24  ;;  %v12670_v24 = vld [vmem:[#allocation11_spill] sm:$0xff] }
 0x13e   : > { %8716 = vmatprep.mubr.bf16.mxu1 %v12667_v16  ;;  %v12671_v16 = vld [vmem:[#allocation13_spill] sm:$0xff] }
 0x141   : > { %9149 = vmatmul.mubr.bf16.vlgmr.msra.gmra.mrb[0].mxu0 %v12668_v47  ;;  %v12672_v47 = vld [vmem:[#allocation60_spill] sm:$0xff] }
 0x142   : > { %9181 = vmatpush3.bf16.msra.mxu0 %v10058_v43  ;;  %9152 = vmatprep.mubr.bf16.mxu0 %v12669_v41  ;;  %v10061_v43 = vld [vmem:[%s12325_s4 + $0x150] sm:$0xff]   ;;  %v10064_v41 = vld [vmem:[%s12326_s5 + $0x158] sm:$0xff]  }
 0x143   : > { %9182 = vmatprep.subr.bf16.mxu0 %v10060_v57 }
 0x145   : > { %8717 = vmatmul.mubr.bf16.vlgmr.msra.gmra.mrb[0].mxu1 %v12670_v24  ;;  %v12675_v24 = vld [vmem:[#allocation17_spill] sm:$0xff] }
 0x146   : > { %8749 = vmatpush3.bf16.msra.mxu1 %v10057_v35  ;;  %8720 = vmatprep.mubr.bf16.mxu1 %v12671_v16  ;;  %v10063_v35 = vld [vmem:[%s12325_s4 + $0x158] sm:$0xff]   ;;  %v12674_v16 = vld [vmem:[#allocation15_spill] sm:$0xff] }
 0x147   : > { %8750 = vmatprep.subr.bf16.mxu1 %v10059_v60  ;;  %9183 = vmatpush3.bf16.msra.mxu0 %v10060_v57  ;;  %v10066_v57 = vld [vmem:[%s12326_s5 + $0x160] sm:$0xff]  }
 0x148   : > { %9184 = vmatprep.subr.bf16.mxu0 %v10062_v7 }
 0x149   : > { %9153 = vmatmul.mubr.bf16.gmra.mrb[4].mxu0 %v12672_v47  ;;  %v2311_v47 = vshll.u32 %v11827_v46, 16 }
 0x14a   : > { %8751 = vmatpush3.bf16.msra.mxu1 %v10059_v60  ;;  %9156 = vmatprep.mubr.bf16.mxu0 %v12673_v63  ;;  %v10065_v60 = vld [vmem:[%s12325_s4 + $0x160] sm:$0xff]   ;;  %v12676_v63 = vld [vmem:[#allocation63_spill] sm:$0xff] }
 0x14b   : > { %8752 = vmatprep.subr.bf16.mxu1 %v10061_v43  ;;  %9185 = vmatpush3.bf16.msra.mxu0 %v10062_v7  ;;  %v10068_v7 = vld [vmem:[%s12326_s5 + $0x168] sm:$0xff]   ;;  %v2313_v45 = vrot.slane %v2311_v47, 5 }
 0x14c   : > { %9186 = vmatprep.subr.bf16.mxu0 %v10064_v41 }
 0x14d   : > { %8721 = vmatmul.mubr.bf16.gmra.mrb[4].mxu1 %v12674_v16  ;;  %v12678_v16 = vld [vmem:[#allocation21_spill] sm:$0xff] }
 0x14e   : > { %8724 = vmatprep.mubr.bf16.mxu1 %v12675_v24  ;;  %8753 = vmatpush3.bf16.msra.mxu1 %v10061_v43  ;;  %v10070_v43 = vld [vmem:[%s12326_s5 + $0x170] sm:$0xff]   ;;  %v12677_v24 = vld [vmem:[#allocation19_spill] sm:$0xff] }
 0x14f   : > { %8754 = vmatprep.subr.bf16.mxu1 %v10063_v35  ;;  %9187 = vmatpush3.bf16.msra.mxu0 %v10064_v41  ;;  %v10067_v41 = vld [vmem:[%s12325_s4 + $0x168] sm:$0xff]  }
 0x150   : > { %9188 = vmatprep.subr.bf16.mxu0 %v10066_v57 }
 0x151   : > { %9157 = vmatmul.mubr.bf16.gmra.mrb[8].mxu0 %v12676_v63  ;;  %v12680_v63 = vld [vmem:[#allocation69_spill] sm:$0xff] }
 0x152   : > { %9160 = vmatprep.mubr.bf16.mxu0 %v11157_v5  ;;  %8755 = vmatpush3.bf16.msra.mxu1 %v10063_v35  ;;  %v10069_v35 = vld [vmem:[%s12325_s4 + $0x170] sm:$0xff]   ;;  %v12679_v5 = vld [vmem:[#allocation67_spill] sm:$0xff] }
 0x153   : > { %8756 = vmatprep.subr.bf16.mxu1 %v10065_v60  ;;  %9189 = vmatpush3.bf16.msra.mxu0 %v10066_v57  ;;  %v10072_v57 = vld [vmem:[%s12326_s5 + $0x178] sm:$0xff]  }
 0x154   : > { %9190 = vmatprep.subr.bf16.mxu0 %v10068_v7 }
 0x155   : > { %8725 = vmatmul.mubr.bf16.gmra.mrb[8].mxu1 %v12677_v24  ;;  %v12682_v24 = vld [vmem:[#allocation29_spill] sm:$0xff] }
 0x156   : > { %8728 = vmatprep.mubr.bf16.mxu1 %v12678_v16  ;;  %8757 = vmatpush3.bf16.msra.mxu1 %v10065_v60  ;;  %v10071_v60 = vld [vmem:[%s12325_s4 + $0x178] sm:$0xff]  }
 0x157   : > { %8758 = vmatprep.subr.bf16.mxu1 %v10067_v41  ;;  %9191 = vmatpush3.bf16.msra.mxu0 %v10068_v7  ;;  %v11899_v7 = vld [vmem:[%s12326_s5 + $0x180] sm:$0xff]   ;;  %v12681_v16 = vld [vmem:[#allocation25_spill] sm:$0xff] }
 0x158   : > { %9192 = vmatprep.subr.bf16.mxu0 %v10070_v43 }
 0x159   : > { %9161 = vmatmul.mubr.bf16.gmra.mrb[12].mxu0 %v12679_v5  ;;  %v5514_v5 = vshll.u32 %v11810_v2, 16 }
 0x15a   : > { %9164 = vmatprep.mubr.bf16.mxu0 %v12680_v63  ;;  %8759 = vmatpush3.bf16.msra.mxu1 %v10067_v41  ;;  %v11906_v41 = vld [vmem:[%s12325_s4 + $0x180] sm:$0xff]   ;;  %v5511_v63 = vshrl.u32 %v11810_v2, 16 }
 0x15b   : > { %8760 = vmatprep.subr.bf16.mxu1 %v10069_v35  ;;  %9193 = vmatpush3.bf16.msra.mxu0 %v10070_v43  ;;  %v12683_v43 = vld [vmem:[#allocation34_spill] sm:$0xff] }
 0x15c   : > { %9194 = vmatprep.subr.bf16.mxu0 %v10072_v57  ;;  %v5513_v10 = vrot.slane %v5511_v63, 4  ;;  %v12689_v63 = vld [vmem:[#allocation43_spill] sm:$0xff] }
 0x15d   : > { %8729 = vmatmul.mubr.bf16.gmra.mrb[12].mxu1 %v12681_v16  ;;  %v5524_v16 = vshrl.u32 %v11813_v4, 16 }
 0x15e   : > { %8732 = vmatprep.mubr.bf16.mxu1 %v12682_v24  ;;  %8761 = vmatpush3.bf16.msra.mxu1 %v10069_v35  ;;  %v12684_v24 = vld [vmem:[#allocation23_spill] sm:$0xff]  ;;  %v5520_v35 = vshll.u32 %v11813_v4, 16 }
 0x15f   : > { %8762 = vmatprep.subr.bf16.mxu1 %v10071_v60  ;;  %9195 = vmatpush3.bf16.msra.mxu0 %v10072_v57  ;;  %v2308_v57 = vshrl.u32 %v11827_v46, 16  ;;  %v5526_v30 = vrot.slane %v5524_v16, 4 }
 0x160   : > { %9228 = vmatprep.subr.bf16.mxu0 %v11899_v7  ;;  %v5522_v8 = vrot.slane %v5520_v35, 5  ;;  %v12690_v35 = vld [vmem:[#allocation47_spill] sm:$0xff] }
 0x161   : > { %9165 = vmatmul.mubr.bf16.gmra.mrb[16].mxu0 %v12683_v43  ;;  %v2321_v43 = vshrl.u32 %v11830_v26, 16  ;;  %v2310_v21 = vrot.slane %v2308_v57, 4 }
 0x162   : > { %9168 = vmatprep.mubr.bf16.mxu0 %v12684_v24  ;;  %8763 = vmatpush3.bf16.msra.mxu1 %v10071_v60  ;;  %v5516_v24 = vrot.slane %v5514_v5, 5  ;;  %v11923_v60 = vld [vmem:[%s11805_s11 + $0x8] sm:$0x1]  ;;  %v5527_v54 = vor.u32 %v5526_v30, %v5522_v8 }
 0x163   : > { %8796 = vmatprep.subr.bf16.mxu1 %v11906_v41  ;;  %v2323_v61 = vrot.slane %v2321_v43, 4  ;;  %v5530_v31 = vshll.u32 %v11923_v60, 16  ;;  %v2314_v5 = vor.u32 %v2313_v45, %v2310_v21  ;;  %v12691_v43 = vld [vmem:[#allocation31_spill] sm:$0xff]  ;;  %v12694_v45 = vld [vmem:[#allocation49_spill] sm:$0xff] }
 0x164   : > { %v5528_v47 = vrot.slane %v5527_v54, 4 }
 0x165   : > { %8733 = vmatmul.mubr.bf16.gmra.mrb[16].mxu1 %v12685_v20  ;;  %v5517_v20 = vor.u32 %v5516_v24, %v5513_v10  ;;  %v2324_v16 = vor.u32 %v2323_v61, %v2319_v28  ;;  %v5532_v27 = vrot.slane %v5530_v31, 5  ;;  %v12692_v10 = vld [vmem:[#allocation6_spill] sm:$0xff] }
 0x166   : > { %8736 = vmatprep.mubr.bf16.mxu1 %v12686_v55  ;;  %v2327_v55 = vshll.u32 %v11929_v39, 16 }
 0x167   : > { %v5518_v57 = vrot.slane %v5517_v20, 4  ;;  %v2325_v30 = vrot.slane %v2324_v16, 4  ;;  %v5533_v61 = vsel %vm10366_vm2, %v5528_v47, %v5532_v27  ;;  %v12695_v20 = vld [vmem:[#allocation50_spill] sm:$0xff]  ;;  %v10086_v47 = vld [vmem:[%s12326_s5 + $0x1b0] sm:$0xff]   ;;  %v12697_v27 = vld [vmem:[#allocation37_spill] sm:$0xff] }
 0x168   : > { %v2329_v24 = vrot.slane %v2327_v55, 5  ;;  %v10076_v55 = vld [vmem:[%s12326_s5 + $0x188] sm:$0xff]   ;;  %v12696_v16 = vld [vmem:[#allocation42_spill] sm:$0xff] }
 0x169   : > { %9169 = vmatmul.mubr.bf16.gmra.mrb[20].mxu0 %v12687_v52  ;;  %v5523_v53 = vsel %vm10366_vm2, %v5518_v57, %v5522_v8  ;;  %v10082_v8 = vld [vmem:[%s12326_s5 + $0x1a0] sm:$0xff]   ;;  %v10083_v57 = vld [vmem:[%s12325_s4 + $0x1a8] sm:$0xff]  }
 0x16a   : > { %9172 = vmatprep.mubr.bf16.mxu0 %v12688_v48  ;;  %v2315_v48 = vrot.slane %v2314_v5, 4  ;;  %v11941_v21 = vcombine.low %v5523_v53, %v5533_v61  ;;  %v2330_v54 = vsel %vm10366_vm2, %v2325_v30, %v2329_v24  ;;  %v10080_v53 = vld [vmem:[%s12326_s5 + $0x198] sm:$0xff]   ;;  %v10085_v24 = vld [vmem:[%s12325_s4 + $0x1b0] sm:$0xff]   ;;  %v12746_v52 = vld [vmem:[#allocation51_spill] sm:$0xff] }
 0x16b   : > { %v12698_v30 = vld [vmem:[#allocation41_spill] sm:$0xff] }
 0x16c   : > { %v2320_v31 = vsel %vm10366_vm2, %v2315_v48, %v2319_v28  ;;  %v10075_v28 = vld [vmem:[%s12325_s4 + $0x188] sm:$0xff]   ;;  %v10079_v48 = vld [vmem:[%s12325_s4 + $0x198] sm:$0xff]  }
 0x16d   : > { %8737 = vmatmul.mubr.bf16.gmra.mrb[20].mxu1 %v12689_v63  ;;  %v11948_v5 = vcombine.low %v2320_v31, %v2330_v54  ;;  %v10088_v61 = vld [vmem:[%s12326_s5 + $0x1b8] sm:$0xff]   ;;  %v12699_v31 = vld [vmem:[#allocation2_spill] sm:$0xff] }
 0x16e   : > { %8740 = vmatprep.mubr.bf16.mxu1 %v12690_v35  ;;  %v12700_v54 = vld [vmem:[#allocation46_spill] sm:$0xff] }
 0x171   : > { %9173 = vmatmul.mubr.bf16.gmra.mrb[24].mxu0 %v12691_v43 }
 0x172   : > { %9176 = vmatprep.mubr.bf16.mxu0 %v12692_v10 }
 0x175   : > { %8741 = vmatmul.mubr.bf16.gmra.mrb[24].mxu1 %v12694_v45 }
 0x176   : > { %8744 = vmatprep.mubr.bf16.mxu1 %v12695_v20 }
 0x179   : > { %9177 = vmatmul.mubr.bf16.gmra.mrb[28].mxu0 %v11941_v21 }
 0x17a   : > { %9196 = vmatprep.mubr.bf16.mxu0 %v11359_v50  ;;  %v10078_v50 = vld [vmem:[%s12326_s5 + $0x190] sm:$0xff]  }
 0x17d   : > { %8745 = vmatmul.mubr.bf16.gmra.mrb[28].mxu1 %v11948_v5 }
 0x17e   : > { %8764 = vmatprep.mubr.bf16.mxu1 %v11407_v14  ;;  %v10077_v14 = vld [vmem:[%s12325_s4 + $0x190] sm:$0xff]  }
 0x181   : > { %9197 = vmatmul.mubr.bf16.vlgmr.msra.gmra.mrb[0].mxu0 %v11401_v32 }
 0x182   : > { %9229 = vmatpush3.bf16.msra.mxu0 %v11899_v7  ;;  %9200 = vmatprep.mubr.bf16.mxu0 %v11436_v15  ;;  %v10081_v7 = vld [vmem:[%s12325_s4 + $0x1a0] sm:$0xff]  }
 0x183   : > { %9230 = vmatprep.subr.bf16.mxu0 %v10076_v55 }
 0x185   : > { %8765 = vmatmul.mubr.bf16.vlgmr.msra.gmra.mrb[0].mxu1 %v11418_v59 }
 0x186   : > { %8797 = vmatpush3.bf16.msra.mxu1 %v11906_v41  ;;  %8768 = vmatprep.mubr.bf16.mxu1 %v11463_v29  ;;  %v10084_v41 = vld [vmem:[%s12326_s5 + $0x1a8] sm:$0xff]  }
 0x187   : > { %8798 = vmatprep.subr.bf16.mxu1 %v10075_v28  ;;  %9231 = vmatpush3.bf16.msra.mxu0 %v10076_v55  ;;  %v10087_v55 = vld [vmem:[%s12325_s4 + $0x1b8] sm:$0xff]  }
 0x188   : > { %9232 = vmatprep.subr.bf16.mxu0 %v10078_v50 }
 0x189   : > { %9201 = vmatmul.mubr.bf16.gmra.mrb[4].mxu0 %v11450_v11 }
 0x18a   : > { %8799 = vmatpush3.bf16.msra.mxu1 %v10075_v28  ;;  %9204 = vmatprep.mubr.bf16.mxu0 %v11487_v36  ;;  %v10090_v28 = vld [vmem:[%s12326_s5 + $0x1c0] sm:$0xff]  }
 0x18b   : > { %8800 = vmatprep.subr.bf16.mxu1 %v10077_v14  ;;  %9233 = vmatpush3.bf16.msra.mxu0 %v10078_v50  ;;  %v12701_v50 = vld [vmem:[#allocation53_spill] sm:$0xff] }
 0x18c   : > { %9234 = vmatprep.subr.bf16.mxu0 %v10080_v53 }
 0x18d   : > { %8769 = vmatmul.mubr.bf16.gmra.mrb[4].mxu1 %v11471_v40 }
 0x18e   : > { %8772 = vmatprep.mubr.bf16.mxu1 %v11510_v37  ;;  %8801 = vmatpush3.bf16.msra.mxu1 %v10077_v14  ;;  %v12702_v14 = vld [vmem:[#allocation57_spill] sm:$0xff] }
 0x18f   : > { %8802 = vmatprep.subr.bf16.mxu1 %v10079_v48  ;;  %9235 = vmatpush3.bf16.msra.mxu0 %v10080_v53  ;;  %v10089_v53 = vld [vmem:[%s12325_s4 + $0x1c0] sm:$0xff]  }
 0x190   : > { %9236 = vmatprep.subr.bf16.mxu0 %v10082_v8 }
 0x191   : > { %9205 = vmatmul.mubr.bf16.gmra.mrb[8].mxu0 %v11502_v49 }
 0x192   : > { %9208 = vmatprep.mubr.bf16.mxu0 %v12696_v16  ;;  %8803 = vmatpush3.bf16.msra.mxu1 %v10079_v48  ;;  %v12703_v48 = vld [vmem:[#allocation45_spill] sm:$0xff] }
 0x193   : > { %8804 = vmatprep.subr.bf16.mxu1 %v10081_v7  ;;  %9237 = vmatpush3.bf16.msra.mxu0 %v10082_v8  ;;  %v12704_v8 = vld [vmem:[#allocation56_spill] sm:$0xff] }
 0x194   : > { %9238 = vmatprep.subr.bf16.mxu0 %v10084_v41 }
 0x195   : > { %8773 = vmatmul.mubr.bf16.gmra.mrb[8].mxu1 %v12697_v27 }
 0x196   : > { %8776 = vmatprep.mubr.bf16.mxu1 %v12698_v30  ;;  %8805 = vmatpush3.bf16.msra.mxu1 %v10081_v7  ;;  %v5799_v7 = vrot.slane %v11813_v4, 5  ;;  %v2599_v4 = vrot.slane %v11929_v39, 5  ;;  %v10092_v39 = vld [vmem:[%s12326_s5 + $0x1c8] sm:$0xff]  }
 0x197   : > { %8806 = vmatprep.subr.bf16.mxu1 %v10083_v57  ;;  %9239 = vmatpush3.bf16.msra.mxu0 %v10084_v41  ;;  %v2596_v41 = vrot.slane %v11830_v26, 5 }
 0x198   : > { %9240 = vmatprep.subr.bf16.mxu0 %v10086_v47 }
 0x199   : > { %9209 = vmatmul.mubr.bf16.gmra.mrb[12].mxu0 %v12699_v31 }
 0x19a   : > { %9212 = vmatprep.mubr.bf16.mxu0 %v12700_v54  ;;  %8807 = vmatpush3.bf16.msra.mxu1 %v10083_v57  ;;  %v7808_v57 = vrot.slane %v11810_v2, 9 }
 0x19b   : > { %8808 = vmatprep.subr.bf16.mxu1 %v10085_v24  ;;  %9241 = vmatpush3.bf16.msra.mxu0 %v10086_v47  ;;  %v5801_v47 = vrot.slane %v5799_v7, 4 }
 0x19c   : > { %9242 = vmatprep.subr.bf16.mxu0 %v10088_v61 }
 0x19d   : > { %8777 = vmatmul.mubr.bf16.gmra.mrb[12].mxu1 %v12701_v50 }
 0x19e   : > { %8780 = vmatprep.mubr.bf16.mxu1 %v12702_v14  ;;  %8809 = vmatpush3.bf16.msra.mxu1 %v10085_v24  ;;  %v5802_v24 = vrot.slane %v11923_v60, 5 }
 0x19f   : > { %8810 = vmatprep.subr.bf16.mxu1 %v10087_v55  ;;  %9243 = vmatpush3.bf16.msra.mxu0 %v10088_v61  ;;  %v7536_v61 = vrot.slane %v11827_v46, 9 }
 0x1a0   : > { %9276 = vmatprep.subr.bf16.mxu0 %v10090_v28  ;;  %v5803_v26 = vsel %vm11311_vm5, %v5801_v47, %v5802_v24  ;;  %v10104_v47 = vld [vmem:[%s12325_s4 + $0x1f8] sm:$0xff]   ;;  %v10108_v24 = vld [vmem:[%s12326_s5 + $0x200] sm:$0xff]  }
 0x1a1   : > { %9213 = vmatmul.mubr.bf16.gmra.mrb[16].mxu0 %v12703_v48  ;;  %v2597_v46 = vsel %vm11311_vm5, %v7536_v61, %v2596_v41  ;;  %v12710_v61 = vld [vmem:[#allocation68_spill] sm:$0xff] }
 0x1a2   : > { %9216 = vmatprep.mubr.bf16.mxu0 %v11646_v56  ;;  %8811 = vmatpush3.bf16.msra.mxu1 %v10087_v55  ;;  %v2598_v55 = vrot.slane %v2596_v41, 4  ;;  %v12708_v41 = vld [vmem:[#allocation22_spill] sm:$0xff] }
 0x1a3   : > { %8844 = vmatprep.subr.bf16.mxu1 %v10089_v53 }
 0x1a4   : > { %v2600_v60 = vsel %vm11311_vm5, %v2598_v55, %v2599_v4  ;;  %v12711_v55 = vld [vmem:[#allocation35_spill] sm:$0xff]  ;;  %v10107_v4 = vld [vmem:[%s12325_s4 + $0x200] sm:$0xff]  }
 0x1a5   : > { %8781 = vmatmul.mubr.bf16.gmra.mrb[16].mxu1 %v12704_v8 }
 0x1a6   : > { %8784 = vmatprep.mubr.bf16.mxu1 %v11670_v12 }
 0x1a9   : > { %9217 = vmatmul.mubr.bf16.gmra.mrb[20].mxu0 %v11658_v23 }
 0x1aa   : > { %9220 = vmatprep.mubr.bf16.mxu0 %v11684_v17  ;;  %v5800_v17 = vsel %vm11311_vm5, %v7808_v57, %v5799_v7  ;;  %v10106_v7 = vld [vmem:[%s12326_s5 + $0x1f8] sm:$0xff]   ;;  %v12709_v57 = vld [vmem:[#allocation26_spill] sm:$0xff] }
 0x1ab   : > { %v12041_v2 = vcombine.low %v5800_v17, %v5803_v26  ;;  %v10091_v17 = vld [vmem:[%s12325_s4 + $0x1c8] sm:$0xff]   ;;  %v12712_v26 = vld [vmem:[#allocation30_spill] sm:$0xff] }
 0x1ad   : > { %8785 = vmatmul.mubr.bf16.gmra.mrb[20].mxu1 %v11677_v33 }
 0x1ae   : > { %8788 = vmatprep.mubr.bf16.mxu1 %v11703_v58 }
 0x1b1   : > { %9221 = vmatmul.mubr.bf16.gmra.mrb[24].mxu0 %v11697_v19 }
 0x1b2   : > { %9224 = vmatprep.mubr.bf16.mxu0 %v11714_v13  ;;  %v12048_v13 = vcombine.low %v2597_v46, %v2600_v60  ;;  %v12713_v46 = vld [vmem:[#allocation36_spill] sm:$0xff] }
 0x1b3   : > { %v12714_v60 = vld [vmem:[#allocation24_spill] sm:$0xff] }
 0x1b5   : > { %8789 = vmatmul.mubr.bf16.gmra.mrb[24].mxu1 %v11706_v42 }
 0x1b6   : > { %8792 = vmatprep.mubr.bf16.mxu1 %v11721_v51 }
 0x1b9   : > { %9225 = vmatmul.mubr.bf16.gmra.mrb[28].mxu0 %v12041_v2 }
 0x1ba   : > { %9244 = vmatprep.mubr.bf16.mxu0 %v12648_v6  ;;  %v10094_v6 = vld [vmem:[%s12326_s5 + $0x1d0] sm:$0xff]  }
 0x1bd   : > { %8793 = vmatmul.mubr.bf16.gmra.mrb[28].mxu1 %v12048_v13 }
 0x1be   : > { %8812 = vmatprep.mubr.bf16.mxu1 %v12650_v25  ;;  %v10096_v25 = vld [vmem:[%s12326_s5 + $0x1d8] sm:$0xff]  }
 0x1c1   : > { %9245 = vmatmul.mubr.bf16.vlgmr.msra.gmra.mrb[0].mxu0 %v12649_v44  ;;  %v10093_v44 = vld [vmem:[%s12325_s4 + $0x1d0] sm:$0xff]  }
 0x1c2   : > { %9277 = vmatpush3.bf16.msra.mxu0 %v10090_v28  ;;  %9248 = vmatprep.mubr.bf16.mxu0 %v12651_v38  ;;  %v10097_v38 = vld [vmem:[%s12325_s4 + $0x1e0] sm:$0xff]   ;;  %v12706_v28 = vld [vmem:[#allocation64_spill] sm:$0xff] }
 0x1c3   : > { %9278 = vmatprep.subr.bf16.mxu0 %v10092_v39 }
 0x1c5   : > { %8813 = vmatmul.mubr.bf16.vlgmr.msra.gmra.mrb[0].mxu1 %v10994_v9  ;;  %v10095_v9 = vld [vmem:[%s12325_s4 + $0x1d8] sm:$0xff]  }
 0x1c6   : > { %8845 = vmatpush3.bf16.msra.mxu1 %v10089_v53  ;;  %8816 = vmatprep.mubr.bf16.mxu1 %v11027_v22  ;;  %v10098_v22 = vld [vmem:[%s12326_s5 + $0x1e0] sm:$0xff]  }
 0x1c7   : > { %8846 = vmatprep.subr.bf16.mxu1 %v10091_v17  ;;  %9279 = vmatpush3.bf16.msra.mxu0 %v10092_v39  ;;  %v12707_v53 = vld [vmem:[#allocation66_spill] sm:$0xff]  ;;  %v12715_v39 = vld [vmem:[#allocation28_spill] sm:$0xff] }
 0x1c8   : > { %9280 = vmatprep.subr.bf16.mxu0 %v10094_v6 }
 0x1c9   : > { %9249 = vmatmul.mubr.bf16.gmra.mrb[4].mxu0 %v12652_v0  ;;  %v10100_v0 = vld [vmem:[%s12326_s5 + $0x1e8] sm:$0xff]  }
 0x1ca   : > { %8847 = vmatpush3.bf16.msra.mxu1 %v10091_v17  ;;  %9252 = vmatprep.mubr.bf16.mxu0 %v12653_v62  ;;  %v12705_v62 = vld [vmem:[#allocation20_spill] sm:$0xff] }
 0x1cb   : > { %8848 = vmatprep.subr.bf16.mxu1 %v10093_v44  ;;  %9281 = vmatpush3.bf16.msra.mxu0 %v10094_v6  ;;  %v12716_v17 = vld [vmem:[#allocation40_spill] sm:$0xff] }
 0x1cc   : > { %9282 = vmatprep.subr.bf16.mxu0 %v10096_v25  ;;  %v12717_v6 = vld [vmem:[#allocation44_spill] sm:$0xff] }
 0x1cd   : > { %8817 = vmatmul.mubr.bf16.gmra.mrb[4].mxu1 %v11062_v34  ;;  %v10099_v34 = vld [vmem:[%s12325_s4 + $0x1e8] sm:$0xff]  }
 0x1ce   : > { %8820 = vmatprep.mubr.bf16.mxu1 %v12655_v1  ;;  %8849 = vmatpush3.bf16.msra.mxu1 %v10093_v44  ;;  %v10102_v1 = vld [vmem:[%s12326_s5 + $0x1f0] sm:$0xff]  }
 0x1cf   : > { %8850 = vmatprep.subr.bf16.mxu1 %v10095_v9  ;;  %9283 = vmatpush3.bf16.msra.mxu0 %v10096_v25  ;;  %v12718_v44 = vld [vmem:[#allocation4_spill] sm:$0xff]  ;;  %v12719_v25 = vld [vmem:[#allocation3_spill] sm:$0xff] }
 0x1d0   : > { %9284 = vmatprep.subr.bf16.mxu0 %v10098_v22 }
 0x1d1   : > { %9253 = vmatmul.mubr.bf16.gmra.mrb[8].mxu0 %v12654_v18  ;;  %v10101_v18 = vld [vmem:[%s12325_s4 + $0x1f0] sm:$0xff]  }
 0x1d2   : > { %9256 = vmatprep.mubr.bf16.mxu0 %v12705_v62  ;;  %8851 = vmatpush3.bf16.msra.mxu1 %v10095_v9  ;;  %v12720_v9 = vld [vmem:[#allocation48_spill] sm:$0xff]  ;;  %v12722_v62 = vld [vmem:[#allocation38_spill] sm:$0xff] }
 0x1d3   : > { %8852 = vmatprep.subr.bf16.mxu1 %v10097_v38  ;;  %9285 = vmatpush3.bf16.msra.mxu0 %v10098_v22  ;;  %v12721_v22 = vld [vmem:[#allocation7_spill] sm:$0xff] }
 0x1d4   : > { %9286 = vmatprep.subr.bf16.mxu0 %v10100_v0 }
 0x1d5   : > { %8821 = vmatmul.mubr.bf16.gmra.mrb[8].mxu1 %v12706_v28  ;;  %v12139_v28 = vld [vmem:[%s11818_s16 + $0xc] sm:$0xf] }
 0x1d6   : > { %8824 = vmatprep.mubr.bf16.mxu1 %v12707_v53  ;;  %8853 = vmatpush3.bf16.msra.mxu1 %v10097_v38  ;;  %v12129_v38 = vld [vmem:[%s11805_s11 + $0xc] sm:$0xf]  ;;  %v12142_v53 = vld [vmem:[%s11818_s16 + $0x10] sm:$0xf] }
 0x1d7   : > { %8854 = vmatprep.subr.bf16.mxu1 %v10099_v34  ;;  %9287 = vmatpush3.bf16.msra.mxu0 %v10100_v0  ;;  %v12132_v0 = vld [vmem:[%s11805_s11 + $0x10] sm:$0xf] }
 0x1d8   : > { %9288 = vmatprep.subr.bf16.mxu0 %v10102_v1 }
 0x1d9   : > { %9257 = vmatmul.mubr.bf16.gmra.mrb[12].mxu0 %v12708_v41  ;;  %v12725_v41 = vld [vmem:[#allocation11_spill] sm:$0xff] }
 0x1da   : > { %9260 = vmatprep.mubr.bf16.mxu0 %v12709_v57  ;;  %8855 = vmatpush3.bf16.msra.mxu1 %v10099_v34  ;;  %v7850_v34 = vcombine.low %v12129_v38, %v12132_v0  ;;  %v10110_v57 = vld [vmem:[%s12326_s5 + $0x208] sm:$0xff]  }
 0x1db   : > { %8856 = vmatprep.subr.bf16.mxu1 %v10101_v18  ;;  %9289 = vmatpush3.bf16.msra.mxu0 %v10102_v1  ;;  %v12723_v1 = vld [vmem:[#allocation9_spill] sm:$0xff] }
 0x1dc   : > { %9290 = vmatprep.subr.bf16.mxu0 %v10106_v7 }
 0x1dd   : > { %8825 = vmatmul.mubr.bf16.gmra.mrb[12].mxu1 %v12710_v61  ;;  %v12727_v61 = vld [vmem:[#allocation60_spill] sm:$0xff] }
 0x1de   : > { %8828 = vmatprep.mubr.bf16.mxu1 %v12711_v55  ;;  %8857 = vmatpush3.bf16.msra.mxu1 %v10101_v18  ;;  %v7578_v18 = vcombine.low %v12139_v28, %v12142_v53  ;;  %v10109_v55 = vld [vmem:[%s12325_s4 + $0x208] sm:$0xff]  }
 0x1df   : > { %8858 = vmatprep.subr.bf16.mxu1 %v10104_v47  ;;  %9291 = vmatpush3.bf16.msra.mxu0 %v10106_v7  ;;  %v12724_v7 = vld [vmem:[#allocation58_spill] sm:$0xff] }
 0x1e0   : > { %9324 = vmatprep.subr.bf16.mxu0 %v10108_v24 }
 0x1e1   : > { %9261 = vmatmul.mubr.bf16.gmra.mrb[16].mxu0 %v12712_v26  ;;  %v10112_v26 = vld [vmem:[%s12326_s5 + $0x210] sm:$0xff]  }
 0x1e2   : > { %9264 = vmatprep.mubr.bf16.mxu0 %v12713_v46  ;;  %8859 = vmatpush3.bf16.msra.mxu1 %v10104_v47  ;;  %v12726_v47 = vld [vmem:[#allocation59_spill] sm:$0xff]  ;;  %v12728_v46 = vld [vmem:[#allocation13_spill] sm:$0xff] }
 0x1e3   : > { %8892 = vmatprep.subr.bf16.mxu1 %v10107_v4 }
 0x1e5   : > { %8829 = vmatmul.mubr.bf16.gmra.mrb[16].mxu1 %v12714_v60  ;;  %v12729_v60 = vld [vmem:[#allocation15_spill] sm:$0xff] }
 0x1e6   : > { %8832 = vmatprep.mubr.bf16.mxu1 %v12715_v39  ;;  %v10114_v39 = vld [vmem:[%s12326_s5 + $0x218] sm:$0xff]  }
 0x1e9   : > { %9265 = vmatmul.mubr.bf16.gmra.mrb[20].mxu0 %v12716_v17  ;;  %v12730_v17 = vld [vmem:[#allocation62_spill] sm:$0xff] }
 0x1ea   : > { %9268 = vmatprep.mubr.bf16.mxu0 %v12717_v6  ;;  %v12731_v6 = vld [vmem:[#allocation63_spill] sm:$0xff] }
 0x1ed   : > { %8833 = vmatmul.mubr.bf16.gmra.mrb[20].mxu1 %v12718_v44  ;;  %v10116_v44 = vld [vmem:[%s12326_s5 + $0x220] sm:$0xff]  }
 0x1ee   : > { %8836 = vmatprep.mubr.bf16.mxu1 %v12719_v25  ;;  %v12732_v25 = vld [vmem:[#allocation17_spill] sm:$0xff] }
 0x1f1   : > { %9269 = vmatmul.mubr.bf16.gmra.mrb[24].mxu0 %v12720_v9  ;;  %v12733_v9 = vld [vmem:[#allocation19_spill] sm:$0xff] }
 0x1f2   : > { %9272 = vmatprep.mubr.bf16.mxu0 %v12721_v22  ;;  %v10115_v22 = vld [vmem:[%s12325_s4 + $0x220] sm:$0xff]  }
 0x1f5   : > { %8837 = vmatmul.mubr.bf16.gmra.mrb[24].mxu1 %v12722_v62  ;;  %v10118_v62 = vld [vmem:[%s12326_s5 + $0x228] sm:$0xff]  }
 0x1f6   : > { %8840 = vmatprep.mubr.bf16.mxu1 %v12723_v1  ;;  %v12735_v1 = vld [vmem:[#allocation67_spill] sm:$0xff] }
 0x1f9   : > { %9273 = vmatmul.mubr.bf16.gmra.mrb[28].mxu0 %v7850_v34  ;;  %v12734_v34 = vld [vmem:[#allocation65_spill] sm:$0xff] }
 0x1fa   : > { %9292 = vmatprep.mubr.bf16.mxu0 %v12724_v7  ;;  %v10120_v7 = vld [vmem:[%s12326_s5 + $0x230] sm:$0xff]  }
 0x1fd   : > { %8841 = vmatmul.mubr.bf16.gmra.mrb[28].mxu1 %v7578_v18  ;;  %v10117_v18 = vld [vmem:[%s12325_s4 + $0x228] sm:$0xff]  }
 0x1fe   : > { %8860 = vmatprep.mubr.bf16.mxu1 %v12725_v41  ;;  %v12736_v41 = vld [vmem:[#allocation21_spill] sm:$0xff] }
 0x201   : > { %9293 = vmatmul.mubr.bf16.vlgmr.msra.gmra.mrb[0].mxu0 %v12726_v47  ;;  %v10119_v47 = vld [vmem:[%s12325_s4 + $0x230] sm:$0xff]  }
 0x202   : > { %9325 = vmatpush3.bf16.msra.mxu0 %v10108_v24  ;;  %9296 = vmatprep.mubr.bf16.mxu0 %v12727_v61  ;;  %v10111_v24 = vld [vmem:[%s12325_s4 + $0x210] sm:$0xff]   ;;  %v10122_v61 = vld [vmem:[%s12326_s5 + $0x238] sm:$0xff]  }
 0x203   : > { %9326 = vmatprep.subr.bf16.mxu0 %v10110_v57 }
 0x205   : > { %8861 = vmatmul.mubr.bf16.vlgmr.msra.gmra.mrb[0].mxu1 %v12728_v46  ;;  %v10121_v46 = vld [vmem:[%s12325_s4 + $0x238] sm:$0xff]  }
 0x206   : > { %8893 = vmatpush3.bf16.msra.mxu1 %v10107_v4  ;;  %8864 = vmatprep.mubr.bf16.mxu1 %v12729_v60  ;;  %v10113_v4 = vld [vmem:[%s12325_s4 + $0x218] sm:$0xff]  }
 0x207   : > { %8894 = vmatprep.subr.bf16.mxu1 %v10109_v55  ;;  %9327 = vmatpush3.bf16.msra.mxu0 %v10110_v57  ;;  %v12737_v57 = vld [vmem:[#allocation25_spill] sm:$0xff] }
 0x208   : > { %9328 = vmatprep.subr.bf16.mxu0 %v10112_v26  ;;  %v12740_v60 = vld [vmem:[#allocation29_spill] sm:$0xff] }
 0x209   : > { %9297 = vmatmul.mubr.bf16.gmra.mrb[4].mxu0 %v12730_v17  ;;  %v6331_v17 = vshrl.u32 %v12129_v38, 16 }
 0x20a   : > { %8895 = vmatpush3.bf16.msra.mxu1 %v10109_v55  ;;  %9300 = vmatprep.mubr.bf16.mxu0 %v12731_v6  ;;  %v12738_v55 = vld [vmem:[#allocation69_spill] sm:$0xff]  ;;  %v6334_v6 = vshll.u32 %v12129_v38, 16 }
 0x20b   : > { %8896 = vmatprep.subr.bf16.mxu1 %v10111_v24  ;;  %9329 = vmatpush3.bf16.msra.mxu0 %v10112_v26  ;;  %v12739_v26 = vld [vmem:[#allocation34_spill] sm:$0xff] }
 0x20c   : > { %9330 = vmatprep.subr.bf16.mxu0 %v10114_v39 }
 0x20d   : > { %8865 = vmatmul.mubr.bf16.gmra.mrb[4].mxu1 %v12732_v25  ;;  %v6340_v25 = vshll.u32 %v12132_v0, 16 }
 0x20e   : > { %8868 = vmatprep.mubr.bf16.mxu1 %v12733_v9  ;;  %8897 = vmatpush3.bf16.msra.mxu1 %v10111_v24  ;;  %v12741_v24 = vld [vmem:[#allocation33_spill] sm:$0xff]  ;;  %v3128_v9 = vshrl.u32 %v12139_v28, 16 }
 0x20f   : > { %8898 = vmatprep.subr.bf16.mxu1 %v10113_v4  ;;  %9331 = vmatpush3.bf16.msra.mxu0 %v10114_v39  ;;  %v12742_v39 = vld [vmem:[#allocation23_spill] sm:$0xff] }
 0x210   : > { %9332 = vmatprep.subr.bf16.mxu0 %v10116_v44 }
 0x211   : > { %9301 = vmatmul.mubr.bf16.gmra.mrb[8].mxu0 %v12734_v34  ;;  %v12744_v34 = vld [vmem:[#allocation39_spill] sm:$0xff] }
 0x212   : > { %9304 = vmatprep.mubr.bf16.mxu0 %v12735_v1  ;;  %8899 = vmatpush3.bf16.msra.mxu1 %v10113_v4  ;;  %v6344_v4 = vshrl.u32 %v12132_v0, 16  ;;  %v3137_v1 = vshll.u32 %v12142_v53, 16 }
 0x213   : > { %8900 = vmatprep.subr.bf16.mxu1 %v10115_v22  ;;  %9333 = vmatpush3.bf16.msra.mxu0 %v10116_v44  ;;  %v12743_v44 = vld [vmem:[#allocation27_spill] sm:$0xff] }
 0x214   : > { %9334 = vmatprep.subr.bf16.mxu0 %v10118_v62 }
 0x215   : > { %8869 = vmatmul.mubr.bf16.gmra.mrb[8].mxu1 %v12736_v41  ;;  %v6342_v41 = vrot.slane %v6340_v25, 5 }
 0x216   : > { %8872 = vmatprep.mubr.bf16.mxu1 %v12737_v57  ;;  %8901 = vmatpush3.bf16.msra.mxu1 %v10115_v22  ;;  %v3131_v22 = vshll.u32 %v12139_v28, 16  ;;  %v6346_v57 = vrot.slane %v6344_v4, 4 }
 0x217   : > { %8902 = vmatprep.subr.bf16.mxu1 %v10117_v18  ;;  %9335 = vmatpush3.bf16.msra.mxu0 %v10118_v62  ;;  %v3141_v62 = vshrl.u32 %v12142_v53, 16 }
 0x218   : > { %9336 = vmatprep.subr.bf16.mxu0 %v10120_v7 }
 0x219   : > { %9305 = vmatmul.mubr.bf16.gmra.mrb[12].mxu0 %v12738_v55  ;;  %v3130_v55 = vrot.slane %v3128_v9, 4 }
 0x21a   : > { %9308 = vmatprep.mubr.bf16.mxu0 %v12739_v26  ;;  %8903 = vmatpush3.bf16.msra.mxu1 %v10117_v18  ;;  %v6333_v18 = vrot.slane %v6331_v17, 4  ;;  %v3133_v26 = vrot.slane %v3131_v22, 5 }
 0x21b   : > { %8904 = vmatprep.subr.bf16.mxu1 %v10119_v47  ;;  %9337 = vmatpush3.bf16.msra.mxu0 %v10120_v7  ;;  %v6336_v7 = vrot.slane %v6334_v6, 5 }
 0x21c   : > { %9338 = vmatprep.subr.bf16.mxu0 %v10122_v61 }
 0x21d   : > { %8873 = vmatmul.mubr.bf16.gmra.mrb[12].mxu1 %v12740_v60  ;;  %v3143_v60 = vrot.slane %v3141_v62, 4 }
 0x21e   : > { %8876 = vmatprep.mubr.bf16.mxu1 %v12741_v24  ;;  %8905 = vmatpush3.bf16.msra.mxu1 %v10119_v47  ;;  %v12219_v47 = vld [vmem:[%s11805_s11 + $0x14] sm:$0x1]  ;;  %v6337_v24 = vor.u32 %v6336_v7, %v6333_v18  ;;  %s7948_s11 = sshll.u32 %s12753_s24, 7 }
 0x21f   : > { %8906 = vmatprep.subr.bf16.mxu1 %v10121_v46  ;;  %9339 = vmatpush3.bf16.msra.mxu0 %v10122_v61  ;;  %v12745_v61 = vld [vmem:[#allocation32_spill] sm:$0xff]  ;;  %s12290_s19 = scalar_lea.vmem %s12327_s6, %s7948_s11 }
 0x220   : > { %v6338_v4 = vrot.slane %v6337_v24, 4 }
 0x221   : > { %9309 = vmatmul.mubr.bf16.gmra.mrb[16].mxu0 %v12742_v39  ;;  %v6347_v39 = vor.u32 %v6346_v57, %v6342_v41 }
 0x222   : > { %9312 = vmatprep.mubr.bf16.mxu0 %v12743_v44  ;;  %8907 = vmatpush3.bf16.msra.mxu1 %v10121_v46  ;;  %v3139_v46 = vrot.slane %v3137_v1, 5  ;;  %v6350_v44 = vshll.u32 %v12219_v47, 16  ;;  %v6343_v1 = vsel %vm10366_vm2, %v6338_v4, %v6342_v41 }
 0x223   : > { %v6348_v25 = vrot.slane %v6347_v39, 4 }
 0x224   : > { %v3144_v17 = vor.u32 %v3143_v60, %v3139_v46  ;;  %v6352_v9 = vrot.slane %v6350_v44, 5 }
 0x225   : > { %8877 = vmatmul.mubr.bf16.gmra.mrb[16].mxu1 %v12744_v34  ;;  %v12225_v34 = vld [vmem:[%s11818_s16 + $0x14] sm:$0x1] }
 0x226   : > { %8880 = vmatprep.mubr.bf16.mxu1 %v12689_v63  ;;  %v3134_v63 = vor.u32 %v3133_v26, %v3130_v55  ;;  %v3147_v6 = vshll.u32 %v12225_v34, 16  ;;  %v3145_v22 = vrot.slane %v3144_v17, 4 }
 0x228   : > { %v3149_v62 = vrot.slane %v3147_v6, 5 }
 0x229   : > { %9313 = vmatmul.mubr.bf16.gmra.mrb[20].mxu0 %v12745_v61 }
 0x22a   : > { %9316 = vmatprep.mubr.bf16.mxu0 %v12691_v43  ;;  %v3135_v43 = vrot.slane %v3134_v63, 4 }
 0x22c   : > { %v3140_v18 = vsel %vm10366_vm2, %v3135_v43, %v3139_v46 }
 0x22d   : > { %8881 = vmatmul.mubr.bf16.gmra.mrb[20].mxu1 %v12690_v35  ;;  %v6353_v35 = vsel %vm10366_vm2, %v6348_v25, %v6352_v9 }
 0x22e   : > { %8884 = vmatprep.mubr.bf16.mxu1 %v12694_v45  ;;  %v7875_v45 = vcombine.low %v6343_v1, %v6353_v35 }
 0x231   : > { %9317 = vmatmul.mubr.bf16.gmra.mrb[24].mxu0 %v12692_v10  ;;  %v3150_v10 = vsel %vm10366_vm2, %v3145_v22, %v3149_v62 }
 0x232   : > { %9320 = vmatprep.mubr.bf16.mxu0 %v11941_v21  ;;  %v7603_v21 = vcombine.low %v3140_v18, %v3150_v10 }
 0x235   : > { %8885 = vmatmul.mubr.bf16.gmra.mrb[24].mxu1 %v12695_v20 }
 0x236   : > { %8888 = vmatprep.mubr.bf16.mxu1 %v11948_v5 }
 0x239   : > { %9321 = vmatmul.mubr.bf16.gmra.mrb[28].mxu0 %v7875_v45 }
 0x23a   : > { %9340 = vmatprep.mubr.bf16.mxu0 %v11401_v32  ;;  %v6619_v32 = vrot.slane %v12132_v0, 5 }
 0x23d   : > { %8889 = vmatmul.mubr.bf16.gmra.mrb[28].mxu1 %v7603_v21 }
 0x23e   : > { %8908 = vmatprep.mubr.bf16.mxu1 %v11418_v59  ;;  %v3416_v59 = vrot.slane %v12142_v53, 5 }
 0x241   : > { %9341 = vmatmul.mubr.bf16.vlgmr.msra.gmra.mrb[0].mxu0 %v11436_v15  ;;  %v7884_v15 = vrot.slane %v12129_v38, 9 }
 0x242   : > { %9344 = vmatprep.mubr.bf16.mxu0 %v11450_v11  ;;  %v6621_v11 = vrot.slane %v6619_v32, 4 }
 0x245   : > { %8909 = vmatmul.mubr.bf16.vlgmr.msra.gmra.mrb[0].mxu1 %v11463_v29  ;;  %v6622_v29 = vrot.slane %v12219_v47, 5 }
 0x246   : > { %8912 = vmatprep.mubr.bf16.mxu1 %v11471_v40  ;;  %v12747_v40 = vld [vmem:[#allocation55_spill] sm:$0xff] }
 0x249   : > { %9345 = vmatmul.mubr.bf16.gmra.mrb[4].mxu0 %v11487_v36  ;;  %v7612_v36 = vrot.slane %v12139_v28, 9 }
 0x24a   : > { %9348 = vmatprep.mubr.bf16.mxu0 %v11502_v49  ;;  %v3418_v49 = vrot.slane %v3416_v59, 4 }
 0x24d   : > { %8913 = vmatmul.mubr.bf16.gmra.mrb[4].mxu1 %v11510_v37  ;;  %v3419_v37 = vrot.slane %v12225_v34, 5 }
 0x24e   : > { %8916 = vmatprep.mubr.bf16.mxu1 %v12697_v27 }
 0x251   : > { %9349 = vmatmul.mubr.bf16.gmra.mrb[8].mxu0 %v12696_v16 }
 0x252   : > { %9352 = vmatprep.mubr.bf16.mxu0 %v12699_v31 }
 0x255   : > { %8917 = vmatmul.mubr.bf16.gmra.mrb[8].mxu1 %v12698_v30 }
 0x256   : > { %8920 = vmatprep.mubr.bf16.mxu1 %v12701_v50 }
 0x259   : > { %9353 = vmatmul.mubr.bf16.gmra.mrb[12].mxu0 %v12700_v54 }
 0x25a   : > { %9356 = vmatprep.mubr.bf16.mxu0 %v12703_v48 }
 0x25d   : > { %8921 = vmatmul.mubr.bf16.gmra.mrb[12].mxu1 %v12702_v14 }
 0x25e   : > { %8924 = vmatprep.mubr.bf16.mxu1 %v12704_v8 }
 0x261   : > { %9357 = vmatmul.mubr.bf16.gmra.mrb[16].mxu0 %v11646_v56  ;;  %v6620_v56 = vsel %vm11311_vm5, %v7884_v15, %v6619_v32 }
 0x262   : > { %9360 = vmatprep.mubr.bf16.mxu0 %v11658_v23  ;;  %v6623_v23 = vsel %vm11311_vm5, %v6621_v11, %v6622_v29 }
 0x265   : > { %8925 = vmatmul.mubr.bf16.gmra.mrb[16].mxu1 %v11670_v12  ;;  %v7901_v12 = vcombine.low %v6620_v56, %v6623_v23 }
 0x266   : > { %8928 = vmatprep.mubr.bf16.mxu1 %v11677_v33  ;;  %v3417_v33 = vsel %vm11311_vm5, %v7612_v36, %v3416_v59 }
 0x269   : > { %9361 = vmatmul.mubr.bf16.gmra.mrb[20].mxu0 %v12746_v52 }
 0x26a   : > { %9364 = vmatprep.mubr.bf16.mxu0 %v11697_v19  ;;  %v3420_v19 = vsel %vm11311_vm5, %v3418_v49, %v3419_v37 }
 0x26d   : > { %8929 = vmatmul.mubr.bf16.gmra.mrb[20].mxu1 %v11703_v58  ;;  %v7629_v58 = vcombine.low %v3417_v33, %v3420_v19 }
 0x26e   : > { %8932 = vmatprep.mubr.bf16.mxu1 %v11706_v42 }
 0x271   : > { %9365 = vmatmul.mubr.bf16.gmra.mrb[24].mxu0 %v12747_v40 }
 0x272   : > { %9368 = vmatprep.mubr.bf16.mxu0 %v12041_v2 }
 0x275   : > { %8933 = vmatmul.mubr.bf16.gmra.mrb[24].mxu1 %v11721_v51 }
 0x276   : > { %8936 = vmatprep.mubr.bf16.mxu1 %v12048_v13 }
 0x279   : > { %9369 = vmatmul.mubr.bf16.gmra.mrb[28].mxu0 %v7901_v12 }
 0x27d   : > { %8937 = vmatmul.mubr.bf16.gmra.mrb[28].mxu1 %v7629_v58 }
 0x314   : > { %v9342_v42 = vpop.f32.mrb[0].mxu0 }
 0x315   : > { %v6727_v20 = vpop.f32.mrb[1].mxu0 }
 0x316   : > { %v9343_v5 = vpop.f32.mrb[2].mxu0 }
 0x317   : > { %v6730_v16 = vpop.f32.mrb[3].mxu0 }
 0x318   : > { %v8910_v27 = vpop.f32.mrb[0].mxu1 }
 0x319   : > { %v9372_v30 = vadd.f32 %v9342_v42, %v8910_v27  ;;  %v3524_v31 = vpop.f32.mrb[1].mxu1 }
 0x31a   : > { %v9373_v51 = vadd.f32 %v6727_v20, %v3524_v31  ;;  %v8911_v54 = vpop.f32.mrb[2].mxu1 }
 0x31b   : > { %v9374_v13 = vadd.f32 %v9343_v5, %v8911_v54  ;;  %v3527_v50 = vpop.f32.mrb[3].mxu1  ;;  %v7086_v41 = vmul.f32 %v9372_v30, %v9372_v30 }
 0x31c   : > { %v9375_v3 = vadd.f32 %v6730_v16, %v3527_v50  ;;  %v9346_v14 = vpop.f32.mrb[4].mxu0  ;;  %v7084_v2 = vmul.f32 %v9373_v51, %v9373_v51 }
 0x31d   : > { %v7989_v48 = vpack.c.bf16 %v9374_v13, %v9372_v30  ;;  %v6743_v8 = vpop.f32.mrb[5].mxu0  ;;  %v7087_v46 = vmul.f32 %v9374_v13, %v9374_v13 }
 0x31e   : > { %v7984_v38 = vpack.c.bf16 %v9375_v3, %v9373_v51  ;;  %v7046_v0 = vadd.f32 %v9375_v3, %v9373_v51  ;;  %v7085_v28 = vmul.f32 %v9375_v3, %v9375_v3  ;;  %v9347_v53 = vpop.f32.mrb[6].mxu0 }
 0x31f   : > { %8061 = vst [vmem:[%s12290_s19 + $0x8] sm:$0xff] %v7989_v48   ;;  %v6746_v7 = vpop.f32.mrb[7].mxu0 }
 0x320   : > { %7985 = vst [vmem:[%s12290_s19] sm:$0xff] %v7984_v38   ;;  %v7047_v57 = vadd.f32 %v9372_v30, %v7046_v0  ;;  %v7116_v47 = vadd.f32 %v7085_v28, %v7084_v2  ;;  %v8914_v61 = vpop.f32.mrb[4].mxu1 }
 0x321   : > { %v9376_v55 = vadd.f32 %v9346_v14, %v8914_v61  ;;  %v3540_v26 = vpop.f32.mrb[5].mxu1 }
 0x322   : > { %v7117_v60 = vadd.f32 %v7116_v47, %v7086_v41  ;;  %v9377_v24 = vadd.f32 %v6743_v8, %v3540_v26  ;;  %v7048_v39 = vadd.f32 %v9374_v13, %v7047_v57  ;;  %v8915_v44 = vpop.f32.mrb[6].mxu1 }
 0x323   : > { %v9378_v34 = vadd.f32 %v9347_v53, %v8915_v44  ;;  %v3543_v63 = vpop.f32.mrb[7].mxu1  ;;  %v7090_v21 = vmul.f32 %v9376_v55, %v9376_v55 }
 0x324   : > { %v7049_v17 = vadd.f32 %v9377_v24, %v7048_v39  ;;  %v7088_v6 = vmul.f32 %v9377_v24, %v9377_v24  ;;  %v7118_v4 = vadd.f32 %v7117_v60, %v7087_v46  ;;  %v9379_v25 = vadd.f32 %v6746_v7, %v3543_v63  ;;  %v9350_v9 = vpop.f32.mrb[8].mxu0 }
 0x325   : > { %v7999_v43 = vpack.c.bf16 %v9378_v34, %v9376_v55  ;;  %v6759_v22 = vpop.f32.mrb[9].mxu0  ;;  %v7091_v29 = vmul.f32 %v9378_v34, %v9378_v34 }
 0x326   : > { %v7119_v62 = vadd.f32 %v7118_v4, %v7088_v6  ;;  %v7994_v1 = vpack.c.bf16 %v9379_v25, %v9377_v24  ;;  %v7050_v35 = vadd.f32 %v9379_v25, %v7049_v17  ;;  %v7089_v45 = vmul.f32 %v9379_v25, %v9379_v25  ;;  %v9351_v18 = vpop.f32.mrb[10].mxu0 }
 0x327   : > { %8063 = vst [vmem:[%s12290_s19 + $0x18] sm:$0xff] %v7999_v43   ;;  %v6762_v10 = vpop.f32.mrb[11].mxu0 }
 0x328   : > { %8062 = vst [vmem:[%s12290_s19 + $0x10] sm:$0xff] %v7994_v1   ;;  %v7051_v52 = vadd.f32 %v9376_v55, %v7050_v35  ;;  %v7120_v32 = vadd.f32 %v7119_v62, %v7089_v45  ;;  %v8918_v59 = vpop.f32.mrb[8].mxu1 }
 0x329   : > { %v9380_v15 = vadd.f32 %v9350_v9, %v8918_v59  ;;  %v3556_v11 = vpop.f32.mrb[9].mxu1 }
 0x32a   : > { %v7121_v40 = vadd.f32 %v7120_v32, %v7090_v21  ;;  %v9381_v36 = vadd.f32 %v6759_v22, %v3556_v11  ;;  %v7052_v49 = vadd.f32 %v9378_v34, %v7051_v52  ;;  %v8919_v37 = vpop.f32.mrb[10].mxu1 }
 0x32b   : > { %v9382_v56 = vadd.f32 %v9351_v18, %v8919_v37  ;;  %v3559_v23 = vpop.f32.mrb[11].mxu1  ;;  %v7094_v13 = vmul.f32 %v9380_v15, %v9380_v15 }
 0x32c   : > { %v7053_v12 = vadd.f32 %v9381_v36, %v7052_v49  ;;  %v7092_v33 = vmul.f32 %v9381_v36, %v9381_v36  ;;  %v7122_v19 = vadd.f32 %v7121_v40, %v7091_v29  ;;  %v9383_v58 = vadd.f32 %v6762_v10, %v3559_v23  ;;  %v9354_v42 = vpop.f32.mrb[12].mxu0 }
 0x32d   : > { %v8009_v20 = vpack.c.bf16 %v9382_v56, %v9380_v15  ;;  %v6775_v5 = vpop.f32.mrb[13].mxu0  ;;  %v7095_v2 = vmul.f32 %v9382_v56, %v9382_v56 }
 0x32e   : > { %v7123_v16 = vadd.f32 %v7122_v19, %v7092_v33  ;;  %v8004_v27 = vpack.c.bf16 %v9383_v58, %v9381_v36  ;;  %v7054_v30 = vadd.f32 %v9383_v58, %v7053_v12  ;;  %v7093_v31 = vmul.f32 %v9383_v58, %v9383_v58  ;;  %v9355_v51 = vpop.f32.mrb[14].mxu0 }
 0x32f   : > { %8065 = vst [vmem:[%s12290_s19 + $0x28] sm:$0xff] %v8009_v20   ;;  %v6778_v54 = vpop.f32.mrb[15].mxu0 }
 0x330   : > { %8064 = vst [vmem:[%s12290_s19 + $0x20] sm:$0xff] %v8004_v27   ;;  %v7055_v50 = vadd.f32 %v9380_v15, %v7054_v30  ;;  %v7124_v3 = vadd.f32 %v7123_v16, %v7093_v31  ;;  %v8922_v14 = vpop.f32.mrb[12].mxu1 }
 0x331   : > { %v9384_v48 = vadd.f32 %v9354_v42, %v8922_v14  ;;  %v3572_v8 = vpop.f32.mrb[13].mxu1 }
 0x332   : > { %v7125_v38 = vadd.f32 %v7124_v3, %v7094_v13  ;;  %v9385_v0 = vadd.f32 %v6775_v5, %v3572_v8  ;;  %v7056_v28 = vadd.f32 %v9382_v56, %v7055_v50  ;;  %v8923_v53 = vpop.f32.mrb[14].mxu1 }
 0x333   : > { %v9386_v7 = vadd.f32 %v9355_v51, %v8923_v53  ;;  %v3575_v41 = vpop.f32.mrb[15].mxu1  ;;  %v7098_v6 = vmul.f32 %v9384_v48, %v9384_v48 }
 0x334   : > { %v7057_v57 = vadd.f32 %v9385_v0, %v7056_v28  ;;  %v7096_v47 = vmul.f32 %v9385_v0, %v9385_v0  ;;  %v7126_v61 = vadd.f32 %v7125_v38, %v7095_v2  ;;  %v9387_v55 = vadd.f32 %v6778_v54, %v3575_v41  ;;  %v9358_v26 = vpop.f32.mrb[16].mxu0 }
 0x335   : > { %v8019_v46 = vpack.c.bf16 %v9386_v7, %v9384_v48  ;;  %v6791_v60 = vpop.f32.mrb[17].mxu0  ;;  %v7099_v62 = vmul.f32 %v9386_v7, %v9386_v7 }
 0x336   : > { %v7127_v24 = vadd.f32 %v7126_v61, %v7096_v47  ;;  %v8014_v39 = vpack.c.bf16 %v9387_v55, %v9385_v0  ;;  %v7058_v44 = vadd.f32 %v9387_v55, %v7057_v57  ;;  %v7097_v34 = vmul.f32 %v9387_v55, %v9387_v55  ;;  %v9359_v63 = vpop.f32.mrb[18].mxu0 }
 0x337   : > { %8067 = vst [vmem:[%s12290_s19 + $0x38] sm:$0xff] %v8019_v46   ;;  %v6794_v17 = vpop.f32.mrb[19].mxu0 }
 0x338   : > { %8066 = vst [vmem:[%s12290_s19 + $0x30] sm:$0xff] %v8014_v39   ;;  %v7059_v4 = vadd.f32 %v9384_v48, %v7058_v44  ;;  %v7128_v25 = vadd.f32 %v7127_v24, %v7097_v34  ;;  %v8926_v9 = vpop.f32.mrb[16].mxu1 }
 0x339   : > { %v9388_v43 = vadd.f32 %v9358_v26, %v8926_v9  ;;  %v3588_v22 = vpop.f32.mrb[17].mxu1 }
 0x33a   : > { %v7129_v1 = vadd.f32 %v7128_v25, %v7098_v6  ;;  %v9389_v35 = vadd.f32 %v6791_v60, %v3588_v22  ;;  %v7060_v45 = vadd.f32 %v9386_v7, %v7059_v4  ;;  %v8927_v18 = vpop.f32.mrb[18].mxu1 }
 0x33b   : > { %v9390_v10 = vadd.f32 %v9359_v63, %v8927_v18  ;;  %v3591_v21 = vpop.f32.mrb[19].mxu1  ;;  %v7102_v33 = vmul.f32 %v9388_v43, %v9388_v43 }
 0x33c   : > { %v7061_v52 = vadd.f32 %v9389_v35, %v7060_v45  ;;  %v7100_v32 = vmul.f32 %v9389_v35, %v9389_v35  ;;  %v7130_v59 = vadd.f32 %v7129_v1, %v7099_v62  ;;  %v9391_v15 = vadd.f32 %v6794_v17, %v3591_v21  ;;  %v9362_v11 = vpop.f32.mrb[20].mxu0 }
 0x33d   : > { %v8029_v29 = vpack.c.bf16 %v9390_v10, %v9388_v43  ;;  %v6807_v40 = vpop.f32.mrb[21].mxu0  ;;  %v7103_v16 = vmul.f32 %v9390_v10, %v9390_v10 }
 0x33e   : > { %v7131_v36 = vadd.f32 %v7130_v59, %v7100_v32  ;;  %v8024_v49 = vpack.c.bf16 %v9391_v15, %v9389_v35  ;;  %v7062_v37 = vadd.f32 %v9391_v15, %v7061_v52  ;;  %v7101_v56 = vmul.f32 %v9391_v15, %v9391_v15  ;;  %v9363_v23 = vpop.f32.mrb[22].mxu0 }
 0x33f   : > { %8069 = vst [vmem:[%s12290_s19 + $0x48] sm:$0xff] %v8029_v29   ;;  %v6810_v12 = vpop.f32.mrb[23].mxu0 }
 0x340   : > { %8068 = vst [vmem:[%s12290_s19 + $0x40] sm:$0xff] %v8024_v49   ;;  %v7063_v19 = vadd.f32 %v9388_v43, %v7062_v37  ;;  %v7132_v58 = vadd.f32 %v7131_v36, %v7101_v56  ;;  %v8930_v42 = vpop.f32.mrb[20].mxu1 }
 0x341   : > { %v9392_v20 = vadd.f32 %v9362_v11, %v8930_v42  ;;  %v3604_v5 = vpop.f32.mrb[21].mxu1 }
 0x342   : > { %v7133_v27 = vadd.f32 %v7132_v58, %v7102_v33  ;;  %v9393_v30 = vadd.f32 %v6807_v40, %v3604_v5  ;;  %v7064_v31 = vadd.f32 %v9390_v10, %v7063_v19  ;;  %v8931_v51 = vpop.f32.mrb[22].mxu1 }
 0x343   : > { %v9394_v54 = vadd.f32 %v9363_v23, %v8931_v51  ;;  %v3607_v13 = vpop.f32.mrb[23].mxu1  ;;  %v7106_v47 = vmul.f32 %v9392_v20, %v9392_v20 }
 0x344   : > { %v7065_v50 = vadd.f32 %v9393_v30, %v7064_v31  ;;  %v7104_v3 = vmul.f32 %v9393_v30, %v9393_v30  ;;  %v7134_v14 = vadd.f32 %v7133_v27, %v7103_v16  ;;  %v9395_v48 = vadd.f32 %v6810_v12, %v3607_v13  ;;  %v9366_v8 = vpop.f32.mrb[24].mxu0 }
 0x345   : > { %v8039_v2 = vpack.c.bf16 %v9394_v54, %v9392_v20  ;;  %v6823_v38 = vpop.f32.mrb[25].mxu0  ;;  %v7107_v24 = vmul.f32 %v9394_v54, %v9394_v54 }
 0x346   : > { %v7135_v0 = vadd.f32 %v7134_v14, %v7104_v3  ;;  %v8034_v28 = vpack.c.bf16 %v9395_v48, %v9393_v30  ;;  %v7066_v53 = vadd.f32 %v9395_v48, %v7065_v50  ;;  %v7105_v7 = vmul.f32 %v9395_v48, %v9395_v48  ;;  %v9367_v41 = vpop.f32.mrb[26].mxu0 }
 0x347   : > { %8071 = vst [vmem:[%s12290_s19 + $0x58] sm:$0xff] %v8039_v2   ;;  %v6826_v57 = vpop.f32.mrb[27].mxu0 }
 0x348   : > { %8070 = vst [vmem:[%s12290_s19 + $0x50] sm:$0xff] %v8034_v28   ;;  %v7067_v61 = vadd.f32 %v9392_v20, %v7066_v53  ;;  %v7136_v55 = vadd.f32 %v7135_v0, %v7105_v7  ;;  %v8934_v26 = vpop.f32.mrb[24].mxu1 }
 0x349   : > { %v9396_v46 = vadd.f32 %v9366_v8, %v8934_v26  ;;  %v3620_v60 = vpop.f32.mrb[25].mxu1 }
 0x34a   : > { %v7137_v39 = vadd.f32 %v7136_v55, %v7106_v47  ;;  %v9397_v44 = vadd.f32 %v6823_v38, %v3620_v60  ;;  %v7068_v34 = vadd.f32 %v9394_v54, %v7067_v61  ;;  %v8935_v63 = vpop.f32.mrb[26].mxu1 }
 0x34b   : > { %v9398_v17 = vadd.f32 %v9367_v41, %v8935_v63  ;;  %v3623_v6 = vpop.f32.mrb[27].mxu1  ;;  %v7110_v32 = vmul.f32 %v9396_v46, %v9396_v46 }
 0x34c   : > { %v7069_v4 = vadd.f32 %v9397_v44, %v7068_v34  ;;  %v7108_v25 = vmul.f32 %v9397_v44, %v9397_v44  ;;  %v7138_v9 = vadd.f32 %v7137_v39, %v7107_v24  ;;  %v9399_v43 = vadd.f32 %v6826_v57, %v3623_v6  ;;  %v9370_v22 = vpop.f32.mrb[28].mxu0 }
 0x34d   : > { %v8049_v62 = vpack.c.bf16 %v9398_v17, %v9396_v46  ;;  %v6839_v1 = vpop.f32.mrb[29].mxu0  ;;  %v7111_v36 = vmul.f32 %v9398_v17, %v9398_v17 }
 0x34e   : > { %v7139_v35 = vadd.f32 %v7138_v9, %v7108_v25  ;;  %v8044_v45 = vpack.c.bf16 %v9399_v43, %v9397_v44  ;;  %v7070_v18 = vadd.f32 %v9399_v43, %v7069_v4  ;;  %v7109_v10 = vmul.f32 %v9399_v43, %v9399_v43  ;;  %v9371_v21 = vpop.f32.mrb[30].mxu0 }
 0x34f   : > { %8073 = vst [vmem:[%s12290_s19 + $0x68] sm:$0xff] %v8049_v62   ;;  %v6842_v52 = vpop.f32.mrb[31].mxu0 }
 0x350   : > { %8072 = vst [vmem:[%s12290_s19 + $0x60] sm:$0xff] %v8044_v45   ;;  %v7071_v59 = vadd.f32 %v9396_v46, %v7070_v18  ;;  %v7140_v15 = vadd.f32 %v7139_v35, %v7109_v10  ;;  %v8938_v11 = vpop.f32.mrb[28].mxu1 }
 0x351   : > { %v9400_v29 = vadd.f32 %v9370_v22, %v8938_v11  ;;  %v3636_v40 = vpop.f32.mrb[29].mxu1 }
 0x352   : > { %v7141_v49 = vadd.f32 %v7140_v15, %v7110_v32  ;;  %v9401_v37 = vadd.f32 %v6839_v1, %v3636_v40  ;;  %v7072_v56 = vadd.f32 %v9398_v17, %v7071_v59  ;;  %v8939_v23 = vpop.f32.mrb[30].mxu1 }
 0x353   : > { %v9402_v12 = vadd.f32 %v9371_v21, %v8939_v23  ;;  %v3639_v33 = vpop.f32.mrb[31].mxu1  ;;  %v7114_v51 = vmul.f32 %v9400_v29, %v9400_v29 }
 0x354   : > { %v7073_v19 = vadd.f32 %v9401_v37, %v7072_v56  ;;  %v7112_v58 = vmul.f32 %v9401_v37, %v9401_v37  ;;  %v7142_v42 = vadd.f32 %v7141_v49, %v7111_v36  ;;  %v9403_v20 = vadd.f32 %v6842_v52, %v3639_v33 }
 0x355   : > { %v8059_v5 = vpack.c.bf16 %v9402_v12, %v9400_v29  ;;  %v7115_v50 = vmul.f32 %v9402_v12, %v9402_v12 }
 0x356   : > { %v7143_v16 = vadd.f32 %v7142_v42, %v7112_v58  ;;  %v8054_v27 = vpack.c.bf16 %v9403_v20, %v9401_v37  ;;  %v7074_v30 = vadd.f32 %v9403_v20, %v7073_v19  ;;  %v7113_v31 = vmul.f32 %v9403_v20, %v9403_v20 }
 0x357   : > { %8075 = vst [vmem:[%s12290_s19 + $0x78] sm:$0xff] %v8059_v5  }
 0x358   : > { %8074 = vst [vmem:[%s12290_s19 + $0x70] sm:$0xff] %v8054_v27   ;;  %v7075_v54 = vadd.f32 %v9400_v29, %v7074_v30  ;;  %v7144_v13 = vadd.f32 %v7143_v16, %v7113_v31 }
 0x35a   : > { %v7076_v3 = vadd.f32 %v9402_v12, %v7075_v54  ;;  %v7145_v14 = vadd.f32 %v7144_v13, %v7114_v51 }
 0x35c   : > { %v7077_v48 = vrot.slane %v7076_v3, 4  ;;  %v7146_v8 = vadd.f32 %v7145_v14, %v7115_v50 }
 0x35e   : > { %v7078_v2 = vadd.f32 %v7077_v48, %v7076_v3  ;;  %v7147_v38 = vrot.slane %v7146_v8, 4 }
 0x360   : > { %v7079_v0 = vrot.slane %v7078_v2, 2  ;;  %v7148_v28 = vadd.f32 %v7147_v38, %v7146_v8 }
 0x362   : > { %v7080_v53 = vadd.f32 %v7079_v0, %v7078_v2  ;;  %v7149_v7 = vrot.slane %v7148_v28, 2 }
 0x364   : > { %v7081_v41 = vrot.slane %v7080_v53, 1  ;;  %v7150_v57 = vadd.f32 %v7149_v7, %v7148_v28 }
 0x366   : > { %v7082_v47 = vadd.f32 %v7081_v41, %v7080_v53  ;;  %v7151_v61 = vrot.slane %v7150_v57, 1 }
 0x368   : > { %7083 = vst [vmem:[%s536_s28] sm:$0x1] %v7082_v47  ;;  %v7152_v55 = vadd.f32 %v7151_v61, %v7150_v57 }
 0x36a   : > { %7153 = vst [vmem:[%s536_s28 + $0x1] sm:$0x1] %v7152_v55 }
 0x36b PF: > { %s18_s26 = sadd.s32 1, %s10221_s26   ;;  %s12748_s24 = smov %s10217_s25 }
 0x36c   : > { %p15_p5 = scmp.ge.s32.totalorder %s18_s26, 4   ;;  %s12749_s25 = smov %s12751_s27 }
 0x36e   :  { %17 = sbr.rel (!%p15_p5) target bundleno = 2 (0x2), region = 111 }

</bundles_post_ra>
